<compile_context>
chip_gen: v7x
topology: tpu7x:2x2x1
jax: 0.10.0
libtpu: 0.0.40
codegen_flags: <defaults>
</compile_context>

<pallas_src>
import functools

import jax
import jax.numpy as jnp
from jax.experimental import pallas as pl
from jax.experimental.pallas import tpu as pltpu

CP = 128    # lane-padded channel width (one full vreg lane group)
WPAD = 8    # W halo width; = one sublane tile so every pad-scratch store is aligned


def _bn_chunk(m):
    # Largest row-chunk (multiple of 8 sublanes) that divides M; each chunk is
    # read once and both BN reductions on it come out of registers.
    for c in (128, 64, 32, 16, 8):
        if m % c == 0:
            return c
    return m


def _bottleneck_kernel(x_ref, w1_ref, g1_ref, b1_ref,
                       w2_ref, g2_ref, b2_ref,
                       w3_ref, g3_ref, b3_ref,
                       out_ref, pad_ref, *, n, h, w):
    cp = x_ref.shape[-1]
    m = n * h * w
    inv_m = 1.0 / m
    eps = 1e-5
    f32 = jnp.float32
    bf16 = jnp.bfloat16
    chunk = _bn_chunk(m)

    def batchnorm(y, g_ref, b_ref):
        # Training-mode BN (biased variance over all N*H*W rows), one-traversal
        # statistics: per-channel sum and sum-of-squares accumulated chunk-wise.
        s = jnp.zeros((1, cp), f32)
        ss = jnp.zeros((1, cp), f32)
        for c0 in range(0, m, chunk):
            blk = y[c0:c0 + chunk, :]
            s = s + jnp.sum(blk, axis=0, keepdims=True)
            ss = ss + jnp.sum(blk * blk, axis=0, keepdims=True)
        mean = s * inv_m
        var = jnp.maximum(ss * inv_m - mean * mean, 0.0)   # guard cancellation
        scale = g_ref[...] * jax.lax.rsqrt(var + eps)      # rsqrt on the EUP slot
        bias = b_ref[...] - mean * scale
        return y * scale + bias

    # --- conv1: 1x1 (Cin -> C1), BN, ReLU --- (bf16 MXU operands, f32 accumulate)
    y1 = jnp.dot(x_ref[...].astype(bf16), w1_ref[...], preferred_element_type=f32)
    h1 = jnp.maximum(batchnorm(y1, g1_ref, b1_ref), 0.0)

    # --- conv2: 3x3, stride=1, pad=1 (C1 -> C1) ---
    # bf16 zero-padded scratch. Data lives at W offsets [WPAD, WPAD+w), so the
    # interior store and both W-halo zero strips start at sublane-tile-aligned
    # offsets (0, WPAD, WPAD+w) -> unmasked stores. Only the cells the 3x3
    # windows actually read need to be zero.
    wtot = w + 2 * WPAD
    pad_ref[:, 0:1, :, :] = jnp.zeros((n, 1, wtot, cp), bf16)            # top row
    pad_ref[:, h + 1:h + 2, :, :] = jnp.zeros((n, 1, wtot, cp), bf16)    # bottom row
    pad_ref[:, 1:h + 1, 0:WPAD, :] = jnp.zeros((n, h, WPAD, cp), bf16)   # left strip
    pad_ref[:, 1:h + 1, WPAD + w:WPAD + w + WPAD, :] = jnp.zeros((n, h, WPAD, cp), bf16)
    pad_ref[:, 1:h + 1, WPAD:WPAD + w, :] = h1.astype(bf16).reshape(n, h, w, cp)

    # 9 accumulating (M,CP)x(CP,CP) matmuls straight off the shifted windows —
    # no im2col scratch, no second pass over the activation. The MXU has plenty
    # of slack at these sizes, so the extra matmuls are free; the strided
    # window read now feeds the MXU instead of a copy pass.
    acc2 = jnp.zeros((m, cp), f32)
    for t in range(9):
        dy, dx = divmod(t, 3)
        off = WPAD - 1 + dx
        win = pad_ref[:, dy:dy + h, off:off + w, :].reshape(m, cp)   # bf16
        acc2 = acc2 + jnp.dot(win, w2_ref[t], preferred_element_type=f32)
    h2 = jnp.maximum(batchnorm(acc2, g2_ref, b2_ref), 0.0)

    # --- conv3: 1x1 (C1 -> Cout = 4*C1), BN ---
    y3 = jnp.dot(h2.astype(bf16), w3_ref[...], preferred_element_type=f32)
    h3 = batchnorm(y3, g3_ref, b3_ref)

    # --- identity residual add (f32) + ReLU; lane-dense (M, 128) unmasked store ---
    out_ref[...] = jnp.maximum(h3 + x_ref[...], 0.0)


def init_params(key, inch, ouch):
    expansion = 4
    cout = expansion * ouch
    k1, k2, k3 = jax.random.split(key, 3)
    # Logical (PyTorch-equivalent) f32 parameters; conv weights stored matmul-ready:
    # w1: (Cin, C1), w2: (kh, kw, C1, C1), w3: (C1, Cout).
    # NOTE: PyTorch stores conv weights as (Cout, Cin, kh, kw); loading a real
    # checkpoint requires an explicit transpose to this layout.
    w1 = jax.random.normal(k1, (inch, ouch), jnp.float32) / jnp.sqrt(float(inch))
    w2 = jax.random.normal(k2, (3, 3, ouch, ouch), jnp.float32) / jnp.sqrt(9.0 * ouch)
    w3 = jax.random.normal(k3, (ouch, cout), jnp.float32) / jnp.sqrt(float(ouch))
    # BatchNorm affine params at PyTorch defaults.
    g1 = jnp.ones((1, ouch), jnp.float32)
    b1 = jnp.zeros((1, ouch), jnp.float32)
    g2 = jnp.ones((1, ouch), jnp.float32)
    b2 = jnp.zeros((1, ouch), jnp.float32)
    g3 = jnp.ones((1, cout), jnp.float32)
    b3 = jnp.zeros((1, cout), jnp.float32)
    return (w1, g1, b1, w2, g2, b2, w3, g3, b3)


@jax.jit
def residual_block(x_nchw, params):
    """ResidualBlock forward. x_nchw: (N, Cin, H, W) float32. Returns NCHW."""
    w1, g1, b1, w2, g2, b2, w3, g3, b3 = params
    N, Cin, H, W = x_nchw.shape
    C1 = w1.shape[1]
    Cout = w3.shape[1]
    assert Cin == Cout, "identity shortcut requires inch == 4 * ouch"
    M = N * H * W

    # NCHW -> NHWC -> zero-pad channels to 128 lanes -> lane-dense (M, 128) slab.
    # x stays f32 so the residual add keeps the module's f32 numerics.
    x = jnp.transpose(x_nchw, (0, 2, 3, 1))
    xp = jnp.pad(x, ((0, 0), (0, 0), (0, 0), (0, CP - Cin))).reshape(M, CP)

    # Matmul-ready, lane-padded, bf16 weights built host-side. Padded rows/cols
    # (and padded gamma/beta lanes) are zero, so padded channels stay exactly
    # zero through every conv/BN/ReLU and the real channels match the unpadded
    # computation.
    w1p = jnp.pad(w1, ((0, CP - Cin), (0, CP - C1))).astype(jnp.bfloat16)
    w2p = jnp.pad(w2, ((0, 0), (0, 0), (0, CP - C1), (0, CP - C1))
                  ).reshape(9, CP, CP).astype(jnp.bfloat16)
    w3p = jnp.pad(w3, ((0, CP - C1), (0, CP - Cout))).astype(jnp.bfloat16)
    g1p = jnp.pad(g1, ((0, 0), (0, CP - C1)))
    b1p = jnp.pad(b1, ((0, 0), (0, CP - C1)))
    g2p = jnp.pad(g2, ((0, 0), (0, CP - C1)))
    b2p = jnp.pad(b2, ((0, 0), (0, CP - C1)))
    g3p = jnp.pad(g3, ((0, 0), (0, CP - Cout)))
    b3p = jnp.pad(b3, ((0, 0), (0, CP - Cout)))

    vmem = pl.BlockSpec(memory_space=pltpu.MemorySpace.VMEM)
    kernel = functools.partial(_bottleneck_kernel, n=N, h=H, w=W)
    out = pl.pallas_call(
        kernel,
        out_shape=jax.ShapeDtypeStruct((M, CP), jnp.float32),
        in_specs=[vmem] * 10,
        out_specs=vmem,
        scratch_shapes=[
            # bf16 zero-padded h1 with an 8-wide (tile-aligned) W halo.
            pltpu.VMEM((N, H + 2, W + 2 * WPAD, CP), jnp.bfloat16),
        ],
        compiler_params=pltpu.CompilerParams(vmem_limit_bytes=32 * 1024 * 1024),
    )(xp, w1p, g1p, b1p, w2p, g2p, b2p, w3p, g3p, b3p)

    # Drop channel padding, return NCHW.
    out = out.reshape(N, H, W, CP)[:, :, :, :Cout]
    return jnp.transpose(out, (0, 3, 1, 2))


if __name__ == "__main__":
    # ResidualBlock(inch=32, ouch=8, stride=1, shortcut=None) -> out channels 32
    N, inch, H, W = 2, 32, 16, 16
    ouch = 8

    key = jax.random.PRNGKey(0)
    kx, kp = jax.random.split(key)
    x = jax.random.normal(kx, (N, inch, H, W), jnp.float32)
    params = init_params(kp, inch, ouch)

    y = residual_block(x, params)
    y = jax.block_until_ready(y)

    assert y.shape == (N, 4 * ouch, H, W)
    assert bool(jnp.all(jnp.isfinite(y)))
    assert bool(jnp.all(y >= 0.0))  # final ReLU
    print("KERNEL_OK")
</pallas_src>

<mosaic_0001>
module attributes {stable_mosaic.version = 11 : i64} {
  func.func @_bottleneck_kernel(%arg0: memref<512x128xf32, #tpu.memory_space<vmem>>, %arg1: memref<128x128xbf16, #tpu.memory_space<vmem>>, %arg2: memref<1x128xf32, #tpu.memory_space<vmem>>, %arg3: memref<1x128xf32, #tpu.memory_space<vmem>>, %arg4: memref<9x128x128xbf16, #tpu.memory_space<vmem>>, %arg5: memref<1x128xf32, #tpu.memory_space<vmem>>, %arg6: memref<1x128xf32, #tpu.memory_space<vmem>>, %arg7: memref<128x128xbf16, #tpu.memory_space<vmem>>, %arg8: memref<1x128xf32, #tpu.memory_space<vmem>>, %arg9: memref<1x128xf32, #tpu.memory_space<vmem>>, %arg10: memref<512x128xf32, #tpu.memory_space<vmem>>, %arg11: memref<2x18x32x128xbf16, #tpu.memory_space<vmem>>) attributes {dimension_semantics = [], scalar_prefetch = 0 : i64, scratch_operands = 1 : i64, tpu.core_type = #tpu.core_type<tc>} {
    %c0 = arith.constant 0 : index
    %c0_0 = arith.constant 0 : index
    %0 = vector.load %arg0[%c0, %c0_0] : memref<512x128xf32, #tpu.memory_space<vmem>>, vector<512x128xf32>
    %1 = arith.truncf %0 : vector<512x128xf32> to vector<512x128xbf16>
    %c0_1 = arith.constant 0 : index
    %c0_2 = arith.constant 0 : index
    %2 = vector.load %arg1[%c0_1, %c0_2] : memref<128x128xbf16, #tpu.memory_space<vmem>>, vector<128x128xbf16>
    %cst = arith.constant dense<0.000000e+00> : vector<512x128xf32>
    %3 = tpu.matmul %1, %2, %cst {dimension_numbers = #tpu.dot_dimension_numbers<[1], [0], [0], [1], [0, 0, 1, 1], [], []>} : vector<512x128xbf16>, vector<128x128xbf16>, vector<512x128xf32> -> vector<512x128xf32>
    %cst_3 = arith.constant 0.000000e+00 : f32
    %4 = vector.broadcast %cst_3 : f32 to vector<1x128xf32>
    %cst_4 = arith.constant 0.000000e+00 : f32
    %5 = vector.broadcast %cst_4 : f32 to vector<1x128xf32>
    %6 = vector.extract_strided_slice %3 {offsets = [0, 0], sizes = [128, 128], strides = [1, 1]} : vector<512x128xf32> to vector<128x128xf32>
    %cst_5 = arith.constant dense<0.000000e+00> : vector<128xf32>
    %7 = vector.multi_reduction <add>, %6, %cst_5 [0] : vector<128x128xf32> to vector<128xf32>
    %8 = vector.shape_cast %7 : vector<128xf32> to vector<1x128xf32>
    %9 = arith.addf %4, %8 : vector<1x128xf32>
    %10 = arith.mulf %6, %6 : vector<128x128xf32>
    %cst_6 = arith.constant dense<0.000000e+00> : vector<128xf32>
    %11 = vector.multi_reduction <add>, %10, %cst_6 [0] : vector<128x128xf32> to vector<128xf32>
    %12 = vector.shape_cast %11 : vector<128xf32> to vector<1x128xf32>
    %13 = arith.addf %5, %12 : vector<1x128xf32>
    %14 = vector.extract_strided_slice %3 {offsets = [128, 0], sizes = [128, 128], strides = [1, 1]} : vector<512x128xf32> to vector<128x128xf32>
    %cst_7 = arith.constant dense<0.000000e+00> : vector<128xf32>
    %15 = vector.multi_reduction <add>, %14, %cst_7 [0] : vector<128x128xf32> to vector<128xf32>
    %16 = vector.shape_cast %15 : vector<128xf32> to vector<1x128xf32>
    %17 = arith.addf %9, %16 : vector<1x128xf32>
    %18 = arith.mulf %14, %14 : vector<128x128xf32>
    %cst_8 = arith.constant dense<0.000000e+00> : vector<128xf32>
    %19 = vector.multi_reduction <add>, %18, %cst_8 [0] : vector<128x128xf32> to vector<128xf32>
    %20 = vector.shape_cast %19 : vector<128xf32> to vector<1x128xf32>
    %21 = arith.addf %13, %20 : vector<1x128xf32>
    %22 = vector.extract_strided_slice %3 {offsets = [256, 0], sizes = [128, 128], strides = [1, 1]} : vector<512x128xf32> to vector<128x128xf32>
    %cst_9 = arith.constant dense<0.000000e+00> : vector<128xf32>
    %23 = vector.multi_reduction <add>, %22, %cst_9 [0] : vector<128x128xf32> to vector<128xf32>
    %24 = vector.shape_cast %23 : vector<128xf32> to vector<1x128xf32>
    %25 = arith.addf %17, %24 : vector<1x128xf32>
    %26 = arith.mulf %22, %22 : vector<128x128xf32>
    %cst_10 = arith.constant dense<0.000000e+00> : vector<128xf32>
    %27 = vector.multi_reduction <add>, %26, %cst_10 [0] : vector<128x128xf32> to vector<128xf32>
    %28 = vector.shape_cast %27 : vector<128xf32> to vector<1x128xf32>
    %29 = arith.addf %21, %28 : vector<1x128xf32>
    %30 = vector.extract_strided_slice %3 {offsets = [384, 0], sizes = [128, 128], strides = [1, 1]} : vector<512x128xf32> to vector<128x128xf32>
    %cst_11 = arith.constant dense<0.000000e+00> : vector<128xf32>
    %31 = vector.multi_reduction <add>, %30, %cst_11 [0] : vector<128x128xf32> to vector<128xf32>
    %32 = vector.shape_cast %31 : vector<128xf32> to vector<1x128xf32>
    %33 = arith.addf %25, %32 : vector<1x128xf32>
    %34 = arith.mulf %30, %30 : vector<128x128xf32>
    %cst_12 = arith.constant dense<0.000000e+00> : vector<128xf32>
    %35 = vector.multi_reduction <add>, %34, %cst_12 [0] : vector<128x128xf32> to vector<128xf32>
    %36 = vector.shape_cast %35 : vector<128xf32> to vector<1x128xf32>
    %37 = arith.addf %29, %36 : vector<1x128xf32>
    %cst_13 = arith.constant 0.001953125 : f32
    %38 = vector.broadcast %cst_13 : f32 to vector<1x128xf32>
    %39 = arith.mulf %33, %38 : vector<1x128xf32>
    %cst_14 = arith.constant 0.001953125 : f32
    %40 = vector.broadcast %cst_14 : f32 to vector<1x128xf32>
    %41 = arith.mulf %37, %40 : vector<1x128xf32>
    %42 = arith.mulf %39, %39 : vector<1x128xf32>
    %43 = arith.subf %41, %42 : vector<1x128xf32>
    %cst_15 = arith.constant 0.000000e+00 : f32
    %44 = vector.broadcast %cst_15 : f32 to vector<1x128xf32>
    %45 = arith.maximumf %43, %44 : vector<1x128xf32>
    %c0_16 = arith.constant 0 : index
    %c0_17 = arith.constant 0 : index
    %46 = vector.load %arg2[%c0_16, %c0_17] : memref<1x128xf32, #tpu.memory_space<vmem>>, vector<1x128xf32>
    %cst_18 = arith.constant 9.99999974E-6 : f32
    %47 = vector.broadcast %cst_18 : f32 to vector<1x128xf32>
    %48 = arith.addf %45, %47 : vector<1x128xf32>
    %49 = math.rsqrt %48 : vector<1x128xf32>
    %50 = arith.mulf %46, %49 : vector<1x128xf32>
    %c0_19 = arith.constant 0 : index
    %c0_20 = arith.constant 0 : index
    %51 = vector.load %arg3[%c0_19, %c0_20] : memref<1x128xf32, #tpu.memory_space<vmem>>, vector<1x128xf32>
    %52 = arith.mulf %39, %50 : vector<1x128xf32>
    %53 = arith.subf %51, %52 : vector<1x128xf32>
    %54 = vector.broadcast %50 : vector<1x128xf32> to vector<512x128xf32>
    %55 = arith.mulf %3, %54 : vector<512x128xf32>
    %56 = vector.broadcast %53 : vector<1x128xf32> to vector<512x128xf32>
    %57 = arith.addf %55, %56 : vector<512x128xf32>
    %cst_21 = arith.constant 0.000000e+00 : f32
    %58 = vector.broadcast %cst_21 : f32 to vector<512x128xf32>
    %59 = arith.maximumf %57, %58 : vector<512x128xf32>
    %cst_22 = arith.constant 0.000000e+00 : bf16
    %60 = vector.broadcast %cst_22 : bf16 to vector<2x1x32x128xbf16>
    %c0_23 = arith.constant 0 : index
    %c0_24 = arith.constant 0 : index
    %c0_25 = arith.constant 0 : index
    %c0_26 = arith.constant 0 : index
    %61 = vector.load %arg11[%c0_23, %c0_24, %c0_25, %c0_26] : memref<2x18x32x128xbf16, #tpu.memory_space<vmem>>, vector<2x1x32x128xbf16>
    tpu.vector_store %arg11[%c0_23, %c0_24, %c0_25, %c0_26], %60 {strides = array<i32>} : memref<2x18x32x128xbf16, #tpu.memory_space<vmem>>, vector<2x1x32x128xbf16>,
    %cst_27 = arith.constant 0.000000e+00 : bf16
    %62 = vector.broadcast %cst_27 : bf16 to vector<2x1x32x128xbf16>
    %c0_28 = arith.constant 0 : index
    %c17 = arith.constant 17 : index
    %c0_29 = arith.constant 0 : index
    %c0_30 = arith.constant 0 : index
    %63 = vector.load %arg11[%c0_28, %c17, %c0_29, %c0_30] : memref<2x18x32x128xbf16, #tpu.memory_space<vmem>>, vector<2x1x32x128xbf16>
    tpu.vector_store %arg11[%c0_28, %c17, %c0_29, %c0_30], %62 {strides = array<i32>} : memref<2x18x32x128xbf16, #tpu.memory_space<vmem>>, vector<2x1x32x128xbf16>,
    %cst_31 = arith.constant 0.000000e+00 : bf16
    %64 = vector.broadcast %cst_31 : bf16 to vector<2x16x8x128xbf16>
    %c0_32 = arith.constant 0 : index
    %c1 = arith.constant 1 : index
    %c0_33 = arith.constant 0 : index
    %c0_34 = arith.constant 0 : index
    %65 = vector.load %arg11[%c0_32, %c1, %c0_33, %c0_34] : memref<2x18x32x128xbf16, #tpu.memory_space<vmem>>, vector<2x16x8x128xbf16>
    tpu.vector_store %arg11[%c0_32, %c1, %c0_33, %c0_34], %64 {strides = array<i32>} : memref<2x18x32x128xbf16, #tpu.memory_space<vmem>>, vector<2x16x8x128xbf16>,
    %cst_35 = arith.constant 0.000000e+00 : bf16
    %66 = vector.broadcast %cst_35 : bf16 to vector<2x16x8x128xbf16>
    %c0_36 = arith.constant 0 : index
    %c1_37 = arith.constant 1 : index
    %c24 = arith.constant 24 : index
    %c0_38 = arith.constant 0 : index
    %67 = vector.load %arg11[%c0_36, %c1_37, %c24, %c0_38] : memref<2x18x32x128xbf16, #tpu.memory_space<vmem>>, vector<2x16x8x128xbf16>
    tpu.vector_store %arg11[%c0_36, %c1_37, %c24, %c0_38], %66 {strides = array<i32>} : memref<2x18x32x128xbf16, #tpu.memory_space<vmem>>, vector<2x16x8x128xbf16>,
    %68 = arith.truncf %59 : vector<512x128xf32> to vector<512x128xbf16>
    %69 = vector.shape_cast %68 : vector<512x128xbf16> to vector<2x16x16x128xbf16>
    %c0_39 = arith.constant 0 : index
    %c1_40 = arith.constant 1 : index
    %c8 = arith.constant 8 : index
    %c0_41 = arith.constant 0 : index
    %70 = vector.load %arg11[%c0_39, %c1_40, %c8, %c0_41] : memref<2x18x32x128xbf16, #tpu.memory_space<vmem>>, vector<2x16x16x128xbf16>
    tpu.vector_store %arg11[%c0_39, %c1_40, %c8, %c0_41], %69 {strides = array<i32>} : memref<2x18x32x128xbf16, #tpu.memory_space<vmem>>, vector<2x16x16x128xbf16>,
    %cst_42 = arith.constant 0.000000e+00 : f32
    %71 = vector.broadcast %cst_42 : f32 to vector<512x128xf32>
    %c0_43 = arith.constant 0 : index
    %c0_44 = arith.constant 0 : index
    %c7 = arith.constant 7 : index
    %c0_45 = arith.constant 0 : index
    %72 = vector.load %arg11[%c0_43, %c0_44, %c7, %c0_45] : memref<2x18x32x128xbf16, #tpu.memory_space<vmem>>, vector<2x16x16x128xbf16>
    %73 = vector.shape_cast %72 : vector<2x16x16x128xbf16> to vector<512x128xbf16>
    %c0_46 = arith.constant 0 : index
    %c0_47 = arith.constant 0 : index
    %c0_48 = arith.constant 0 : index
    %74 = vector.load %arg4[%c0_46, %c0_47, %c0_48] : memref<9x128x128xbf16, #tpu.memory_space<vmem>>, vector<1x128x128xbf16>
    %75 = vector.shape_cast %74 : vector<1x128x128xbf16> to vector<128x128xbf16>
    %cst_49 = arith.constant dense<0.000000e+00> : vector<512x128xf32>
    %76 = tpu.matmul %73, %75, %cst_49 {dimension_numbers = #tpu.dot_dimension_numbers<[1], [0], [0], [1], [0, 0, 1, 1], [], []>} : vector<512x128xbf16>, vector<128x128xbf16>, vector<512x128xf32> -> vector<512x128xf32>
    %77 = arith.addf %71, %76 : vector<512x128xf32>
    %c0_50 = arith.constant 0 : index
    %c0_51 = arith.constant 0 : index
    %c8_52 = arith.constant 8 : index
    %c0_53 = arith.constant 0 : index
    %78 = vector.load %arg11[%c0_50, %c0_51, %c8_52, %c0_53] : memref<2x18x32x128xbf16, #tpu.memory_space<vmem>>, vector<2x16x16x128xbf16>
    %79 = vector.shape_cast %78 : vector<2x16x16x128xbf16> to vector<512x128xbf16>
    %c1_54 = arith.constant 1 : index
    %c0_55 = arith.constant 0 : index
    %c0_56 = arith.constant 0 : index
    %80 = vector.load %arg4[%c1_54, %c0_55, %c0_56] : memref<9x128x128xbf16, #tpu.memory_space<vmem>>, vector<1x128x128xbf16>
    %81 = vector.shape_cast %80 : vector<1x128x128xbf16> to vector<128x128xbf16>
    %cst_57 = arith.constant dense<0.000000e+00> : vector<512x128xf32>
    %82 = tpu.matmul %79, %81, %cst_57 {dimension_numbers = #tpu.dot_dimension_numbers<[1], [0], [0], [1], [0, 0, 1, 1], [], []>} : vector<512x128xbf16>, vector<128x128xbf16>, vector<512x128xf32> -> vector<512x128xf32>
    %83 = arith.addf %77, %82 : vector<512x128xf32>
    %c0_58 = arith.constant 0 : index
    %c0_59 = arith.constant 0 : index
    %c9 = arith.constant 9 : index
    %c0_60 = arith.constant 0 : index
    %84 = vector.load %arg11[%c0_58, %c0_59, %c9, %c0_60] : memref<2x18x32x128xbf16, #tpu.memory_space<vmem>>, vector<2x16x16x128xbf16>
    %85 = vector.shape_cast %84 : vector<2x16x16x128xbf16> to vector<512x128xbf16>
    %c2 = arith.constant 2 : index
    %c0_61 = arith.constant 0 : index
    %c0_62 = arith.constant 0 : index
    %86 = vector.load %arg4[%c2, %c0_61, %c0_62] : memref<9x128x128xbf16, #tpu.memory_space<vmem>>, vector<1x128x128xbf16>
    %87 = vector.shape_cast %86 : vector<1x128x128xbf16> to vector<128x128xbf16>
    %cst_63 = arith.constant dense<0.000000e+00> : vector<512x128xf32>
    %88 = tpu.matmul %85, %87, %cst_63 {dimension_numbers = #tpu.dot_dimension_numbers<[1], [0], [0], [1], [0, 0, 1, 1], [], []>} : vector<512x128xbf16>, vector<128x128xbf16>, vector<512x128xf32> -> vector<512x128xf32>
    %89 = arith.addf %83, %88 : vector<512x128xf32>
    %c0_64 = arith.constant 0 : index
    %c1_65 = arith.constant 1 : index
    %c7_66 = arith.constant 7 : index
    %c0_67 = arith.constant 0 : index
    %90 = vector.load %arg11[%c0_64, %c1_65, %c7_66, %c0_67] : memref<2x18x32x128xbf16, #tpu.memory_space<vmem>>, vector<2x16x16x128xbf16>
    %91 = vector.shape_cast %90 : vector<2x16x16x128xbf16> to vector<512x128xbf16>
    %c3 = arith.constant 3 : index
    %c0_68 = arith.constant 0 : index
    %c0_69 = arith.constant 0 : index
    %92 = vector.load %arg4[%c3, %c0_68, %c0_69] : memref<9x128x128xbf16, #tpu.memory_space<vmem>>, vector<1x128x128xbf16>
    %93 = vector.shape_cast %92 : vector<1x128x128xbf16> to vector<128x128xbf16>
    %cst_70 = arith.constant dense<0.000000e+00> : vector<512x128xf32>
    %94 = tpu.matmul %91, %93, %cst_70 {dimension_numbers = #tpu.dot_dimension_numbers<[1], [0], [0], [1], [0, 0, 1, 1], [], []>} : vector<512x128xbf16>, vector<128x128xbf16>, vector<512x128xf32> -> vector<512x128xf32>
    %95 = arith.addf %89, %94 : vector<512x128xf32>
    %c0_71 = arith.constant 0 : index
    %c1_72 = arith.constant 1 : index
    %c8_73 = arith.constant 8 : index
    %c0_74 = arith.constant 0 : index
    %96 = vector.load %arg11[%c0_71, %c1_72, %c8_73, %c0_74] : memref<2x18x32x128xbf16, #tpu.memory_space<vmem>>, vector<2x16x16x128xbf16>
    %97 = vector.shape_cast %96 : vector<2x16x16x128xbf16> to vector<512x128xbf16>
    %c4 = arith.constant 4 : index
    %c0_75 = arith.constant 0 : index
    %c0_76 = arith.constant 0 : index
    %98 = vector.load %arg4[%c4, %c0_75, %c0_76] : memref<9x128x128xbf16, #tpu.memory_space<vmem>>, vector<1x128x128xbf16>
    %99 = vector.shape_cast %98 : vector<1x128x128xbf16> to vector<128x128xbf16>
    %cst_77 = arith.constant dense<0.000000e+00> : vector<512x128xf32>
    %100 = tpu.matmul %97, %99, %cst_77 {dimension_numbers = #tpu.dot_dimension_numbers<[1], [0], [0], [1], [0, 0, 1, 1], [], []>} : vector<512x128xbf16>, vector<128x128xbf16>, vector<512x128xf32> -> vector<512x128xf32>
    %101 = arith.addf %95, %100 : vector<512x128xf32>
    %c0_78 = arith.constant 0 : index
    %c1_79 = arith.constant 1 : index
    %c9_80 = arith.constant 9 : index
    %c0_81 = arith.constant 0 : index
    %102 = vector.load %arg11[%c0_78, %c1_79, %c9_80, %c0_81] : memref<2x18x32x128xbf16, #tpu.memory_space<vmem>>, vector<2x16x16x128xbf16>
    %103 = vector.shape_cast %102 : vector<2x16x16x128xbf16> to vector<512x128xbf16>
    %c5 = arith.constant 5 : index
    %c0_82 = arith.constant 0 : index
    %c0_83 = arith.constant 0 : index
    %104 = vector.load %arg4[%c5, %c0_82, %c0_83] : memref<9x128x128xbf16, #tpu.memory_space<vmem>>, vector<1x128x128xbf16>
    %105 = vector.shape_cast %104 : vector<1x128x128xbf16> to vector<128x128xbf16>
    %cst_84 = arith.constant dense<0.000000e+00> : vector<512x128xf32>
    %106 = tpu.matmul %103, %105, %cst_84 {dimension_numbers = #tpu.dot_dimension_numbers<[1], [0], [0], [1], [0, 0, 1, 1], [], []>} : vector<512x128xbf16>, vector<128x128xbf16>, vector<512x128xf32> -> vector<512x128xf32>
    %107 = arith.addf %101, %106 : vector<512x128xf32>
    %c0_85 = arith.constant 0 : index
    %c2_86 = arith.constant 2 : index
    %c7_87 = arith.constant 7 : index
    %c0_88 = arith.constant 0 : index
    %108 = vector.load %arg11[%c0_85, %c2_86, %c7_87, %c0_88] : memref<2x18x32x128xbf16, #tpu.memory_space<vmem>>, vector<2x16x16x128xbf16>
    %109 = vector.shape_cast %108 : vector<2x16x16x128xbf16> to vector<512x128xbf16>
    %c6 = arith.constant 6 : index
    %c0_89 = arith.constant 0 : index
    %c0_90 = arith.constant 0 : index
    %110 = vector.load %arg4[%c6, %c0_89, %c0_90] : memref<9x128x128xbf16, #tpu.memory_space<vmem>>, vector<1x128x128xbf16>
    %111 = vector.shape_cast %110 : vector<1x128x128xbf16> to vector<128x128xbf16>
    %cst_91 = arith.constant dense<0.000000e+00> : vector<512x128xf32>
    %112 = tpu.matmul %109, %111, %cst_91 {dimension_numbers = #tpu.dot_dimension_numbers<[1], [0], [0], [1], [0, 0, 1, 1], [], []>} : vector<512x128xbf16>, vector<128x128xbf16>, vector<512x128xf32> -> vector<512x128xf32>
    %113 = arith.addf %107, %112 : vector<512x128xf32>
    %c0_92 = arith.constant 0 : index
    %c2_93 = arith.constant 2 : index
    %c8_94 = arith.constant 8 : index
    %c0_95 = arith.constant 0 : index
    %114 = vector.load %arg11[%c0_92, %c2_93, %c8_94, %c0_95] : memref<2x18x32x128xbf16, #tpu.memory_space<vmem>>, vector<2x16x16x128xbf16>
    %115 = vector.shape_cast %114 : vector<2x16x16x128xbf16> to vector<512x128xbf16>
    %c7_96 = arith.constant 7 : index
    %c0_97 = arith.constant 0 : index
    %c0_98 = arith.constant 0 : index
    %116 = vector.load %arg4[%c7_96, %c0_97, %c0_98] : memref<9x128x128xbf16, #tpu.memory_space<vmem>>, vector<1x128x128xbf16>
    %117 = vector.shape_cast %116 : vector<1x128x128xbf16> to vector<128x128xbf16>
    %cst_99 = arith.constant dense<0.000000e+00> : vector<512x128xf32>
    %118 = tpu.matmul %115, %117, %cst_99 {dimension_numbers = #tpu.dot_dimension_numbers<[1], [0], [0], [1], [0, 0, 1, 1], [], []>} : vector<512x128xbf16>, vector<128x128xbf16>, vector<512x128xf32> -> vector<512x128xf32>
    %119 = arith.addf %113, %118 : vector<512x128xf32>
    %c0_100 = arith.constant 0 : index
    %c2_101 = arith.constant 2 : index
    %c9_102 = arith.constant 9 : index
    %c0_103 = arith.constant 0 : index
    %120 = vector.load %arg11[%c0_100, %c2_101, %c9_102, %c0_103] : memref<2x18x32x128xbf16, #tpu.memory_space<vmem>>, vector<2x16x16x128xbf16>
    %121 = vector.shape_cast %120 : vector<2x16x16x128xbf16> to vector<512x128xbf16>
    %c8_104 = arith.constant 8 : index
    %c0_105 = arith.constant 0 : index
    %c0_106 = arith.constant 0 : index
    %122 = vector.load %arg4[%c8_104, %c0_105, %c0_106] : memref<9x128x128xbf16, #tpu.memory_space<vmem>>, vector<1x128x128xbf16>
    %123 = vector.shape_cast %122 : vector<1x128x128xbf16> to vector<128x128xbf16>
    %cst_107 = arith.constant dense<0.000000e+00> : vector<512x128xf32>
    %124 = tpu.matmul %121, %123, %cst_107 {dimension_numbers = #tpu.dot_dimension_numbers<[1], [0], [0], [1], [0, 0, 1, 1], [], []>} : vector<512x128xbf16>, vector<128x128xbf16>, vector<512x128xf32> -> vector<512x128xf32>
    %125 = arith.addf %119, %124 : vector<512x128xf32>
    %cst_108 = arith.constant 0.000000e+00 : f32
    %126 = vector.broadcast %cst_108 : f32 to vector<1x128xf32>
    %cst_109 = arith.constant 0.000000e+00 : f32
    %127 = vector.broadcast %cst_109 : f32 to vector<1x128xf32>
    %128 = vector.extract_strided_slice %125 {offsets = [0, 0], sizes = [128, 128], strides = [1, 1]} : vector<512x128xf32> to vector<128x128xf32>
    %cst_110 = arith.constant dense<0.000000e+00> : vector<128xf32>
    %129 = vector.multi_reduction <add>, %128, %cst_110 [0] : vector<128x128xf32> to vector<128xf32>
    %130 = vector.shape_cast %129 : vector<128xf32> to vector<1x128xf32>
    %131 = arith.addf %126, %130 : vector<1x128xf32>
    %132 = arith.mulf %128, %128 : vector<128x128xf32>
    %cst_111 = arith.constant dense<0.000000e+00> : vector<128xf32>
    %133 = vector.multi_reduction <add>, %132, %cst_111 [0] : vector<128x128xf32> to vector<128xf32>
    %134 = vector.shape_cast %133 : vector<128xf32> to vector<1x128xf32>
    %135 = arith.addf %127, %134 : vector<1x128xf32>
    %136 = vector.extract_strided_slice %125 {offsets = [128, 0], sizes = [128, 128], strides = [1, 1]} : vector<512x128xf32> to vector<128x128xf32>
    %cst_112 = arith.constant dense<0.000000e+00> : vector<128xf32>
    %137 = vector.multi_reduction <add>, %136, %cst_112 [0] : vector<128x128xf32> to vector<128xf32>
    %138 = vector.shape_cast %137 : vector<128xf32> to vector<1x128xf32>
    %139 = arith.addf %131, %138 : vector<1x128xf32>
    %140 = arith.mulf %136, %136 : vector<128x128xf32>
    %cst_113 = arith.constant dense<0.000000e+00> : vector<128xf32>
    %141 = vector.multi_reduction <add>, %140, %cst_113 [0] : vector<128x128xf32> to vector<128xf32>
    %142 = vector.shape_cast %141 : vector<128xf32> to vector<1x128xf32>
    %143 = arith.addf %135, %142 : vector<1x128xf32>
    %144 = vector.extract_strided_slice %125 {offsets = [256, 0], sizes = [128, 128], strides = [1, 1]} : vector<512x128xf32> to vector<128x128xf32>
    %cst_114 = arith.constant dense<0.000000e+00> : vector<128xf32>
    %145 = vector.multi_reduction <add>, %144, %cst_114 [0] : vector<128x128xf32> to vector<128xf32>
    %146 = vector.shape_cast %145 : vector<128xf32> to vector<1x128xf32>
    %147 = arith.addf %139, %146 : vector<1x128xf32>
    %148 = arith.mulf %144, %144 : vector<128x128xf32>
    %cst_115 = arith.constant dense<0.000000e+00> : vector<128xf32>
    %149 = vector.multi_reduction <add>, %148, %cst_115 [0] : vector<128x128xf32> to vector<128xf32>
    %150 = vector.shape_cast %149 : vector<128xf32> to vector<1x128xf32>
    %151 = arith.addf %143, %150 : vector<1x128xf32>
    %152 = vector.extract_strided_slice %125 {offsets = [384, 0], sizes = [128, 128], strides = [1, 1]} : vector<512x128xf32> to vector<128x128xf32>
    %cst_116 = arith.constant dense<0.000000e+00> : vector<128xf32>
    %153 = vector.multi_reduction <add>, %152, %cst_116 [0] : vector<128x128xf32> to vector<128xf32>
    %154 = vector.shape_cast %153 : vector<128xf32> to vector<1x128xf32>
    %155 = arith.addf %147, %154 : vector<1x128xf32>
    %156 = arith.mulf %152, %152 : vector<128x128xf32>
    %cst_117 = arith.constant dense<0.000000e+00> : vector<128xf32>
    %157 = vector.multi_reduction <add>, %156, %cst_117 [0] : vector<128x128xf32> to vector<128xf32>
    %158 = vector.shape_cast %157 : vector<128xf32> to vector<1x128xf32>
    %159 = arith.addf %151, %158 : vector<1x128xf32>
    %cst_118 = arith.constant 0.001953125 : f32
    %160 = vector.broadcast %cst_118 : f32 to vector<1x128xf32>
    %161 = arith.mulf %155, %160 : vector<1x128xf32>
    %cst_119 = arith.constant 0.001953125 : f32
    %162 = vector.broadcast %cst_119 : f32 to vector<1x128xf32>
    %163 = arith.mulf %159, %162 : vector<1x128xf32>
    %164 = arith.mulf %161, %161 : vector<1x128xf32>
    %165 = arith.subf %163, %164 : vector<1x128xf32>
    %cst_120 = arith.constant 0.000000e+00 : f32
    %166 = vector.broadcast %cst_120 : f32 to vector<1x128xf32>
    %167 = arith.maximumf %165, %166 : vector<1x128xf32>
    %c0_121 = arith.constant 0 : index
    %c0_122 = arith.constant 0 : index
    %168 = vector.load %arg5[%c0_121, %c0_122] : memref<1x128xf32, #tpu.memory_space<vmem>>, vector<1x128xf32>
    %cst_123 = arith.constant 9.99999974E-6 : f32
    %169 = vector.broadcast %cst_123 : f32 to vector<1x128xf32>
    %170 = arith.addf %167, %169 : vector<1x128xf32>
    %171 = math.rsqrt %170 : vector<1x128xf32>
    %172 = arith.mulf %168, %171 : vector<1x128xf32>
    %c0_124 = arith.constant 0 : index
    %c0_125 = arith.constant 0 : index
    %173 = vector.load %arg6[%c0_124, %c0_125] : memref<1x128xf32, #tpu.memory_space<vmem>>, vector<1x128xf32>
    %174 = arith.mulf %161, %172 : vector<1x128xf32>
    %175 = arith.subf %173, %174 : vector<1x128xf32>
    %176 = vector.broadcast %172 : vector<1x128xf32> to vector<512x128xf32>
    %177 = arith.mulf %125, %176 : vector<512x128xf32>
    %178 = vector.broadcast %175 : vector<1x128xf32> to vector<512x128xf32>
    %179 = arith.addf %177, %178 : vector<512x128xf32>
    %cst_126 = arith.constant 0.000000e+00 : f32
    %180 = vector.broadcast %cst_126 : f32 to vector<512x128xf32>
    %181 = arith.maximumf %179, %180 : vector<512x128xf32>
    %182 = arith.truncf %181 : vector<512x128xf32> to vector<512x128xbf16>
    %c0_127 = arith.constant 0 : index
    %c0_128 = arith.constant 0 : index
    %183 = vector.load %arg7[%c0_127, %c0_128] : memref<128x128xbf16, #tpu.memory_space<vmem>>, vector<128x128xbf16>
    %cst_129 = arith.constant dense<0.000000e+00> : vector<512x128xf32>
    %184 = tpu.matmul %182, %183, %cst_129 {dimension_numbers = #tpu.dot_dimension_numbers<[1], [0], [0], [1], [0, 0, 1, 1], [], []>} : vector<512x128xbf16>, vector<128x128xbf16>, vector<512x128xf32> -> vector<512x128xf32>
    %cst_130 = arith.constant 0.000000e+00 : f32
    %185 = vector.broadcast %cst_130 : f32 to vector<1x128xf32>
    %cst_131 = arith.constant 0.000000e+00 : f32
    %186 = vector.broadcast %cst_131 : f32 to vector<1x128xf32>
    %187 = vector.extract_strided_slice %184 {offsets = [0, 0], sizes = [128, 128], strides = [1, 1]} : vector<512x128xf32> to vector<128x128xf32>
    %cst_132 = arith.constant dense<0.000000e+00> : vector<128xf32>
    %188 = vector.multi_reduction <add>, %187, %cst_132 [0] : vector<128x128xf32> to vector<128xf32>
    %189 = vector.shape_cast %188 : vector<128xf32> to vector<1x128xf32>
    %190 = arith.addf %185, %189 : vector<1x128xf32>
    %191 = arith.mulf %187, %187 : vector<128x128xf32>
    %cst_133 = arith.constant dense<0.000000e+00> : vector<128xf32>
    %192 = vector.multi_reduction <add>, %191, %cst_133 [0] : vector<128x128xf32> to vector<128xf32>
    %193 = vector.shape_cast %192 : vector<128xf32> to vector<1x128xf32>
    %194 = arith.addf %186, %193 : vector<1x128xf32>
    %195 = vector.extract_strided_slice %184 {offsets = [128, 0], sizes = [128, 128], strides = [1, 1]} : vector<512x128xf32> to vector<128x128xf32>
    %cst_134 = arith.constant dense<0.000000e+00> : vector<128xf32>
    %196 = vector.multi_reduction <add>, %195, %cst_134 [0] : vector<128x128xf32> to vector<128xf32>
    %197 = vector.shape_cast %196 : vector<128xf32> to vector<1x128xf32>
    %198 = arith.addf %190, %197 : vector<1x128xf32>
    %199 = arith.mulf %195, %195 : vector<128x128xf32>
    %cst_135 = arith.constant dense<0.000000e+00> : vector<128xf32>
    %200 = vector.multi_reduction <add>, %199, %cst_135 [0] : vector<128x128xf32> to vector<128xf32>
    %201 = vector.shape_cast %200 : vector<128xf32> to vector<1x128xf32>
    %202 = arith.addf %194, %201 : vector<1x128xf32>
    %203 = vector.extract_strided_slice %184 {offsets = [256, 0], sizes = [128, 128], strides = [1, 1]} : vector<512x128xf32> to vector<128x128xf32>
    %cst_136 = arith.constant dense<0.000000e+00> : vector<128xf32>
    %204 = vector.multi_reduction <add>, %203, %cst_136 [0] : vector<128x128xf32> to vector<128xf32>
    %205 = vector.shape_cast %204 : vector<128xf32> to vector<1x128xf32>
    %206 = arith.addf %198, %205 : vector<1x128xf32>
    %207 = arith.mulf %203, %203 : vector<128x128xf32>
    %cst_137 = arith.constant dense<0.000000e+00> : vector<128xf32>
    %208 = vector.multi_reduction <add>, %207, %cst_137 [0] : vector<128x128xf32> to vector<128xf32>
    %209 = vector.shape_cast %208 : vector<128xf32> to vector<1x128xf32>
    %210 = arith.addf %202, %209 : vector<1x128xf32>
    %211 = vector.extract_strided_slice %184 {offsets = [384, 0], sizes = [128, 128], strides = [1, 1]} : vector<512x128xf32> to vector<128x128xf32>
    %cst_138 = arith.constant dense<0.000000e+00> : vector<128xf32>
    %212 = vector.multi_reduction <add>, %211, %cst_138 [0] : vector<128x128xf32> to vector<128xf32>
    %213 = vector.shape_cast %212 : vector<128xf32> to vector<1x128xf32>
    %214 = arith.addf %206, %213 : vector<1x128xf32>
    %215 = arith.mulf %211, %211 : vector<128x128xf32>
    %cst_139 = arith.constant dense<0.000000e+00> : vector<128xf32>
    %216 = vector.multi_reduction <add>, %215, %cst_139 [0] : vector<128x128xf32> to vector<128xf32>
    %217 = vector.shape_cast %216 : vector<128xf32> to vector<1x128xf32>
    %218 = arith.addf %210, %217 : vector<1x128xf32>
    %cst_140 = arith.constant 0.001953125 : f32
    %219 = vector.broadcast %cst_140 : f32 to vector<1x128xf32>
    %220 = arith.mulf %214, %219 : vector<1x128xf32>
    %cst_141 = arith.constant 0.001953125 : f32
    %221 = vector.broadcast %cst_141 : f32 to vector<1x128xf32>
    %222 = arith.mulf %218, %221 : vector<1x128xf32>
    %223 = arith.mulf %220, %220 : vector<1x128xf32>
    %224 = arith.subf %222, %223 : vector<1x128xf32>
    %cst_142 = arith.constant 0.000000e+00 : f32
    %225 = vector.broadcast %cst_142 : f32 to vector<1x128xf32>
    %226 = arith.maximumf %224, %225 : vector<1x128xf32>
    %c0_143 = arith.constant 0 : index
    %c0_144 = arith.constant 0 : index
    %227 = vector.load %arg8[%c0_143, %c0_144] : memref<1x128xf32, #tpu.memory_space<vmem>>, vector<1x128xf32>
    %cst_145 = arith.constant 9.99999974E-6 : f32
    %228 = vector.broadcast %cst_145 : f32 to vector<1x128xf32>
    %229 = arith.addf %226, %228 : vector<1x128xf32>
    %230 = math.rsqrt %229 : vector<1x128xf32>
    %231 = arith.mulf %227, %230 : vector<1x128xf32>
    %c0_146 = arith.constant 0 : index
    %c0_147 = arith.constant 0 : index
    %232 = vector.load %arg9[%c0_146, %c0_147] : memref<1x128xf32, #tpu.memory_space<vmem>>, vector<1x128xf32>
    %233 = arith.mulf %220, %231 : vector<1x128xf32>
    %234 = arith.subf %232, %233 : vector<1x128xf32>
    %235 = vector.broadcast %231 : vector<1x128xf32> to vector<512x128xf32>
    %236 = arith.mulf %184, %235 : vector<512x128xf32>
    %237 = vector.broadcast %234 : vector<1x128xf32> to vector<512x128xf32>
    %238 = arith.addf %236, %237 : vector<512x128xf32>
    %c0_148 = arith.constant 0 : index
    %c0_149 = arith.constant 0 : index
    %239 = vector.load %arg0[%c0_148, %c0_149] : memref<512x128xf32, #tpu.memory_space<vmem>>, vector<512x128xf32>
    %240 = arith.addf %238, %239 : vector<512x128xf32>
    %cst_150 = arith.constant 0.000000e+00 : f32
    %241 = vector.broadcast %cst_150 : f32 to vector<512x128xf32>
    %242 = arith.maximumf %240, %241 : vector<512x128xf32>
    %c0_151 = arith.constant 0 : index
    %c0_152 = arith.constant 0 : index
    %243 = vector.load %arg10[%c0_151, %c0_152] : memref<512x128xf32, #tpu.memory_space<vmem>>, vector<512x128xf32>
    tpu.vector_store %arg10[%c0_151, %c0_152], %242 {strides = array<i32>} : memref<512x128xf32, #tpu.memory_space<vmem>>, vector<512x128xf32>,
    return
  }
}

</mosaic_0001>

<bundles_post_ra>
// kernel: residual_block.1
= control target key start
LH: loop header
LB: loop body
LE: loop exit
PB: predicated region body
PF: predicated region fallthrough
CT: control target
= control target key end

     0   :  { %vm1960_vm0 = vcmask 1043456   ;;  %vm1271_vm1 = vsmask.f32 4352  ;;  %vm2812_vm2 = vsmask.f32 3328  ;;  %s17991_s1 = inlined_call_operand.vmem [shape: bf16[128,128], index: 1, kind: input, shape index: {}]   ;;  %s17992_s0 = inlined_call_operand.vmem [shape: f32[512,128], index: 0, kind: input, shape index: {}]   ;;  %s17993_s4 = inlined_call_operand.vmem [shape: bf16[9,128,128], index: 4, kind: input, shape index: {}]   ;;  %s17994_s2 = inlined_call_operand.vmem [shape: f32[1,128], index: 2, kind: input, shape index: {}]   ;;  %s17995_s3 = inlined_call_operand.vmem [shape: f32[1,128], index: 3, kind: input, shape index: {}]   ;;  %s17996_s7 = inlined_call_operand.vmem [shape: bf16[128,128], index: 7, kind: input, shape index: {}]   ;;  %s17997_s5 = inlined_call_operand.vmem [shape: f32[1,128], index: 5, kind: input, shape index: {}]   ;;  %s17998_s6 = inlined_call_operand.vmem [shape: f32[1,128], index: 6, kind: input, shape index: {}]   ;;  %s17999_s8 = inlined_call_operand.vmem [shape: f32[1,128], index: 8, kind: input, shape index: {}]   ;;  %s18000_s9 = inlined_call_operand.vmem [shape: f32[1,128], index: 9, kind: input, shape index: {}]   ;;  %s18001_s10 = inlined_call_operand.vmem [shape: f32[512,128], index: 10, kind: output, shape index: {}]  }
   0x1   :  { %v12818_v0 = vld [vmem:[%s17991_s1] sm:$0xff]   ;;  %v12819_v1 = vld [vmem:[%s17991_s1 + $0x8] sm:$0xff]   ;;  %v12820_v2 = vld [vmem:[%s17991_s1 + $0x10] sm:$0xff]  }
   0x2   :  { %11409 = vmatprep.subr.bf16.mxu0 %v12818_v0  ;;  %v12821_v3 = vld [vmem:[%s17991_s1 + $0x18] sm:$0xff]   ;;  %v36_v4 = vld [vmem:[%s17992_s0] sm:$0xff]  ;;  %v37_v5 = vld [vmem:[%s17992_s0 + $0x8] sm:$0xff] }
   0x3   :  { %11410 = vmatpush3.bf16.msra.mxu0 %v12818_v0  ;;  %v100_v6 = vpack.c.bf16 %v37_v5, %v36_v4  ;;  %v12822_v7 = vld [vmem:[%s17991_s1 + $0x20] sm:$0xff]   ;;  %v12823_v8 = vld [vmem:[%s17991_s1 + $0x28] sm:$0xff]   ;;  %v12824_v9 = vld [vmem:[%s17991_s1 + $0x30] sm:$0xff]  }
   0x4   :  { %11411 = vmatprep.subr.bf16.mxu0 %v12819_v1  ;;  %v12825_v10 = vld [vmem:[%s17991_s1 + $0x38] sm:$0xff]   ;;  %v38_v11 = vld [vmem:[%s17992_s0 + $0x10] sm:$0xff]  ;;  %v40_v13 = vld [vmem:[%s17992_s0 + $0x20] sm:$0xff] }
   0x5   :  { %11425 = vmatprep.mubr.bf16.mxu0 %v100_v6  ;;  %v39_v12 = vld [vmem:[%s17992_s0 + $0x18] sm:$0xff]  ;;  %v41_v14 = vld [vmem:[%s17992_s0 + $0x28] sm:$0xff]  ;;  %v42_v17 = vld [vmem:[%s17992_s0 + $0x30] sm:$0xff] }
   0x6   :  { %v101_v15 = vpack.c.bf16 %v39_v12, %v38_v11  ;;  %v102_v16 = vpack.c.bf16 %v41_v14, %v40_v13  ;;  %v43_v18 = vld [vmem:[%s17992_s0 + $0x38] sm:$0xff]  ;;  %v44_v19 = vld [vmem:[%s17992_s0 + $0x40] sm:$0xff]  ;;  %v45_v20 = vld [vmem:[%s17992_s0 + $0x48] sm:$0xff] }
   0x7   :  { %11412 = vmatpush3.bf16.msra.mxu0 %v12819_v1  ;;  %v103_v21 = vpack.c.bf16 %v43_v18, %v42_v17  ;;  %v104_v22 = vpack.c.bf16 %v45_v20, %v44_v19  ;;  %v46_v23 = vld [vmem:[%s17992_s0 + $0x50] sm:$0xff]  ;;  %v47_v24 = vld [vmem:[%s17992_s0 + $0x58] sm:$0xff]  ;;  %v48_v25 = vld [vmem:[%s17992_s0 + $0x60] sm:$0xff] }
   0x8   :  { %11413 = vmatprep.subr.bf16.mxu0 %v12820_v2  ;;  %v49_v26 = vld [vmem:[%s17992_s0 + $0x68] sm:$0xff]  ;;  %v105_v27 = vpack.c.bf16 %v47_v24, %v46_v23  ;;  %v50_v29 = vld [vmem:[%s17992_s0 + $0x70] sm:$0xff]  ;;  %v51_v30 = vld [vmem:[%s17992_s0 + $0x78] sm:$0xff] }
   0x9   :  { %v106_v28 = vpack.c.bf16 %v49_v26, %v48_v25  ;;  %v52_v31 = vld [vmem:[%s17992_s0 + $0x80] sm:$0xff]  ;;  %v53_v32 = vld [vmem:[%s17992_s0 + $0x88] sm:$0xff]  ;;  %v107_v33 = vpack.c.bf16 %v51_v30, %v50_v29  ;;  %v54_v35 = vld [vmem:[%s17992_s0 + $0x90] sm:$0xff] }
   0xa   :  { %v108_v34 = vpack.c.bf16 %v53_v32, %v52_v31  ;;  %v55_v36 = vld [vmem:[%s17992_s0 + $0x98] sm:$0xff]  ;;  %v56_v37 = vld [vmem:[%s17992_s0 + $0xa0] sm:$0xff]  ;;  %v57_v38 = vld [vmem:[%s17992_s0 + $0xa8] sm:$0xff] }
   0xb   :  { %11414 = vmatpush3.bf16.msra.mxu0 %v12820_v2  ;;  %v109_v39 = vpack.c.bf16 %v55_v36, %v54_v35  ;;  %v110_v40 = vpack.c.bf16 %v57_v38, %v56_v37  ;;  %v58_v41 = vld [vmem:[%s17992_s0 + $0xb0] sm:$0xff]  ;;  %v59_v42 = vld [vmem:[%s17992_s0 + $0xb8] sm:$0xff]  ;;  %v60_v43 = vld [vmem:[%s17992_s0 + $0xc0] sm:$0xff] }
   0xc   :  { %11415 = vmatprep.subr.bf16.mxu0 %v12821_v3  ;;  %v61_v44 = vld [vmem:[%s17992_s0 + $0xc8] sm:$0xff]  ;;  %v111_v45 = vpack.c.bf16 %v59_v42, %v58_v41  ;;  %v62_v47 = vld [vmem:[%s17992_s0 + $0xd0] sm:$0xff]  ;;  %v63_v48 = vld [vmem:[%s17992_s0 + $0xd8] sm:$0xff] }
   0xd   :  { %v112_v46 = vpack.c.bf16 %v61_v44, %v60_v43  ;;  %v64_v49 = vld [vmem:[%s17992_s0 + $0xe0] sm:$0xff]  ;;  %v65_v50 = vld [vmem:[%s17992_s0 + $0xe8] sm:$0xff]  ;;  %v113_v51 = vpack.c.bf16 %v63_v48, %v62_v47  ;;  %v66_v53 = vld [vmem:[%s17992_s0 + $0xf0] sm:$0xff] }
   0xe   :  { %v114_v52 = vpack.c.bf16 %v65_v50, %v64_v49  ;;  %v67_v54 = vld [vmem:[%s17992_s0 + $0xf8] sm:$0xff]  ;;  %v68_v55 = vld [vmem:[%s17992_s0 + $0x100] sm:$0xff]  ;;  %v69_v56 = vld [vmem:[%s17992_s0 + $0x108] sm:$0xff] }
   0xf   :  { %11416 = vmatpush3.bf16.msra.mxu0 %v12821_v3  ;;  %v115_v57 = vpack.c.bf16 %v67_v54, %v66_v53  ;;  %v116_v58 = vpack.c.bf16 %v69_v56, %v68_v55  ;;  %v70_v59 = vld [vmem:[%s17992_s0 + $0x110] sm:$0xff]  ;;  %v71_v60 = vld [vmem:[%s17992_s0 + $0x118] sm:$0xff]  ;;  %v72_v61 = vld [vmem:[%s17992_s0 + $0x120] sm:$0xff] }
  0x10   :  { %11417 = vmatprep.subr.bf16.mxu0 %v12822_v7  ;;  %v73_v62 = vld [vmem:[%s17992_s0 + $0x128] sm:$0xff]  ;;  %v117_v63 = vpack.c.bf16 %v71_v60, %v70_v59  ;;  %v74_v1 = vld [vmem:[%s17992_s0 + $0x130] sm:$0xff]  ;;  %v75_v2 = vld [vmem:[%s17992_s0 + $0x138] sm:$0xff] }
  0x11   :  { %v118_v0 = vpack.c.bf16 %v73_v62, %v72_v61  ;;  %v76_v3 = vld [vmem:[%s17992_s0 + $0x140] sm:$0xff]  ;;  %v77_v4 = vld [vmem:[%s17992_s0 + $0x148] sm:$0xff]  ;;  %v119_v5 = vpack.c.bf16 %v75_v2, %v74_v1  ;;  %v82_v13 = vld [vmem:[%s17992_s0 + $0x170] sm:$0xff] }
  0x12   :  { %v120_v6 = vpack.c.bf16 %v77_v4, %v76_v3  ;;  %v83_v14 = vld [vmem:[%s17992_s0 + $0x178] sm:$0xff]  ;;  %v86_v19 = vld [vmem:[%s17992_s0 + $0x190] sm:$0xff] }
  0x13   :  { %11418 = vmatpush3.bf16.msra.mxu0 %v12822_v7  ;;  %v78_v7 = vld [vmem:[%s17992_s0 + $0x150] sm:$0xff]  ;;  %v123_v17 = vpack.c.bf16 %v83_v14, %v82_v13  ;;  %v87_v20 = vld [vmem:[%s17992_s0 + $0x198] sm:$0xff] }
  0x14   :  { %11419 = vmatprep.subr.bf16.mxu0 %v12823_v8  ;;  %v125_v23 = vpack.c.bf16 %v87_v20, %v86_v19  ;;  %v90_v25 = vld [vmem:[%s17992_s0 + $0x1b0] sm:$0xff]  ;;  %v91_v26 = vld [vmem:[%s17992_s0 + $0x1b8] sm:$0xff] }
  0x15   :  { %v127_v29 = vpack.c.bf16 %v91_v26, %v90_v25  ;;  %v94_v31 = vld [vmem:[%s17992_s0 + $0x1d0] sm:$0xff]  ;;  %v95_v32 = vld [vmem:[%s17992_s0 + $0x1d8] sm:$0xff] }
  0x16   :  { %v129_v35 = vpack.c.bf16 %v95_v32, %v94_v31  ;;  %v98_v37 = vld [vmem:[%s17992_s0 + $0x1f0] sm:$0xff]  ;;  %v99_v38 = vld [vmem:[%s17992_s0 + $0x1f8] sm:$0xff] }
  0x17   :  { %11420 = vmatpush3.bf16.msra.mxu0 %v12823_v8  ;;  %v79_v8 = vld [vmem:[%s17992_s0 + $0x158] sm:$0xff] }
  0x18   :  { %11421 = vmatprep.subr.bf16.mxu0 %v12824_v9  ;;  %v121_v11 = vpack.c.bf16 %v79_v8, %v78_v7 }
  0x1b   :  { %11422 = vmatpush3.bf16.msra.mxu0 %v12824_v9  ;;  %v80_v9 = vld [vmem:[%s17992_s0 + $0x160] sm:$0xff] }
  0x1c   :  { %11423 = vmatprep.subr.bf16.mxu0 %v12825_v10 }
  0x1f   :  { %11424 = vmatpush3.bf16.msra.mxu0 %v12825_v10  ;;  %v81_v10 = vld [vmem:[%s17992_s0 + $0x168] sm:$0xff] }
  0x20   :  { %v122_v12 = vpack.c.bf16 %v81_v10, %v80_v9 }
  0x22   :  { %11426 = vmatmul.mubr.bf16.vlgmr.msra.gmra.mrb[0].mxu0 %v101_v15  ;;  %v84_v15 = vld [vmem:[%s17992_s0 + $0x180] sm:$0xff] }
  0x23   :  { %11429 = vmatprep.mubr.bf16.mxu0 %v102_v16  ;;  %v85_v16 = vld [vmem:[%s17992_s0 + $0x188] sm:$0xff] }
  0x24   :  { %v124_v18 = vpack.c.bf16 %v85_v16, %v84_v15 }
  0x2a   :  { %11430 = vmatmul.mubr.bf16.gmra.mrb[4].mxu0 %v103_v21  ;;  %v88_v21 = vld [vmem:[%s17992_s0 + $0x1a0] sm:$0xff] }
  0x2b   :  { %11433 = vmatprep.mubr.bf16.mxu0 %v104_v22  ;;  %v89_v22 = vld [vmem:[%s17992_s0 + $0x1a8] sm:$0xff] }
  0x2c   :  { %v126_v24 = vpack.c.bf16 %v89_v22, %v88_v21 }
  0x32   :  { %11434 = vmatmul.mubr.bf16.gmra.mrb[8].mxu0 %v105_v27  ;;  %v92_v27 = vld [vmem:[%s17992_s0 + $0x1c0] sm:$0xff] }
  0x33   :  { %11437 = vmatprep.mubr.bf16.mxu0 %v106_v28  ;;  %v93_v28 = vld [vmem:[%s17992_s0 + $0x1c8] sm:$0xff] }
  0x34   :  { %v128_v30 = vpack.c.bf16 %v93_v28, %v92_v27 }
  0x3a   :  { %11438 = vmatmul.mubr.bf16.gmra.mrb[12].mxu0 %v107_v33  ;;  %v96_v33 = vld [vmem:[%s17992_s0 + $0x1e0] sm:$0xff] }
  0x3b   :  { %11441 = vmatprep.mubr.bf16.mxu0 %v108_v34  ;;  %v97_v34 = vld [vmem:[%s17992_s0 + $0x1e8] sm:$0xff] }
  0x3c   :  { %v130_v36 = vpack.c.bf16 %v97_v34, %v96_v33 }
  0x42   :  { %11442 = vmatmul.mubr.bf16.gmra.mrb[16].mxu0 %v109_v39  ;;  %v131_v39 = vpack.c.bf16 %v99_v38, %v98_v37 }
  0x43   :  { %11445 = vmatprep.mubr.bf16.mxu0 %v110_v40 }
  0x4a   :  { %11446 = vmatmul.mubr.bf16.gmra.mrb[20].mxu0 %v111_v45 }
  0x4b   :  { %11449 = vmatprep.mubr.bf16.mxu0 %v112_v46 }
  0x52   :  { %11450 = vmatmul.mubr.bf16.gmra.mrb[24].mxu0 %v113_v51 }
  0x53   :  { %11453 = vmatprep.mubr.bf16.mxu0 %v114_v52 }
  0x5a   :  { %11454 = vmatmul.mubr.bf16.gmra.mrb[28].mxu0 %v115_v57 }
  0x5b   :  { %11457 = vmatprep.mubr.bf16.mxu0 %v116_v58 }
  0x62   :  { %11458 = vmatmul.mubr.bf16.gmra.mrb[32].mxu0 %v117_v63 }
  0x63   :  { %11461 = vmatprep.mubr.bf16.mxu0 %v118_v0 }
  0x6a   :  { %11462 = vmatmul.mubr.bf16.gmra.mrb[36].mxu0 %v119_v5 }
  0x6b   :  { %11465 = vmatprep.mubr.bf16.mxu0 %v120_v6 }
  0x72   :  { %11466 = vmatmul.mubr.bf16.gmra.mrb[40].mxu0 %v121_v11 }
  0x73   :  { %11469 = vmatprep.mubr.bf16.mxu0 %v122_v12 }
  0x7a   :  { %11470 = vmatmul.mubr.bf16.gmra.mrb[44].mxu0 %v123_v17 }
  0x7b   :  { %11473 = vmatprep.mubr.bf16.mxu0 %v124_v18 }
  0x82   :  { %11474 = vmatmul.mubr.bf16.gmra.mrb[48].mxu0 %v125_v23 }
  0x83   :  { %11477 = vmatprep.mubr.bf16.mxu0 %v126_v24 }
  0x8a   :  { %11478 = vmatmul.mubr.bf16.gmra.mrb[52].mxu0 %v127_v29 }
  0x8b   :  { %11481 = vmatprep.mubr.bf16.mxu0 %v128_v30 }
  0x92   :  { %11482 = vmatmul.mubr.bf16.gmra.mrb[56].mxu0 %v129_v35 }
  0x93   :  { %11485 = vmatprep.mubr.bf16.mxu0 %v130_v36 }
  0x9a   :  { %11486 = vmatmul.mubr.bf16.gmra.mrb[60].mxu0 %v131_v39 }
  0xf5   :  { %v13338_v40 = vpop.f32.mrb[0].mxu0 }
  0xf6   :  { %v13340_v41 = vpop.f32.mrb[1].mxu0  ;;  %v509_v47 = vmul.f32 %v13338_v40, %v13338_v40 }
  0xf7   :  { %v13342_v42 = vpop.f32.mrb[2].mxu0  ;;  %v507_v44 = vmul.f32 %v13340_v41, %v13340_v41 }
  0xf8   :  { %v13344_v43 = vpop.f32.mrb[3].mxu0  ;;  %v510_v50 = vmul.f32 %v13342_v42, %v13342_v42 }
  0xf9   :  { %v485_v45 = vadd.f32 %v13344_v43, %v13340_v41  ;;  %v508_v46 = vmul.f32 %v13344_v43, %v13344_v43 }
  0xfb   :  { %v486_v48 = vadd.f32 %v13338_v40, %v485_v45  ;;  %v523_v49 = vadd.f32 %v508_v46, %v507_v44 }
  0xfd   :  { %v524_v51 = vadd.f32 %v523_v49, %v509_v47  ;;  %v13357_v52 = vpop.f32.mrb[4].mxu0  ;;  %v487_v53 = vadd.f32 %v13342_v42, %v486_v48 }
  0xfe   :  { %v13360_v54 = vpop.f32.mrb[5].mxu0  ;;  %v513_v63 = vmul.f32 %v13357_v52, %v13357_v52 }
  0xff   :  { %v488_v55 = vadd.f32 %v487_v53, %v13360_v54  ;;  %v511_v56 = vmul.f32 %v13360_v54, %v13360_v54  ;;  %v525_v57 = vadd.f32 %v524_v51, %v510_v50  ;;  %v13365_v58 = vpop.f32.mrb[6].mxu0 }
 0x100   :  { %v13367_v59 = vpop.f32.mrb[7].mxu0  ;;  %v514_v2 = vmul.f32 %v13365_v58, %v13365_v58 }
 0x101   :  { %v526_v60 = vadd.f32 %v525_v57, %v511_v56  ;;  %v489_v61 = vadd.f32 %v488_v55, %v13367_v59  ;;  %v512_v62 = vmul.f32 %v13367_v59, %v13367_v59 }
 0x103   :  { %v490_v0 = vadd.f32 %v13357_v52, %v489_v61  ;;  %v527_v1 = vadd.f32 %v526_v60, %v512_v62 }
 0x105   :  { %v528_v3 = vadd.f32 %v527_v1, %v513_v63  ;;  %v13377_v4 = vpop.f32.mrb[8].mxu0  ;;  %v491_v5 = vadd.f32 %v13365_v58, %v490_v0 }
 0x106   :  { %v13380_v6 = vpop.f32.mrb[9].mxu0  ;;  %v517_v15 = vmul.f32 %v13377_v4, %v13377_v4 }
 0x107   :  { %v492_v7 = vadd.f32 %v491_v5, %v13380_v6  ;;  %v515_v8 = vmul.f32 %v13380_v6, %v13380_v6  ;;  %v529_v9 = vadd.f32 %v528_v3, %v514_v2  ;;  %v13385_v10 = vpop.f32.mrb[10].mxu0 }
 0x108   :  { %v13387_v11 = vpop.f32.mrb[11].mxu0  ;;  %v518_v18 = vmul.f32 %v13385_v10, %v13385_v10 }
 0x109   :  { %v530_v12 = vadd.f32 %v529_v9, %v515_v8  ;;  %v493_v13 = vadd.f32 %v492_v7, %v13387_v11  ;;  %v516_v14 = vmul.f32 %v13387_v11, %v13387_v11 }
 0x10b   :  { %v494_v16 = vadd.f32 %v13377_v4, %v493_v13  ;;  %v531_v17 = vadd.f32 %v530_v12, %v516_v14 }
 0x10d   :  { %v532_v19 = vadd.f32 %v531_v17, %v517_v15  ;;  %v13397_v20 = vpop.f32.mrb[12].mxu0  ;;  %v495_v21 = vadd.f32 %v13385_v10, %v494_v16 }
 0x10e   :  { %v13400_v22 = vpop.f32.mrb[13].mxu0  ;;  %v521_v31 = vmul.f32 %v13397_v20, %v13397_v20 }
 0x10f   :  { %v496_v23 = vadd.f32 %v495_v21, %v13400_v22  ;;  %v519_v24 = vmul.f32 %v13400_v22, %v13400_v22  ;;  %v533_v25 = vadd.f32 %v532_v19, %v518_v18  ;;  %v13405_v26 = vpop.f32.mrb[14].mxu0 }
 0x110   :  { %v13407_v27 = vpop.f32.mrb[15].mxu0  ;;  %v522_v34 = vmul.f32 %v13405_v26, %v13405_v26 }
 0x111   :  { %v534_v28 = vadd.f32 %v533_v25, %v519_v24  ;;  %v497_v29 = vadd.f32 %v496_v23, %v13407_v27  ;;  %v520_v30 = vmul.f32 %v13407_v27, %v13407_v27 }
 0x113   :  { %v498_v32 = vadd.f32 %v13397_v20, %v497_v29  ;;  %v535_v33 = vadd.f32 %v534_v28, %v520_v30 }
 0x115   :  { %v499_v35 = vadd.f32 %v13405_v26, %v498_v32  ;;  %v536_v36 = vadd.f32 %v535_v33, %v521_v31  ;;  %v13418_v37 = vpop.f32.mrb[16].mxu0 }
 0x116   :  { %v13420_v38 = vpop.f32.mrb[17].mxu0  ;;  %v569_v49 = vmul.f32 %v13418_v37, %v13418_v37 }
 0x117   :  { %v537_v39 = vadd.f32 %v536_v36, %v522_v34  ;;  %v13422_v44 = vpop.f32.mrb[18].mxu0  ;;  %v567_v46 = vmul.f32 %v13420_v38, %v13420_v38  ;;  %v500_v21 = vrot.slane %v499_v35, 4 }
 0x118   :  { %v13424_v45 = vpop.f32.mrb[19].mxu0  ;;  %v570_v57 = vmul.f32 %v13422_v44, %v13422_v44 }
 0x119   :  { %v545_v47 = vadd.f32 %v13424_v45, %v13420_v38  ;;  %v568_v48 = vmul.f32 %v13424_v45, %v13424_v45  ;;  %v501_v31 = vadd.f32 %v500_v21, %v499_v35 }
 0x11b   :  { %v546_v50 = vadd.f32 %v13418_v37, %v545_v47  ;;  %v583_v51 = vadd.f32 %v568_v48, %v567_v46 }
 0x11d   :  { %v584_v53 = vadd.f32 %v583_v51, %v569_v49  ;;  %v13435_v55 = vpop.f32.mrb[20].mxu0  ;;  %v547_v56 = vadd.f32 %v13422_v44, %v546_v50  ;;  %v538_v49 = vrot.slane %v537_v39, 4 }
 0x11e   :  { %v13440_v60 = vpop.f32.mrb[21].mxu0  ;;  %v573_v8 = vmul.f32 %v13435_v55, %v13435_v55 }
 0x11f   :  { %v548_v61 = vadd.f32 %v547_v56, %v13440_v60  ;;  %v571_v62 = vmul.f32 %v13440_v60, %v13440_v60  ;;  %v13445_v63 = vpop.f32.mrb[22].mxu0  ;;  %v585_v0 = vadd.f32 %v584_v53, %v570_v57  ;;  %v502_v53 = vrot.slane %v501_v31, 2 }
 0x120   :  { %v13447_v1 = vpop.f32.mrb[23].mxu0  ;;  %v574_v14 = vmul.f32 %v13445_v63, %v13445_v63 }
 0x121   :  { %v549_v2 = vadd.f32 %v548_v61, %v13447_v1  ;;  %v572_v3 = vmul.f32 %v13447_v1, %v13447_v1  ;;  %v586_v5 = vadd.f32 %v585_v0, %v571_v62 }
 0x123   :  { %v550_v7 = vadd.f32 %v13435_v55, %v549_v2  ;;  %v587_v9 = vadd.f32 %v586_v5, %v572_v3  ;;  %v539_v3 = vadd.f32 %v538_v49, %v537_v39 }
 0x125   :  { %v13455_v12 = vpop.f32.mrb[24].mxu0  ;;  %v551_v13 = vadd.f32 %v13445_v63, %v550_v7  ;;  %v588_v15 = vadd.f32 %v587_v9, %v573_v8 }
 0x126   :  { %v13460_v16 = vpop.f32.mrb[25].mxu0  ;;  %v577_v32 = vmul.f32 %v13455_v12, %v13455_v12 }
 0x127   :  { %v552_v17 = vadd.f32 %v551_v13, %v13460_v16  ;;  %v575_v18 = vmul.f32 %v13460_v16, %v13460_v16  ;;  %v13465_v19 = vpop.f32.mrb[26].mxu0  ;;  %v589_v23 = vadd.f32 %v588_v15, %v574_v14  ;;  %v503_v13 = vadd.f32 %v502_v53, %v501_v31 }
 0x128   :  { %v13467_v24 = vpop.f32.mrb[27].mxu0  ;;  %v578_v46 = vmul.f32 %v13465_v19, %v13465_v19 }
 0x129   :  { %v553_v25 = vadd.f32 %v552_v17, %v13467_v24  ;;  %v576_v28 = vmul.f32 %v13467_v24, %v13467_v24  ;;  %v590_v29 = vadd.f32 %v589_v23, %v575_v18  ;;  %v540_v23 = vrot.slane %v539_v3, 2 }
 0x12b   :  { %v554_v30 = vadd.f32 %v13455_v12, %v553_v25  ;;  %v591_v33 = vadd.f32 %v590_v29, %v576_v28 }
 0x12d   :  { %v13475_v34 = vpop.f32.mrb[28].mxu0  ;;  %v555_v36 = vadd.f32 %v13465_v19, %v554_v30  ;;  %v592_v47 = vadd.f32 %v591_v33, %v577_v32  ;;  %v504_v32 = vrot.slane %v503_v13, 1 }
 0x12e   :  { %v13480_v48 = vpop.f32.mrb[29].mxu0  ;;  %v581_v5 = vmul.f32 %v13475_v34, %v13475_v34 }
 0x12f   :  { %v556_v50 = vadd.f32 %v555_v36, %v13480_v48  ;;  %v579_v35 = vmul.f32 %v13480_v48, %v13480_v48  ;;  %v13485_v51 = vpop.f32.mrb[30].mxu0  ;;  %v593_v56 = vadd.f32 %v592_v47, %v578_v46 }
 0x130   :  { %v13487_v57 = vpop.f32.mrb[31].mxu0  ;;  %v582_v14 = vmul.f32 %v13485_v51, %v13485_v51 }
 0x131   :  { %v557_v61 = vadd.f32 %v556_v50, %v13487_v57  ;;  %v580_v62 = vmul.f32 %v13487_v57, %v13487_v57  ;;  %v594_v0 = vadd.f32 %v593_v56, %v579_v35  ;;  %v541_v50 = vadd.f32 %v540_v23, %v539_v3 }
 0x133   :  { %v558_v2 = vadd.f32 %v13475_v34, %v557_v61  ;;  %v595_v7 = vadd.f32 %v594_v0, %v580_v62  ;;  %v542_v23 = vrot.slane %v541_v50, 1 }
 0x135   :  { %v559_v8 = vadd.f32 %v13485_v51, %v558_v2  ;;  %v13496_v9 = vpop.f32.mrb[32].mxu0  ;;  %v596_v15 = vadd.f32 %v595_v7, %v581_v5 }
 0x136   :  { %v13500_v17 = vpop.f32.mrb[33].mxu0  ;;  %v629_v46 = vmul.f32 %v13496_v9, %v13496_v9 }
 0x137   :  { %v560_v18 = vrot.slane %v559_v8, 4  ;;  %v13502_v21 = vpop.f32.mrb[34].mxu0  ;;  %v597_v39 = vadd.f32 %v596_v15, %v582_v14  ;;  %v627_v29 = vmul.f32 %v13500_v17, %v13500_v17 }
 0x138   :  { %v13504_v25 = vpop.f32.mrb[35].mxu0  ;;  %v630_v56 = vmul.f32 %v13502_v21, %v13502_v21 }
 0x139   :  { %v561_v28 = vadd.f32 %v560_v18, %v559_v8  ;;  %v605_v30 = vadd.f32 %v13504_v25, %v13500_v17  ;;  %v628_v31 = vmul.f32 %v13504_v25, %v13504_v25  ;;  %v598_v33 = vrot.slane %v597_v39, 4 }
 0x13a   :  { %v505_v18 = vadd.f32 %v504_v32, %v503_v13  ;;  %v543_v32 = vadd.f32 %v542_v23, %v541_v50 }
 0x13b   :  { %v562_v36 = vrot.slane %v561_v28, 2  ;;  %v606_v47 = vadd.f32 %v13496_v9, %v605_v30  ;;  %v643_v49 = vadd.f32 %v628_v31, %v627_v29  ;;  %v599_v35 = vadd.f32 %v598_v33, %v597_v39 }
 0x13d   :  { %v563_v53 = vadd.f32 %v562_v36, %v561_v28  ;;  %v644_v61 = vadd.f32 %v643_v49, %v629_v46  ;;  %v13517_v62 = vpop.f32.mrb[36].mxu0  ;;  %v607_v0 = vadd.f32 %v13502_v21, %v606_v47  ;;  %v600_v2 = vrot.slane %v599_v35, 2 }
 0x13e   :  { %18095 = vst [vmem:[#allocation3_spill] sm:$0xff] %v13517_v62  ;;  %v13520_v5 = vpop.f32.mrb[37].mxu0  ;;  %v633_v47 = vmul.f32 %v13517_v62, %v13517_v62 }
 0x13f   :  { %v564_v7 = vrot.slane %v563_v53, 1  ;;  %v608_v8 = vadd.f32 %v607_v0, %v13520_v5  ;;  %v631_v14 = vmul.f32 %v13520_v5, %v13520_v5  ;;  %v645_v3 = vadd.f32 %v644_v61, %v630_v56  ;;  %v13525_v15 = vpop.f32.mrb[38].mxu0 }
 0x140   :  { %18096 = vst [vmem:[#allocation4_spill] sm:$0xff] %v13525_v15  ;;  %v601_v39 = vadd.f32 %v600_v2, %v599_v35  ;;  %v13527_v28 = vpop.f32.mrb[39].mxu0 }
 0x141   :  { %v565_v29 = vadd.f32 %v564_v7, %v563_v53  ;;  %v646_v30 = vadd.f32 %v645_v3, %v631_v14  ;;  %v609_v31 = vadd.f32 %v608_v8, %v13527_v28  ;;  %v632_v33 = vmul.f32 %v13527_v28, %v13527_v28 }
 0x142   :  { %v602_v36 = vrot.slane %v601_v39, 1  ;;  %v634_v53 = vmul.f32 %v13525_v15, %v13525_v15 }
 0x143   :  { %v13532_v46 = vadd.f32 %v565_v29, %v505_v18  ;;  %v610_v49 = vadd.f32 %v13517_v62, %v609_v31  ;;  %v647_v13 = vadd.f32 %v646_v30, %v632_v33  ;;  %v12826_v30 = vld [vmem:[%s17993_s4 + $0x40] sm:$0xff]  }
 0x144   :  { %v603_v35 = vadd.f32 %v602_v36, %v601_v39  ;;  %11489 = vmatprep.subr.bf16.mxu0 %v12826_v30 }
 0x145   :  { %v648_v56 = vadd.f32 %v647_v13, %v633_v47  ;;  %v13539_v61 = vpop.f32.mrb[40].mxu0  ;;  %v611_v0 = vadd.f32 %v13525_v15, %v610_v49  ;;  %11490 = vmatpush3.bf16.msra.mxu0 %v12826_v30 }
 0x146   :  { %18097 = vst [vmem:[#allocation5_spill] sm:$0xff] %v13539_v61  ;;  %v13542_v2 = vadd.f32 %v603_v35, %v543_v32  ;;  %v13544_v7 = vpop.f32.mrb[41].mxu0  ;;  %v637_v31 = vmul.f32 %v13539_v61, %v13539_v61 }
 0x147   :  { %18098 = vst [vmem:[#allocation6_spill] sm:$0xff] %v13544_v7  ;;  %v612_v8 = vadd.f32 %v611_v0, %v13544_v7  ;;  %v635_v14 = vmul.f32 %v13544_v7, %v13544_v7  ;;  %v649_v3 = vadd.f32 %v648_v56, %v634_v53  ;;  %v13549_v50 = vpop.f32.mrb[42].mxu0  ;;  %v12827_v53 = vld [vmem:[%s17993_s4 + $0x48] sm:$0xff]  }
 0x148   :  { %18099 = vst [vmem:[#allocation7_spill] sm:$0xff] %v13549_v50  ;;  %v13551_v18 = vpop.f32.mrb[43].mxu0  ;;  %v638_v47 = vmul.f32 %v13549_v50, %v13549_v50  ;;  %11491 = vmatprep.subr.bf16.mxu0 %v12827_v53 }
 0x149   :  { %18100 = vst [vmem:[#allocation8_spill] sm:$0xff] %v13551_v18  ;;  %v650_v23 = vadd.f32 %v649_v3, %v635_v14  ;;  %v613_v39 = vadd.f32 %v612_v8, %v13551_v18  ;;  %v636_v29 = vmul.f32 %v13551_v18, %v13551_v18  ;;  %v12828_v3 = vld [vmem:[%s17993_s4 + $0xc0] sm:$0xff]   ;;  %11492 = vmatpush3.bf16.msra.mxu0 %v12827_v53 }
 0x14a   :  { %12289 = vmatprep.subr.bf16.mxu1 %v12828_v3 }
 0x14b   :  { %v614_v33 = vadd.f32 %v13539_v61, %v613_v39  ;;  %v651_v36 = vadd.f32 %v650_v23, %v636_v29  ;;  %12297 = vmatpush3.bf16.msra.mxu1 %v12828_v3  ;;  %v12831_v3 = vld [vmem:[%s17993_s4 + $0x58] sm:$0xff]  }
 0x14d   :  { %v652_v49 = vadd.f32 %v651_v36, %v637_v31  ;;  %v13564_v13 = vpop.f32.mrb[44].mxu0  ;;  %v615_v32 = vadd.f32 %v13549_v50, %v614_v33  ;;  %v12829_v31 = vld [vmem:[%s17993_s4 + $0x50] sm:$0xff]  }
 0x14e   :  { %18101 = vst [vmem:[#allocation9_spill] sm:$0xff] %v13564_v13  ;;  %v13567_v35 = vpop.f32.mrb[45].mxu0  ;;  %v641_v33 = vmul.f32 %v13564_v13, %v13564_v13  ;;  %11493 = vmatprep.subr.bf16.mxu0 %v12829_v31 }
 0x14f   :  { %18102 = vst [vmem:[#allocation10_spill] sm:$0xff] %v13567_v35  ;;  %v616_v56 = vadd.f32 %v615_v32, %v13567_v35  ;;  %v639_v0 = vmul.f32 %v13567_v35, %v13567_v35  ;;  %v653_v8 = vadd.f32 %v652_v49, %v638_v47  ;;  %v13575_v14 = vpop.f32.mrb[46].mxu0  ;;  %v12830_v49 = vld [vmem:[%s17993_s4 + $0xc8] sm:$0xff]   ;;  %11494 = vmatpush3.bf16.msra.mxu0 %v12829_v31 }
 0x150   :  { %18103 = vst [vmem:[#allocation11_spill] sm:$0xff] %v13575_v14  ;;  %v13580_v23 = vpop.f32.mrb[47].mxu0  ;;  %v642_v32 = vmul.f32 %v13575_v14, %v13575_v14  ;;  %12290 = vmatprep.subr.bf16.mxu1 %v12830_v49  ;;  %11495 = vmatprep.subr.bf16.mxu0 %v12831_v3 }
 0x151   :  { %18104 = vst [vmem:[#allocation12_spill] sm:$0xff] %v13580_v23  ;;  %v654_v39 = vadd.f32 %v653_v8, %v639_v0  ;;  %v617_v29 = vadd.f32 %v616_v56, %v13580_v23  ;;  %v640_v30 = vmul.f32 %v13580_v23, %v13580_v23  ;;  %12298 = vmatpush3.bf16.msra.mxu1 %v12830_v49 }
 0x153   :  { %v618_v36 = vadd.f32 %v13564_v13, %v617_v29  ;;  %v655_v47 = vadd.f32 %v654_v39, %v640_v30  ;;  %11496 = vmatpush3.bf16.msra.mxu0 %v12831_v3  ;;  %v12833_v13 = vld [vmem:[%s17993_s4 + $0x60] sm:$0xff]  }
 0x154   :  { %11497 = vmatprep.subr.bf16.mxu0 %v12833_v13 }
 0x155   :  { %v619_v53 = vadd.f32 %v13575_v14, %v618_v36  ;;  %v656_v56 = vadd.f32 %v655_v47, %v641_v33  ;;  %v13597_v0 = vpop.f32.mrb[48].mxu0  ;;  %v12832_v36 = vld [vmem:[%s17993_s4 + $0xd0] sm:$0xff]  }
 0x156   :  { %18105 = vst [vmem:[#allocation13_spill] sm:$0xff] %v13597_v0  ;;  %v13599_v8 = vpop.f32.mrb[49].mxu0  ;;  %12291 = vmatprep.subr.bf16.mxu1 %v12832_v36 }
 0x157   :  { %18106 = vst [vmem:[#allocation14_spill] sm:$0xff] %v13599_v8  ;;  %v620_v39 = vrot.slane %v619_v53, 4  ;;  %v657_v29 = vadd.f32 %v656_v56, %v642_v32  ;;  %v13604_v30 = vpop.f32.mrb[50].mxu0  ;;  %v687_v33 = vmul.f32 %v13599_v8, %v13599_v8  ;;  %v689_v56 = vmul.f32 %v13597_v0, %v13597_v0  ;;  %12299 = vmatpush3.bf16.msra.mxu1 %v12832_v36 }
 0x158   :  { %18107 = vst [vmem:[#allocation15_spill] sm:$0xff] %v13604_v30  ;;  %v13611_v47 = vpop.f32.mrb[51].mxu0  ;;  %11498 = vmatpush3.bf16.msra.mxu0 %v12833_v13 }
 0x159   :  { %18108 = vst [vmem:[#allocation16_spill] sm:$0xff] %v13611_v47  ;;  %v621_v31 = vadd.f32 %v620_v39, %v619_v53  ;;  %v658_v49 = vrot.slane %v657_v29, 4  ;;  %v665_v14 = vadd.f32 %v13611_v47, %v13599_v8  ;;  %v688_v32 = vmul.f32 %v13611_v47, %v13611_v47  ;;  %v12834_v8 = vld [vmem:[%s17993_s4 + $0xd8] sm:$0xff]  }
 0x15a   :  { %12292 = vmatprep.subr.bf16.mxu1 %v12834_v8 }
 0x15b   :  { %v622_v23 = vrot.slane %v621_v31, 2  ;;  %v659_v35 = vadd.f32 %v658_v49, %v657_v29  ;;  %v666_v53 = vadd.f32 %v13597_v0, %v665_v14  ;;  %v703_v39 = vadd.f32 %v688_v32, %v687_v33  ;;  %12300 = vmatpush3.bf16.msra.mxu1 %v12834_v8  ;;  %v12835_v14 = vld [vmem:[%s17993_s4 + $0x68] sm:$0xff]  }
 0x15c   :  { %v690_v29 = vmul.f32 %v13604_v30, %v13604_v30  ;;  %11499 = vmatprep.subr.bf16.mxu0 %v12835_v14 }
 0x15d   :  { %v623_v47 = vadd.f32 %v622_v23, %v621_v31  ;;  %v660_v3 = vrot.slane %v659_v35, 2  ;;  %v704_v50 = vadd.f32 %v703_v39, %v689_v56  ;;  %v13626_v61 = vpop.f32.mrb[52].mxu0  ;;  %v667_v36 = vadd.f32 %v13604_v30, %v666_v53  ;;  %v13648_v56 = vld [vmem:[%s17993_s4 + $0xe0] sm:$0xff]   ;;  %11500 = vmatpush3.bf16.msra.mxu0 %v12835_v14 }
 0x15e   :  { %18109 = vst [vmem:[#allocation17_spill] sm:$0xff] %v13626_v61  ;;  %v13631_v49 = vpop.f32.mrb[53].mxu0  ;;  %12293 = vmatprep.subr.bf16.mxu1 %v13648_v56 }
 0x15f   :  { %18110 = vst [vmem:[#allocation18_spill] sm:$0xff] %v13631_v49  ;;  %v624_v33 = vrot.slane %v623_v47, 1  ;;  %v13636_v23 = vadd.f32 %v660_v3, %v659_v35  ;;  %v668_v31 = vadd.f32 %v667_v36, %v13631_v49  ;;  %v13641_v32 = vmul.f32 %v13631_v49, %v13631_v49  ;;  %v13643_v13 = vpop.f32.mrb[54].mxu0  ;;  %12301 = vmatpush3.bf16.msra.mxu1 %v13648_v56 }
 0x160   :  { %18111 = vst [vmem:[#allocation19_spill] sm:$0xff] %v13643_v13  ;;  %v13650_v8 = vadd.f32 %v704_v50, %v690_v29  ;;  %v13652_v53 = vpop.f32.mrb[55].mxu0  ;;  %v13668_v50 = vld [vmem:[%s17993_s4 + $0x70] sm:$0xff]   ;;  %v13678_v29 = vld [vmem:[%s17993_s4 + $0x78] sm:$0xff]  }
 0x161   :  { %18112 = vst [vmem:[#allocation20_spill] sm:$0xff] %v13652_v53  ;;  %v13654_v35 = vadd.f32 %v624_v33, %v623_v47  ;;  %v13658_v3 = vadd.f32 %v668_v31, %v13652_v53  ;;  %v13662_v36 = vmul.f32 %v13652_v53, %v13652_v53  ;;  %v13673_v47 = vld [vmem:[%s17993_s4 + $0xe8] sm:$0xff]   ;;  %v13066_v33 = vmov 0   ;;  %v12840_v31 = vld [vmem:[%s17993_s4 + $0xf0] sm:$0xff]   ;;  %11501 = vmatprep.subr.bf16.mxu0 %v13668_v50 }
 0x162   :  { %941 = vst [vmem:[#allocation2] sm:$0xff] %v13066_v33  ;;  %942 = vst [vmem:[#allocation2 + $0x8] sm:$0xff] %v13066_v33  ;;  %v706_v14 = vadd.f32 %v13650_v8, %v13641_v32  ;;  %v18113_v53 = vrot.slane %v13636_v23, 1  ;;  %12294 = vmatprep.subr.bf16.mxu1 %v13673_v47  ;;  %v693_v32 = vmul.f32 %v13626_v61, %v13626_v61  ;;  %11502 = vmatpush3.bf16.msra.mxu0 %v13668_v50  ;;  %v12841_v50 = vld [vmem:[%s17993_s4 + $0xf8] sm:$0xff]  }
 0x163   :  { %943 = vst [vmem:[#allocation2 + $0x120] sm:$0xff] %v13066_v33  ;;  %944 = vst [vmem:[#allocation2 + $0x128] sm:$0xff] %v13066_v33  ;;  %v13760_v39 = vadd.f32 %v13654_v35, %v13532_v46  ;;  %12302 = vmatpush3.bf16.msra.mxu1 %v13673_v47  ;;  %11503 = vmatprep.subr.bf16.mxu0 %v13678_v29 }
 0x164   :  { %946 = vst [vmem:[#allocation2 + $0x110] sm:$0xff] %v13066_v33  ;;  %947 = vst [vmem:[#allocation2 + $0x118] sm:$0xff] %v13066_v33  ;;  %v663_v49 = vadd.f32 %v18113_v53, %v13636_v23  ;;  %v707_v56 = vadd.f32 %v706_v14, %v13662_v36  ;;  %v694_v23 = vmul.f32 %v13643_v13, %v13643_v13  ;;  %12295 = vmatprep.subr.bf16.mxu1 %v12840_v31 }
 0x165   :  { %948 = vst [vmem:[#allocation2 + $0x230] sm:$0xff] %v13066_v33  ;;  %949 = vst [vmem:[#allocation2 + $0x238] sm:$0xff] %v13066_v33  ;;  %v13775_v46 = vpop.f32.mrb[56].mxu0 }
 0x166   :  { %951 = vst [vmem:[#allocation2 + $0x10] sm:$0xf] %v13066_v33  ;;  %952 = vst [vmem:[#allocation2 + $0x20] sm:$0xf] %v13066_v33  ;;  %v13773_v8 = vadd.f32 %v663_v49, %v13542_v2  ;;  %v708_v53 = vadd.f32 %v707_v56, %v693_v32  ;;  %11504 = vmatpush3.bf16.msra.mxu0 %v13678_v29 }
 0x167   :  { %953 = vst [vmem:[#allocation2 + $0x30] sm:$0xf] %v13066_v33  ;;  %954 = vst [vmem:[#allocation2 + $0x40] sm:$0xf] %v13066_v33  ;;  %12303 = vmatpush3.bf16.msra.mxu1 %v12840_v31 }
 0x168   :  { %955 = vst [vmem:[#allocation2 + $0x50] sm:$0xf] %v13066_v33  ;;  %956 = vst [vmem:[#allocation2 + $0x60] sm:$0xf] %v13066_v33  ;;  %v709_v14 = vadd.f32 %v708_v53, %v694_v23  ;;  %12296 = vmatprep.subr.bf16.mxu1 %v12841_v50  ;;  %v697_v53 = vmul.f32 %v13775_v46, %v13775_v46 }
 0x169   :  { %957 = vst [vmem:[#allocation2 + $0x70] sm:$0xf] %v13066_v33  ;;  %958 = vst [vmem:[#allocation2 + $0x80] sm:$0xf] %v13066_v33  ;;  %v1208_v32 = vld [vmem:[#allocation2 + $0x8] sm:$0xf] }
 0x16a   :  { %959 = vst [vmem:[#allocation2 + $0x90] sm:$0xf] %v13066_v33  ;;  %960 = vst [vmem:[#allocation2 + $0xa0] sm:$0xf] %v13066_v33  ;;  %v1864_v56 = vld [vmem:[#allocation2] sm:$0xf0] }
 0x16b   :  { %961 = vst [vmem:[#allocation2 + $0xb0] sm:$0xf] %v13066_v33  ;;  %962 = vst [vmem:[#allocation2 + $0xc0] sm:$0xf] %v13066_v33  ;;  %12304 = vmatpush3.bf16.msra.mxu1 %v12841_v50 }
 0x16c   :  { %963 = vst [vmem:[#allocation2 + $0xd0] sm:$0xf] %v13066_v33  ;;  %964 = vst [vmem:[#allocation2 + $0xe0] sm:$0xf] %v13066_v33 }
 0x16d   :  { %965 = vst [vmem:[#allocation2 + $0xf0] sm:$0xf] %v13066_v33  ;;  %966 = vst [vmem:[#allocation2 + $0x100] sm:$0xf] %v13066_v33 }
 0x16e   :  { %967 = vst [vmem:[#allocation2 + $0x130] sm:$0xf] %v13066_v33  ;;  %968 = vst [vmem:[#allocation2 + $0x140] sm:$0xf] %v13066_v33 }
 0x16f   :  { %969 = vst [vmem:[#allocation2 + $0x150] sm:$0xf] %v13066_v33  ;;  %970 = vst [vmem:[#allocation2 + $0x160] sm:$0xf] %v13066_v33 }
 0x170   :  { %971 = vst [vmem:[#allocation2 + $0x170] sm:$0xf] %v13066_v33  ;;  %972 = vst [vmem:[#allocation2 + $0x180] sm:$0xf] %v13066_v33 }
 0x171   :  { %973 = vst [vmem:[#allocation2 + $0x190] sm:$0xf] %v13066_v33  ;;  %974 = vst [vmem:[#allocation2 + $0x1a0] sm:$0xf] %v13066_v33 }
 0x172   :  { %975 = vst [vmem:[#allocation2 + $0x1b0] sm:$0xf] %v13066_v33  ;;  %976 = vst [vmem:[#allocation2 + $0x1c0] sm:$0xf] %v13066_v33 }
 0x173   :  { %977 = vst [vmem:[#allocation2 + $0x1d0] sm:$0xf] %v13066_v33  ;;  %978 = vst [vmem:[#allocation2 + $0x1e0] sm:$0xf] %v13066_v33 }
 0x174   :  { %979 = vst [vmem:[#allocation2 + $0x1f0] sm:$0xf] %v13066_v33  ;;  %980 = vst [vmem:[#allocation2 + $0x200] sm:$0xf] %v13066_v33 }
 0x175   :  { %981 = vst [vmem:[#allocation2 + $0x210] sm:$0xf] %v13066_v33  ;;  %982 = vst [vmem:[#allocation2 + $0x220] sm:$0xf] %v13066_v33 }
 0x176   :  { %983 = vst [vmem:[#allocation2 + $0x18] sm:$0xf0] %v13066_v33  ;;  %984 = vst [vmem:[#allocation2 + $0x28] sm:$0xf0] %v13066_v33 }
 0x177   :  { %985 = vst [vmem:[#allocation2 + $0x38] sm:$0xf0] %v13066_v33  ;;  %986 = vst [vmem:[#allocation2 + $0x48] sm:$0xf0] %v13066_v33 }
 0x178   :  { %987 = vst [vmem:[#allocation2 + $0x58] sm:$0xf0] %v13066_v33  ;;  %988 = vst [vmem:[#allocation2 + $0x68] sm:$0xf0] %v13066_v33 }
 0x179   :  { %989 = vst [vmem:[#allocation2 + $0x78] sm:$0xf0] %v13066_v33  ;;  %990 = vst [vmem:[#allocation2 + $0x88] sm:$0xf0] %v13066_v33 }
 0x17a   :  { %991 = vst [vmem:[#allocation2 + $0x98] sm:$0xf0] %v13066_v33  ;;  %992 = vst [vmem:[#allocation2 + $0xa8] sm:$0xf0] %v13066_v33 }
 0x17b   :  { %993 = vst [vmem:[#allocation2 + $0xb8] sm:$0xf0] %v13066_v33  ;;  %994 = vst [vmem:[#allocation2 + $0xc8] sm:$0xf0] %v13066_v33 }
 0x17c   :  { %995 = vst [vmem:[#allocation2 + $0xd8] sm:$0xf0] %v13066_v33  ;;  %996 = vst [vmem:[#allocation2 + $0xe8] sm:$0xf0] %v13066_v33 }
 0x17d   :  { %997 = vst [vmem:[#allocation2 + $0xf8] sm:$0xf0] %v13066_v33  ;;  %998 = vst [vmem:[#allocation2 + $0x108] sm:$0xf0] %v13066_v33 }
 0x17e   :  { %999 = vst [vmem:[#allocation2 + $0x138] sm:$0xf0] %v13066_v33  ;;  %1000 = vst [vmem:[#allocation2 + $0x148] sm:$0xf0] %v13066_v33 }
 0x17f   :  { %1001 = vst [vmem:[#allocation2 + $0x158] sm:$0xf0] %v13066_v33  ;;  %1002 = vst [vmem:[#allocation2 + $0x168] sm:$0xf0] %v13066_v33 }
 0x180   :  { %1003 = vst [vmem:[#allocation2 + $0x178] sm:$0xf0] %v13066_v33  ;;  %1004 = vst [vmem:[#allocation2 + $0x188] sm:$0xf0] %v13066_v33 }
 0x181   :  { %1005 = vst [vmem:[#allocation2 + $0x198] sm:$0xf0] %v13066_v33  ;;  %1006 = vst [vmem:[#allocation2 + $0x1a8] sm:$0xf0] %v13066_v33 }
 0x182   :  { %1007 = vst [vmem:[#allocation2 + $0x1b8] sm:$0xf0] %v13066_v33  ;;  %1008 = vst [vmem:[#allocation2 + $0x1c8] sm:$0xf0] %v13066_v33 }
 0x183   :  { %1009 = vst [vmem:[#allocation2 + $0x1d8] sm:$0xf0] %v13066_v33  ;;  %1010 = vst [vmem:[#allocation2 + $0x1e8] sm:$0xf0] %v13066_v33 }
 0x184   :  { %1011 = vst [vmem:[#allocation2 + $0x1f8] sm:$0xf0] %v13066_v33  ;;  %1012 = vst [vmem:[#allocation2 + $0x208] sm:$0xf0] %v13066_v33 }
 0x185   :  { %1013 = vst [vmem:[#allocation2 + $0x218] sm:$0xf0] %v13066_v33  ;;  %1014 = vst [vmem:[#allocation2 + $0x228] sm:$0xf0] %v13066_v33  ;;  %v670_v33 = vadd.f32 %v13626_v61, %v13658_v3  ;;  %v13781_v3 = vpop.f32.mrb[57].mxu0 }
 0x186   :  { %18114 = vst [vmem:[#allocation21_spill] sm:$0xff] %v13775_v46  ;;  %18115 = vst [vmem:[#allocation22_spill] sm:$0xff] %v13781_v3  ;;  %v695_v2 = vmul.f32 %v13781_v3, %v13781_v3  ;;  %v13788_v49 = vpop.f32.mrb[58].mxu0 }
 0x187   :  { %v671_v35 = vadd.f32 %v13643_v13, %v670_v33  ;;  %18116 = vst [vmem:[#allocation23_spill] sm:$0xff] %v13788_v49  ;;  %v13793_v33 = vpop.f32.mrb[59].mxu0  ;;  %v1962_v13 = vrot.slane %v1208_v32, 4  ;;  %v698_v31 = vmul.f32 %v13788_v49, %v13788_v49 }
 0x188   :  { %18117 = vst [vmem:[#allocation24_spill] sm:$0xff] %v13793_v33  ;;  %v710_v61 = vadd.f32 %v709_v14, %v695_v2  ;;  %v13808_v29 = vpop.f32.mrb[60].mxu0 }
 0x189   :  { %v672_v36 = vadd.f32 %v671_v35, %v13781_v3  ;;  %v696_v35 = vmul.f32 %v13793_v33, %v13793_v33  ;;  %v1961_v3 = vrot.slane %v1864_v56, 4  ;;  %18119 = vst [vmem:[#allocation26_spill] sm:$0xff] %v13808_v29 }
 0x18b   :  { %v673_v47 = vadd.f32 %v672_v36, %v13793_v33  ;;  %v1963_v23 = vsel %vm1960_vm0, %v1961_v3, %v1962_v13  ;;  %v711_v0 = vadd.f32 %v710_v61, %v696_v35  ;;  %v13806_v36 = vld [vmem:[%s17993_s4 + $0x100] sm:$0xff]   ;;  %v470_v13 = vpop.f32.mrb[61].mxu0 }
 0x18c   :  { %11505 = vmatprep.mubr.bf16.mxu0 %v1963_v23  ;;  %18118 = vst [vmem:[#allocation25_spill] sm:$0xff] %v13806_v36  ;;  %v699_v32 = vmul.f32 %v470_v13, %v470_v13  ;;  %v13813_v56 = vpop.f32.mrb[62].mxu0  ;;  %11809 = vmatprep.subr.bf16.mxu1 %v13806_v36 }
 0x18d   :  { %v674_v30 = vadd.f32 %v13775_v46, %v673_v47  ;;  %v712_v14 = vadd.f32 %v711_v0, %v697_v53  ;;  %18120 = vst [vmem:[#allocation27_spill] sm:$0xff] %v13813_v56  ;;  %v473_v47 = vpop.f32.mrb[63].mxu0  ;;  %v702_v50 = vmul.f32 %v13813_v56, %v13813_v56 }
 0x18e   :  { %v700_v23 = vmul.f32 %v473_v47, %v473_v47 }
 0x18f   :  { %v675_v2 = vadd.f32 %v13788_v49, %v674_v30  ;;  %v713_v61 = vadd.f32 %v712_v14, %v698_v31  ;;  %v701_v30 = vmul.f32 %v13808_v29, %v13808_v29 }
 0x191   :  { %v676_v3 = vadd.f32 %v675_v2, %v470_v13  ;;  %v714_v46 = vadd.f32 %v713_v61, %v699_v32 }
 0x193   :  { %v677_v35 = vadd.f32 %v676_v3, %v473_v47  ;;  %v715_v49 = vadd.f32 %v714_v46, %v700_v23 }
 0x195   :  { %v678_v33 = vadd.f32 %v13808_v29, %v677_v35  ;;  %v716_v53 = vadd.f32 %v715_v49, %v701_v30 }
 0x197   :  { %v679_v0 = vadd.f32 %v13813_v56, %v678_v33  ;;  %v717_v18 = vadd.f32 %v716_v53, %v702_v50  ;;  %v738_v53 = vlaneseq }
 0x199   :  { %v680_v2 = vrot.slane %v679_v0, 4  ;;  %v718_v31 = vrot.slane %v717_v18, 4 }
 0x19b   :  { %v681_v36 = vadd.f32 %v680_v2, %v679_v0  ;;  %v719_v3 = vadd.f32 %v718_v31, %v717_v18  ;;  %v739_v18 = vshrl.u32 %v738_v53, 7  ;;  %v18131_v53 = vld [vmem:[#allocation6_spill] sm:$0xff] }
 0x19d   :  { %v682_v14 = vrot.slane %v681_v36, 2  ;;  %v720_v32 = vrot.slane %v719_v3, 2 }
 0x19f   :  { %v683_v7 = vadd.f32 %v682_v14, %v681_v36  ;;  %v721_v35 = vadd.f32 %v720_v32, %v719_v3  ;;  %v730_v36 = vld [vmem:[%s17994_s2] sm:$0x1] }
 0x1a1   :  { %v684_v61 = vrot.slane %v683_v7, 1  ;;  %v722_v62 = vrot.slane %v721_v35, 1 }
 0x1a3   :  { %v685_v15 = vadd.f32 %v684_v61, %v683_v7  ;;  %v723_v23 = vadd.f32 %v722_v62, %v721_v35  ;;  %v13827_v7 = vsub.s32 0, %v739_v18  ;;  %v734_v62 = vld [vmem:[%s17995_s3] sm:$0x1] }
 0x1a5   :  { %v686_v46 = vadd.f32 %v685_v15, %v13760_v39  ;;  %v724_v29 = vadd.f32 %v723_v23, %v13773_v8  ;;  %18121 = vst [vmem:[#allocation28_spill] sm:$0xff] %v13827_v7 }
 0x1a7   :  { %v725_v33 = vmul.f32 0.001953125, %v686_v46  ;;  %v726_v49 = vmul.f32 0.001953125, %v724_v29 }
 0x1a9   :  { %v727_v56 = vmul.f32 %v725_v33, %v725_v33 }
 0x1ab   :  { %v728_v30 = vsub.f32 %v726_v49, %v727_v56 }
 0x1ad   :  { %v729_v50 = vmax.f32 %v728_v30, 0.0 }
 0x1af   :  { %v731_v0 = vadd.f32 1e-05, %v729_v50 }
 0x1b1   :  { %12906 = vrsqrt.f32 %v731_v0  ;;  %v18130_v0 = vld [vmem:[#allocation4_spill] sm:$0xff] }
 0x1bb   :  { %v12907_v2 = vpop.eup %12906 }
 0x1bc   :  { %v733_v15 = vmul.f32 %v12907_v2, %v730_v36 }
 0x1be   :  { %v735_v39 = vmul.f32 %v733_v15, %v725_v33  ;;  %v13833_v8 = vrot.slane %v733_v15, %v13827_v7  ;;  %v18134_v15 = vld [vmem:[#allocation7_spill] sm:$0xff] }
 0x1c0   :  { %v736_v29 = vsub.f32 %v734_v62, %v735_v39  ;;  %v803_v56 = vmul.f32 %v13833_v8, %v470_v13  ;;  %v804_v31 = vmul.f32 %v13833_v8, %v473_v47  ;;  %v13839_v14 = vmul.f32 %v13833_v8, %v13340_v41  ;;  %v18135_v62 = vld [vmem:[#allocation10_spill] sm:$0xff] }
 0x1c1   :  { %v13843_v3 = vmul.f32 %v13833_v8, %v13344_v43  ;;  %v13847_v32 = vmul.f32 %v13338_v40, %v13833_v8  ;;  %v13851_v61 = vmul.f32 %v13342_v42, %v13833_v8  ;;  %v13855_v13 = vmul.f32 %v13833_v8, %v13360_v54 }
 0x1c2   :  { %v13858_v47 = vrot.slane %v736_v29, %v13827_v7  ;;  %v13862_v41 = vmul.f32 %v13833_v8, %v13367_v59  ;;  %v13866_v43 = vmul.f32 %v13357_v52, %v13833_v8  ;;  %v13870_v40 = vmul.f32 %v13365_v58, %v13833_v8  ;;  %v18136_v29 = vld [vmem:[#allocation12_spill] sm:$0xff] }
 0x1c3   :  { %v13874_v42 = vmul.f32 %v13833_v8, %v13380_v6  ;;  %v13878_v54 = vmul.f32 %v13833_v8, %v13387_v11  ;;  %v13882_v59 = vmul.f32 %v13377_v4, %v13833_v8  ;;  %v13886_v52 = vmul.f32 %v13385_v10, %v13833_v8 }
 0x1c4   :  { %v873_v35 = vadd.f32 %v13858_v47, %v803_v56  ;;  %v874_v58 = vadd.f32 %v13858_v47, %v804_v31  ;;  %v13892_v6 = vmul.f32 %v13833_v8, %v13400_v22  ;;  %v13896_v11 = vmul.f32 %v13833_v8, %v13407_v27  ;;  %v18137_v31 = vld [vmem:[#allocation9_spill] sm:$0xff] }
 0x1c5   :  { %v13900_v4 = vmul.f32 %v13397_v20, %v13833_v8  ;;  %v13904_v10 = vmul.f32 %v13405_v26, %v13833_v8  ;;  %v13908_v46 = vmul.f32 %v13833_v8, %v13420_v38  ;;  %v13912_v22 = vmul.f32 %v13833_v8, %v13424_v45 }
 0x1c6   :  { %v937_v23 = vmax.f32 %v873_v35, 0.0  ;;  %v938_v33 = vmax.f32 %v874_v58, 0.0  ;;  %v13916_v27 = vmul.f32 %v13418_v37, %v13833_v8  ;;  %v13920_v20 = vmul.f32 %v13422_v44, %v13833_v8  ;;  %v18138_v58 = vld [vmem:[#allocation11_spill] sm:$0xff] }
 0x1c7   :  { %v13924_v26 = vmul.f32 %v13833_v8, %v13440_v60  ;;  %v13928_v38 = vmul.f32 %v13833_v8, %v13447_v1  ;;  %v13932_v45 = vmul.f32 %v13435_v55, %v13833_v8  ;;  %v13936_v37 = vmul.f32 %v13445_v63, %v13833_v8 }
 0x1c8   :  { %v1045_v49 = vpack.c.bf16 %v938_v33, %v937_v23  ;;  %v13940_v44 = vmul.f32 %v13833_v8, %v13460_v16  ;;  %v13944_v60 = vmul.f32 %v13833_v8, %v13467_v24  ;;  %v13948_v1 = vmul.f32 %v13455_v12, %v13833_v8  ;;  %v18139_v33 = vld [vmem:[#allocation14_spill] sm:$0xff] }
 0x1c9   :  { %v13952_v55 = vmul.f32 %v13465_v19, %v13833_v8  ;;  %v13956_v63 = vmul.f32 %v13833_v8, %v13480_v48  ;;  %v13960_v16 = vmul.f32 %v13833_v8, %v13487_v57  ;;  %v13964_v24 = vmul.f32 %v13475_v34, %v13833_v8 }
 0x1ca   :  { %v1109_v30 = vrot.slane %v1045_v49, 4  ;;  %v13968_v12 = vmul.f32 %v13485_v51, %v13833_v8  ;;  %v13972_v19 = vmul.f32 %v13833_v8, %v13500_v17  ;;  %v13976_v48 = vmul.f32 %v13833_v8, %v13504_v25  ;;  %v18129_v25 = vld [vmem:[#allocation3_spill] sm:$0xff] }
 0x1cb   :  { %v13980_v57 = vmul.f32 %v13496_v9, %v13833_v8  ;;  %v13984_v34 = vmul.f32 %v13502_v21, %v13833_v8  ;;  %v13988_v51 = vmul.f32 %v13833_v8, %v13520_v5  ;;  %v13992_v17 = vmul.f32 %v13833_v8, %v13527_v28  ;;  %v18132_v21 = vld [vmem:[#allocation8_spill] sm:$0xff]  ;;  %v18133_v5 = vld [vmem:[#allocation5_spill] sm:$0xff] }
 0x1cc   :  { %18122 = vst [vmem:[#allocation29_spill] sm:$0xff] %v13968_v12  ;;  %18123 = vst [vmem:[#allocation30_spill] sm:$0xff] %v13972_v19  ;;  %v781_v50 = vmul.f32 %v18129_v25, %v13833_v8  ;;  %v782_v9 = vmul.f32 %v18130_v0, %v13833_v8  ;;  %v783_v18 = vmul.f32 %v13833_v8, %v18131_v53  ;;  %v18141_v0 = vld [vmem:[#allocation13_spill] sm:$0xff] }
 0x1cd   :  { %18124 = vst [vmem:[#allocation31_spill] sm:$0xff] %v13976_v48  ;;  %18125 = vst [vmem:[#allocation32_spill] sm:$0xff] %v13980_v57  ;;  %v784_v36 = vmul.f32 %v13833_v8, %v18132_v21  ;;  %v785_v2 = vmul.f32 %v18133_v5, %v13833_v8  ;;  %v786_v28 = vmul.f32 %v18134_v15, %v13833_v8  ;;  %v18142_v21 = vld [vmem:[#allocation15_spill] sm:$0xff]  ;;  %v18143_v15 = vld [vmem:[#allocation18_spill] sm:$0xff] }
 0x1ce   :  { %18126 = vst [vmem:[#allocation33_spill] sm:$0xff] %v13984_v34  ;;  %18127 = vst [vmem:[#allocation34_spill] sm:$0xff] %v13988_v51  ;;  %v787_v39 = vmul.f32 %v13833_v8, %v18135_v62  ;;  %v788_v56 = vmul.f32 %v13833_v8, %v18136_v29  ;;  %v789_v35 = vmul.f32 %v18137_v31, %v13833_v8  ;;  %v18144_v29 = vld [vmem:[#allocation20_spill] sm:$0xff]  ;;  %v18147_v51 = vld [vmem:[#allocation22_spill] sm:$0xff] }
 0x1cf   :  { %18128 = vst [vmem:[#allocation35_spill] sm:$0xff] %v13992_v17  ;;  %1203 = vst [vmem:[#allocation2 + $0x218] ss:$-4 sps:$4 sm:$0xff] %v1109_v30   ;;  %v790_v23 = vmul.f32 %v18138_v58, %v13833_v8  ;;  %v791_v49 = vmul.f32 %v13833_v8, %v18139_v33  ;;  %v18140_v30 = vld [vmem:[#allocation16_spill] sm:$0xff]  ;;  %v793_v53 = vmul.f32 %v18141_v0, %v13833_v8  ;;  %v18145_v58 = vld [vmem:[#allocation17_spill] sm:$0xff] }
 0x1d0   :  { %v792_v25 = vmul.f32 %v13833_v8, %v18140_v30  ;;  %v794_v5 = vmul.f32 %v18142_v21, %v13833_v8  ;;  %v795_v62 = vmul.f32 %v13833_v8, %v18143_v15  ;;  %v796_v31 = vmul.f32 %v13833_v8, %v18144_v29  ;;  %v18146_v33 = vld [vmem:[#allocation19_spill] sm:$0xff]  ;;  %v18148_v34 = vld [vmem:[#allocation24_spill] sm:$0xff]  ;;  %v18149_v21 = vld [vmem:[#allocation21_spill] sm:$0xff] }
 0x1d1   :  { %v797_v7 = vmul.f32 %v18145_v58, %v13833_v8  ;;  %v798_v17 = vmul.f32 %v18146_v33, %v13833_v8  ;;  %v799_v30 = vmul.f32 %v13833_v8, %v18147_v51  ;;  %v800_v0 = vmul.f32 %v13833_v8, %v18148_v34  ;;  %v18150_v15 = vld [vmem:[#allocation23_spill] sm:$0xff]  ;;  %v18151_v29 = vld [vmem:[#allocation26_spill] sm:$0xff] }
 0x1d2   :  { %v801_v57 = vmul.f32 %v18149_v21, %v13833_v8  ;;  %v802_v48 = vmul.f32 %v18150_v15, %v13833_v8  ;;  %v805_v19 = vmul.f32 %v18151_v29, %v13833_v8  ;;  %v18152_v58 = vld [vmem:[#allocation27_spill] sm:$0xff]  ;;  %v14044_v33 = vadd.f32 %v13858_v47, %v13839_v14 }
 0x1d3   :  { %v806_v12 = vmul.f32 %v18152_v58, %v13833_v8  ;;  %v14048_v51 = vadd.f32 %v13858_v47, %v13843_v3  ;;  %v14052_v34 = vadd.f32 %v13858_v47, %v13847_v32  ;;  %v14056_v21 = vadd.f32 %v13858_v47, %v13851_v61  ;;  %v18161_v29 = vld [vmem:[#allocation30_spill] sm:$0xff] }
 0x1d4   :  { %18153 = vst [vmem:[#allocation3_spill] sm:$0xff] %v14044_v33  ;;  %v14060_v15 = vadd.f32 %v13858_v47, %v13855_v13  ;;  %v14064_v8 = vadd.f32 %v13858_v47, %v13862_v41  ;;  %v14068_v14 = vadd.f32 %v13858_v47, %v13866_v43  ;;  %v14072_v3 = vadd.f32 %v13858_v47, %v13870_v40  ;;  %v18163_v58 = vld [vmem:[#allocation31_spill] sm:$0xff] }
 0x1d5   :  { %18154 = vst [vmem:[#allocation4_spill] sm:$0xff] %v14048_v51  ;;  %18155 = vst [vmem:[#allocation6_spill] sm:$0xff] %v14052_v34  ;;  %v14076_v32 = vadd.f32 %v13858_v47, %v13874_v42  ;;  %v14080_v61 = vadd.f32 %v13858_v47, %v13878_v54  ;;  %v14084_v13 = vadd.f32 %v13858_v47, %v13882_v59 }
 0x1d6   :  { %v14088_v41 = vadd.f32 %v13858_v47, %v13886_v52  ;;  %v14092_v43 = vadd.f32 %v13858_v47, %v13892_v6  ;;  %v14096_v40 = vadd.f32 %v13858_v47, %v13896_v11  ;;  %v14100_v42 = vadd.f32 %v13858_v47, %v13900_v4 }
 0x1d7   :  { %v14104_v54 = vadd.f32 %v13858_v47, %v13904_v10  ;;  %v14108_v59 = vadd.f32 %v13858_v47, %v13908_v46  ;;  %v14112_v52 = vadd.f32 %v13858_v47, %v13912_v22  ;;  %v14116_v6 = vadd.f32 %v13858_v47, %v13916_v27 }
 0x1d8   :  { %v14120_v11 = vadd.f32 %v13858_v47, %v13920_v20  ;;  %v14124_v4 = vadd.f32 %v13858_v47, %v13924_v26  ;;  %v14128_v10 = vadd.f32 %v13858_v47, %v13928_v38  ;;  %v14132_v46 = vadd.f32 %v13858_v47, %v13932_v45 }
 0x1d9   :  { %v14136_v22 = vadd.f32 %v13858_v47, %v13936_v37  ;;  %v14140_v27 = vadd.f32 %v13858_v47, %v13940_v44  ;;  %v14144_v20 = vadd.f32 %v13858_v47, %v13944_v60  ;;  %v14148_v26 = vadd.f32 %v13858_v47, %v13948_v1  ;;  %v18159_v60 = vld [vmem:[#allocation29_spill] sm:$0xff] }
 0x1da   :  { %v14152_v38 = vadd.f32 %v13858_v47, %v13952_v55  ;;  %v14156_v45 = vadd.f32 %v13858_v47, %v13956_v63  ;;  %v14160_v37 = vadd.f32 %v13858_v47, %v13960_v16  ;;  %v14164_v44 = vadd.f32 %v13858_v47, %v13964_v24 }
 0x1db   :  { %v14168_v1 = vadd.f32 %v13858_v47, %v18159_v60  ;;  %v14172_v55 = vadd.f32 %v13858_v47, %v18161_v29  ;;  %v14176_v63 = vadd.f32 %v13858_v47, %v18163_v58  ;;  %v14198_v58 = vadd.f32 %v13858_v47, %v782_v9 }
 0x1dc   :  { %18156 = vst [vmem:[#allocation8_spill] sm:$0xff] %v14156_v45  ;;  %18157 = vst [vmem:[#allocation5_spill] sm:$0xff] %v14160_v37  ;;  %v18164_v45 = vld [vmem:[#allocation32_spill] sm:$0xff]  ;;  %v18165_v37 = vld [vmem:[#allocation33_spill] sm:$0xff]  ;;  %v14219_v9 = vadd.f32 %v13858_v47, %v789_v35  ;;  %v14240_v35 = vadd.f32 %v13858_v47, %v796_v31  ;;  %v14261_v31 = vadd.f32 %v13858_v47, %v805_v19  ;;  %v884_v19 = vmax.f32 %v14072_v3, 0.0 }
 0x1dd   :  { %18158 = vst [vmem:[#allocation7_spill] sm:$0xff] %v14164_v44  ;;  %18160 = vst [vmem:[#allocation10_spill] sm:$0xff] %v14168_v1  ;;  %v14180_v16 = vadd.f32 %v13858_v47, %v18164_v45  ;;  %v14184_v24 = vadd.f32 %v13858_v47, %v18165_v37  ;;  %v18167_v44 = vld [vmem:[#allocation34_spill] sm:$0xff]  ;;  %v18168_v1 = vld [vmem:[#allocation35_spill] sm:$0xff]  ;;  %v14201_v45 = vadd.f32 %v13858_v47, %v783_v18  ;;  %v894_v3 = vmax.f32 %v14112_v52, 0.0 }
 0x1de   :  { %18162 = vst [vmem:[#allocation12_spill] sm:$0xff] %v14172_v55  ;;  %v14188_v60 = vadd.f32 %v13858_v47, %v18167_v44  ;;  %v14192_v29 = vadd.f32 %v13858_v47, %v18168_v1  ;;  %v14195_v55 = vadd.f32 %v13858_v47, %v781_v50  ;;  %v14204_v37 = vadd.f32 %v13858_v47, %v784_v36 }
 0x1df   :  { %18166 = vst [vmem:[#allocation9_spill] sm:$0xff] %v14184_v24  ;;  %v14207_v24 = vadd.f32 %v13858_v47, %v785_v2  ;;  %v14210_v44 = vadd.f32 %v13858_v47, %v786_v28  ;;  %v14213_v1 = vadd.f32 %v13858_v47, %v787_v39  ;;  %v14216_v50 = vadd.f32 %v13858_v47, %v788_v56 }
 0x1e0   :  { %v14222_v18 = vadd.f32 %v13858_v47, %v790_v23  ;;  %v14225_v36 = vadd.f32 %v13858_v47, %v791_v49  ;;  %v14228_v2 = vadd.f32 %v13858_v47, %v792_v25  ;;  %v14231_v28 = vadd.f32 %v13858_v47, %v793_v53  ;;  %18173 = vst [vmem:[#allocation15_spill] sm:$0xff] %v14261_v31 }
 0x1e1   :  { %v14234_v39 = vadd.f32 %v13858_v47, %v794_v5  ;;  %v14237_v56 = vadd.f32 %v13858_v47, %v795_v62  ;;  %v14243_v23 = vadd.f32 %v13858_v47, %v797_v7  ;;  %v14246_v49 = vadd.f32 %v13858_v47, %v798_v17 }
 0x1e2   :  { %v14249_v25 = vadd.f32 %v13858_v47, %v799_v30  ;;  %v14252_v53 = vadd.f32 %v13858_v47, %v800_v0  ;;  %v14255_v5 = vadd.f32 %v13858_v47, %v801_v57  ;;  %v14258_v62 = vadd.f32 %v13858_v47, %v802_v48 }
 0x1e3   :  { %v14264_v7 = vadd.f32 %v13858_v47, %v806_v12  ;;  %v880_v0 = vmax.f32 %v14056_v21, 0.0  ;;  %v881_v57 = vmax.f32 %v14060_v15, 0.0  ;;  %v883_v48 = vmax.f32 %v14068_v14, 0.0  ;;  %v18175_v17 = vld [vmem:[#allocation8_spill] sm:$0xff]  ;;  %v18176_v34 = vld [vmem:[#allocation5_spill] sm:$0xff] }
 0x1e4   :  { %18169 = vst [vmem:[#allocation11_spill] sm:$0xff] %v14249_v25  ;;  %18170 = vst [vmem:[#allocation14_spill] sm:$0xff] %v14252_v53  ;;  %v885_v31 = vmax.f32 %v14076_v32, 0.0  ;;  %v886_v47 = vmax.f32 %v14080_v61, 0.0  ;;  %v887_v12 = vmax.f32 %v14084_v13, 0.0  ;;  %v888_v30 = vmax.f32 %v14088_v41, 0.0 }
 0x1e5   :  { %18171 = vst [vmem:[#allocation16_spill] sm:$0xff] %v14255_v5  ;;  %18172 = vst [vmem:[#allocation13_spill] sm:$0xff] %v14258_v62  ;;  %v882_v5 = vmax.f32 %v14064_v8, 0.0  ;;  %v889_v25 = vmax.f32 %v14092_v43, 0.0  ;;  %v890_v21 = vmax.f32 %v14096_v40, 0.0  ;;  %v891_v15 = vmax.f32 %v14100_v42, 0.0 }
 0x1e6   :  { %18174 = vst [vmem:[#allocation18_spill] sm:$0xff] %v14264_v7  ;;  %v892_v8 = vmax.f32 %v14104_v54, 0.0  ;;  %v893_v14 = vmax.f32 %v14108_v59, 0.0  ;;  %v895_v32 = vmax.f32 %v14116_v6, 0.0  ;;  %v896_v61 = vmax.f32 %v14120_v11, 0.0  ;;  %v18177_v51 = vld [vmem:[#allocation7_spill] sm:$0xff] }
 0x1e7   :  { %v897_v13 = vmax.f32 %v14124_v4, 0.0  ;;  %v898_v41 = vmax.f32 %v14128_v10, 0.0  ;;  %v899_v43 = vmax.f32 %v14132_v46, 0.0  ;;  %v900_v40 = vmax.f32 %v14136_v22, 0.0  ;;  %v18178_v33 = vld [vmem:[#allocation10_spill] sm:$0xff]  ;;  %v18179_v7 = vld [vmem:[#allocation12_spill] sm:$0xff] }
 0x1e8   :  { %v901_v42 = vmax.f32 %v14140_v27, 0.0  ;;  %v902_v54 = vmax.f32 %v14144_v20, 0.0  ;;  %v903_v59 = vmax.f32 %v14148_v26, 0.0  ;;  %v904_v52 = vmax.f32 %v14152_v38, 0.0  ;;  %v14303_v27 = vld [vmem:[%s17993_s4] sm:$0xff]   ;;  %v18181_v26 = vld [vmem:[#allocation9_spill] sm:$0xff] }
 0x1e9   :  { %v905_v6 = vmax.f32 %v18175_v17, 0.0  ;;  %v906_v11 = vmax.f32 %v18176_v34, 0.0  ;;  %v907_v4 = vmax.f32 %v18177_v51, 0.0  ;;  %v908_v10 = vmax.f32 %v18178_v33, 0.0  ;;  %18180 = vst [vmem:[#allocation20_spill] sm:$0xff] %v14303_v27  ;;  %11569 = vmatprep.subr.bf16.mxu0 %v14303_v27 }
 0x1ea   :  { %v909_v46 = vmax.f32 %v18179_v7, 0.0  ;;  %v910_v22 = vmax.f32 %v14176_v63, 0.0  ;;  %v911_v20 = vmax.f32 %v14180_v16, 0.0  ;;  %v912_v38 = vmax.f32 %v18181_v26, 0.0 }
 0x1eb   :  { %v913_v17 = vmax.f32 %v14188_v60, 0.0  ;;  %v914_v34 = vmax.f32 %v14192_v29, 0.0  ;;  %v915_v51 = vmax.f32 %v14195_v55, 0.0  ;;  %v916_v33 = vmax.f32 %v14198_v58, 0.0  ;;  %v18182_v53 = vld [vmem:[#allocation11_spill] sm:$0xff] }
 0x1ec   :  { %v917_v7 = vmax.f32 %v14201_v45, 0.0  ;;  %v918_v63 = vmax.f32 %v14204_v37, 0.0  ;;  %v919_v62 = vmax.f32 %v14207_v24, 0.0  ;;  %v920_v16 = vmax.f32 %v14210_v44, 0.0 }
 0x1ed   :  { %v921_v26 = vmax.f32 %v14213_v1, 0.0  ;;  %v922_v60 = vmax.f32 %v14216_v50, 0.0  ;;  %v923_v29 = vmax.f32 %v14219_v9, 0.0  ;;  %v924_v55 = vmax.f32 %v14222_v18, 0.0  ;;  %v18183_v18 = vld [vmem:[#allocation14_spill] sm:$0xff] }
 0x1ee   :  { %v925_v58 = vmax.f32 %v14225_v36, 0.0  ;;  %v926_v45 = vmax.f32 %v14228_v2, 0.0  ;;  %v927_v37 = vmax.f32 %v14231_v28, 0.0  ;;  %v928_v27 = vmax.f32 %v14234_v39, 0.0  ;;  %v18184_v2 = vld [vmem:[#allocation16_spill] sm:$0xff]  ;;  %v18185_v39 = vld [vmem:[#allocation13_spill] sm:$0xff] }
 0x1ef   :  { %v929_v24 = vmax.f32 %v14237_v56, 0.0  ;;  %v930_v44 = vmax.f32 %v14240_v35, 0.0  ;;  %v931_v1 = vmax.f32 %v14243_v23, 0.0  ;;  %v932_v50 = vmax.f32 %v14246_v49, 0.0  ;;  %v18186_v35 = vld [vmem:[#allocation15_spill] sm:$0xff]  ;;  %v18187_v49 = vld [vmem:[#allocation18_spill] sm:$0xff] }
 0x1f0   :  { %v933_v9 = vmax.f32 %v18182_v53, 0.0  ;;  %v934_v36 = vmax.f32 %v18183_v18, 0.0  ;;  %v935_v28 = vmax.f32 %v18184_v2, 0.0  ;;  %v936_v56 = vmax.f32 %v18185_v39, 0.0  ;;  %v18188_v18 = vld [vmem:[#allocation3_spill] sm:$0xff]  ;;  %v18190_v39 = vld [vmem:[#allocation4_spill] sm:$0xff] }
 0x1f1   :  { %v939_v23 = vmax.f32 %v18186_v35, 0.0  ;;  %v940_v53 = vmax.f32 %v18187_v49, 0.0  ;;  %v18189_v2 = vmax.f32 %v18188_v18, 0.0  ;;  %v18191_v35 = vmax.f32 %v18190_v39, 0.0  ;;  %v18192_v18 = vld [vmem:[#allocation6_spill] sm:$0xff] }
 0x1f2   :  { %v18193_v39 = vmax.f32 %v18192_v18, 0.0  ;;  %v1018_v18 = vpack.c.bf16 %v884_v19, %v883_v48  ;;  %v1023_v19 = vpack.c.bf16 %v894_v3, %v893_v14  ;;  %v1024_v48 = vpack.c.bf16 %v896_v61, %v895_v32 }
 0x1f3   :  { %v1015_v49 = vpack.c.bf16 %v18191_v35, %v18189_v2  ;;  %v1017_v35 = vpack.c.bf16 %v882_v5, %v881_v57  ;;  %v1021_v5 = vpack.c.bf16 %v890_v21, %v889_v25  ;;  %v1022_v57 = vpack.c.bf16 %v892_v8, %v891_v15 }
 0x1f4   :  { %v1016_v2 = vpack.c.bf16 %v880_v0, %v18193_v39  ;;  %v1019_v0 = vpack.c.bf16 %v886_v47, %v885_v31  ;;  %v1020_v39 = vpack.c.bf16 %v888_v30, %v887_v12  ;;  %v1025_v31 = vpack.c.bf16 %v898_v41, %v897_v13 }
 0x1f5   :  { %v1026_v47 = vpack.c.bf16 %v900_v40, %v899_v43  ;;  %v1027_v12 = vpack.c.bf16 %v902_v54, %v901_v42  ;;  %v1028_v30 = vpack.c.bf16 %v904_v52, %v903_v59  ;;  %v1029_v21 = vpack.c.bf16 %v906_v11, %v905_v6 }
 0x1f6   :  { %v1030_v25 = vpack.c.bf16 %v908_v10, %v907_v4  ;;  %v1031_v8 = vpack.c.bf16 %v910_v22, %v909_v46  ;;  %v1032_v15 = vpack.c.bf16 %v912_v38, %v911_v20  ;;  %v1033_v3 = vpack.c.bf16 %v914_v34, %v913_v17 }
 0x1f7   :  { %v1034_v14 = vpack.c.bf16 %v916_v33, %v915_v51  ;;  %v1035_v32 = vpack.c.bf16 %v918_v63, %v917_v7  ;;  %v1036_v61 = vpack.c.bf16 %v920_v16, %v919_v62  ;;  %v1037_v13 = vpack.c.bf16 %v922_v60, %v921_v26 }
 0x1f8   :  { %v1038_v41 = vpack.c.bf16 %v924_v55, %v923_v29  ;;  %v1039_v40 = vpack.c.bf16 %v926_v45, %v925_v58  ;;  %v1040_v43 = vpack.c.bf16 %v928_v27, %v927_v37  ;;  %v1041_v42 = vpack.c.bf16 %v930_v44, %v929_v24 }
 0x1f9   :  { %v1042_v54 = vpack.c.bf16 %v932_v50, %v931_v1  ;;  %v1043_v52 = vpack.c.bf16 %v934_v36, %v933_v9  ;;  %v14340_v59 = vpack.c.bf16 %v936_v56, %v935_v28  ;;  %v14342_v6 = vpack.c.bf16 %v940_v53, %v939_v23 }
 0x1fa   :  { %v1079_v11 = vrot.slane %v1015_v49, 4  ;;  %v1080_v4 = vrot.slane %v1016_v2, 4  ;;  %v1081_v10 = vrot.slane %v1017_v35, 4  ;;  %v1082_v46 = vrot.slane %v1018_v18, 4  ;;  %v12853_v49 = vld [vmem:[%s17993_s4 + $0x8] sm:$0xff]  }
 0x1fb   :  { %v1083_v22 = vrot.slane %v1019_v0, 4  ;;  %v1084_v20 = vrot.slane %v1020_v39, 4  ;;  %v1085_v38 = vrot.slane %v1021_v5, 4  ;;  %v1086_v17 = vrot.slane %v1022_v57, 4 }
 0x1fc   :  { %v1087_v62 = vrot.slane %v1023_v19, 4  ;;  %1143 = vst [vmem:[#allocation2 + $0x18] ss:$-4 sps:$4 sm:$0xff] %v1079_v11   ;;  %v1088_v34 = vrot.slane %v1024_v48, 4  ;;  %v1089_v51 = vrot.slane %v1025_v31, 4  ;;  %v1090_v27 = vrot.slane %v1026_v47, 4 }
 0x1fd   :  { %v1091_v33 = vrot.slane %v1027_v12, 4  ;;  %1145 = vst [vmem:[#allocation2 + $0x28] ss:$-4 sps:$4 sm:$0xff] %v1080_v4   ;;  %1147 = vst [vmem:[#allocation2 + $0x38] ss:$-4 sps:$4 sm:$0xff] %v1081_v10   ;;  %v1092_v7 = vrot.slane %v1028_v30, 4 }
 0x1fe   :  { %1149 = vst [vmem:[#allocation2 + $0x48] ss:$-4 sps:$4 sm:$0xff] %v1082_v46   ;;  %1151 = vst [vmem:[#allocation2 + $0x58] ss:$-4 sps:$4 sm:$0xff] %v1083_v22   ;;  %v1093_v63 = vrot.slane %v1029_v21, 4  ;;  %v1094_v16 = vrot.slane %v1030_v25, 4 }
 0x1ff   :  { %v1095_v26 = vrot.slane %v1031_v8, 4  ;;  %1153 = vst [vmem:[#allocation2 + $0x68] ss:$-4 sps:$4 sm:$0xff] %v1084_v20   ;;  %1155 = vst [vmem:[#allocation2 + $0x78] ss:$-4 sps:$4 sm:$0xff] %v1085_v38   ;;  %v1096_v60 = vrot.slane %v1032_v15, 4 }
 0x200   :  { %1157 = vst [vmem:[#allocation2 + $0x88] ss:$-4 sps:$4 sm:$0xff] %v1086_v17   ;;  %1159 = vst [vmem:[#allocation2 + $0x98] ss:$-4 sps:$4 sm:$0xff] %v1087_v62   ;;  %v1097_v29 = vrot.slane %v1033_v3, 4  ;;  %v1098_v55 = vrot.slane %v1034_v14, 4 }
 0x201   :  { %v1099_v58 = vrot.slane %v1035_v32, 4  ;;  %1161 = vst [vmem:[#allocation2 + $0xa8] ss:$-4 sps:$4 sm:$0xff] %v1088_v34   ;;  %1163 = vst [vmem:[#allocation2 + $0xb8] ss:$-4 sps:$4 sm:$0xff] %v1089_v51   ;;  %v1100_v45 = vrot.slane %v1036_v61, 4 }
 0x202   :  { %1165 = vst [vmem:[#allocation2 + $0xc8] ss:$-4 sps:$4 sm:$0xff] %v1090_v27   ;;  %1167 = vst [vmem:[#allocation2 + $0xd8] ss:$-4 sps:$4 sm:$0xff] %v1091_v33   ;;  %v1101_v37 = vrot.slane %v1037_v13, 4  ;;  %v1102_v24 = vrot.slane %v1038_v41, 4 }
 0x203   :  { %v1103_v44 = vrot.slane %v1039_v40, 4  ;;  %1169 = vst [vmem:[#allocation2 + $0xe8] ss:$-4 sps:$4 sm:$0xff] %v1092_v7   ;;  %1171 = vst [vmem:[#allocation2 + $0xf8] ss:$-4 sps:$4 sm:$0xff] %v1093_v63   ;;  %v1104_v1 = vrot.slane %v1040_v43, 4 }
 0x204   :  { %1173 = vst [vmem:[#allocation2 + $0x108] ss:$-4 sps:$4 sm:$0xff] %v1094_v16   ;;  %1175 = vst [vmem:[#allocation2 + $0x138] ss:$-4 sps:$4 sm:$0xff] %v1095_v26   ;;  %v1105_v50 = vrot.slane %v1041_v42, 4  ;;  %v1106_v9 = vrot.slane %v1042_v54, 4 }
 0x205   :  { %v1107_v36 = vrot.slane %v1043_v52, 4  ;;  %1177 = vst [vmem:[#allocation2 + $0x148] ss:$-4 sps:$4 sm:$0xff] %v1096_v60   ;;  %1179 = vst [vmem:[#allocation2 + $0x158] ss:$-4 sps:$4 sm:$0xff] %v1097_v29   ;;  %v1108_v28 = vrot.slane %v14340_v59, 4 }
 0x206   :  { %1181 = vst [vmem:[#allocation2 + $0x168] ss:$-4 sps:$4 sm:$0xff] %v1098_v55   ;;  %1183 = vst [vmem:[#allocation2 + $0x178] ss:$-4 sps:$4 sm:$0xff] %v1099_v58   ;;  %v1110_v56 = vrot.slane %v14342_v6, 4  ;;  %v12855_v14 = vld [vmem:[%s17993_s4 + $0x10] sm:$0xff]  }
 0x207   :  { %1185 = vst [vmem:[#allocation2 + $0x188] ss:$-4 sps:$4 sm:$0xff] %v1100_v45   ;;  %1187 = vst [vmem:[#allocation2 + $0x198] ss:$-4 sps:$4 sm:$0xff] %v1101_v37   ;;  %v1210_v23 = vld [vmem:[#allocation2 + $0x18] sm:$0xf] }
 0x208   :  { %1189 = vst [vmem:[#allocation2 + $0x1a8] ss:$-4 sps:$4 sm:$0xff] %v1102_v24   ;;  %1191 = vst [vmem:[#allocation2 + $0x1b8] ss:$-4 sps:$4 sm:$0xff] %v1103_v44   ;;  %v1865_v53 = vld [vmem:[#allocation2 + $0x10] sm:$0xf0] }
 0x209   :  { %1193 = vst [vmem:[#allocation2 + $0x1c8] ss:$-4 sps:$4 sm:$0xff] %v1104_v1   ;;  %1195 = vst [vmem:[#allocation2 + $0x1d8] ss:$-4 sps:$4 sm:$0xff] %v1105_v50   ;;  %v1964_v2 = vrot.slane %v1865_v53, 4  ;;  %v1965_v35 = vrot.slane %v1210_v23, 4 }
 0x20a   :  { %1197 = vst [vmem:[#allocation2 + $0x1e8] ss:$-4 sps:$4 sm:$0xff] %v1106_v9   ;;  %1199 = vst [vmem:[#allocation2 + $0x1f8] ss:$-4 sps:$4 sm:$0xff] %v1107_v36   ;;  %v1212_v18 = vld [vmem:[#allocation2 + $0x28] sm:$0xf] }
 0x20b   :  { %1201 = vst [vmem:[#allocation2 + $0x208] ss:$-4 sps:$4 sm:$0xff] %v1108_v28   ;;  %1205 = vst [vmem:[#allocation2 + $0x228] ss:$-4 sps:$4 sm:$0xff] %v1110_v56   ;;  %v1866_v0 = vld [vmem:[#allocation2 + $0x20] sm:$0xf0]  ;;  %v1966_v48 = vsel %vm1960_vm0, %v1964_v2, %v1965_v35 }
 0x20c   :  { %v1967_v39 = vrot.slane %v1866_v0, 4  ;;  %v1968_v5 = vrot.slane %v1212_v18, 4  ;;  %v1214_v57 = vld [vmem:[#allocation2 + $0x38] sm:$0xf]  ;;  %v1867_v19 = vld [vmem:[#allocation2 + $0x30] sm:$0xf0]  ;;  %11506 = vmatmul.mubr.bf16.vlgmr.msra.gmra.mrb[64].mxu0 %v1966_v48 }
 0x20d   :  { %v1970_v31 = vrot.slane %v1867_v19, 4  ;;  %v1971_v47 = vrot.slane %v1214_v57, 4  ;;  %v1216_v12 = vld [vmem:[#allocation2 + $0x48] sm:$0xf]  ;;  %v1868_v30 = vld [vmem:[#allocation2 + $0x40] sm:$0xf0] }
 0x20e   :  { %v1969_v21 = vsel %vm1960_vm0, %v1967_v39, %v1968_v5  ;;  %v3839_v25 = vld [vmem:[#allocation2 + $0x130] sm:$0xf8]  ;;  %v14351_v8 = vld [vmem:[#allocation2 + $0x138] sm:$0xf]  ;;  %v1973_v15 = vrot.slane %v1868_v30, 4  ;;  %v1974_v3 = vrot.slane %v1216_v12, 4 }
 0x20f   :  { %11509 = vmatprep.mubr.bf16.mxu0 %v1969_v21  ;;  %v4144_v32 = vshrl.u32 %v3839_v25, 16  ;;  %v4147_v61 = vshll.u32 %v3839_v25, 16  ;;  %v4152_v13 = vshrl.u32 %v14351_v8, 16  ;;  %v4155_v41 = vshll.u32 %v14351_v8, 16  ;;  %v3841_v40 = vld [vmem:[#allocation2 + $0x140] sm:$0xf8] }
 0x210   :  { %v18194_v43 = vld [vmem:[#allocation20_spill] sm:$0xff]  ;;  %v4161_v54 = vshrl.u32 %v3841_v40, 16  ;;  %v4164_v52 = vshll.u32 %v3841_v40, 16  ;;  %v3843_v59 = vld [vmem:[#allocation2 + $0x150] sm:$0xf8]  ;;  %v1972_v6 = vsel %vm1960_vm0, %v1970_v31, %v1971_v47  ;;  %v1975_v11 = vsel %vm1960_vm0, %v1973_v15, %v1974_v3  ;;  %v12856_v58 = vld [vmem:[%s17993_s4 + $0x18] sm:$0xff]  }
 0x211   :  { %11570 = vmatpush3.bf16.msra.mxu0 %v18194_v43  ;;  %v3842_v42 = vld [vmem:[#allocation2 + $0x148] sm:$0xf]  ;;  %v4146_v4 = vrot.slane %v4144_v32, 3  ;;  %v4149_v10 = vrot.slane %v4147_v61, 4  ;;  %v4154_v46 = vrot.slane %v4152_v13, 3  ;;  %v4157_v22 = vrot.slane %v4155_v41, 4 }
 0x212   :  { %11571 = vmatprep.subr.bf16.mxu0 %v12853_v49  ;;  %v3844_v20 = vld [vmem:[#allocation2 + $0x158] sm:$0xf]  ;;  %v4163_v38 = vrot.slane %v4161_v54, 3  ;;  %v4166_v17 = vrot.slane %v4164_v52, 4  ;;  %v4169_v62 = vshrl.u32 %v3842_v42, 16  ;;  %v4172_v34 = vshll.u32 %v3842_v42, 16 }
 0x213   :  { %v4150_v51 = vor.u32 %v4149_v10, %v4146_v4  ;;  %v4158_v27 = vor.u32 %v4157_v22, %v4154_v46  ;;  %v4178_v33 = vshrl.u32 %v3843_v59, 16  ;;  %v4181_v7 = vshll.u32 %v3843_v59, 16  ;;  %v3845_v63 = vld [vmem:[#allocation2 + $0x160] sm:$0xf8]  ;;  %v3846_v55 = vld [vmem:[#allocation2 + $0x168] sm:$0xf] }
 0x214   :  { %v4167_v16 = vor.u32 %v4166_v17, %v4163_v38  ;;  %v4171_v26 = vrot.slane %v4169_v62, 3  ;;  %v4174_v60 = vrot.slane %v4172_v34, 4  ;;  %v4186_v29 = vshrl.u32 %v3844_v20, 16  ;;  %v3847_v1 = vld [vmem:[#allocation2 + $0x170] sm:$0xf8]  ;;  %11510 = vmatmul.mubr.bf16.gmra.mrb[68].mxu0 %v1972_v6  ;;  %v12857_v31 = vld [vmem:[%s17993_s4 + $0x20] sm:$0xff]  }
 0x215   :  { %11572 = vmatpush3.bf16.msra.mxu0 %v12853_v49  ;;  %v4159_v45 = vsel %vm1271_vm1, %v4150_v51, %v4158_v27  ;;  %v4180_v37 = vrot.slane %v4178_v33, 3  ;;  %v4183_v24 = vrot.slane %v4181_v7, 4  ;;  %v4189_v44 = vshll.u32 %v3844_v20, 16  ;;  %v3848_v56 = vld [vmem:[#allocation2 + $0x178] sm:$0xf]  ;;  %11513 = vmatprep.mubr.bf16.mxu0 %v1975_v11  ;;  %v12843_v49 = vld [vmem:[%s17993_s4 + $0x108] sm:$0xff]  }
 0x216   :  { %11573 = vmatprep.subr.bf16.mxu0 %v12855_v14  ;;  %11777 = vmatprep.mubr.bf16.mxu1 %v4159_v45  ;;  %v4175_v50 = vor.u32 %v4174_v60, %v4171_v26  ;;  %v4188_v9 = vrot.slane %v4186_v29, 3  ;;  %v4195_v36 = vshrl.u32 %v3845_v63, 16  ;;  %v4198_v28 = vshll.u32 %v3845_v63, 16  ;;  %v1218_v18 = vld [vmem:[#allocation2 + $0x58] sm:$0xf]  ;;  %v18195_v15 = vld [vmem:[#allocation25_spill] sm:$0xff] }
 0x217   :  { %v4184_v23 = vor.u32 %v4183_v24, %v4180_v37  ;;  %v4191_v53 = vrot.slane %v4189_v44, 4  ;;  %v4203_v2 = vshrl.u32 %v3846_v55, 16  ;;  %v4206_v35 = vshll.u32 %v3846_v55, 16  ;;  %v1869_v0 = vld [vmem:[#allocation2 + $0x50] sm:$0xf0]  ;;  %v12858_v62 = vld [vmem:[%s17993_s4 + $0x28] sm:$0xff]  }
 0x218   :  { %v4176_v39 = vsel %vm1271_vm1, %v4167_v16, %v4175_v50  ;;  %v4197_v5 = vrot.slane %v4195_v36, 3  ;;  %v4200_v57 = vrot.slane %v4198_v28, 4  ;;  %v4212_v19 = vshrl.u32 %v3847_v1, 16  ;;  %v1220_v48 = vld [vmem:[#allocation2 + $0x68] sm:$0xf]  ;;  %v12844_v54 = vld [vmem:[%s17993_s4 + $0x110] sm:$0xff]  }
 0x219   :  { %11574 = vmatpush3.bf16.msra.mxu0 %v12855_v14  ;;  %11778 = vmatmul.mubr.bf16.vlgmr.msra.gmra.mrb[0].mxu1 %v4176_v39  ;;  %v4192_v47 = vor.u32 %v4191_v53, %v4188_v9  ;;  %v4205_v12 = vrot.slane %v4203_v2, 3  ;;  %v4208_v30 = vrot.slane %v4206_v35, 4  ;;  %v4215_v21 = vshll.u32 %v3847_v1, 16  ;;  %v1870_v25 = vld [vmem:[#allocation2 + $0x60] sm:$0xf0]  ;;  %v12860_v50 = vld [vmem:[%s17993_s4 + $0x30] sm:$0xff]  }
 0x21a   :  { %11575 = vmatprep.subr.bf16.mxu0 %v12856_v58  ;;  %11810 = vmatpush3.bf16.msra.mxu1 %v18195_v15  ;;  %v4201_v3 = vor.u32 %v4200_v57, %v4197_v5  ;;  %v4214_v14 = vrot.slane %v4212_v19, 3  ;;  %v4220_v32 = vshrl.u32 %v3848_v56, 16  ;;  %v4223_v61 = vshll.u32 %v3848_v56, 16  ;;  %v3849_v13 = vld [vmem:[#allocation2 + $0x180] sm:$0xf8] }
 0x21b   :  { %v4193_v41 = vsel %vm1271_vm1, %v4184_v23, %v4192_v47  ;;  %11811 = vmatprep.subr.bf16.mxu1 %v12843_v49  ;;  %v4209_v40 = vor.u32 %v4208_v30, %v4205_v12  ;;  %v4217_v43 = vrot.slane %v4215_v21, 4  ;;  %v1976_v42 = vrot.slane %v1869_v0, 4  ;;  %v3850_v52 = vld [vmem:[#allocation2 + $0x188] sm:$0xf]  ;;  %v3851_v10 = vld [vmem:[#allocation2 + $0x190] sm:$0xf8] }
 0x21c   :  { %11781 = vmatprep.mubr.bf16.mxu1 %v4193_v41  ;;  %v4222_v59 = vrot.slane %v4220_v32, 3  ;;  %v4225_v6 = vrot.slane %v4223_v61, 4  ;;  %v1977_v11 = vrot.slane %v1218_v18, 4  ;;  %v1979_v4 = vrot.slane %v1870_v25, 4  ;;  %v3852_v17 = vld [vmem:[#allocation2 + $0x198] sm:$0xf] }
 0x21d   :  { %11576 = vmatpush3.bf16.msra.mxu0 %v12856_v58  ;;  %v4210_v46 = vsel %vm1271_vm1, %v4201_v3, %v4209_v40  ;;  %v4218_v22 = vor.u32 %v4217_v43, %v4214_v14  ;;  %v1980_v20 = vrot.slane %v1220_v48, 4  ;;  %v4229_v38 = vshrl.u32 %v3849_v13, 16  ;;  %v1222_v7 = vld [vmem:[#allocation2 + $0x78] sm:$0xf]  ;;  %v1871_v63 = vld [vmem:[#allocation2 + $0x70] sm:$0xf0] }
 0x21e   :  { %11577 = vmatprep.subr.bf16.mxu0 %v12857_v31  ;;  %11812 = vmatpush3.bf16.msra.mxu1 %v12843_v49  ;;  %v4226_v34 = vor.u32 %v4225_v6, %v4222_v59  ;;  %v1978_v51 = vsel %vm1960_vm0, %v1976_v42, %v1977_v11  ;;  %v4232_v27 = vshll.u32 %v3849_v13, 16  ;;  %v4237_v33 = vshrl.u32 %v3850_v52, 16  ;;  %v1224_v55 = vld [vmem:[#allocation2 + $0x88] sm:$0xf]  ;;  %v12845_v58 = vld [vmem:[%s17993_s4 + $0x118] sm:$0xff]   ;;  %v12846_v48 = vld [vmem:[%s17993_s4 + $0x120] sm:$0xff]  }
 0x21f   :  { %11514 = vmatmul.mubr.bf16.gmra.mrb[72].mxu0 %v1978_v51  ;;  %v1981_v16 = vsel %vm1960_vm0, %v1979_v4, %v1980_v20  ;;  %11813 = vmatprep.subr.bf16.mxu1 %v12844_v54  ;;  %v4231_v26 = vrot.slane %v4229_v38, 3  ;;  %v4240_v60 = vshll.u32 %v3850_v52, 16  ;;  %v4246_v29 = vshrl.u32 %v3851_v10, 16  ;;  %v1872_v1 = vld [vmem:[#allocation2 + $0x80] sm:$0xf0]  ;;  %v12861_v25 = vld [vmem:[%s17993_s4 + $0x38] sm:$0xff]  }
 0x220   :  { %v4227_v45 = vsel %vm1271_vm1, %v4218_v22, %v4226_v34  ;;  %11517 = vmatprep.mubr.bf16.mxu0 %v1981_v16  ;;  %v4234_v37 = vrot.slane %v4232_v27, 4  ;;  %v4239_v24 = vrot.slane %v4237_v33, 3  ;;  %v4249_v44 = vshll.u32 %v3851_v10, 16  ;;  %v3853_v23 = vld [vmem:[#allocation2 + $0x1a0] sm:$0xf8]  ;;  %v12847_v10 = vld [vmem:[%s17993_s4 + $0x128] sm:$0xff]  }
 0x221   :  { %11578 = vmatpush3.bf16.msra.mxu0 %v12857_v31  ;;  %11782 = vmatmul.mubr.bf16.gmra.mrb[4].mxu1 %v4210_v46  ;;  %v4242_v9 = vrot.slane %v4240_v60, 4  ;;  %v4248_v36 = vrot.slane %v4246_v29, 3  ;;  %v4254_v28 = vshrl.u32 %v3852_v17, 16  ;;  %v4257_v56 = vshll.u32 %v3852_v17, 16  ;;  %v3854_v18 = vld [vmem:[#allocation2 + $0x1a8] sm:$0xf] }
 0x222   :  { %11579 = vmatprep.subr.bf16.mxu0 %v12858_v62  ;;  %11785 = vmatprep.mubr.bf16.mxu1 %v4227_v45  ;;  %v4235_v53 = vor.u32 %v4234_v37, %v4231_v26  ;;  %v4251_v49 = vrot.slane %v4249_v44, 4  ;;  %v1982_v2 = vrot.slane %v1871_v63, 4  ;;  %v1983_v35 = vrot.slane %v1222_v7, 4  ;;  %v3855_v19 = vld [vmem:[#allocation2 + $0x1b0] sm:$0xf8] }
 0x223   :  { %11814 = vmatpush3.bf16.msra.mxu1 %v12844_v54  ;;  %v4243_v0 = vor.u32 %v4242_v9, %v4239_v24  ;;  %v4256_v39 = vrot.slane %v4254_v28, 3  ;;  %v4259_v5 = vrot.slane %v4257_v56, 4  ;;  %v1985_v57 = vrot.slane %v1872_v1, 4  ;;  %v3856_v21 = vld [vmem:[#allocation2 + $0x1b8] sm:$0xf]  ;;  %v12848_v24 = vld [vmem:[%s17993_s4 + $0x130] sm:$0xff]  }
 0x224   :  { %11815 = vmatprep.subr.bf16.mxu1 %v12845_v58  ;;  %v4252_v31 = vor.u32 %v4251_v49, %v4248_v36  ;;  %v1984_v47 = vsel %vm1960_vm0, %v1982_v2, %v1983_v35  ;;  %v1986_v12 = vrot.slane %v1224_v55, 4  ;;  %v4263_v30 = vshrl.u32 %v3853_v23, 16  ;;  %v1226_v61 = vld [vmem:[#allocation2 + $0x98] sm:$0xf]  ;;  %v1873_v13 = vld [vmem:[#allocation2 + $0x90] sm:$0xf0] }
 0x225   :  { %11580 = vmatpush3.bf16.msra.mxu0 %v12858_v62  ;;  %v4244_v15 = vsel %vm1271_vm1, %v4235_v53, %v4243_v0  ;;  %v4260_v3 = vor.u32 %v4259_v5, %v4256_v39  ;;  %v4266_v14 = vshll.u32 %v3853_v23, 16  ;;  %v4271_v32 = vshrl.u32 %v3854_v18, 16  ;;  %v1228_v54 = vld [vmem:[#allocation2 + $0xa8] sm:$0xf]  ;;  %v1874_v4 = vld [vmem:[#allocation2 + $0xa0] sm:$0xf0] }
 0x226   :  { %11581 = vmatprep.subr.bf16.mxu0 %v12860_v50  ;;  %v1987_v41 = vsel %vm1960_vm0, %v1985_v57, %v1986_v12  ;;  %v4265_v40 = vrot.slane %v4263_v30, 3  ;;  %v4274_v43 = vshll.u32 %v3854_v18, 16  ;;  %v4280_v42 = vshrl.u32 %v3855_v19, 16  ;;  %v3857_v17 = vld [vmem:[#allocation2 + $0x1c0] sm:$0xf8]  ;;  %v12849_v57 = vld [vmem:[%s17993_s4 + $0x138] sm:$0xff]  }
 0x227   :  { %11816 = vmatpush3.bf16.msra.mxu1 %v12845_v58  ;;  %v4261_v52 = vsel %vm1271_vm1, %v4252_v31, %v4260_v3  ;;  %11518 = vmatmul.mubr.bf16.gmra.mrb[76].mxu0 %v1984_v47  ;;  %v4268_v59 = vrot.slane %v4266_v14, 4  ;;  %v4273_v6 = vrot.slane %v4271_v32, 3  ;;  %v4283_v11 = vshll.u32 %v3855_v19, 16  ;;  %v3858_v33 = vld [vmem:[#allocation2 + $0x1c8] sm:$0xf] }
 0x228   :  { %11817 = vmatprep.subr.bf16.mxu1 %v12846_v48  ;;  %11521 = vmatprep.mubr.bf16.mxu0 %v1987_v41  ;;  %v4276_v46 = vrot.slane %v4274_v43, 4  ;;  %v4282_v22 = vrot.slane %v4280_v42, 3  ;;  %v4288_v20 = vshrl.u32 %v3856_v21, 16  ;;  %v4291_v38 = vshll.u32 %v3856_v21, 16  ;;  %v3859_v60 = vld [vmem:[#allocation2 + $0x1d0] sm:$0xf8] }
 0x229   :  { %11582 = vmatpush3.bf16.msra.mxu0 %v12860_v50  ;;  %11786 = vmatmul.mubr.bf16.gmra.mrb[8].mxu1 %v4244_v15  ;;  %v4269_v62 = vor.u32 %v4268_v59, %v4265_v40  ;;  %v4285_v34 = vrot.slane %v4283_v11, 4  ;;  %v1988_v51 = vrot.slane %v1873_v13, 4  ;;  %v1989_v27 = vrot.slane %v1226_v61, 4  ;;  %v3860_v37 = vld [vmem:[#allocation2 + $0x1d8] sm:$0xf]  ;;  %v14416_v11 = vld [vmem:[%s17993_s4 + $0x140] sm:$0xff]  }
 0x22a   :  { %11583 = vmatprep.subr.bf16.mxu0 %v12861_v25  ;;  %11789 = vmatprep.mubr.bf16.mxu1 %v4261_v52  ;;  %v4277_v7 = vor.u32 %v4276_v46, %v4273_v6  ;;  %v4290_v63 = vrot.slane %v4288_v20, 3  ;;  %v4293_v16 = vrot.slane %v4291_v38, 4  ;;  %v1991_v26 = vrot.slane %v1874_v4, 4  ;;  %v1230_v36 = vld [vmem:[#allocation2 + $0xb8] sm:$0xf] }
 0x22b   :  { %11818 = vmatpush3.bf16.msra.mxu1 %v12846_v48  ;;  %v4286_v29 = vor.u32 %v4285_v34, %v4282_v22  ;;  %v1990_v55 = vsel %vm1960_vm0, %v1988_v51, %v1989_v27  ;;  %v1992_v58 = vrot.slane %v1228_v54, 4  ;;  %v4297_v45 = vshrl.u32 %v3857_v17, 16  ;;  %v1875_v28 = vld [vmem:[#allocation2 + $0xb0] sm:$0xf0]  ;;  %v1232_v2 = vld [vmem:[#allocation2 + $0xc8] sm:$0xf] }
 0x22c   :  { %11819 = vmatprep.subr.bf16.mxu1 %v12847_v10  ;;  %v4278_v44 = vsel %vm1271_vm1, %v4269_v62, %v4277_v7  ;;  %v4294_v1 = vor.u32 %v4293_v16, %v4290_v63  ;;  %v4300_v50 = vshll.u32 %v3857_v17, 16  ;;  %v4305_v9 = vshrl.u32 %v3858_v33, 16  ;;  %v1876_v5 = vld [vmem:[#allocation2 + $0xc0] sm:$0xf0]  ;;  %v3862_v3 = vld [vmem:[#allocation2 + $0x1e8] sm:$0xf] }
 0x22d   :  { %11584 = vmatpush3.bf16.msra.mxu0 %v12861_v25  ;;  %v1993_v56 = vsel %vm1960_vm0, %v1991_v26, %v1992_v58  ;;  %v4299_v23 = vrot.slane %v4297_v45, 3  ;;  %v4308_v53 = vshll.u32 %v3858_v33, 16  ;;  %v4314_v49 = vshrl.u32 %v3859_v60, 16  ;;  %v3861_v12 = vld [vmem:[#allocation2 + $0x1e0] sm:$0xf8] }
 0x22e   :  { %v4295_v35 = vsel %vm1271_vm1, %v4286_v29, %v4294_v1  ;;  %v4302_v18 = vrot.slane %v4300_v50, 4  ;;  %v4307_v0 = vrot.slane %v4305_v9, 3  ;;  %v4317_v39 = vshll.u32 %v3859_v60, 16  ;;  %v3863_v41 = vld [vmem:[#allocation2 + $0x1f0] sm:$0xf8] }
 0x22f   :  { %11820 = vmatpush3.bf16.msra.mxu1 %v12847_v10  ;;  %11522 = vmatmul.mubr.bf16.gmra.mrb[80].mxu0 %v1990_v55  ;;  %v4310_v19 = vrot.slane %v4308_v53, 4  ;;  %v4316_v48 = vrot.slane %v4314_v49, 3  ;;  %v4322_v31 = vshrl.u32 %v3860_v37, 16  ;;  %v4325_v47 = vshll.u32 %v3860_v37, 16  ;;  %v3864_v6 = vld [vmem:[#allocation2 + $0x1f8] sm:$0xf] }
 0x230   :  { %11821 = vmatprep.subr.bf16.mxu1 %v12848_v24  ;;  %11525 = vmatprep.mubr.bf16.mxu0 %v1993_v56  ;;  %v4303_v30 = vor.u32 %v4302_v18, %v4299_v23  ;;  %v4319_v21 = vrot.slane %v4317_v39, 4  ;;  %v1994_v25 = vrot.slane %v1875_v28, 4  ;;  %v1995_v15 = vrot.slane %v1230_v36, 4  ;;  %v1234_v46 = vld [vmem:[#allocation2 + $0xd8] sm:$0xf] }
 0x231   :  { %11790 = vmatmul.mubr.bf16.gmra.mrb[12].mxu1 %v4278_v44  ;;  %v4311_v14 = vor.u32 %v4310_v19, %v4307_v0  ;;  %v4324_v32 = vrot.slane %v4322_v31, 3  ;;  %v4327_v61 = vrot.slane %v4325_v47, 4  ;;  %v1997_v13 = vrot.slane %v1876_v5, 4  ;;  %v1877_v22 = vld [vmem:[#allocation2 + $0xd0] sm:$0xf0] }
 0x232   :  { %11793 = vmatprep.mubr.bf16.mxu1 %v4295_v35  ;;  %v4320_v40 = vor.u32 %v4319_v21, %v4316_v48  ;;  %v1998_v43 = vrot.slane %v1232_v2, 4  ;;  %v4331_v42 = vshrl.u32 %v3861_v12, 16  ;;  %v4334_v52 = vshll.u32 %v3861_v12, 16  ;;  %v1236_v34 = vld [vmem:[#allocation2 + $0xe8] sm:$0xf] }
 0x233   :  { %11822 = vmatpush3.bf16.msra.mxu1 %v12848_v24  ;;  %v4328_v54 = vor.u32 %v4327_v61, %v4324_v32  ;;  %v4339_v59 = vshrl.u32 %v3862_v3, 16  ;;  %v4342_v4 = vshll.u32 %v3862_v3, 16  ;;  %v4348_v10 = vshrl.u32 %v3863_v41, 16  ;;  %v1878_v51 = vld [vmem:[#allocation2 + $0xe0] sm:$0xf0] }
 0x234   :  { %11823 = vmatprep.subr.bf16.mxu1 %v12849_v57  ;;  %v4312_v20 = vsel %vm1271_vm1, %v4303_v30, %v4311_v14  ;;  %v1996_v38 = vsel %vm1960_vm0, %v1994_v25, %v1995_v15  ;;  %v1999_v17 = vsel %vm1960_vm0, %v1997_v13, %v1998_v43  ;;  %v4351_v62 = vshll.u32 %v3863_v41, 16  ;;  %v3867_v27 = vld [vmem:[#allocation2 + $0x210] sm:$0xf8]  ;;  %v3865_v26 = vld [vmem:[#allocation2 + $0x200] sm:$0xf8] }
 0x235   :  { %v4329_v33 = vsel %vm1271_vm1, %v4320_v40, %v4328_v54  ;;  %v4333_v7 = vrot.slane %v4331_v42, 3  ;;  %v4356_v63 = vshrl.u32 %v3864_v6, 16  ;;  %v4359_v16 = vshll.u32 %v3864_v6, 16  ;;  %v3866_v45 = vld [vmem:[#allocation2 + $0x208] sm:$0xf] }
 0x236   :  { %v4336_v60 = vrot.slane %v4334_v52, 4  ;;  %v4341_v29 = vrot.slane %v4339_v59, 3  ;;  %v4344_v55 = vrot.slane %v4342_v4, 4  ;;  %v4350_v58 = vrot.slane %v4348_v10, 3  ;;  %v3868_v50 = vld [vmem:[#allocation2 + $0x218] sm:$0xf] }
 0x237   :  { %11824 = vmatpush3.bf16.msra.mxu1 %v12849_v57  ;;  %11526 = vmatmul.mubr.bf16.gmra.mrb[84].mxu0 %v1996_v38  ;;  %v4353_v37 = vrot.slane %v4351_v62, 4  ;;  %v4358_v24 = vrot.slane %v4356_v63, 3  ;;  %v2000_v44 = vrot.slane %v1877_v22, 4  ;;  %v2001_v1 = vrot.slane %v1234_v46, 4  ;;  %v3869_v48 = vld [vmem:[#allocation2 + $0x220] sm:$0xf8] }
 0x238   :  { %11889 = vmatprep.subr.bf16.mxu1 %v14416_v11  ;;  %11529 = vmatprep.mubr.bf16.mxu0 %v1999_v17  ;;  %v4361_v9 = vrot.slane %v4359_v16, 4  ;;  %v2003_v36 = vrot.slane %v1878_v51, 4  ;;  %v2004_v28 = vrot.slane %v1236_v34, 4  ;;  %v4365_v56 = vshrl.u32 %v3865_v26, 16  ;;  %v14429_v21 = vld [vmem:[#allocation2 + $0xf8] sm:$0xf] }
 0x239   :  { %11794 = vmatmul.mubr.bf16.gmra.mrb[16].mxu1 %v4312_v20  ;;  %v4368_v23 = vshll.u32 %v3865_v26, 16  ;;  %v4373_v53 = vshrl.u32 %v3866_v45, 16  ;;  %v4382_v49 = vshrl.u32 %v3867_v27, 16  ;;  %v4385_v2 = vshll.u32 %v3867_v27, 16  ;;  %v3870_v25 = vld [vmem:[#allocation2 + $0x228] sm:$0xf] }
 0x23a   :  { %11797 = vmatprep.mubr.bf16.mxu1 %v4329_v33  ;;  %v4376_v35 = vshll.u32 %v3866_v45, 16  ;;  %v4390_v18 = vshrl.u32 %v3868_v50, 16  ;;  %v4393_v0 = vshll.u32 %v3868_v50, 16  ;;  %v4337_v39 = vor.u32 %v4336_v60, %v4333_v7  ;;  %v1240_v15 = vld [vmem:[#allocation2 + $0x128] sm:$0xf] }
 0x23b   :  { %v4345_v5 = vor.u32 %v4344_v55, %v4341_v29  ;;  %v4354_v57 = vor.u32 %v4353_v37, %v4350_v58  ;;  %v2002_v19 = vsel %vm1960_vm0, %v2000_v44, %v2001_v1  ;;  %v4362_v31 = vor.u32 %v4361_v9, %v4358_v24  ;;  %v1880_v3 = vld [vmem:[#allocation2 + $0x120] sm:$0xf0]  ;;  %v1879_v41 = vld [vmem:[#allocation2 + $0xf0] sm:$0xf0]  ;;  %v14437_v52 = vld [vmem:[#allocation2 + $0x18] sm:$0xf] }
 0x23c   :  { %v2005_v47 = vsel %vm1960_vm0, %v2003_v36, %v2004_v28  ;;  %v14425_v12 = vrot.slane %v4365_v56, 3  ;;  %v14427_v30 = vrot.slane %v4368_v23, 4  ;;  %v14431_v14 = vrot.slane %v4373_v53, 3  ;;  %v14439_v59 = vld [vmem:[#allocation2 + $0x10] sm:$0xf0] }
 0x23d   :  { %v14433_v32 = vrot.slane %v4376_v35, 4  ;;  %v14435_v61 = vrot.slane %v4382_v49, 3  ;;  %v4387_v13 = vrot.slane %v4385_v2, 4  ;;  %v4392_v40 = vrot.slane %v4390_v18, 3  ;;  %v14442_v46 = vld [vmem:[#allocation2 + $0x138] sm:$0xf] }
 0x23e   :  { %v4395_v43 = vrot.slane %v4393_v0, 4  ;;  %v4399_v42 = vshrl.u32 %v3869_v48, 16  ;;  %v4402_v54 = vshll.u32 %v3869_v48, 16  ;;  %v4346_v6 = vsel %vm1271_vm1, %v4337_v39, %v4345_v5  ;;  %v14444_v22 = vld [vmem:[#allocation2 + $0x130] sm:$0xf0] }
 0x23f   :  { %11530 = vmatmul.mubr.bf16.gmra.mrb[88].mxu0 %v2002_v19  ;;  %v4407_v4 = vshrl.u32 %v3870_v25, 16  ;;  %v4410_v10 = vshll.u32 %v3870_v25, 16  ;;  %v14446_v20 = vld [vmem:[#allocation2 + $0x140] sm:$0xf0]  ;;  %v4363_v38 = vsel %vm1271_vm1, %v4354_v57, %v4362_v31  ;;  %v4371_v17 = vor.u32 %v14427_v30, %v14425_v12  ;;  %v14452_v51 = vld [vmem:[#allocation2 + $0x148] sm:$0xf] }
 0x240   :  { %11533 = vmatprep.mubr.bf16.mxu0 %v2005_v47  ;;  %v2006_v62 = vrot.slane %v1879_v41, 4  ;;  %v2007_v34 = vrot.slane %v14429_v21, 4  ;;  %v14454_v27 = vld [vmem:[#allocation2 + $0x28] sm:$0xf]  ;;  %v14456_v33 = vld [vmem:[#allocation2 + $0x20] sm:$0xf0]  ;;  %v4379_v7 = vor.u32 %v14433_v32, %v14431_v14  ;;  %v4388_v63 = vor.u32 %v4387_v13, %v14435_v61 }
 0x241   :  { %11798 = vmatmul.mubr.bf16.gmra.mrb[20].mxu1 %v4346_v6  ;;  %v2009_v16 = vrot.slane %v1880_v3, 4  ;;  %v2010_v26 = vrot.slane %v1240_v15, 4  ;;  %v14461_v60 = vld [vmem:[#allocation2 + $0x38] sm:$0xf]  ;;  %v14463_v29 = vld [vmem:[#allocation2 + $0x30] sm:$0xf0]  ;;  %v4396_v58 = vor.u32 %v4395_v43, %v4392_v40 }
 0x242   :  { %11801 = vmatprep.mubr.bf16.mxu1 %v4363_v38  ;;  %v14465_v55 = vld [vmem:[#allocation2 + $0x150] sm:$0xf0]  ;;  %v14467_v45 = vrot.slane %v4399_v42, 3  ;;  %v14469_v37 = vrot.slane %v4402_v54, 4  ;;  %v4961_v24 = vrot.slane %v14439_v59, 4  ;;  %v14480_v36 = vrot.slane %v4407_v4, 3 }
 0x243   :  { %v14472_v44 = vld [vmem:[#allocation2 + $0x158] sm:$0xf]  ;;  %v14474_v1 = vld [vmem:[#allocation2 + $0x168] sm:$0xf]  ;;  %v14476_v50 = vld [vmem:[#allocation2 + $0x160] sm:$0xf0]  ;;  %v2008_v35 = vsel %vm1960_vm0, %v2006_v62, %v2007_v34  ;;  %v2011_v18 = vsel %vm1960_vm0, %v2009_v16, %v2010_v26  ;;  %v4380_v25 = vsel %vm1271_vm1, %v4371_v17, %v4379_v7  ;;  %v4397_v15 = vsel %vm1271_vm1, %v4388_v63, %v4396_v58 }
 0x244   :  { %v14478_v9 = vld [vmem:[#allocation2 + $0x40] sm:$0xf0]  ;;  %v14482_v28 = vrot.slane %v4410_v10, 4  ;;  %v4962_v56 = vrot.slane %v14437_v52, 4  ;;  %v2012_v23 = vrot.slane %v14444_v22, 4  ;;  %v2013_v0 = vrot.slane %v14442_v46, 4 }
 0x245   :  { %v14486_v53 = vld [vmem:[#allocation2 + $0x48] sm:$0xf]  ;;  %v14488_v49 = vld [vmem:[#allocation2 + $0x58] sm:$0xf]  ;;  %v14490_v2 = vld [vmem:[#allocation2 + $0x50] sm:$0xf0]  ;;  %v4405_v62 = vor.u32 %v14469_v37, %v14467_v45 }
 0x246   :  { %v2015_v39 = vrot.slane %v14446_v20, 4  ;;  %v14496_v5 = vld [vmem:[#allocation2 + $0x178] sm:$0xf]  ;;  %v14498_v57 = vld [vmem:[#allocation2 + $0x170] sm:$0xf0]  ;;  %v2016_v19 = vrot.slane %v14452_v51, 4  ;;  %v4413_v34 = vor.u32 %v14482_v28, %v14480_v36  ;;  %v4963_v63 = vsel %vm1960_vm0, %v4961_v24, %v4962_v56 }
 0x247   :  { %v4964_v48 = vrot.slane %v14456_v33, 4  ;;  %v4965_v31 = vrot.slane %v14454_v27, 4  ;;  %v4967_v47 = vrot.slane %v14463_v29, 4  ;;  %v14504_v12 = vld [vmem:[#allocation2 + $0x188] sm:$0xf]  ;;  %11534 = vmatmul.mubr.bf16.gmra.mrb[92].mxu0 %v2008_v35  ;;  %v4968_v3 = vrot.slane %v14461_v60, 4 }
 0x248   :  { %v14506_v30 = vld [vmem:[#allocation2 + $0x180] sm:$0xf0]  ;;  %v2018_v14 = vrot.slane %v14465_v55, 4  ;;  %v14512_v32 = vld [vmem:[#allocation2 + $0x68] sm:$0xf]  ;;  %11537 = vmatprep.mubr.bf16.mxu0 %v2011_v18  ;;  %v2019_v13 = vrot.slane %v14472_v44, 4  ;;  %v2014_v16 = vsel %vm1960_vm0, %v2012_v23, %v2013_v0  ;;  %v4414_v56 = vsel %vm1271_vm1, %v4405_v62, %v4413_v34 }
 0x249   :  { %v14514_v61 = vld [vmem:[#allocation2 + $0x60] sm:$0xf0]  ;;  %v2021_v41 = vrot.slane %v14476_v50, 4  ;;  %v2022_v40 = vrot.slane %v14474_v1, 4  ;;  %v4970_v43 = vrot.slane %v14478_v9, 4  ;;  %11802 = vmatmul.mubr.bf16.gmra.mrb[24].mxu1 %v4380_v25  ;;  %v4971_v54 = vrot.slane %v14486_v53, 4 }
 0x24a   :  { %v14520_v42 = vld [vmem:[#allocation2 + $0x78] sm:$0xf]  ;;  %v4973_v52 = vrot.slane %v14490_v2, 4  ;;  %v4974_v6 = vrot.slane %v14488_v49, 4  ;;  %v2024_v4 = vrot.slane %v14498_v57, 4  ;;  %11805 = vmatprep.mubr.bf16.mxu1 %v4397_v15  ;;  %v2025_v46 = vrot.slane %v14496_v5, 4 }
 0x24b   :  { %v14526_v10 = vld [vmem:[#allocation2 + $0x70] sm:$0xf0]  ;;  %v2027_v22 = vrot.slane %v14506_v30, 4  ;;  %v14530_v20 = vld [vmem:[#allocation2 + $0x198] sm:$0xf]  ;;  %v2028_v51 = vrot.slane %v14504_v12, 4  ;;  %v2017_v23 = vsel %vm1960_vm0, %v2015_v39, %v2016_v19  ;;  %v4966_v18 = vsel %vm1960_vm0, %v4964_v48, %v4965_v31 }
 0x24c   :  { %v14532_v38 = vld [vmem:[#allocation2 + $0x190] sm:$0xf0]  ;;  %v4976_v27 = vrot.slane %v14514_v61, 4  ;;  %v1256_v33 = vld [vmem:[#allocation2 + $0x1a8] sm:$0xf]  ;;  %v4977_v26 = vrot.slane %v14512_v32, 4  ;;  %v14554_v0 = vsel %vm1960_vm0, %v4967_v47, %v4968_v3  ;;  %v2020_v25 = vsel %vm1960_vm0, %v2018_v14, %v2019_v13 }
 0x24d   :  { %v14534_v17 = vld [vmem:[#allocation2 + $0x210] sm:$0xf0]  ;;  %v1888_v7 = vld [vmem:[#allocation2 + $0x1a0] sm:$0xf0]  ;;  %v4979_v60 = vrot.slane %v14526_v10, 4  ;;  %v4980_v58 = vrot.slane %v14520_v42, 4  ;;  %v2023_v39 = vsel %vm1960_vm0, %v2021_v41, %v2022_v40  ;;  %v14559_v42 = vsel %vm1960_vm0, %v4970_v43, %v4971_v54 }
 0x24e   :  { %v3822_v29 = vld [vmem:[#allocation2 + $0x88] sm:$0xf]  ;;  %v4872_v55 = vld [vmem:[#allocation2 + $0x80] sm:$0xf0]  ;;  %v2030_v45 = vrot.slane %v14532_v38, 4  ;;  %v2031_v37 = vrot.slane %v14530_v20, 4  ;;  %v14562_v48 = vsel %vm1960_vm0, %v4973_v52, %v4974_v6  ;;  %v14565_v20 = vsel %vm1960_vm0, %v2024_v4, %v2025_v46 }
 0x24f   :  { %v2033_v44 = vrot.slane %v1888_v7, 4  ;;  %v3824_v1 = vld [vmem:[#allocation2 + $0x98] sm:$0xf]  ;;  %v2034_v50 = vrot.slane %v1256_v33, 4  ;;  %v4982_v9 = vrot.slane %v4872_v55, 4  ;;  %v4983_v36 = vrot.slane %v3822_v29, 4  ;;  %11538 = vmatmul.mubr.bf16.gmra.mrb[96].mxu0 %v2014_v16 }
 0x250   :  { %v4873_v24 = vld [vmem:[#allocation2 + $0x90] sm:$0xf0]  ;;  %v4986_v28 = vrot.slane %v3824_v1, 4  ;;  %v1258_v49 = vld [vmem:[#allocation2 + $0x1b8] sm:$0xf]  ;;  %v2054_v35 = vrot.slane %v14534_v17, 4  ;;  %11541 = vmatprep.mubr.bf16.mxu0 %v2017_v23  ;;  %v14568_v14 = vsel %vm1960_vm0, %v2027_v22, %v2028_v51  ;;  %v14571_v43 = vsel %vm1960_vm0, %v4976_v27, %v4977_v26 }
 0x251   :  { %v4985_v53 = vrot.slane %v4873_v24, 4  ;;  %v1889_v2 = vld [vmem:[#allocation2 + $0x1b0] sm:$0xf0]  ;;  %v2037_v57 = vrot.slane %v1258_v49, 4  ;;  %v1260_v12 = vld [vmem:[#allocation2 + $0x1c8] sm:$0xf]  ;;  %11806 = vmatmul.mubr.bf16.gmra.mrb[28].mxu1 %v4414_v56  ;;  %v14574_v54 = vsel %vm1960_vm0, %v4979_v60, %v4980_v58  ;;  %v14580_v46 = vsel %vm1960_vm0, %v2030_v45, %v2031_v37 }
 0x252   :  { %v2036_v5 = vrot.slane %v1889_v2, 4  ;;  %v1890_v30 = vld [vmem:[#allocation2 + $0x1c0] sm:$0xf0]  ;;  %v2040_v15 = vrot.slane %v1260_v12, 4  ;;  %v3826_v32 = vld [vmem:[#allocation2 + $0xa8] sm:$0xf]  ;;  %11825 = vmatprep.mubr.bf16.mxu1 %v4963_v63  ;;  %v14583_v22 = vsel %vm1960_vm0, %v2033_v44, %v2034_v50  ;;  %v14586_v63 = vsel %vm1960_vm0, %v4982_v9, %v4983_v36 }
 0x253   :  { %v2039_v19 = vrot.slane %v1890_v30, 4  ;;  %v4874_v61 = vld [vmem:[#allocation2 + $0xa0] sm:$0xf0]  ;;  %v4989_v47 = vrot.slane %v3826_v32, 4  ;;  %v3828_v3 = vld [vmem:[#allocation2 + $0xb8] sm:$0xf]  ;;  %v14589_v16 = vsel %vm1960_vm0, %v4985_v53, %v4986_v28 }
 0x254   :  { %v4988_v31 = vrot.slane %v4874_v61, 4  ;;  %v4875_v10 = vld [vmem:[#allocation2 + $0xb0] sm:$0xf0]  ;;  %v4992_v41 = vrot.slane %v3828_v3, 4  ;;  %v1262_v40 = vld [vmem:[#allocation2 + $0x1d8] sm:$0xf]  ;;  %v14592_v45 = vsel %vm1960_vm0, %v2036_v5, %v2037_v57 }
 0x255   :  { %v4991_v13 = vrot.slane %v4875_v10, 4  ;;  %v1891_v38 = vld [vmem:[#allocation2 + $0x1d0] sm:$0xf0]  ;;  %v2043_v6 = vrot.slane %v1262_v40, 4  ;;  %v1264_v62 = vld [vmem:[#allocation2 + $0x1e8] sm:$0xf]  ;;  %v14595_v37 = vsel %vm1960_vm0, %v2039_v19, %v2040_v15 }
 0x256   :  { %v2042_v52 = vrot.slane %v1891_v38, 4  ;;  %v1892_v34 = vld [vmem:[#allocation2 + $0x1e0] sm:$0xf0]  ;;  %v12851_v4 = vld [vmem:[%s17993_s4 + $0x148] sm:$0xff]   ;;  %v2046_v27 = vrot.slane %v1264_v62, 4  ;;  %v14598_v36 = vsel %vm1960_vm0, %v4988_v31, %v4989_v47  ;;  %v12854_v61 = vld [vmem:[%s17993_s4 + $0x150] sm:$0xff]  }
 0x257   :  { %v2045_v51 = vrot.slane %v1892_v34, 4  ;;  %v3830_v33 = vld [vmem:[#allocation2 + $0xc8] sm:$0xf]  ;;  %v4876_v7 = vld [vmem:[#allocation2 + $0xc0] sm:$0xf0]  ;;  %11542 = vmatmul.mubr.bf16.gmra.mrb[100].mxu0 %v2020_v25  ;;  %v14601_v24 = vsel %vm1960_vm0, %v4991_v13, %v4992_v41 }
 0x258   :  { %v4994_v26 = vrot.slane %v4876_v7, 4  ;;  %v4995_v60 = vrot.slane %v3830_v33, 4  ;;  %v3832_v29 = vld [vmem:[#allocation2 + $0xd8] sm:$0xf]  ;;  %v4877_v55 = vld [vmem:[#allocation2 + $0xd0] sm:$0xf0]  ;;  %11545 = vmatprep.mubr.bf16.mxu0 %v2023_v39  ;;  %v14604_v49 = vsel %vm1960_vm0, %v2042_v52, %v2043_v6 }
 0x259   :  { %v1270_v58 = vld [vmem:[#allocation2 + $0x218] sm:$0xf]  ;;  %v4997_v44 = vrot.slane %v4877_v55, 4  ;;  %v4998_v1 = vrot.slane %v3832_v29, 4  ;;  %v1893_v9 = vld [vmem:[#allocation2 + $0x1f0] sm:$0xf0]  ;;  %11826 = vmatmul.mubr.bf16.vlgmr.msra.gmra.mrb[32].mxu1 %v4966_v18  ;;  %v14607_v2 = vsel %vm1960_vm0, %v2045_v51, %v2046_v27 }
 0x25a   :  { %v1266_v50 = vld [vmem:[#allocation2 + $0x1f8] sm:$0xf]  ;;  %v2048_v28 = vrot.slane %v1893_v9, 4  ;;  %v1268_v23 = vld [vmem:[#allocation2 + $0x208] sm:$0xf]  ;;  %11890 = vmatpush3.bf16.msra.mxu1 %v14416_v11  ;;  %11829 = vmatprep.mubr.bf16.mxu1 %v14554_v0  ;;  %v14612_v25 = vsel %vm1960_vm0, %v4994_v26, %v4995_v60  ;;  %v2055_v47 = vrot.slane %v1270_v58, 4 }
 0x25b   :  { %v2049_v56 = vrot.slane %v1266_v50, 4  ;;  %v1894_v53 = vld [vmem:[#allocation2 + $0x200] sm:$0xf0]  ;;  %v2052_v57 = vrot.slane %v1268_v23, 4  ;;  %v3834_v12 = vld [vmem:[#allocation2 + $0xe8] sm:$0xf]  ;;  %v14615_v39 = vsel %vm1960_vm0, %v4997_v44, %v4998_v1  ;;  %11891 = vmatprep.subr.bf16.mxu1 %v12851_v4 }
 0x25c   :  { %v2051_v5 = vrot.slane %v1894_v53, 4  ;;  %v4878_v30 = vld [vmem:[#allocation2 + $0xe0] sm:$0xf0]  ;;  %v5001_v19 = vrot.slane %v3834_v12, 4  ;;  %v3836_v15 = vld [vmem:[#allocation2 + $0xf8] sm:$0xf]  ;;  %v14636_v62 = vsel %vm1960_vm0, %v2054_v35, %v2055_v47 }
 0x25d   :  { %v5000_v18 = vrot.slane %v4878_v30, 4  ;;  %v4879_v32 = vld [vmem:[#allocation2 + $0xf0] sm:$0xf0]  ;;  %v14621_v31 = vsel %vm1960_vm0, %v2048_v28, %v2049_v56  ;;  %v5004_v0 = vrot.slane %v3836_v15, 4  ;;  %v3838_v3 = vld [vmem:[#allocation2 + $0x108] sm:$0xf] }
 0x25e   :  { %v5003_v11 = vrot.slane %v4879_v32, 4  ;;  %v14624_v10 = vsel %vm1960_vm0, %v2051_v5, %v2052_v57  ;;  %v4880_v41 = vld [vmem:[#allocation2 + $0x100] sm:$0xf0]  ;;  %v5007_v40 = vrot.slane %v3838_v3, 4  ;;  %v4881_v38 = vld [vmem:[#allocation2 + $0x130] sm:$0xf0]  ;;  %11892 = vmatpush3.bf16.msra.mxu1 %v12851_v4 }
 0x25f   :  { %v14627_v13 = vsel %vm1960_vm0, %v5000_v18, %v5001_v19  ;;  %v5010_v52 = vrot.slane %v14351_v8, 4  ;;  %v5006_v34 = vrot.slane %v4880_v41, 4  ;;  %v5009_v51 = vrot.slane %v4881_v38, 4  ;;  %v1207_v27 = vld [vmem:[#allocation2] sm:$0xf8]  ;;  %11546 = vmatmul.mubr.bf16.gmra.mrb[104].mxu0 %v14565_v20  ;;  %11893 = vmatprep.subr.bf16.mxu1 %v12854_v61  ;;  %v12859_v8 = vld [vmem:[%s17993_s4 + $0x158] sm:$0xff]  }
 0x260   :  { %v14631_v6 = vsel %vm1960_vm0, %v5003_v11, %v5004_v0  ;;  %v1209_v33 = vld [vmem:[#allocation2 + $0x10] sm:$0xf8]  ;;  %v1273_v7 = vshrl.u32 %v1207_v27, 16  ;;  %v1276_v26 = vshll.u32 %v1207_v27, 16  ;;  %v12912_v60 = vld [vmem:[#allocation2 + $0x8] sm:$0xf]  ;;  %11549 = vmatprep.mubr.bf16.mxu0 %v14568_v14 }
 0x261   :  { %v1281_v29 = vshrl.u32 %v12912_v60, 16  ;;  %v1284_v55 = vshll.u32 %v12912_v60, 16  ;;  %v14643_v17 = vsel %vm1960_vm0, %v5006_v34, %v5007_v40  ;;  %v14646_v35 = vsel %vm1960_vm0, %v5009_v51, %v5010_v52  ;;  %v1211_v44 = vld [vmem:[#allocation2 + $0x20] sm:$0xf8]  ;;  %11830 = vmatmul.mubr.bf16.gmra.mrb[36].mxu1 %v14559_v42  ;;  %v12913_v23 = vld [vmem:[#allocation2 + $0x18] sm:$0xf] }
 0x262   :  { %v1290_v58 = vshrl.u32 %v1209_v33, 16  ;;  %v1293_v4 = vshll.u32 %v1209_v33, 16  ;;  %v1275_v1 = vrot.slane %v1273_v7, 3  ;;  %v1278_v50 = vrot.slane %v1276_v26, 4  ;;  %11833 = vmatprep.mubr.bf16.mxu1 %v14562_v48  ;;  %11894 = vmatpush3.bf16.msra.mxu1 %v12854_v61  ;;  %v4882_v19 = vld [vmem:[#allocation2 + $0x140] sm:$0xf0] }
 0x263   :  { %v1283_v9 = vrot.slane %v1281_v29, 3  ;;  %v1286_v20 = vrot.slane %v1284_v55, 4  ;;  %v1298_v53 = vshrl.u32 %v12913_v23, 16  ;;  %v1301_v5 = vshll.u32 %v12913_v23, 16  ;;  %11895 = vmatprep.subr.bf16.mxu1 %v12859_v8  ;;  %v12914_v11 = vld [vmem:[#allocation2 + $0x28] sm:$0xf] }
 0x264   :  { %v1292_v28 = vrot.slane %v1290_v58, 3  ;;  %v1295_v56 = vrot.slane %v1293_v4, 4  ;;  %v1279_v57 = vor.u32 %v1278_v50, %v1275_v1  ;;  %v1307_v30 = vshrl.u32 %v1211_v44, 16  ;;  %v12862_v42 = vld [vmem:[%s17993_s4 + $0x160] sm:$0xff]   ;;  %v4883_v47 = vld [vmem:[#allocation2 + $0x150] sm:$0xf0] }
 0x265   :  { %v1287_v12 = vor.u32 %v1286_v20, %v1283_v9  ;;  %v1310_v18 = vshll.u32 %v1211_v44, 16  ;;  %v1300_v15 = vrot.slane %v1298_v53, 3  ;;  %v1303_v32 = vrot.slane %v1301_v5, 4  ;;  %v1213_v40 = vld [vmem:[#allocation2 + $0x30] sm:$0xf8] }
 0x266   :  { %v1296_v14 = vor.u32 %v1295_v56, %v1292_v28  ;;  %v1315_v0 = vshrl.u32 %v12914_v11, 16  ;;  %v1309_v48 = vrot.slane %v1307_v30, 3  ;;  %v1318_v41 = vshll.u32 %v12914_v11, 16  ;;  %v12915_v51 = vld [vmem:[#allocation2 + $0x148] sm:$0xf]  ;;  %11896 = vmatpush3.bf16.msra.mxu1 %v12859_v8 }
 0x267   :  { %v14655_v3 = vsel %vm1271_vm1, %v1279_v57, %v1287_v12  ;;  %v1312_v61 = vrot.slane %v1310_v18, 4  ;;  %v1304_v38 = vor.u32 %v1303_v32, %v1300_v15  ;;  %v5012_v34 = vrot.slane %v4882_v19, 4  ;;  %v12916_v60 = vld [vmem:[#allocation2 + $0x158] sm:$0xf]  ;;  %v1215_v55 = vld [vmem:[#allocation2 + $0x40] sm:$0xf8]  ;;  %11550 = vmatmul.mubr.bf16.gmra.mrb[108].mxu0 %v14580_v46  ;;  %11897 = vmatprep.subr.bf16.mxu1 %v12862_v42 }
 0x268   :  { %v1317_v52 = vrot.slane %v1315_v0, 3  ;;  %v5013_v27 = vrot.slane %v12915_v51, 4  ;;  %v1320_v7 = vrot.slane %v1318_v41, 4  ;;  %v5015_v26 = vrot.slane %v4883_v47, 4  ;;  %v12863_v8 = vld [vmem:[%s17993_s4 + $0x168] sm:$0xff]   ;;  %11553 = vmatprep.mubr.bf16.mxu0 %v14583_v22  ;;  %v12864_v47 = vld [vmem:[%s17993_s4 + $0x170] sm:$0xff]  }
 0x269   :  { %v1313_v33 = vor.u32 %v1312_v61, %v1309_v48  ;;  %v5016_v29 = vrot.slane %v12916_v60, 4  ;;  %v14659_v58 = vsel %vm1271_vm1, %v1296_v14, %v1304_v38  ;;  %v1324_v44 = vshrl.u32 %v1213_v40, 16  ;;  %v12917_v46 = vld [vmem:[#allocation2 + $0x38] sm:$0xf]  ;;  %11834 = vmatmul.mubr.bf16.gmra.mrb[40].mxu1 %v14571_v43  ;;  %v4884_v57 = vld [vmem:[#allocation2 + $0x160] sm:$0xf0] }
 0x26a   :  { %v14662_v4 = vsel %vm1960_vm0, %v5012_v34, %v5013_v27  ;;  %v1327_v1 = vshll.u32 %v1213_v40, 16  ;;  %v1321_v50 = vor.u32 %v1320_v7, %v1317_v52  ;;  %v1332_v20 = vshrl.u32 %v12917_v46, 16  ;;  %11837 = vmatprep.mubr.bf16.mxu1 %v14574_v54  ;;  %11898 = vmatpush3.bf16.msra.mxu1 %v12862_v42  ;;  %v12918_v18 = vld [vmem:[#allocation2 + $0x48] sm:$0xf]  ;;  %v4885_v14 = vld [vmem:[#allocation2 + $0x170] sm:$0xf0] }
 0x26b   :  { %v14669_v9 = vsel %vm1960_vm0, %v5015_v26, %v5016_v29  ;;  %v1335_v28 = vshll.u32 %v12917_v46, 16  ;;  %v1326_v56 = vrot.slane %v1324_v44, 3  ;;  %v1341_v53 = vshrl.u32 %v1215_v55, 16  ;;  %v1217_v0 = vld [vmem:[#allocation2 + $0x50] sm:$0xf8]  ;;  %11899 = vmatprep.subr.bf16.mxu1 %v12863_v8  ;;  %v12865_v46 = vld [vmem:[%s17993_s4 + $0x178] sm:$0xff]  }
 0x26c   :  { %v1329_v23 = vrot.slane %v1327_v1, 4  ;;  %v1344_v5 = vshll.u32 %v1215_v55, 16  ;;  %v14674_v12 = vsel %vm1271_vm1, %v1313_v33, %v1321_v50  ;;  %v1334_v22 = vrot.slane %v1332_v20, 3  ;;  %v12919_v41 = vld [vmem:[#allocation2 + $0x168] sm:$0xf] }
 0x26d   :  { %v1337_v30 = vrot.slane %v1335_v28, 4  ;;  %v1349_v19 = vshrl.u32 %v12918_v18, 16  ;;  %v1343_v32 = vrot.slane %v1341_v53, 3  ;;  %v1352_v43 = vshll.u32 %v12918_v18, 16  ;;  %v12920_v34 = vld [vmem:[#allocation2 + $0x178] sm:$0xf] }
 0x26e   :  { %v1330_v15 = vor.u32 %v1329_v23, %v1326_v56  ;;  %v1346_v11 = vrot.slane %v1344_v5, 4  ;;  %v5018_v61 = vrot.slane %v4884_v57, 4  ;;  %v5019_v42 = vrot.slane %v12919_v41, 4  ;;  %v1219_v27 = vld [vmem:[#allocation2 + $0x60] sm:$0xf8]  ;;  %11900 = vmatpush3.bf16.msra.mxu1 %v12863_v8 }
 0x26f   :  { %v1338_v54 = vor.u32 %v1337_v30, %v1334_v22  ;;  %v1351_v48 = vrot.slane %v1349_v19, 3  ;;  %v1354_v38 = vrot.slane %v1352_v43, 4  ;;  %v5021_v52 = vrot.slane %v4885_v14, 4  ;;  %11554 = vmatmul.mubr.bf16.gmra.mrb[112].mxu0 %v14592_v45  ;;  %v12921_v44 = vld [vmem:[#allocation2 + $0x58] sm:$0xf]  ;;  %11901 = vmatprep.subr.bf16.mxu1 %v12864_v47 }
 0x270   :  { %v1347_v40 = vor.u32 %v1346_v11, %v1343_v32  ;;  %v5022_v51 = vrot.slane %v12920_v34, 4  ;;  %v14683_v7 = vsel %vm1960_vm0, %v5018_v61, %v5019_v42  ;;  %v1358_v26 = vshrl.u32 %v1217_v0, 16  ;;  %11557 = vmatprep.mubr.bf16.mxu0 %v14595_v37  ;;  %v4886_v23 = vld [vmem:[#allocation2 + $0x180] sm:$0xf0]  ;;  %v12922_v57 = vld [vmem:[#allocation2 + $0x68] sm:$0xf] }
 0x271   :  { %v14680_v33 = vsel %vm1271_vm1, %v1330_v15, %v1338_v54  ;;  %v1361_v60 = vshll.u32 %v1217_v0, 16  ;;  %v1355_v29 = vor.u32 %v1354_v38, %v1351_v48  ;;  %v1366_v1 = vshrl.u32 %v12921_v44, 16  ;;  %11838 = vmatmul.mubr.bf16.gmra.mrb[44].mxu1 %v14586_v63  ;;  %v4887_v30 = vld [vmem:[#allocation2 + $0x190] sm:$0xf0]  ;;  %v14701_v63 = vld [vmem:[%s17993_s4 + $0x80] sm:$0xff]  }
 0x272   :  { %v14687_v55 = vsel %vm1960_vm0, %v5021_v52, %v5022_v51  ;;  %v1369_v50 = vshll.u32 %v12921_v44, 16  ;;  %v1360_v20 = vrot.slane %v1358_v26, 3  ;;  %v1375_v56 = vshrl.u32 %v1219_v27, 16  ;;  %11841 = vmatprep.mubr.bf16.mxu1 %v14589_v16  ;;  %v1221_v15 = vld [vmem:[#allocation2 + $0x70] sm:$0xf8]  ;;  %11902 = vmatpush3.bf16.msra.mxu1 %v12864_v47  ;;  %v12866_v16 = vld [vmem:[%s17993_s4 + $0x180] sm:$0xff]  }
 0x273   :  { %v1363_v28 = vrot.slane %v1361_v60, 4  ;;  %v1378_v8 = vshll.u32 %v1219_v27, 16  ;;  %v14695_v45 = vsel %vm1271_vm1, %v1347_v40, %v1355_v29  ;;  %v1368_v53 = vrot.slane %v1366_v1, 3  ;;  %v12923_v0 = vld [vmem:[#allocation2 + $0x188] sm:$0xf]  ;;  %11903 = vmatprep.subr.bf16.mxu1 %v12865_v46  ;;  %11649 = vmatprep.subr.bf16.mxu0 %v14701_v63 }
 0x274   :  { %v1371_v5 = vrot.slane %v1369_v50, 4  ;;  %v1383_v22 = vshrl.u32 %v12922_v57, 16  ;;  %v1377_v19 = vrot.slane %v1375_v56, 3  ;;  %v1386_v14 = vshll.u32 %v12922_v57, 16  ;;  %v12924_v42 = vld [vmem:[#allocation2 + $0x198] sm:$0xf] }
 0x275   :  { %v1364_v18 = vor.u32 %v1363_v28, %v1360_v20  ;;  %v1380_v37 = vrot.slane %v1378_v8, 4  ;;  %v5024_v43 = vrot.slane %v4886_v23, 4  ;;  %v5025_v54 = vrot.slane %v12923_v0, 4  ;;  %v1223_v40 = vld [vmem:[#allocation2 + $0x80] sm:$0xf8] }
 0x276   :  { %v1372_v32 = vor.u32 %v1371_v5, %v1368_v53  ;;  %v1385_v11 = vrot.slane %v1383_v22, 3  ;;  %v1388_v61 = vrot.slane %v1386_v14, 4  ;;  %v5027_v41 = vrot.slane %v4887_v30, 4  ;;  %v12925_v60 = vld [vmem:[#allocation2 + $0x78] sm:$0xf]  ;;  %11904 = vmatpush3.bf16.msra.mxu1 %v12865_v46 }
 0x277   :  { %v1381_v48 = vor.u32 %v1380_v37, %v1377_v19  ;;  %v5028_v47 = vrot.slane %v12924_v42, 4  ;;  %v14711_v52 = vsel %vm1960_vm0, %v5024_v43, %v5025_v54  ;;  %v1392_v34 = vshrl.u32 %v1221_v15, 16  ;;  %11558 = vmatmul.mubr.bf16.gmra.mrb[116].mxu0 %v14604_v49  ;;  %v4888_v56 = vld [vmem:[#allocation2 + $0x1a0] sm:$0xf0]  ;;  %11969 = vmatprep.subr.bf16.mxu1 %v12866_v16  ;;  %v12926_v5 = vld [vmem:[#allocation2 + $0x88] sm:$0xf] }
 0x278   :  { %v14708_v38 = vsel %vm1271_vm1, %v1364_v18, %v1372_v32  ;;  %v1395_v51 = vshll.u32 %v1221_v15, 16  ;;  %v1389_v27 = vor.u32 %v1388_v61, %v1385_v11  ;;  %v1400_v29 = vshrl.u32 %v12925_v60, 16  ;;  %11561 = vmatprep.mubr.bf16.mxu0 %v14607_v2  ;;  %v4889_v22 = vld [vmem:[#allocation2 + $0x1b0] sm:$0xf0]  ;;  %v12927_v15 = vld [vmem:[#allocation2 + $0x1a8] sm:$0xf] }
 0x279   :  { %v14714_v26 = vsel %vm1960_vm0, %v5027_v41, %v5028_v47  ;;  %v1403_v44 = vshll.u32 %v12925_v60, 16  ;;  %v1394_v1 = vrot.slane %v1392_v34, 3  ;;  %v1409_v20 = vshrl.u32 %v1223_v40, 16  ;;  %11842 = vmatmul.mubr.bf16.gmra.mrb[48].mxu1 %v14598_v36  ;;  %v1225_v19 = vld [vmem:[#allocation2 + $0x90] sm:$0xf8] }
 0x27a   :  { %v1397_v50 = vrot.slane %v1395_v51, 4  ;;  %v1412_v28 = vshll.u32 %v1223_v40, 16  ;;  %v14719_v8 = vsel %vm1271_vm1, %v1381_v48, %v1389_v27  ;;  %v1402_v23 = vrot.slane %v1400_v29, 3  ;;  %11845 = vmatprep.mubr.bf16.mxu1 %v14601_v24  ;;  %v12928_v54 = vld [vmem:[#allocation2 + $0x1b8] sm:$0xf] }
 0x27b   :  { %v1405_v53 = vrot.slane %v1403_v44, 4  ;;  %v1417_v57 = vshrl.u32 %v12926_v5, 16  ;;  %v1411_v49 = vrot.slane %v1409_v20, 3  ;;  %v1420_v18 = vshll.u32 %v12926_v5, 16  ;;  %v1227_v48 = vld [vmem:[#allocation2 + $0xa0] sm:$0xf8] }
 0x27c   :  { %v1398_v46 = vor.u32 %v1397_v50, %v1394_v1  ;;  %v1414_v30 = vrot.slane %v1412_v28, 4  ;;  %v5030_v2 = vrot.slane %v4888_v56, 4  ;;  %v5031_v32 = vrot.slane %v12927_v15, 4  ;;  %v12929_v40 = vld [vmem:[#allocation2 + $0x98] sm:$0xf] }
 0x27d   :  { %v1406_v37 = vor.u32 %v1405_v53, %v1402_v23  ;;  %v1419_v14 = vrot.slane %v1417_v57, 3  ;;  %v1422_v43 = vrot.slane %v1420_v18, 4  ;;  %v5033_v0 = vrot.slane %v4889_v22, 4  ;;  %v4890_v1 = vld [vmem:[#allocation2 + $0x1c0] sm:$0xf0] }
 0x27e   :  { %v1415_v11 = vor.u32 %v1414_v30, %v1411_v49  ;;  %v5034_v16 = vrot.slane %v12928_v54, 4  ;;  %v14727_v61 = vsel %vm1960_vm0, %v5030_v2, %v5031_v32  ;;  %v1426_v41 = vshrl.u32 %v1225_v19, 16  ;;  %v12930_v56 = vld [vmem:[#allocation2 + $0xa8] sm:$0xf]  ;;  %v4891_v53 = vld [vmem:[#allocation2 + $0x1d0] sm:$0xf0] }
 0x27f   :  { %v14724_v36 = vsel %vm1271_vm1, %v1398_v46, %v1406_v37  ;;  %v1429_v42 = vshll.u32 %v1225_v19, 16  ;;  %v1423_v24 = vor.u32 %v1422_v43, %v1419_v14  ;;  %v1434_v34 = vshrl.u32 %v12929_v40, 16  ;;  %11562 = vmatmul.mubr.bf16.gmra.mrb[120].mxu0 %v14621_v31  ;;  %v1229_v49 = vld [vmem:[#allocation2 + $0xb0] sm:$0xf8]  ;;  %v12931_v19 = vld [vmem:[#allocation2 + $0x1c8] sm:$0xf] }
 0x280   :  { %v14730_v47 = vsel %vm1960_vm0, %v5033_v0, %v5034_v16  ;;  %v1437_v51 = vshll.u32 %v12929_v40, 16  ;;  %v1428_v27 = vrot.slane %v1426_v41, 3  ;;  %v1443_v29 = vshrl.u32 %v1227_v48, 16  ;;  %11565 = vmatprep.mubr.bf16.mxu0 %v14624_v10  ;;  %v12932_v32 = vld [vmem:[#allocation2 + $0x1d8] sm:$0xf] }
 0x281   :  { %v1431_v60 = vrot.slane %v1429_v42, 4  ;;  %v1446_v44 = vshll.u32 %v1227_v48, 16  ;;  %v14734_v50 = vsel %vm1271_vm1, %v1415_v11, %v1423_v24  ;;  %v1436_v20 = vrot.slane %v1434_v34, 3  ;;  %11846 = vmatmul.mubr.bf16.gmra.mrb[52].mxu1 %v14612_v25  ;;  %v1231_v10 = vld [vmem:[#allocation2 + $0xc0] sm:$0xf8] }
 0x282   :  { %v1439_v28 = vrot.slane %v1437_v51, 4  ;;  %v1451_v23 = vshrl.u32 %v12930_v56, 16  ;;  %v1445_v57 = vrot.slane %v1443_v29, 3  ;;  %v1454_v46 = vshll.u32 %v12930_v56, 16  ;;  %11849 = vmatprep.mubr.bf16.mxu1 %v14615_v39  ;;  %v12933_v41 = vld [vmem:[#allocation2 + $0xb8] sm:$0xf] }
 0x283   :  { %v1432_v5 = vor.u32 %v1431_v60, %v1428_v27  ;;  %v1448_v22 = vrot.slane %v1446_v44, 4  ;;  %v5036_v31 = vrot.slane %v4890_v1, 4  ;;  %v5037_v37 = vrot.slane %v12931_v19, 4  ;;  %v4892_v27 = vld [vmem:[#allocation2 + $0x1e0] sm:$0xf0] }
 0x284   :  { %v1440_v30 = vor.u32 %v1439_v28, %v1436_v20  ;;  %v1453_v18 = vrot.slane %v1451_v23, 3  ;;  %v1456_v2 = vrot.slane %v1454_v46, 4  ;;  %v5039_v15 = vrot.slane %v4891_v53, 4  ;;  %v12934_v1 = vld [vmem:[#allocation2 + $0xc8] sm:$0xf] }
 0x285   :  { %v1449_v14 = vor.u32 %v1448_v22, %v1445_v57  ;;  %v5040_v11 = vrot.slane %v12932_v32, 4  ;;  %v14743_v0 = vsel %vm1960_vm0, %v5036_v31, %v5037_v37  ;;  %v1460_v25 = vshrl.u32 %v1229_v49, 16  ;;  %v4893_v28 = vld [vmem:[#allocation2 + $0x1f0] sm:$0xf0] }
 0x286   :  { %v14740_v43 = vsel %vm1271_vm1, %v1432_v5, %v1440_v30  ;;  %v1463_v54 = vshll.u32 %v1229_v49, 16  ;;  %v1457_v16 = vor.u32 %v1456_v2, %v1453_v18  ;;  %v1468_v39 = vshrl.u32 %v12933_v41, 16  ;;  %v1233_v57 = vld [vmem:[#allocation2 + $0xd0] sm:$0xf8]  ;;  %v12935_v30 = vld [vmem:[#allocation2 + $0x1e8] sm:$0xf] }
 0x287   :  { %v14746_v48 = vsel %vm1960_vm0, %v5039_v15, %v5040_v11  ;;  %v1471_v42 = vshll.u32 %v12933_v41, 16  ;;  %v1462_v24 = vrot.slane %v1460_v25, 3  ;;  %v1477_v34 = vshrl.u32 %v1231_v10, 16  ;;  %11566 = vmatmul.mubr.bf16.gmra.mrb[124].mxu0 %v14636_v62  ;;  %v1235_v62 = vld [vmem:[#allocation2 + $0xe0] sm:$0xf8] }
 0x288   :  { %v1465_v40 = vrot.slane %v1463_v54, 4  ;;  %v1480_v51 = vshll.u32 %v1231_v10, 16  ;;  %v14749_v60 = vsel %vm1271_vm1, %v1449_v14, %v1457_v16  ;;  %v1470_v29 = vrot.slane %v1468_v39, 3  ;;  %11585 = vmatprep.mubr.bf16.mxu0 %v14655_v3  ;;  %v12936_v14 = vld [vmem:[#allocation2 + $0x1f8] sm:$0xf] }
 0x289   :  { %v1473_v44 = vrot.slane %v1471_v42, 4  ;;  %v1485_v20 = vshrl.u32 %v12934_v1, 16  ;;  %v1479_v23 = vrot.slane %v1477_v34, 3  ;;  %v1488_v5 = vshll.u32 %v12934_v1, 16  ;;  %11850 = vmatmul.mubr.bf16.gmra.mrb[56].mxu1 %v14627_v13  ;;  %v12937_v13 = vld [vmem:[#allocation2 + $0xd8] sm:$0xf] }
 0x28a   :  { %v1466_v56 = vor.u32 %v1465_v40, %v1462_v24  ;;  %v1482_v53 = vrot.slane %v1480_v51, 4  ;;  %v5042_v49 = vrot.slane %v4892_v27, 4  ;;  %v5043_v18 = vrot.slane %v12935_v30, 4  ;;  %11853 = vmatprep.mubr.bf16.mxu1 %v14631_v6  ;;  %v4894_v6 = vld [vmem:[#allocation2 + $0x200] sm:$0xf0]  ;;  %v12869_v1 = vld [vmem:[%s17993_s4 + $0x88] sm:$0xff]  }
 0x28b   :  { %v1474_v22 = vor.u32 %v1473_v44, %v1470_v29  ;;  %v1487_v46 = vrot.slane %v1485_v20, 3  ;;  %v1490_v19 = vrot.slane %v1488_v5, 4  ;;  %v5045_v37 = vrot.slane %v4893_v28, 4  ;;  %v12938_v27 = vld [vmem:[#allocation2 + $0xe8] sm:$0xf] }
 0x28c   :  { %v1483_v31 = vor.u32 %v1482_v53, %v1479_v23  ;;  %v5046_v2 = vrot.slane %v12936_v14, 4  ;;  %v14759_v3 = vsel %vm1960_vm0, %v5042_v49, %v5043_v18  ;;  %v1494_v32 = vshrl.u32 %v1233_v57, 16  ;;  %v4895_v44 = vld [vmem:[#allocation2 + $0x210] sm:$0xf0]  ;;  %v4896_v14 = vld [vmem:[#allocation2 + $0x220] sm:$0xf0] }
 0x28d   :  { %v14756_v15 = vsel %vm1271_vm1, %v1466_v56, %v1474_v22  ;;  %v1497_v11 = vshll.u32 %v1233_v57, 16  ;;  %v1491_v10 = vor.u32 %v1490_v19, %v1487_v46  ;;  %v1502_v54 = vshrl.u32 %v12937_v13, 16  ;;  %v1237_v53 = vld [vmem:[#allocation2 + $0xf0] sm:$0xf8]  ;;  %v12939_v46 = vld [vmem:[#allocation2 + $0x208] sm:$0xf] }
 0x28e   :  { %v14762_v25 = vsel %vm1960_vm0, %v5045_v37, %v5046_v2  ;;  %v1505_v16 = vshll.u32 %v12937_v13, 16  ;;  %v1496_v41 = vrot.slane %v1494_v32, 3  ;;  %v1511_v42 = vshrl.u32 %v1235_v62, 16  ;;  %v12940_v19 = vld [vmem:[#allocation2 + $0x218] sm:$0xf] }
 0x28f   :  { %v1499_v39 = vrot.slane %v1497_v11, 4  ;;  %v1514_v24 = vshll.u32 %v1235_v62, 16  ;;  %v14765_v40 = vsel %vm1271_vm1, %v1483_v31, %v1491_v10  ;;  %v1504_v34 = vrot.slane %v1502_v54, 3  ;;  %11586 = vmatmul.mubr.bf16.vlgmr.msra.gmra.mrb[64].mxu0 %v14659_v58  ;;  %v5507_v13 = vld [vmem:[#allocation2 + $0x18] sm:$0x1f] }
 0x290   :  { %v1507_v51 = vrot.slane %v1505_v16, 4  ;;  %v1519_v29 = vshrl.u32 %v12938_v27, 16  ;;  %v1513_v28 = vrot.slane %v1511_v42, 3  ;;  %v1522_v23 = vshll.u32 %v12938_v27, 16  ;;  %11589 = vmatprep.mubr.bf16.mxu0 %v14674_v12  ;;  %11650 = vmatpush3.bf16.msra.mxu0 %v14701_v63  ;;  %v12871_v12 = vld [vmem:[%s17993_s4 + $0x90] sm:$0xff]  }
 0x291   :  { %v1500_v20 = vor.u32 %v1499_v39, %v1496_v41  ;;  %v1516_v56 = vrot.slane %v1514_v24, 4  ;;  %v5048_v22 = vrot.slane %v4894_v6, 4  ;;  %v5049_v49 = vrot.slane %v12939_v46, 4  ;;  %11854 = vmatmul.mubr.bf16.gmra.mrb[60].mxu1 %v14643_v17  ;;  %11651 = vmatprep.subr.bf16.mxu0 %v12869_v1  ;;  %v12941_v39 = vld [vmem:[#allocation2 + $0x228] sm:$0xf] }
 0x292   :  { %v1508_v5 = vor.u32 %v1507_v51, %v1504_v34  ;;  %v1521_v57 = vrot.slane %v1519_v29, 3  ;;  %v1524_v18 = vrot.slane %v1522_v23, 4  ;;  %v5051_v31 = vrot.slane %v4895_v44, 4  ;;  %11857 = vmatprep.mubr.bf16.mxu1 %v14646_v35  ;;  %v1239_v24 = vld [vmem:[#allocation2 + $0x120] sm:$0xf8]  ;;  %v12872_v44 = vld [vmem:[%s17993_s4 + $0x98] sm:$0xff]  }
 0x293   :  { %v1517_v30 = vor.u32 %v1516_v56, %v1513_v28  ;;  %v5052_v37 = vrot.slane %v12940_v19, 4  ;;  %v14778_v58 = vsel %vm1960_vm0, %v5048_v22, %v5049_v49  ;;  %v1528_v62 = vshrl.u32 %v1237_v53, 16  ;;  %v1241_v46 = vld [vmem:[#allocation2 + $0x130] sm:$0xf8] }
 0x294   :  { %v14775_v2 = vsel %vm1271_vm1, %v1500_v20, %v1508_v5  ;;  %v1531_v32 = vshll.u32 %v1237_v53, 16  ;;  %v1525_v11 = vor.u32 %v1524_v18, %v1521_v57  ;;  %v1536_v17 = vshrl.u32 %v14429_v21, 16  ;;  %11652 = vmatpush3.bf16.msra.mxu0 %v12869_v1  ;;  %v12942_v57 = vld [vmem:[#allocation2 + $0x128] sm:$0xf] }
 0x295   :  { %v14785_v63 = vsel %vm1960_vm0, %v5051_v31, %v5052_v37  ;;  %v1539_v10 = vshll.u32 %v14429_v21, 16  ;;  %v1530_v54 = vrot.slane %v1528_v62, 3  ;;  %v5054_v41 = vrot.slane %v4896_v14, 4  ;;  %11653 = vmatprep.subr.bf16.mxu0 %v12871_v12  ;;  %v1243_v31 = vld [vmem:[#allocation2 + $0x140] sm:$0xf8] }
 0x296   :  { %v1533_v16 = vrot.slane %v1531_v32, 4  ;;  %v5055_v42 = vrot.slane %v12941_v39, 4  ;;  %v14790_v6 = vsel %vm1271_vm1, %v1517_v30, %v1525_v11  ;;  %v1538_v34 = vrot.slane %v1536_v17, 3  ;;  %v12873_v62 = vld [vmem:[%s17993_s4 + $0xa0] sm:$0xff]   ;;  %v12943_v17 = vld [vmem:[#allocation2 + $0x138] sm:$0xf] }
 0x297   :  { %v1541_v35 = vrot.slane %v1539_v10, 4  ;;  %v5540_v21 = vshrl.u32 %v14439_v59, 16  ;;  %v5543_v29 = vshll.u32 %v14439_v59, 16  ;;  %v5548_v28 = vshrl.u32 %v5507_v13, 16  ;;  %11590 = vmatmul.mubr.bf16.gmra.mrb[68].mxu0 %v14680_v33 }
 0x298   :  { %v1534_v51 = vor.u32 %v1533_v16, %v1530_v54  ;;  %v14793_v27 = vsel %vm1960_vm0, %v5054_v41, %v5055_v42  ;;  %v5551_v56 = vshll.u32 %v5507_v13, 16  ;;  %v1545_v23 = vshrl.u32 %v1239_v24, 16  ;;  %11593 = vmatprep.mubr.bf16.mxu0 %v14695_v45  ;;  %11654 = vmatpush3.bf16.msra.mxu0 %v12871_v12 }
 0x299   :  { %v1542_v20 = vor.u32 %v1541_v35, %v1538_v34  ;;  %v5542_v1 = vrot.slane %v5540_v21, 4  ;;  %v5545_v53 = vrot.slane %v5543_v29, 5  ;;  %v1548_v5 = vshll.u32 %v1239_v24, 16  ;;  %11858 = vmatmul.mubr.bf16.gmra.mrb[0].mxu1 %v14662_v4  ;;  %11655 = vmatprep.subr.bf16.mxu0 %v12872_v44  ;;  %v12874_v21 = vld [vmem:[%s17993_s4 + $0xa8] sm:$0xff]  }
 0x29a   :  { %v1553_v22 = vshrl.u32 %v12942_v57, 16  ;;  %v5550_v49 = vrot.slane %v5548_v28, 4  ;;  %v5553_v30 = vrot.slane %v5551_v56, 5  ;;  %v1547_v18 = vrot.slane %v1545_v23, 3  ;;  %11861 = vmatprep.mubr.bf16.mxu1 %v14669_v9  ;;  %v12945_v23 = vld [vmem:[#allocation2 + $0x20] sm:$0xf0] }
 0x29b   :  { %v14803_v59 = vsel %vm1271_vm1, %v1534_v51, %v1542_v20  ;;  %v5546_v19 = vor.u32 %v5545_v53, %v5542_v1  ;;  %v1550_v33 = vrot.slane %v1548_v5, 4  ;;  %v1556_v14 = vshll.u32 %v12942_v57, 16  ;;  %v5508_v51 = vld [vmem:[#allocation2 + $0x28] sm:$0x1f] }
 0x29c   :  { %v1555_v37 = vrot.slane %v1553_v22, 3  ;;  %v5554_v45 = vor.u32 %v5553_v30, %v5550_v49  ;;  %v1562_v32 = vshrl.u32 %v1241_v46, 16  ;;  %v1565_v11 = vshll.u32 %v1241_v46, 16  ;;  %11656 = vmatpush3.bf16.msra.mxu0 %v12872_v44  ;;  %v12944_v20 = vld [vmem:[#allocation2 + $0x148] sm:$0xf] }
 0x29d   :  { %v1570_v10 = vshrl.u32 %v12943_v17, 16  ;;  %v1551_v13 = vor.u32 %v1550_v33, %v1547_v18  ;;  %v1558_v12 = vrot.slane %v1556_v14, 4  ;;  %v1573_v54 = vshll.u32 %v12943_v17, 16  ;;  %11657 = vmatprep.subr.bf16.mxu0 %v12873_v62  ;;  %v5509_v18 = vld [vmem:[#allocation2 + $0x38] sm:$0x1f] }
 0x29e   :  { %v1579_v4 = vshrl.u32 %v1243_v31, 16  ;;  %v14811_v16 = vsel %vm2812_vm2, %v5546_v19, %v5554_v45  ;;  %v1564_v41 = vrot.slane %v1562_v32, 3  ;;  %v1567_v39 = vrot.slane %v1565_v11, 4  ;;  %v12946_v32 = vld [vmem:[#allocation2 + $0x30] sm:$0xf0] }
 0x29f   :  { %v1572_v42 = vrot.slane %v1570_v10, 3  ;;  %v1559_v24 = vor.u32 %v1558_v12, %v1555_v37  ;;  %v1575_v34 = vrot.slane %v1573_v54, 4  ;;  %v1582_v9 = vshll.u32 %v1243_v31, 16  ;;  %11594 = vmatmul.mubr.bf16.gmra.mrb[72].mxu0 %v14708_v38  ;;  %v1245_v37 = vld [vmem:[#allocation2 + $0x150] sm:$0xf8] }
 0x2a0   :  { %v1581_v35 = vrot.slane %v1579_v4, 3  ;;  %v1568_v29 = vor.u32 %v1567_v39, %v1564_v41  ;;  %v1587_v28 = vshrl.u32 %v12944_v20, 16  ;;  %v1590_v56 = vshll.u32 %v12944_v20, 16  ;;  %11597 = vmatprep.mubr.bf16.mxu0 %v14719_v8  ;;  %11658 = vmatpush3.bf16.msra.mxu0 %v12873_v62  ;;  %v12876_v8 = vld [vmem:[%s17993_s4 + $0xb0] sm:$0xff]   ;;  %v1247_v39 = vld [vmem:[#allocation2 + $0x160] sm:$0xf8] }
 0x2a1   :  { %v5557_v1 = vshrl.u32 %v12945_v23, 16  ;;  %v14818_v44 = vsel %vm1271_vm1, %v1551_v13, %v1559_v24  ;;  %v1576_v53 = vor.u32 %v1575_v34, %v1572_v42  ;;  %v1584_v5 = vrot.slane %v1582_v9, 4  ;;  %11862 = vmatmul.mubr.bf16.gmra.mrb[4].mxu1 %v14683_v7  ;;  %11659 = vmatprep.subr.bf16.mxu0 %v12874_v21 }
 0x2a2   :  { %v5560_v57 = vshll.u32 %v12945_v23, 16  ;;  %v1589_v22 = vrot.slane %v1587_v28, 3  ;;  %v1592_v46 = vrot.slane %v1590_v56, 4  ;;  %v5565_v30 = vshrl.u32 %v5508_v51, 16  ;;  %11865 = vmatprep.mubr.bf16.mxu1 %v14687_v55 }
 0x2a3   :  { %v5559_v49 = vrot.slane %v5557_v1, 4  ;;  %v14823_v31 = vsel %vm1271_vm1, %v1568_v29, %v1576_v53  ;;  %v1585_v38 = vor.u32 %v1584_v5, %v1581_v35  ;;  %v5568_v33 = vshll.u32 %v5508_v51, 16  ;;  %v12877_v35 = vld [vmem:[%s17993_s4 + $0xb8] sm:$0xff]  }
 0x2a4   :  { %v5562_v19 = vrot.slane %v5560_v57, 5  ;;  %v1593_v14 = vor.u32 %v1592_v46, %v1589_v22  ;;  %v5567_v45 = vrot.slane %v5565_v30, 4  ;;  %v5574_v62 = vshrl.u32 %v12946_v32, 16  ;;  %11660 = vmatpush3.bf16.msra.mxu0 %v12874_v21  ;;  %v12947_v29 = vld [vmem:[#allocation2 + $0x158] sm:$0xf] }
 0x2a5   :  { %v5577_v11 = vshll.u32 %v12946_v32, 16  ;;  %v5570_v17 = vrot.slane %v5568_v33, 5  ;;  %v5582_v10 = vshrl.u32 %v5509_v18, 16  ;;  %v5585_v13 = vshll.u32 %v5509_v18, 16  ;;  %11661 = vmatprep.subr.bf16.mxu0 %v12876_v8  ;;  %v12948_v22 = vld [vmem:[#allocation2 + $0x168] sm:$0xf] }
 0x2a6   :  { %v5563_v7 = vor.u32 %v5562_v19, %v5559_v49  ;;  %v14830_v12 = vsel %vm1271_vm1, %v1585_v38, %v1593_v14  ;;  %v5576_v54 = vrot.slane %v5574_v62, 4  ;;  %v1596_v41 = vshrl.u32 %v1245_v37, 16  ;;  %v5510_v49 = vld [vmem:[#allocation2 + $0x48] sm:$0x1f] }
 0x2a7   :  { %v5579_v4 = vrot.slane %v5577_v11, 5  ;;  %v5571_v42 = vor.u32 %v5570_v17, %v5567_v45  ;;  %v5584_v24 = vrot.slane %v5582_v10, 4  ;;  %v5587_v55 = vrot.slane %v5585_v13, 5  ;;  %11598 = vmatmul.mubr.bf16.gmra.mrb[76].mxu0 %v14724_v36  ;;  %v5511_v11 = vld [vmem:[#allocation2 + $0x58] sm:$0x1f] }
 0x2a8   :  { %v1599_v34 = vshll.u32 %v1245_v37, 16  ;;  %v1598_v51 = vrot.slane %v1596_v41, 3  ;;  %v1604_v20 = vshrl.u32 %v12947_v29, 16  ;;  %v1607_v28 = vshll.u32 %v12947_v29, 16  ;;  %11601 = vmatprep.mubr.bf16.mxu0 %v14734_v50  ;;  %11662 = vmatpush3.bf16.msra.mxu0 %v12876_v8  ;;  %v12949_v37 = vld [vmem:[#allocation2 + $0x40] sm:$0xf0] }
 0x2a9   :  { %v5580_v9 = vor.u32 %v5579_v4, %v5576_v54  ;;  %v14837_v56 = vsel %vm2812_vm2, %v5563_v7, %v5571_v42  ;;  %v5588_v21 = vor.u32 %v5587_v55, %v5584_v24  ;;  %v1613_v1 = vshrl.u32 %v1247_v39, 16  ;;  %11866 = vmatmul.mubr.bf16.gmra.mrb[8].mxu1 %v14711_v52  ;;  %11663 = vmatprep.subr.bf16.mxu0 %v12877_v35  ;;  %v12950_v10 = vld [vmem:[#allocation2 + $0x50] sm:$0xf0]  ;;  %v14851_v42 = vld [vmem:[%s17993_s4 + $0xc0] sm:$0xff]  }
 0x2aa   :  { %v1601_v23 = vrot.slane %v1599_v34, 4  ;;  %v1606_v53 = vrot.slane %v1604_v20, 3  ;;  %v1609_v5 = vrot.slane %v1607_v28, 4  ;;  %v1616_v57 = vshll.u32 %v1247_v39, 16  ;;  %11869 = vmatprep.mubr.bf16.mxu1 %v14714_v26  ;;  %v1249_v54 = vld [vmem:[#allocation2 + $0x170] sm:$0xf8] }
 0x2ab   :  { %v1621_v46 = vshrl.u32 %v12948_v22, 16  ;;  %v14842_v30 = vsel %vm2812_vm2, %v5580_v9, %v5588_v21  ;;  %v1615_v18 = vrot.slane %v1613_v1, 3  ;;  %v1624_v38 = vshll.u32 %v12948_v22, 16  ;;  %v1251_v28 = vld [vmem:[#allocation2 + $0x180] sm:$0xf8] }
 0x2ac   :  { %v1602_v36 = vor.u32 %v1601_v23, %v1598_v51  ;;  %v1610_v19 = vor.u32 %v1609_v5, %v1606_v53  ;;  %v1618_v50 = vrot.slane %v1616_v57, 4  ;;  %v5591_v14 = vshrl.u32 %v12949_v37, 16  ;;  %11664 = vmatpush3.bf16.msra.mxu0 %v12877_v35 }
 0x2ad   :  { %v1623_v33 = vrot.slane %v1621_v46, 3  ;;  %v1626_v45 = vrot.slane %v1624_v38, 4  ;;  %v5594_v32 = vshll.u32 %v12949_v37, 16  ;;  %v5599_v62 = vshrl.u32 %v5510_v49, 16  ;;  %11729 = vmatprep.subr.bf16.mxu0 %v14851_v42 }
 0x2ae   :  { %v5602_v8 = vshll.u32 %v5510_v49, 16  ;;  %v14846_v52 = vsel %vm1271_vm1, %v1602_v36, %v1610_v19  ;;  %v1619_v7 = vor.u32 %v1618_v50, %v1615_v18  ;;  %v5593_v17 = vrot.slane %v5591_v14, 4  ;;  %v5512_v14 = vld [vmem:[#allocation2 + $0x68] sm:$0x1f] }
 0x2af   :  { %v5608_v13 = vshrl.u32 %v12950_v10, 16  ;;  %v1627_v26 = vor.u32 %v1626_v45, %v1623_v33  ;;  %v5596_v4 = vrot.slane %v5594_v32, 5  ;;  %v5601_v41 = vrot.slane %v5599_v62, 4  ;;  %11602 = vmatmul.mubr.bf16.gmra.mrb[80].mxu0 %v14740_v43  ;;  %v12952_v43 = vld [vmem:[#allocation2 + $0x178] sm:$0xf] }
 0x2b0   :  { %v5604_v39 = vrot.slane %v5602_v8, 5  ;;  %v5611_v55 = vshll.u32 %v12950_v10, 16  ;;  %v5616_v34 = vshrl.u32 %v5511_v11, 16  ;;  %v5619_v9 = vshll.u32 %v5511_v11, 16  ;;  %11605 = vmatprep.mubr.bf16.mxu0 %v14749_v60  ;;  %v12953_v33 = vld [vmem:[#allocation2 + $0x188] sm:$0xf] }
 0x2b1   :  { %v5610_v24 = vrot.slane %v5608_v13, 4  ;;  %v14856_v51 = vsel %vm1271_vm1, %v1619_v7, %v1627_v26  ;;  %v5597_v35 = vor.u32 %v5596_v4, %v5593_v17  ;;  %v1630_v20 = vshrl.u32 %v1249_v54, 16  ;;  %11870 = vmatmul.mubr.bf16.gmra.mrb[12].mxu1 %v14727_v61  ;;  %v5513_v4 = vld [vmem:[#allocation2 + $0x78] sm:$0x1f] }
 0x2b2   :  { %v5605_v29 = vor.u32 %v5604_v39, %v5601_v41  ;;  %v5613_v21 = vrot.slane %v5611_v55, 5  ;;  %v5618_v23 = vrot.slane %v5616_v34, 4  ;;  %v5621_v1 = vrot.slane %v5619_v9, 5  ;;  %11873 = vmatprep.mubr.bf16.mxu1 %v14730_v47  ;;  %v12954_v47 = vld [vmem:[#allocation2 + $0x60] sm:$0xf0] }
 0x2b3   :  { %v1633_v53 = vshll.u32 %v1249_v54, 16  ;;  %v1632_v57 = vrot.slane %v1630_v20, 3  ;;  %v1638_v22 = vshrl.u32 %v12952_v43, 16  ;;  %v1641_v46 = vshll.u32 %v12952_v43, 16  ;;  %v12955_v55 = vld [vmem:[#allocation2 + $0x70] sm:$0xf0] }
 0x2b4   :  { %v14861_v5 = vsel %vm2812_vm2, %v5597_v35, %v5605_v29  ;;  %v5614_v49 = vor.u32 %v5613_v21, %v5610_v24  ;;  %v5622_v36 = vor.u32 %v5621_v1, %v5618_v23  ;;  %v1647_v38 = vshrl.u32 %v1251_v28, 16  ;;  %v1253_v9 = vld [vmem:[#allocation2 + $0x190] sm:$0xf8] }
 0x2b5   :  { %v1635_v18 = vrot.slane %v1633_v53, 4  ;;  %v1640_v60 = vrot.slane %v1638_v22, 3  ;;  %v1643_v19 = vrot.slane %v1641_v46, 4  ;;  %v1650_v50 = vshll.u32 %v1251_v28, 16  ;;  %v1255_v46 = vld [vmem:[#allocation2 + $0x1a0] sm:$0xf8] }
 0x2b6   :  { %v1655_v37 = vshrl.u32 %v12953_v33, 16  ;;  %v14865_v61 = vsel %vm2812_vm2, %v5614_v49, %v5622_v36  ;;  %v1649_v32 = vrot.slane %v1647_v38, 3  ;;  %v1658_v62 = vshll.u32 %v12953_v33, 16 }
 0x2b7   :  { %v1636_v45 = vor.u32 %v1635_v18, %v1632_v57  ;;  %v1644_v8 = vor.u32 %v1643_v19, %v1640_v60  ;;  %v1652_v11 = vrot.slane %v1650_v50, 4  ;;  %v5625_v17 = vshrl.u32 %v12954_v47, 16  ;;  %11606 = vmatmul.mubr.bf16.gmra.mrb[84].mxu0 %v14756_v15  ;;  %v12956_v60 = vld [vmem:[#allocation2 + $0x198] sm:$0xf] }
 0x2b8   :  { %v1657_v7 = vrot.slane %v1655_v37, 3  ;;  %v1660_v10 = vrot.slane %v1658_v62, 4  ;;  %v5628_v13 = vshll.u32 %v12954_v47, 16  ;;  %v5633_v54 = vshrl.u32 %v5512_v14, 16  ;;  %11609 = vmatprep.mubr.bf16.mxu0 %v14765_v40 }
 0x2b9   :  { %v5636_v26 = vshll.u32 %v5512_v14, 16  ;;  %v14869_v41 = vsel %vm1271_vm1, %v1636_v45, %v1644_v8  ;;  %v1653_v39 = vor.u32 %v1652_v11, %v1649_v32  ;;  %v5627_v24 = vrot.slane %v5625_v17, 4  ;;  %11874 = vmatmul.mubr.bf16.gmra.mrb[16].mxu1 %v14743_v0  ;;  %v12957_v8 = vld [vmem:[#allocation2 + $0x1a8] sm:$0xf] }
 0x2ba   :  { %v5642_v34 = vshrl.u32 %v12955_v55, 16  ;;  %v1661_v35 = vor.u32 %v1660_v10, %v1657_v7  ;;  %v5630_v29 = vrot.slane %v5628_v13, 5  ;;  %v5635_v20 = vrot.slane %v5633_v54, 4  ;;  %11877 = vmatprep.mubr.bf16.mxu1 %v14746_v48  ;;  %v5514_v7 = vld [vmem:[#allocation2 + $0x88] sm:$0x1f] }
 0x2bb   :  { %v5638_v28 = vrot.slane %v5636_v26, 5  ;;  %v5645_v23 = vshll.u32 %v12955_v55, 16  ;;  %v5650_v1 = vshrl.u32 %v5513_v4, 16  ;;  %v5653_v15 = vshll.u32 %v5513_v4, 16 }
 0x2bc   :  { %v5644_v21 = vrot.slane %v5642_v34, 4  ;;  %v14875_v53 = vsel %vm1271_vm1, %v1653_v39, %v1661_v35  ;;  %v5631_v57 = vor.u32 %v5630_v29, %v5627_v24  ;;  %v1664_v22 = vshrl.u32 %v1253_v9, 16  ;;  %v12958_v39 = vld [vmem:[#allocation2 + $0x80] sm:$0xf0] }
 0x2bd   :  { %v5639_v43 = vor.u32 %v5638_v28, %v5635_v20  ;;  %v5647_v40 = vrot.slane %v5645_v23, 5  ;;  %v5652_v49 = vrot.slane %v5650_v1, 4  ;;  %v5655_v36 = vrot.slane %v5653_v15, 5  ;;  %v1257_v23 = vld [vmem:[#allocation2 + $0x1b0] sm:$0xf8] }
 0x2be   :  { %v1667_v18 = vshll.u32 %v1253_v9, 16  ;;  %v1666_v0 = vrot.slane %v1664_v22, 3  ;;  %v1672_v19 = vshrl.u32 %v12956_v60, 16  ;;  %v1675_v50 = vshll.u32 %v12956_v60, 16 }
 0x2bf   :  { %v14878_v38 = vsel %vm2812_vm2, %v5631_v57, %v5639_v43  ;;  %v5648_v33 = vor.u32 %v5647_v40, %v5644_v21  ;;  %v5656_v48 = vor.u32 %v5655_v36, %v5652_v49  ;;  %v1681_v14 = vshrl.u32 %v1255_v46, 16  ;;  %11610 = vmatmul.mubr.bf16.gmra.mrb[88].mxu0 %v14775_v2  ;;  %v5515_v2 = vld [vmem:[#allocation2 + $0x98] sm:$0x1f] }
 0x2c0   :  { %v1669_v37 = vrot.slane %v1667_v18, 4  ;;  %v1674_v45 = vrot.slane %v1672_v19, 3  ;;  %v1677_v32 = vrot.slane %v1675_v50, 4  ;;  %v1684_v62 = vshll.u32 %v1255_v46, 16  ;;  %11613 = vmatprep.mubr.bf16.mxu0 %v14790_v6  ;;  %v12959_v6 = vld [vmem:[#allocation2 + $0x90] sm:$0xf0] }
 0x2c1   :  { %v1689_v11 = vshrl.u32 %v12957_v8, 16  ;;  %v14882_v47 = vsel %vm2812_vm2, %v5648_v33, %v5656_v48  ;;  %v1683_v10 = vrot.slane %v1681_v14, 3  ;;  %v1692_v13 = vshll.u32 %v12957_v8, 16  ;;  %11878 = vmatmul.mubr.bf16.gmra.mrb[20].mxu1 %v14759_v3  ;;  %v12960_v14 = vld [vmem:[#allocation2 + $0x1b8] sm:$0xf] }
 0x2c2   :  { %v1670_v17 = vor.u32 %v1669_v37, %v1666_v0  ;;  %v1678_v54 = vor.u32 %v1677_v32, %v1674_v45  ;;  %v1686_v26 = vrot.slane %v1684_v62, 4  ;;  %v5659_v24 = vshrl.u32 %v12958_v39, 16  ;;  %11881 = vmatprep.mubr.bf16.mxu1 %v14762_v25  ;;  %v1259_v0 = vld [vmem:[#allocation2 + $0x1c0] sm:$0xf8] }
 0x2c3   :  { %v1691_v4 = vrot.slane %v1689_v11, 3  ;;  %v1694_v55 = vrot.slane %v1692_v13, 4  ;;  %v5662_v34 = vshll.u32 %v12958_v39, 16  ;;  %v5667_v9 = vshrl.u32 %v5514_v7, 16 }
 0x2c4   :  { %v5670_v35 = vshll.u32 %v5514_v7, 16  ;;  %v14888_v29 = vsel %vm1271_vm1, %v1670_v17, %v1678_v54  ;;  %v1687_v20 = vor.u32 %v1686_v26, %v1683_v10  ;;  %v5661_v28 = vrot.slane %v5659_v24, 4  ;;  %v12961_v54 = vld [vmem:[#allocation2 + $0x1c8] sm:$0xf] }
 0x2c5   :  { %v5676_v21 = vshrl.u32 %v12959_v6, 16  ;;  %v1695_v1 = vor.u32 %v1694_v55, %v1691_v4  ;;  %v5664_v15 = vrot.slane %v5662_v34, 5  ;;  %v5669_v57 = vrot.slane %v5667_v9, 4  ;;  %v5516_v26 = vld [vmem:[#allocation2 + $0xa8] sm:$0x1f] }
 0x2c6   :  { %v5672_v43 = vrot.slane %v5670_v35, 5  ;;  %v5679_v22 = vshll.u32 %v12959_v6, 16  ;;  %v5684_v46 = vshrl.u32 %v5515_v2, 16  ;;  %v5687_v40 = vshll.u32 %v5515_v2, 16  ;;  %v12962_v35 = vld [vmem:[#allocation2 + $0xa0] sm:$0xf0] }
 0x2c7   :  { %v5678_v3 = vrot.slane %v5676_v21, 4  ;;  %v14891_v49 = vsel %vm1271_vm1, %v1687_v20, %v1695_v1  ;;  %v5665_v25 = vor.u32 %v5664_v15, %v5661_v28  ;;  %v1698_v18 = vshrl.u32 %v1257_v23, 16  ;;  %11614 = vmatmul.mubr.bf16.gmra.mrb[92].mxu0 %v14803_v59  ;;  %v5517_v21 = vld [vmem:[#allocation2 + $0xb8] sm:$0x1f]  ;;  %v12963_v15 = vld [vmem:[#allocation2 + $0xb0] sm:$0xf0] }
 0x2c8   :  { %v5673_v36 = vor.u32 %v5672_v43, %v5669_v57  ;;  %v5681_v60 = vrot.slane %v5679_v22, 5  ;;  %v5686_v19 = vrot.slane %v5684_v46, 4  ;;  %v5689_v50 = vrot.slane %v5687_v40, 5  ;;  %11617 = vmatprep.mubr.bf16.mxu0 %v14818_v44  ;;  %v1261_v43 = vld [vmem:[#allocation2 + $0x1d0] sm:$0xf8] }
 0x2c9   :  { %v1701_v33 = vshll.u32 %v1257_v23, 16  ;;  %v1700_v37 = vrot.slane %v1698_v18, 3  ;;  %v1706_v45 = vshrl.u32 %v12960_v14, 16  ;;  %v1709_v32 = vshll.u32 %v12960_v14, 16  ;;  %11882 = vmatmul.mubr.bf16.gmra.mrb[24].mxu1 %v14778_v58 }
 0x2ca   :  { %v14895_v48 = vsel %vm2812_vm2, %v5665_v25, %v5673_v36  ;;  %v5682_v62 = vor.u32 %v5681_v60, %v5678_v3  ;;  %v5690_v8 = vor.u32 %v5689_v50, %v5686_v19  ;;  %v1715_v7 = vshrl.u32 %v1259_v0, 16  ;;  %11885 = vmatprep.mubr.bf16.mxu1 %v14785_v63 }
 0x2cb   :  { %v1703_v11 = vrot.slane %v1701_v33, 4  ;;  %v1708_v17 = vrot.slane %v1706_v45, 3  ;;  %v1711_v10 = vrot.slane %v1709_v32, 4  ;;  %v1718_v13 = vshll.u32 %v1259_v0, 16 }
 0x2cc   :  { %v1723_v59 = vshrl.u32 %v12961_v54, 16  ;;  %v14901_v4 = vsel %vm2812_vm2, %v5682_v62, %v5690_v8  ;;  %v1717_v24 = vrot.slane %v1715_v7, 3  ;;  %v1726_v44 = vshll.u32 %v12961_v54, 16 }
 0x2cd   :  { %v1704_v39 = vor.u32 %v1703_v11, %v1700_v37  ;;  %v1712_v55 = vor.u32 %v1711_v10, %v1708_v17  ;;  %v1720_v34 = vrot.slane %v1718_v13, 4  ;;  %v5693_v2 = vshrl.u32 %v12962_v35, 16  ;;  %v1263_v37 = vld [vmem:[#allocation2 + $0x1e0] sm:$0xf8] }
 0x2ce   :  { %v1725_v9 = vrot.slane %v1723_v59, 3  ;;  %v1728_v58 = vrot.slane %v1726_v44, 4  ;;  %v5696_v20 = vshll.u32 %v12962_v35, 16  ;;  %v5701_v28 = vshrl.u32 %v5516_v26, 16  ;;  %v5518_v44 = vld [vmem:[#allocation2 + $0xc8] sm:$0x1f] }
 0x2cf   :  { %v5704_v6 = vshll.u32 %v5516_v26, 16  ;;  %v14904_v23 = vsel %vm1271_vm1, %v1704_v39, %v1712_v55  ;;  %v1721_v63 = vor.u32 %v1720_v34, %v1717_v24  ;;  %v5695_v1 = vrot.slane %v5693_v2, 4  ;;  %11618 = vmatmul.mubr.bf16.gmra.mrb[96].mxu0 %v14823_v31  ;;  %v12965_v39 = vld [vmem:[#allocation2 + $0x1e8] sm:$0xf] }
 0x2d0   :  { %v5710_v57 = vshrl.u32 %v12963_v15, 16  ;;  %v1729_v3 = vor.u32 %v1728_v58, %v1725_v9  ;;  %v5698_v22 = vrot.slane %v5696_v20, 5  ;;  %v5703_v46 = vrot.slane %v5701_v28, 4  ;;  %11621 = vmatprep.mubr.bf16.mxu0 %v14830_v12  ;;  %v12964_v12 = vld [vmem:[#allocation2 + $0x1d8] sm:$0xf]  ;;  %v12867_v35 = vld [vmem:[%s17993_s4 + $0x188] sm:$0xff]  }
 0x2d1   :  { %v5706_v40 = vrot.slane %v5704_v6, 5  ;;  %v5713_v36 = vshll.u32 %v12963_v15, 16  ;;  %v5718_v18 = vshrl.u32 %v5517_v21, 16  ;;  %v5721_v0 = vshll.u32 %v5517_v21, 16  ;;  %11886 = vmatmul.mubr.bf16.gmra.mrb[28].mxu1 %v14793_v27  ;;  %v12966_v28 = vld [vmem:[#allocation2 + $0xc0] sm:$0xf0] }
 0x2d2   :  { %v5712_v25 = vrot.slane %v5710_v57, 4  ;;  %v14909_v60 = vsel %vm1271_vm1, %v1721_v63, %v1729_v3  ;;  %v5699_v19 = vor.u32 %v5698_v22, %v5695_v1  ;;  %v1732_v33 = vshrl.u32 %v1261_v43, 16  ;;  %11905 = vmatprep.mubr.bf16.mxu1 %v14811_v16  ;;  %v5519_v57 = vld [vmem:[#allocation2 + $0xd8] sm:$0x1f] }
 0x2d3   :  { %v5707_v50 = vor.u32 %v5706_v40, %v5703_v46  ;;  %v5715_v14 = vrot.slane %v5713_v36, 5  ;;  %v5720_v45 = vrot.slane %v5718_v18, 4  ;;  %v5723_v32 = vrot.slane %v5721_v0, 5  ;;  %v12967_v46 = vld [vmem:[#allocation2 + $0xd0] sm:$0xf0] }
 0x2d4   :  { %v1735_v62 = vshll.u32 %v1261_v43, 16  ;;  %v1734_v8 = vrot.slane %v1732_v33, 3  ;;  %v1740_v11 = vshrl.u32 %v12964_v12, 16  ;;  %v1743_v7 = vshll.u32 %v12964_v12, 16 }
 0x2d5   :  { %v14914_v31 = vsel %vm2812_vm2, %v5699_v19, %v5707_v50  ;;  %v5716_v17 = vor.u32 %v5715_v14, %v5712_v25  ;;  %v5724_v10 = vor.u32 %v5723_v32, %v5720_v45  ;;  %v1749_v54 = vshrl.u32 %v1263_v37, 16  ;;  %v1265_v25 = vld [vmem:[#allocation2 + $0x1f0] sm:$0xf8]  ;;  %v12968_v19 = vld [vmem:[%s17993_s4 + $0x180] sm:$0xff]  }
 0x2d6   :  { %v1737_v13 = vrot.slane %v1735_v62, 4  ;;  %v1742_v59 = vrot.slane %v1740_v11, 3  ;;  %v1745_v26 = vrot.slane %v1743_v7, 4  ;;  %v1752_v27 = vshll.u32 %v1263_v37, 16 }
 0x2d7   :  { %v1757_v24 = vshrl.u32 %v12965_v39, 16  ;;  %v14917_v55 = vsel %vm2812_vm2, %v5716_v17, %v5724_v10  ;;  %v1751_v34 = vrot.slane %v1749_v54, 3  ;;  %v1760_v9 = vshll.u32 %v12965_v39, 16  ;;  %11622 = vmatmul.mubr.bf16.gmra.mrb[100].mxu0 %v14846_v52 }
 0x2d8   :  { %v1738_v16 = vor.u32 %v1737_v13, %v1734_v8  ;;  %v1746_v2 = vor.u32 %v1745_v26, %v1742_v59  ;;  %v1754_v58 = vrot.slane %v1752_v27, 4  ;;  %v5727_v6 = vshrl.u32 %v12966_v28, 16  ;;  %11625 = vmatprep.mubr.bf16.mxu0 %v14856_v51  ;;  %v1267_v8 = vld [vmem:[#allocation2 + $0x200] sm:$0xf8]  ;;  %v12969_v13 = vld [vmem:[#allocation2 + $0x1f8] sm:$0xf] }
 0x2d9   :  { %v1759_v20 = vrot.slane %v1757_v24, 3  ;;  %v1762_v21 = vrot.slane %v1760_v9, 4  ;;  %v5730_v63 = vshll.u32 %v12966_v28, 16  ;;  %v5735_v1 = vshrl.u32 %v5518_v44, 16  ;;  %11906 = vmatmul.mubr.bf16.vlgmr.msra.gmra.mrb[32].mxu1 %v14837_v56  ;;  %v12870_v56 = vld [vmem:[%s17993_s4 + $0x190] sm:$0xff]  }
 0x2da   :  { %v5738_v15 = vshll.u32 %v5518_v44, 16  ;;  %v14925_v43 = vsel %vm1271_vm1, %v1738_v16, %v1746_v2  ;;  %v1755_v3 = vor.u32 %v1754_v58, %v1751_v34  ;;  %v5729_v22 = vrot.slane %v5727_v6, 4  ;;  %11970 = vmatpush3.bf16.msra.mxu1 %v12968_v19  ;;  %11909 = vmatprep.mubr.bf16.mxu1 %v14842_v30  ;;  %v12875_v44 = vld [vmem:[%s17993_s4 + $0x198] sm:$0xff]   ;;  %v12970_v2 = vld [vmem:[#allocation2 + $0x208] sm:$0xf]  ;;  %v12878_v19 = vld [vmem:[%s17993_s4 + $0x1a0] sm:$0xff]  }
 0x2db   :  { %v5744_v40 = vshrl.u32 %v12967_v46, 16  ;;  %v1763_v36 = vor.u32 %v1762_v21, %v1759_v20  ;;  %v5732_v18 = vrot.slane %v5730_v63, 5  ;;  %v5737_v52 = vrot.slane %v5735_v1, 4  ;;  %11971 = vmatprep.subr.bf16.mxu1 %v12867_v35  ;;  %v5520_v20 = vld [vmem:[#allocation2 + $0xe8] sm:$0x1f] }
 0x2dc   :  { %v5740_v0 = vrot.slane %v5738_v15, 5  ;;  %v5747_v50 = vshll.u32 %v12967_v46, 16  ;;  %v5752_v33 = vshrl.u32 %v5519_v57, 16  ;;  %v5755_v37 = vshll.u32 %v5519_v57, 16  ;;  %v12971_v15 = vld [vmem:[#allocation2 + $0xe0] sm:$0xf0] }
 0x2dd   :  { %v5746_v51 = vrot.slane %v5744_v40, 4  ;;  %v14936_v14 = vsel %vm1271_vm1, %v1755_v3, %v1763_v36  ;;  %v5733_v45 = vor.u32 %v5732_v18, %v5729_v22  ;;  %v1766_v62 = vshrl.u32 %v1265_v25, 16  ;;  %v5521_v40 = vld [vmem:[#allocation2 + $0xf8] sm:$0x1f] }
 0x2de   :  { %v5741_v32 = vor.u32 %v5740_v0, %v5737_v52  ;;  %v5749_v12 = vrot.slane %v5747_v50, 5  ;;  %v5754_v11 = vrot.slane %v5752_v33, 4  ;;  %v5757_v7 = vrot.slane %v5755_v37, 5  ;;  %11972 = vmatpush3.bf16.msra.mxu1 %v12867_v35  ;;  %v1269_v0 = vld [vmem:[#allocation2 + $0x210] sm:$0xf8] }
 0x2df   :  { %v1769_v30 = vshll.u32 %v1265_v25, 16  ;;  %v1768_v10 = vrot.slane %v1766_v62, 3  ;;  %v1774_v54 = vshrl.u32 %v12969_v13, 16  ;;  %v1777_v59 = vshll.u32 %v12969_v13, 16  ;;  %11626 = vmatmul.mubr.bf16.gmra.mrb[104].mxu0 %v14869_v41  ;;  %11973 = vmatprep.subr.bf16.mxu1 %v12870_v56 }
 0x2e0   :  { %v14939_v17 = vsel %vm2812_vm2, %v5733_v45, %v5741_v32  ;;  %v5750_v26 = vor.u32 %v5749_v12, %v5746_v51  ;;  %v5758_v27 = vor.u32 %v5757_v7, %v5754_v11  ;;  %v1783_v24 = vshrl.u32 %v1267_v8, 16  ;;  %11629 = vmatprep.mubr.bf16.mxu0 %v14875_v53  ;;  %v5522_v7 = vld [vmem:[#allocation2 + $0x108] sm:$0x1f] }
 0x2e1   :  { %v1771_v39 = vrot.slane %v1769_v30, 4  ;;  %v1776_v16 = vrot.slane %v1774_v54, 3  ;;  %v1779_v34 = vrot.slane %v1777_v59, 4  ;;  %v1786_v9 = vshll.u32 %v1267_v8, 16  ;;  %11910 = vmatmul.mubr.bf16.gmra.mrb[36].mxu1 %v14861_v5  ;;  %v12972_v5 = vld [vmem:[#allocation2 + $0xf0] sm:$0xf0] }
 0x2e2   :  { %v1791_v58 = vshrl.u32 %v12970_v2, 16  ;;  %v14947_v35 = vsel %vm2812_vm2, %v5750_v26, %v5758_v27  ;;  %v1785_v6 = vrot.slane %v1783_v24, 3  ;;  %v1794_v21 = vshll.u32 %v12970_v2, 16  ;;  %11913 = vmatprep.mubr.bf16.mxu1 %v14865_v61  ;;  %11974 = vmatpush3.bf16.msra.mxu1 %v12870_v56  ;;  %v12879_v59 = vld [vmem:[%s17993_s4 + $0x1a8] sm:$0xff]  }
 0x2e3   :  { %v1772_v28 = vor.u32 %v1771_v39, %v1768_v10  ;;  %v1780_v63 = vor.u32 %v1779_v34, %v1776_v16  ;;  %v1788_v1 = vrot.slane %v1786_v9, 4  ;;  %v5761_v57 = vshrl.u32 %v12971_v15, 16  ;;  %11975 = vmatprep.subr.bf16.mxu1 %v12875_v44  ;;  %v12973_v39 = vld [vmem:[#allocation2 + $0x218] sm:$0xf]  ;;  %v12974_v9 = vld [vmem:[#allocation2 + $0x100] sm:$0xf0] }
 0x2e4   :  { %v1793_v41 = vrot.slane %v1791_v58, 3  ;;  %v1796_v3 = vrot.slane %v1794_v21, 4  ;;  %v5764_v22 = vshll.u32 %v12971_v15, 16  ;;  %v5769_v46 = vshrl.u32 %v5520_v20, 16 }
 0x2e5   :  { %v5772_v53 = vshll.u32 %v5520_v20, 16  ;;  %v14952_v25 = vsel %vm1271_vm1, %v1772_v28, %v1780_v63  ;;  %v1789_v36 = vor.u32 %v1788_v1, %v1785_v6  ;;  %v5763_v18 = vrot.slane %v5761_v57, 4  ;;  %v5523_v6 = vld [vmem:[#allocation2 + $0x138] sm:$0x1f] }
 0x2e6   :  { %v5778_v52 = vshrl.u32 %v12972_v5, 16  ;;  %v1797_v61 = vor.u32 %v1796_v3, %v1793_v41  ;;  %v5766_v51 = vrot.slane %v5764_v22, 5  ;;  %v5771_v50 = vrot.slane %v5769_v46, 4  ;;  %11976 = vmatpush3.bf16.msra.mxu1 %v12875_v44  ;;  %v12975_v3 = vld [vmem:[#allocation2 + $0x130] sm:$0xf0] }
 0x2e7   :  { %v5774_v33 = vrot.slane %v5772_v53, 5  ;;  %v5781_v56 = vshll.u32 %v12972_v5, 16  ;;  %v5786_v45 = vshrl.u32 %v5521_v40, 16  ;;  %v5789_v32 = vshll.u32 %v5521_v40, 16  ;;  %11630 = vmatmul.mubr.bf16.gmra.mrb[108].mxu0 %v14888_v29  ;;  %11977 = vmatprep.subr.bf16.mxu1 %v12878_v19 }
 0x2e8   :  { %v5780_v37 = vrot.slane %v5778_v52, 4  ;;  %v14958_v62 = vsel %vm1271_vm1, %v1789_v36, %v1797_v61  ;;  %v5767_v8 = vor.u32 %v5766_v51, %v5763_v18  ;;  %v1800_v11 = vshrl.u32 %v1269_v0, 16  ;;  %11633 = vmatprep.mubr.bf16.mxu0 %v14891_v49  ;;  %v2780_v18 = vld [vmem:[#allocation2 + $0x8] sm:$0x1f] }
 0x2e9   :  { %v5775_v12 = vor.u32 %v5774_v33, %v5771_v50  ;;  %v5783_v30 = vrot.slane %v5781_v56, 5  ;;  %v5788_v10 = vrot.slane %v5786_v45, 4  ;;  %v5791_v13 = vrot.slane %v5789_v32, 5  ;;  %11914 = vmatmul.mubr.bf16.gmra.mrb[40].mxu1 %v14878_v38  ;;  %v12880_v38 = vld [vmem:[%s17993_s4 + $0x1b0] sm:$0xff]   ;;  %v12881_v56 = vld [vmem:[%s17993_s4 + $0x1b8] sm:$0xff]  }
 0x2ea   :  { %v1803_v54 = vshll.u32 %v1269_v0, 16  ;;  %v1802_v27 = vrot.slane %v1800_v11, 3  ;;  %v1808_v24 = vshrl.u32 %v12973_v39, 16  ;;  %v1811_v44 = vshll.u32 %v12973_v39, 16  ;;  %11917 = vmatprep.mubr.bf16.mxu1 %v14882_v47  ;;  %11978 = vmatpush3.bf16.msra.mxu1 %v12878_v19  ;;  %v12976_v19 = vld [vmem:[#allocation2] sm:$0xf0] }
 0x2eb   :  { %v14966_v26 = vsel %vm2812_vm2, %v5767_v8, %v5775_v12  ;;  %v5784_v29 = vor.u32 %v5783_v30, %v5780_v37  ;;  %v5792_v16 = vor.u32 %v5791_v13, %v5788_v10  ;;  %v5795_v2 = vshrl.u32 %v12974_v9, 16  ;;  %11979 = vmatprep.subr.bf16.mxu1 %v12879_v59  ;;  %v2781_v11 = vld [vmem:[#allocation2 + $0x18] sm:$0x1f]  ;;  %v12977_v10 = vld [vmem:[#allocation2 + $0x10] sm:$0xf0] }
 0x2ec   :  { %v1805_v34 = vrot.slane %v1803_v54, 4  ;;  %v1810_v58 = vrot.slane %v1808_v24, 3  ;;  %v1813_v20 = vrot.slane %v1811_v44, 4  ;;  %v5798_v28 = vshll.u32 %v12974_v9, 16  ;;  %v2782_v39 = vld [vmem:[#allocation2 + $0x28] sm:$0x1f] }
 0x2ed   :  { %v5803_v49 = vshrl.u32 %v5522_v7, 16  ;;  %v14971_v21 = vsel %vm2812_vm2, %v5784_v29, %v5792_v16  ;;  %v5797_v1 = vrot.slane %v5795_v2, 4  ;;  %v5806_v41 = vshll.u32 %v5522_v7, 16  ;;  %v12882_v16 = vld [vmem:[%s17993_s4 + $0x1c0] sm:$0xff]  }
 0x2ee   :  { %v1806_v63 = vor.u32 %v1805_v34, %v1802_v27  ;;  %v1814_v15 = vor.u32 %v1813_v20, %v1810_v58  ;;  %v5800_v57 = vrot.slane %v5798_v28, 5  ;;  %v5812_v22 = vshrl.u32 %v12975_v3, 16  ;;  %11980 = vmatpush3.bf16.msra.mxu1 %v12879_v59  ;;  %v12978_v2 = vld [vmem:[#allocation2 + $0x20] sm:$0xf0] }
 0x2ef   :  { %v5805_v47 = vrot.slane %v5803_v49, 4  ;;  %v5808_v46 = vrot.slane %v5806_v41, 5  ;;  %v5815_v53 = vshll.u32 %v12975_v3, 16  ;;  %v5820_v40 = vshrl.u32 %v5523_v6, 16  ;;  %11634 = vmatmul.mubr.bf16.gmra.mrb[112].mxu0 %v14904_v23  ;;  %11981 = vmatprep.subr.bf16.mxu1 %v12880_v38 }
 0x2f0   :  { %v5823_v36 = vshll.u32 %v5523_v6, 16  ;;  %v14977_v5 = vsel %vm1271_vm1, %v1806_v63, %v1814_v15  ;;  %v5801_v52 = vor.u32 %v5800_v57, %v5797_v1  ;;  %v5814_v0 = vrot.slane %v5812_v22, 4  ;;  %11637 = vmatprep.mubr.bf16.mxu0 %v14909_v60  ;;  %v5524_v63 = vld [vmem:[#allocation2 + $0x148] sm:$0x1f]  ;;  %v12979_v22 = vld [vmem:[#allocation2 + $0x140] sm:$0xf0] }
 0x2f1   :  { %v2814_v61 = vshrl.u32 %v12976_v19, 16  ;;  %v5809_v51 = vor.u32 %v5808_v46, %v5805_v47  ;;  %v5817_v50 = vrot.slane %v5815_v53, 5  ;;  %v5822_v33 = vrot.slane %v5820_v40, 4  ;;  %11918 = vmatmul.mubr.bf16.gmra.mrb[44].mxu1 %v14895_v48 }
 0x2f2   :  { %v5825_v37 = vrot.slane %v5823_v36, 5  ;;  %v2817_v32 = vshll.u32 %v12976_v19, 16  ;;  %v2822_v8 = vshrl.u32 %v2780_v18, 16  ;;  %v2825_v12 = vshll.u32 %v2780_v18, 16  ;;  %11921 = vmatprep.mubr.bf16.mxu1 %v14901_v4  ;;  %11982 = vmatpush3.bf16.msra.mxu1 %v12880_v38 }
 0x2f3   :  { %v2816_v45 = vrot.slane %v2814_v61, 4  ;;  %v14986_v23 = vsel %vm2812_vm2, %v5801_v52, %v5809_v51  ;;  %v5818_v7 = vor.u32 %v5817_v50, %v5814_v0  ;;  %v2831_v13 = vshrl.u32 %v12977_v10, 16  ;;  %11983 = vmatprep.subr.bf16.mxu1 %v12881_v56  ;;  %v5525_v52 = vld [vmem:[#allocation2 + $0x158] sm:$0x1f]  ;;  %v12980_v61 = vld [vmem:[#allocation2 + $0x150] sm:$0xf0] }
 0x2f4   :  { %v5826_v30 = vor.u32 %v5825_v37, %v5822_v33  ;;  %v2819_v54 = vrot.slane %v2817_v32, 5  ;;  %v2824_v59 = vrot.slane %v2822_v8, 4  ;;  %v2827_v27 = vrot.slane %v2825_v12, 5  ;;  %v2783_v12 = vld [vmem:[#allocation2 + $0x38] sm:$0x1f] }
 0x2f5   :  { %v2834_v60 = vshll.u32 %v12977_v10, 16  ;;  %v2833_v44 = vrot.slane %v2831_v13, 4  ;;  %v2839_v48 = vshrl.u32 %v2781_v11, 16  ;;  %v2842_v29 = vshll.u32 %v2781_v11, 16 }
 0x2f6   :  { %v14990_v24 = vsel %vm2812_vm2, %v5818_v7, %v5826_v30  ;;  %v2820_v34 = vor.u32 %v2819_v54, %v2816_v45  ;;  %v2828_v9 = vor.u32 %v2827_v27, %v2824_v59  ;;  %v2848_v58 = vshrl.u32 %v12978_v2, 16  ;;  %11984 = vmatpush3.bf16.msra.mxu1 %v12881_v56  ;;  %v12981_v30 = vld [vmem:[#allocation2 + $0x30] sm:$0xf0]  ;;  %v2784_v27 = vld [vmem:[#allocation2 + $0x48] sm:$0x1f] }
 0x2f7   :  { %v2836_v4 = vrot.slane %v2834_v60, 5  ;;  %v2841_v20 = vrot.slane %v2839_v48, 4  ;;  %v2844_v28 = vrot.slane %v2842_v29, 5  ;;  %v2851_v49 = vshll.u32 %v12978_v2, 16  ;;  %11638 = vmatmul.mubr.bf16.gmra.mrb[116].mxu0 %v14925_v43  ;;  %12049 = vmatprep.subr.bf16.mxu1 %v12882_v16 }
 0x2f8   :  { %v2856_v6 = vshrl.u32 %v2782_v39, 16  ;;  %v14996_v1 = vsel %vm2812_vm2, %v2820_v34, %v2828_v9  ;;  %v2850_v38 = vrot.slane %v2848_v58, 4  ;;  %v2859_v15 = vshll.u32 %v2782_v39, 16  ;;  %11641 = vmatprep.mubr.bf16.mxu0 %v14936_v14  ;;  %v12982_v9 = vld [vmem:[#allocation2 + $0x40] sm:$0xf0] }
 0x2f9   :  { %v2837_v41 = vor.u32 %v2836_v4, %v2833_v44  ;;  %v2845_v57 = vor.u32 %v2844_v28, %v2841_v20  ;;  %v2853_v47 = vrot.slane %v2851_v49, 5  ;;  %v5829_v46 = vshrl.u32 %v12979_v22, 16  ;;  %11922 = vmatmul.mubr.bf16.gmra.mrb[48].mxu1 %v14914_v31  ;;  %v5526_v49 = vld [vmem:[#allocation2 + $0x168] sm:$0x1f] }
 0x2fa   :  { %v2858_v3 = vrot.slane %v2856_v6, 4  ;;  %v2861_v53 = vrot.slane %v2859_v15, 5  ;;  %v5832_v40 = vshll.u32 %v12979_v22, 16  ;;  %v5837_v36 = vshrl.u32 %v5524_v63, 16  ;;  %11925 = vmatprep.mubr.bf16.mxu1 %v14917_v55 }
 0x2fb   :  { %v5840_v18 = vshll.u32 %v5524_v63, 16  ;;  %v15002_v0 = vsel %vm2812_vm2, %v2837_v41, %v2845_v57  ;;  %v2854_v19 = vor.u32 %v2853_v47, %v2850_v38  ;;  %v5831_v43 = vrot.slane %v5829_v46, 4  ;;  %v12983_v47 = vld [vmem:[#allocation2 + $0x160] sm:$0xf0] }
 0x2fc   :  { %v5846_v51 = vshrl.u32 %v12980_v61, 16  ;;  %v2862_v50 = vor.u32 %v2861_v53, %v2858_v3  ;;  %v5834_v33 = vrot.slane %v5832_v40, 5  ;;  %v5839_v37 = vrot.slane %v5837_v36, 4  ;;  %v5527_v40 = vld [vmem:[#allocation2 + $0x178] sm:$0x1f] }
 0x2fd   :  { %v5842_v14 = vrot.slane %v5840_v18, 5  ;;  %v5849_v45 = vshll.u32 %v12980_v61, 16  ;;  %v5854_v32 = vshrl.u32 %v5525_v52, 16  ;;  %v5857_v8 = vshll.u32 %v5525_v52, 16  ;;  %v12984_v52 = vld [vmem:[#allocation2 + $0x170] sm:$0xf0] }
 0x2fe   :  { %v5848_v56 = vrot.slane %v5846_v51, 4  ;;  %v15006_v31 = vsel %vm2812_vm2, %v2854_v19, %v2862_v50  ;;  %v5835_v11 = vor.u32 %v5834_v33, %v5831_v43  ;;  %v2865_v10 = vshrl.u32 %v12981_v30, 16 }
 0x2ff   :  { %v5843_v7 = vor.u32 %v5842_v14, %v5839_v37  ;;  %v5851_v13 = vrot.slane %v5849_v45, 5  ;;  %v5856_v54 = vrot.slane %v5854_v32, 4  ;;  %v5859_v59 = vrot.slane %v5857_v8, 5  ;;  %11642 = vmatmul.mubr.bf16.gmra.mrb[120].mxu0 %v14952_v25 }
 0x300   :  { %v2868_v55 = vshll.u32 %v12981_v30, 16  ;;  %v2867_v39 = vrot.slane %v2865_v10, 4  ;;  %v2873_v44 = vshrl.u32 %v2783_v12, 16  ;;  %v2876_v48 = vshll.u32 %v2783_v12, 16  ;;  %11645 = vmatprep.mubr.bf16.mxu0 %v14958_v62  ;;  %v12985_v12 = vld [vmem:[#allocation2 + $0x50] sm:$0xf0] }
 0x301   :  { %v15009_v60 = vsel %vm2812_vm2, %v5835_v11, %v5843_v7  ;;  %v5852_v29 = vor.u32 %v5851_v13, %v5848_v56  ;;  %v5860_v16 = vor.u32 %v5859_v59, %v5856_v54  ;;  %v2882_v4 = vshrl.u32 %v12982_v9, 16  ;;  %11926 = vmatmul.mubr.bf16.gmra.mrb[52].mxu1 %v14939_v17  ;;  %v2785_v56 = vld [vmem:[#allocation2 + $0x58] sm:$0x1f]  ;;  %v2786_v54 = vld [vmem:[#allocation2 + $0x68] sm:$0x1f] }
 0x302   :  { %v2870_v34 = vrot.slane %v2868_v55, 5  ;;  %v2875_v2 = vrot.slane %v2873_v44, 4  ;;  %v2878_v58 = vrot.slane %v2876_v48, 5  ;;  %v2885_v20 = vshll.u32 %v12982_v9, 16  ;;  %11929 = vmatprep.mubr.bf16.mxu1 %v14947_v35 }
 0x303   :  { %v2890_v28 = vshrl.u32 %v2784_v27, 16  ;;  %v15015_v6 = vsel %vm2812_vm2, %v5852_v29, %v5860_v16  ;;  %v2884_v41 = vrot.slane %v2882_v4, 4  ;;  %v2893_v25 = vshll.u32 %v2784_v27, 16  ;;  %v12986_v29 = vld [vmem:[#allocation2 + $0x60] sm:$0xf0] }
 0x304   :  { %v2871_v63 = vor.u32 %v2870_v34, %v2867_v39  ;;  %v2879_v38 = vor.u32 %v2878_v58, %v2875_v2  ;;  %v2887_v15 = vrot.slane %v2885_v20, 5  ;;  %v5863_v62 = vshrl.u32 %v12983_v47, 16  ;;  %v5528_v2 = vld [vmem:[#allocation2 + $0x188] sm:$0x1f] }
 0x305   :  { %v2892_v57 = vrot.slane %v2890_v28, 4  ;;  %v2895_v3 = vrot.slane %v2893_v25, 5  ;;  %v5866_v22 = vshll.u32 %v12983_v47, 16  ;;  %v5871_v46 = vshrl.u32 %v5526_v49, 16 }
 0x306   :  { %v5874_v53 = vshll.u32 %v5526_v49, 16  ;;  %v15019_v17 = vsel %vm2812_vm2, %v2871_v63, %v2879_v38  ;;  %v2888_v36 = vor.u32 %v2887_v15, %v2884_v41  ;;  %v5865_v18 = vrot.slane %v5863_v62, 4  ;;  %v5529_v62 = vld [vmem:[#allocation2 + $0x198] sm:$0x1f] }
 0x307   :  { %v5880_v19 = vshrl.u32 %v12984_v52, 16  ;;  %v2896_v43 = vor.u32 %v2895_v3, %v2892_v57  ;;  %v5868_v61 = vrot.slane %v5866_v22, 5  ;;  %v5873_v35 = vrot.slane %v5871_v46, 4  ;;  %11646 = vmatmul.mubr.bf16.gmra.mrb[124].mxu0 %v14977_v5 }
 0x308   :  { %v5876_v51 = vrot.slane %v5874_v53, 5  ;;  %v5883_v33 = vshll.u32 %v12984_v52, 16  ;;  %v5888_v37 = vshrl.u32 %v5527_v40, 16  ;;  %v5891_v14 = vshll.u32 %v5527_v40, 16  ;;  %11665 = vmatprep.mubr.bf16.mxu0 %v14996_v1  ;;  %v12988_v53 = vld [vmem:[#allocation2 + $0x190] sm:$0xf0] }
 0x309   :  { %v5882_v50 = vrot.slane %v5880_v19, 4  ;;  %v15023_v45 = vsel %vm2812_vm2, %v2888_v36, %v2896_v43  ;;  %v5869_v32 = vor.u32 %v5868_v61, %v5865_v18  ;;  %v2899_v11 = vshrl.u32 %v12985_v12, 16  ;;  %11930 = vmatmul.mubr.bf16.gmra.mrb[56].mxu1 %v14966_v26 }
 0x30a   :  { %v5877_v8 = vor.u32 %v5876_v51, %v5873_v35  ;;  %v5885_v7 = vrot.slane %v5883_v33, 5  ;;  %v5890_v30 = vrot.slane %v5888_v37, 4  ;;  %v5893_v10 = vrot.slane %v5891_v14, 5  ;;  %11933 = vmatprep.mubr.bf16.mxu1 %v14971_v21  ;;  %v12987_v21 = vld [vmem:[#allocation2 + $0x180] sm:$0xf0] }
 0x30b   :  { %v2902_v13 = vshll.u32 %v12985_v12, 16  ;;  %v2901_v5 = vrot.slane %v2899_v11, 4  ;;  %v2907_v55 = vshrl.u32 %v2785_v56, 16  ;;  %v2910_v27 = vshll.u32 %v2785_v56, 16  ;;  %v2787_v51 = vld [vmem:[#allocation2 + $0x78] sm:$0x1f] }
 0x30c   :  { %v15028_v59 = vsel %vm2812_vm2, %v5869_v32, %v5877_v8  ;;  %v5886_v39 = vor.u32 %v5885_v7, %v5882_v50  ;;  %v5894_v44 = vor.u32 %v5893_v10, %v5890_v30  ;;  %v2916_v1 = vshrl.u32 %v12986_v29, 16  ;;  %v12989_v50 = vld [vmem:[%s17993_s4 + $0xc8] sm:$0xff]  }
 0x30d   :  { %v2904_v48 = vrot.slane %v2902_v13, 5  ;;  %v2909_v16 = vrot.slane %v2907_v55, 4  ;;  %v2912_v34 = vrot.slane %v2910_v27, 5  ;;  %v2919_v9 = vshll.u32 %v12986_v29, 16  ;;  %v2788_v12 = vld [vmem:[#allocation2 + $0x88] sm:$0x1f] }
 0x30e   :  { %v2924_v4 = vshrl.u32 %v2786_v54, 16  ;;  %v15032_v26 = vsel %vm2812_vm2, %v5886_v39, %v5894_v44  ;;  %v2918_v20 = vrot.slane %v2916_v1, 4  ;;  %v2927_v28 = vshll.u32 %v2786_v54, 16  ;;  %v12992_v27 = vld [vmem:[%s17993_s4 + $0xd0] sm:$0xff]   ;;  %v5530_v1 = vld [vmem:[#allocation2 + $0x1a8] sm:$0x1f] }
 0x30f   :  { %v2905_v58 = vor.u32 %v2904_v48, %v2901_v5  ;;  %v2913_v49 = vor.u32 %v2912_v34, %v2909_v16  ;;  %v2921_v63 = vrot.slane %v2919_v9, 5  ;;  %v5897_v25 = vshrl.u32 %v12987_v21, 16  ;;  %11666 = vmatmul.mubr.bf16.vlgmr.msra.gmra.mrb[64].mxu0 %v15002_v0  ;;  %v12991_v5 = vld [vmem:[#allocation2 + $0x80] sm:$0xf0] }
 0x310   :  { %v2926_v41 = vrot.slane %v2924_v4, 4  ;;  %v2929_v38 = vrot.slane %v2927_v28, 5  ;;  %v5900_v15 = vshll.u32 %v12987_v21, 16  ;;  %v5905_v57 = vshrl.u32 %v5528_v2, 16  ;;  %11669 = vmatprep.mubr.bf16.mxu0 %v15006_v31  ;;  %11730 = vmatpush3.bf16.msra.mxu0 %v14851_v42  ;;  %v12990_v42 = vld [vmem:[#allocation2 + $0x70] sm:$0xf0] }
 0x311   :  { %v5908_v47 = vshll.u32 %v5528_v2, 16  ;;  %v15036_v3 = vsel %vm2812_vm2, %v2905_v58, %v2913_v49  ;;  %v2922_v22 = vor.u32 %v2921_v63, %v2918_v20  ;;  %v5899_v46 = vrot.slane %v5897_v25, 4  ;;  %11934 = vmatmul.mubr.bf16.gmra.mrb[60].mxu1 %v14986_v23  ;;  %11731 = vmatprep.subr.bf16.mxu0 %v12989_v50  ;;  %v12993_v28 = vld [vmem:[#allocation2 + $0x1a0] sm:$0xf0]  ;;  %v5531_v25 = vld [vmem:[#allocation2 + $0x1b8] sm:$0x1f] }
 0x312   :  { %v5914_v40 = vshrl.u32 %v12988_v53, 16  ;;  %v2930_v36 = vor.u32 %v2929_v38, %v2926_v41  ;;  %v5902_v18 = vrot.slane %v5900_v15, 5  ;;  %v5907_v52 = vrot.slane %v5905_v57, 4  ;;  %11937 = vmatprep.mubr.bf16.mxu1 %v14990_v24  ;;  %v12994_v38 = vld [vmem:[%s17993_s4 + $0xd8] sm:$0xff]  }
 0x313   :  { %v5910_v19 = vrot.slane %v5908_v47, 5  ;;  %v5917_v61 = vshll.u32 %v12988_v53, 16  ;;  %v5922_v0 = vshrl.u32 %v5529_v62, 16  ;;  %v5925_v35 = vshll.u32 %v5529_v62, 16  ;;  %v12995_v47 = vld [vmem:[#allocation2 + $0x1b0] sm:$0xf0] }
 0x314   :  { %v5916_v43 = vrot.slane %v5914_v40, 4  ;;  %v15046_v31 = vsel %vm2812_vm2, %v2922_v22, %v2930_v36  ;;  %v5903_v33 = vor.u32 %v5902_v18, %v5899_v46  ;;  %v2933_v14 = vshrl.u32 %v12990_v42, 16  ;;  %11732 = vmatpush3.bf16.msra.mxu0 %v12989_v50 }
 0x315   :  { %v5911_v37 = vor.u32 %v5910_v19, %v5907_v52  ;;  %v5919_v23 = vrot.slane %v5917_v61, 5  ;;  %v5924_v56 = vrot.slane %v5922_v0, 4  ;;  %v5927_v32 = vrot.slane %v5925_v35, 5  ;;  %11733 = vmatprep.subr.bf16.mxu0 %v12992_v27  ;;  %v2789_v19 = vld [vmem:[#allocation2 + $0x98] sm:$0x1f] }
 0x316   :  { %v2936_v8 = vshll.u32 %v12990_v42, 16  ;;  %v2935_v7 = vrot.slane %v2933_v14, 4  ;;  %v2941_v30 = vshrl.u32 %v2787_v51, 16  ;;  %v2944_v10 = vshll.u32 %v2787_v51, 16  ;;  %v12996_v0 = vld [vmem:[#allocation2 + $0x90] sm:$0xf0] }
 0x317   :  { %v15049_v11 = vsel %vm2812_vm2, %v5903_v33, %v5911_v37  ;;  %v5920_v24 = vor.u32 %v5919_v23, %v5916_v43  ;;  %v5928_v13 = vor.u32 %v5927_v32, %v5924_v56  ;;  %v2950_v55 = vshrl.u32 %v12991_v5, 16  ;;  %11670 = vmatmul.mubr.bf16.gmra.mrb[68].mxu0 %v15019_v17  ;;  %v12997_v51 = vld [vmem:[%s17993_s4 + $0xe0] sm:$0xff]   ;;  %v2790_v14 = vld [vmem:[#allocation2 + $0xa8] sm:$0x1f] }
 0x318   :  { %v2938_v54 = vrot.slane %v2936_v8, 5  ;;  %v2943_v39 = vrot.slane %v2941_v30, 4  ;;  %v2946_v44 = vrot.slane %v2944_v10, 5  ;;  %v2953_v48 = vshll.u32 %v12991_v5, 16  ;;  %11673 = vmatprep.mubr.bf16.mxu0 %v15023_v45  ;;  %11734 = vmatpush3.bf16.msra.mxu0 %v12992_v27  ;;  %v12998_v10 = vld [vmem:[#allocation2 + $0xa0] sm:$0xf0] }
 0x319   :  { %v2958_v29 = vshrl.u32 %v2788_v12, 16  ;;  %v15056_v16 = vsel %vm2812_vm2, %v5920_v24, %v5928_v13  ;;  %v2952_v9 = vrot.slane %v2950_v55, 4  ;;  %v2961_v4 = vshll.u32 %v2788_v12, 16  ;;  %11938 = vmatmul.mubr.bf16.gmra.mrb[0].mxu1 %v15009_v60  ;;  %11735 = vmatprep.subr.bf16.mxu0 %v12994_v38  ;;  %v5532_v55 = vld [vmem:[#allocation2 + $0x1c8] sm:$0x1f] }
 0x31a   :  { %v2939_v34 = vor.u32 %v2938_v54, %v2935_v7  ;;  %v2947_v2 = vor.u32 %v2946_v44, %v2943_v39  ;;  %v2955_v58 = vrot.slane %v2953_v48, 5  ;;  %v5931_v49 = vshrl.u32 %v12993_v28, 16  ;;  %11941 = vmatprep.mubr.bf16.mxu1 %v15015_v6  ;;  %v12999_v27 = vld [vmem:[%s17993_s4 + $0xe8] sm:$0xff]  }
 0x31b   :  { %v2960_v20 = vrot.slane %v2958_v29, 4  ;;  %v2963_v63 = vrot.slane %v2961_v4, 5  ;;  %v5934_v41 = vshll.u32 %v12993_v28, 16  ;;  %v5939_v21 = vshrl.u32 %v5530_v1, 16  ;;  %v5533_v28 = vld [vmem:[#allocation2 + $0x1d8] sm:$0x1f] }
 0x31c   :  { %v5942_v17 = vshll.u32 %v5530_v1, 16  ;;  %v15065_v45 = vsel %vm2812_vm2, %v2939_v34, %v2947_v2  ;;  %v2956_v15 = vor.u32 %v2955_v58, %v2952_v9  ;;  %v5933_v57 = vrot.slane %v5931_v49, 4  ;;  %11736 = vmatpush3.bf16.msra.mxu0 %v12994_v38  ;;  %v13000_v34 = vld [vmem:[#allocation2 + $0x1c0] sm:$0xf0] }
 0x31d   :  { %v5948_v62 = vshrl.u32 %v12995_v47, 16  ;;  %v2964_v60 = vor.u32 %v2963_v63, %v2960_v20  ;;  %v5936_v22 = vrot.slane %v5934_v41, 5  ;;  %v5941_v46 = vrot.slane %v5939_v21, 4  ;;  %11737 = vmatprep.subr.bf16.mxu0 %v12997_v51  ;;  %v13001_v41 = vld [vmem:[#allocation2 + $0x1d0] sm:$0xf0] }
 0x31e   :  { %v5944_v53 = vrot.slane %v5942_v17, 5  ;;  %v5951_v36 = vshll.u32 %v12995_v47, 16  ;;  %v5956_v18 = vshrl.u32 %v5531_v25, 16  ;;  %v5959_v52 = vshll.u32 %v5531_v25, 16  ;;  %v13002_v17 = vld [vmem:[%s17993_s4 + $0xf0] sm:$0xff]  }
 0x31f   :  { %v5950_v40 = vrot.slane %v5948_v62, 4  ;;  %v15068_v43 = vsel %vm2812_vm2, %v2956_v15, %v2964_v60  ;;  %v5937_v6 = vor.u32 %v5936_v22, %v5933_v57  ;;  %v2967_v35 = vshrl.u32 %v12996_v0, 16  ;;  %11674 = vmatmul.mubr.bf16.gmra.mrb[72].mxu0 %v15036_v3 }
 0x320   :  { %v5945_v61 = vor.u32 %v5944_v53, %v5941_v46  ;;  %v5953_v50 = vrot.slane %v5951_v36, 5  ;;  %v5958_v33 = vrot.slane %v5956_v18, 4  ;;  %v5961_v37 = vrot.slane %v5959_v52, 5  ;;  %11677 = vmatprep.mubr.bf16.mxu0 %v15046_v31  ;;  %11738 = vmatpush3.bf16.msra.mxu0 %v12997_v51  ;;  %v2791_v46 = vld [vmem:[#allocation2 + $0xb8] sm:$0x1f] }
 0x321   :  { %v2970_v42 = vshll.u32 %v12996_v0, 16  ;;  %v2969_v56 = vrot.slane %v2967_v35, 4  ;;  %v2975_v32 = vshrl.u32 %v2789_v19, 16  ;;  %v2978_v8 = vshll.u32 %v2789_v19, 16  ;;  %11942 = vmatmul.mubr.bf16.gmra.mrb[4].mxu1 %v15028_v59  ;;  %11739 = vmatprep.subr.bf16.mxu0 %v12999_v27  ;;  %v13003_v18 = vld [vmem:[#allocation2 + $0xb0] sm:$0xf0] }
 0x322   :  { %v15075_v23 = vsel %vm2812_vm2, %v5937_v6, %v5945_v61  ;;  %v5954_v12 = vor.u32 %v5953_v50, %v5950_v40  ;;  %v5962_v7 = vor.u32 %v5961_v37, %v5958_v33  ;;  %v2984_v24 = vshrl.u32 %v12998_v10, 16  ;;  %11945 = vmatprep.mubr.bf16.mxu1 %v15032_v26  ;;  %v2792_v0 = vld [vmem:[#allocation2 + $0xc8] sm:$0x1f]  ;;  %v13004_v35 = vld [vmem:[%s17993_s4 + $0xf8] sm:$0xff]  }
 0x323   :  { %v2972_v30 = vrot.slane %v2970_v42, 5  ;;  %v2977_v13 = vrot.slane %v2975_v32, 4  ;;  %v2980_v54 = vrot.slane %v2978_v8, 5  ;;  %v2987_v5 = vshll.u32 %v12998_v10, 16 }
 0x324   :  { %v2992_v3 = vshrl.u32 %v2790_v14, 16  ;;  %v15084_v31 = vsel %vm2812_vm2, %v5954_v12, %v5962_v7  ;;  %v2986_v44 = vrot.slane %v2984_v24, 4  ;;  %v2995_v48 = vshll.u32 %v2790_v14, 16  ;;  %11740 = vmatpush3.bf16.msra.mxu0 %v12999_v27  ;;  %v13005_v14 = vld [vmem:[#allocation2 + $0xc0] sm:$0xf0] }
 0x325   :  { %v2973_v39 = vor.u32 %v2972_v30, %v2969_v56  ;;  %v2981_v29 = vor.u32 %v2980_v54, %v2977_v13  ;;  %v2989_v59 = vrot.slane %v2987_v5, 5  ;;  %v5965_v9 = vshrl.u32 %v13000_v34, 16  ;;  %11741 = vmatprep.subr.bf16.mxu0 %v13002_v17  ;;  %v5534_v30 = vld [vmem:[#allocation2 + $0x1e8] sm:$0x1f] }
 0x326   :  { %v2994_v1 = vrot.slane %v2992_v3, 4  ;;  %v2997_v4 = vrot.slane %v2995_v48, 5  ;;  %v5968_v2 = vshll.u32 %v13000_v34, 16  ;;  %v5973_v58 = vshrl.u32 %v5532_v55, 16 }
 0x327   :  { %v5976_v20 = vshll.u32 %v5532_v55, 16  ;;  %v2982_v49 = vsel %vm2812_vm2, %v2973_v39, %v2981_v29  ;;  %v2990_v26 = vor.u32 %v2989_v59, %v2986_v44  ;;  %v5967_v63 = vrot.slane %v5965_v9, 4  ;;  %11678 = vmatmul.mubr.bf16.gmra.mrb[76].mxu0 %v15065_v45  ;;  %v13006_v55 = vld [vmem:[#allocation2 + $0x1e0] sm:$0xf0]  ;;  %v5535_v59 = vld [vmem:[#allocation2 + $0x1f8] sm:$0x1f] }
 0x328   :  { %v5982_v21 = vshrl.u32 %v13001_v41, 16  ;;  %v2998_v25 = vor.u32 %v2997_v4, %v2994_v1  ;;  %v5970_v38 = vrot.slane %v5968_v2, 5  ;;  %v5975_v15 = vrot.slane %v5973_v58, 4  ;;  %11681 = vmatprep.mubr.bf16.mxu0 %v15068_v43  ;;  %11742 = vmatpush3.bf16.msra.mxu0 %v13002_v17  ;;  %v13007_v4 = vld [vmem:[#allocation2 + $0x1f0] sm:$0xf0] }
 0x329   :  { %v5978_v57 = vrot.slane %v5976_v20, 5  ;;  %v5985_v62 = vshll.u32 %v13001_v41, 16  ;;  %v5990_v60 = vshrl.u32 %v5533_v28, 16  ;;  %v5993_v22 = vshll.u32 %v5533_v28, 16  ;;  %11946 = vmatmul.mubr.bf16.gmra.mrb[8].mxu1 %v15049_v11  ;;  %11743 = vmatprep.subr.bf16.mxu0 %v13004_v35  ;;  %v2793_v17 = vld [vmem:[#allocation2 + $0xd8] sm:$0x1f] }
 0x32a   :  { %v5984_v47 = vrot.slane %v5982_v21, 4  ;;  %v2999_v53 = vsel %vm2812_vm2, %v2990_v26, %v2998_v25  ;;  %v5971_v40 = vor.u32 %v5970_v38, %v5967_v63  ;;  %v3001_v52 = vshrl.u32 %v13003_v18, 16  ;;  %11949 = vmatprep.mubr.bf16.mxu1 %v15056_v16 }
 0x32b   :  { %v5979_v36 = vor.u32 %v5978_v57, %v5975_v15  ;;  %v5987_v19 = vrot.slane %v5985_v62, 5  ;;  %v5992_v6 = vrot.slane %v5990_v60, 4  ;;  %v5995_v61 = vrot.slane %v5993_v22, 5  ;;  %v13008_v57 = vld [vmem:[#allocation2 + $0xd0] sm:$0xf0] }
 0x32c   :  { %v3004_v45 = vshll.u32 %v13003_v18, 16  ;;  %v3003_v51 = vrot.slane %v3001_v52, 4  ;;  %v3009_v50 = vshrl.u32 %v2791_v46, 16  ;;  %v3012_v33 = vshll.u32 %v2791_v46, 16  ;;  %11744 = vmatpush3.bf16.msra.mxu0 %v13004_v35  ;;  %v2794_v46 = vld [vmem:[#allocation2 + $0xe8] sm:$0x1f] }
 0x32d   :  { %v15099_v43 = vsel %vm2812_vm2, %v5971_v40, %v5979_v36  ;;  %v5988_v37 = vor.u32 %v5987_v19, %v5984_v47  ;;  %v5996_v11 = vor.u32 %v5995_v61, %v5992_v6  ;;  %v3018_v56 = vshrl.u32 %v13005_v14, 16  ;;  %v13009_v6 = vld [vmem:[#allocation2 + $0xe0] sm:$0xf0] }
 0x32e   :  { %v3006_v42 = vrot.slane %v3004_v45, 5  ;;  %v3011_v32 = vrot.slane %v3009_v50, 4  ;;  %v3014_v8 = vrot.slane %v3012_v33, 5  ;;  %v3021_v12 = vshll.u32 %v13005_v14, 16  ;;  %v5536_v50 = vld [vmem:[#allocation2 + $0x208] sm:$0x1f] }
 0x32f   :  { %v3026_v7 = vshrl.u32 %v2792_v0, 16  ;;  %v15102_v10 = vsel %vm2812_vm2, %v5988_v37, %v5996_v11  ;;  %v3020_v24 = vrot.slane %v3018_v56, 4  ;;  %v3029_v13 = vshll.u32 %v2792_v0, 16  ;;  %11682 = vmatmul.mubr.bf16.gmra.mrb[80].mxu0 %v2982_v49 }
 0x330   :  { %v3007_v16 = vor.u32 %v3006_v42, %v3003_v51  ;;  %v3015_v54 = vor.u32 %v3014_v8, %v3011_v32  ;;  %v3023_v5 = vrot.slane %v3021_v12, 5  ;;  %v5999_v27 = vshrl.u32 %v13006_v55, 16  ;;  %11685 = vmatprep.mubr.bf16.mxu0 %v2999_v53  ;;  %v13010_v8 = vld [vmem:[#allocation2 + $0x200] sm:$0xf0] }
 0x331   :  { %v3028_v3 = vrot.slane %v3026_v7, 4  ;;  %v3031_v39 = vrot.slane %v3029_v13, 5  ;;  %v6002_v44 = vshll.u32 %v13006_v55, 16  ;;  %v6007_v48 = vshrl.u32 %v5534_v30, 16  ;;  %11950 = vmatmul.mubr.bf16.gmra.mrb[12].mxu1 %v15075_v23  ;;  %v5537_v13 = vld [vmem:[#allocation2 + $0x218] sm:$0x1f] }
 0x332   :  { %v6010_v29 = vshll.u32 %v5534_v30, 16  ;;  %v3016_v1 = vsel %vm2812_vm2, %v3007_v16, %v3015_v54  ;;  %v3024_v34 = vor.u32 %v3023_v5, %v3020_v24  ;;  %v6001_v9 = vrot.slane %v5999_v27, 4  ;;  %11953 = vmatprep.mubr.bf16.mxu1 %v15084_v31  ;;  %v13011_v55 = vld [vmem:[#allocation2 + $0x210] sm:$0xf0] }
 0x333   :  { %v6016_v2 = vshrl.u32 %v13007_v4, 16  ;;  %v3032_v58 = vor.u32 %v3031_v39, %v3028_v3  ;;  %v6004_v20 = vrot.slane %v6002_v44, 5  ;;  %v6009_v28 = vrot.slane %v6007_v48, 4 }
 0x334   :  { %v6012_v26 = vrot.slane %v6010_v29, 5  ;;  %v6019_v63 = vshll.u32 %v13007_v4, 16  ;;  %v6024_v41 = vshrl.u32 %v5535_v59, 16  ;;  %v6027_v21 = vshll.u32 %v5535_v59, 16 }
 0x335   :  { %v6018_v49 = vrot.slane %v6016_v2, 4  ;;  %v3033_v25 = vsel %vm2812_vm2, %v3024_v34, %v3032_v58  ;;  %v6005_v38 = vor.u32 %v6004_v20, %v6001_v9  ;;  %v3035_v47 = vshrl.u32 %v13008_v57, 16  ;;  %v13012_v58 = vld [vmem:[#allocation2 + $0xf0] sm:$0xf0] }
 0x336   :  { %v6013_v15 = vor.u32 %v6012_v26, %v6009_v28  ;;  %v6021_v62 = vrot.slane %v6019_v63, 5  ;;  %v6026_v60 = vrot.slane %v6024_v41, 4  ;;  %v6029_v23 = vrot.slane %v6027_v21, 5  ;;  %v5538_v41 = vld [vmem:[#allocation2 + $0x228] sm:$0x1f] }
 0x337   :  { %v3038_v22 = vshll.u32 %v13008_v57, 16  ;;  %v3037_v40 = vrot.slane %v3035_v47, 4  ;;  %v3043_v31 = vshrl.u32 %v2793_v17, 16  ;;  %v3046_v36 = vshll.u32 %v2793_v17, 16  ;;  %11686 = vmatmul.mubr.bf16.gmra.mrb[84].mxu0 %v3016_v1 }
 0x338   :  { %v6014_v53 = vsel %vm2812_vm2, %v6005_v38, %v6013_v15  ;;  %v6022_v18 = vor.u32 %v6021_v62, %v6018_v49  ;;  %v6030_v52 = vor.u32 %v6029_v23, %v6026_v60  ;;  %v3052_v61 = vshrl.u32 %v13009_v6, 16  ;;  %11689 = vmatprep.mubr.bf16.mxu0 %v3033_v25  ;;  %v13013_v62 = vld [vmem:[#allocation2 + $0x220] sm:$0xf0] }
 0x339   :  { %v3040_v19 = vrot.slane %v3038_v22, 5  ;;  %v3045_v45 = vrot.slane %v3043_v31, 4  ;;  %v3048_v0 = vrot.slane %v3046_v36, 5  ;;  %v3055_v35 = vshll.u32 %v13009_v6, 16  ;;  %11954 = vmatmul.mubr.bf16.gmra.mrb[16].mxu1 %v15099_v43  ;;  %v6534_v23 = vld [vmem:[#allocation2 + $0x20] sm:$0xf8] }
 0x33a   :  { %v3060_v51 = vshrl.u32 %v2794_v46, 16  ;;  %v6031_v33 = vsel %vm2812_vm2, %v6022_v18, %v6030_v52  ;;  %v3054_v11 = vrot.slane %v3052_v61, 4  ;;  %v3063_v42 = vshll.u32 %v2794_v46, 16  ;;  %11957 = vmatprep.mubr.bf16.mxu1 %v15102_v10  ;;  %v2795_v10 = vld [vmem:[#allocation2 + $0xf8] sm:$0x1f] }
 0x33b   :  { %v3041_v37 = vor.u32 %v3040_v19, %v3037_v40  ;;  %v3049_v14 = vor.u32 %v3048_v0, %v3045_v45  ;;  %v3057_v56 = vrot.slane %v3055_v35, 5  ;;  %v6033_v12 = vshrl.u32 %v13010_v8, 16  ;;  %v6535_v36 = vld [vmem:[#allocation2 + $0x28] sm:$0xf] }
 0x33c   :  { %v3062_v32 = vrot.slane %v3060_v51, 4  ;;  %v3065_v7 = vrot.slane %v3063_v42, 5  ;;  %v6036_v30 = vshll.u32 %v13010_v8, 16  ;;  %v6041_v16 = vshrl.u32 %v5536_v50, 16 }
 0x33d   :  { %v6044_v24 = vshll.u32 %v5536_v50, 16  ;;  %v3050_v54 = vsel %vm2812_vm2, %v3041_v37, %v3049_v14  ;;  %v3058_v5 = vor.u32 %v3057_v56, %v3054_v11  ;;  %v6035_v3 = vrot.slane %v6033_v12, 4  ;;  %v2796_v11 = vld [vmem:[#allocation2 + $0x128] sm:$0x1f]  ;;  %v13014_v56 = vld [vmem:[#allocation2 + $0x120] sm:$0xf0] }
 0x33e   :  { %v6050_v27 = vshrl.u32 %v13011_v55, 16  ;;  %v3066_v39 = vor.u32 %v3065_v7, %v3062_v32  ;;  %v6038_v43 = vrot.slane %v6036_v30, 5  ;;  %v6043_v44 = vrot.slane %v6041_v16, 4 }
 0x33f   :  { %v6046_v48 = vrot.slane %v6044_v24, 5  ;;  %v6053_v59 = vshll.u32 %v13011_v55, 16  ;;  %v6058_v1 = vshrl.u32 %v5537_v13, 16  ;;  %v6061_v34 = vshll.u32 %v5537_v13, 16  ;;  %11690 = vmatmul.mubr.bf16.gmra.mrb[88].mxu0 %v3050_v54 }
 0x340   :  { %v6052_v29 = vrot.slane %v6050_v27, 4  ;;  %v3067_v9 = vsel %vm2812_vm2, %v3058_v5, %v3066_v39  ;;  %v6039_v4 = vor.u32 %v6038_v43, %v6035_v3  ;;  %v3069_v20 = vshrl.u32 %v13012_v58, 16  ;;  %v2797_v5 = vld [vmem:[#allocation2 + $0x138] sm:$0x1f]  ;;  %v13015_v39 = vld [vmem:[#allocation2 + $0x130] sm:$0xf0] }
 0x341   :  { %v6047_v2 = vor.u32 %v6046_v48, %v6043_v44  ;;  %v6055_v28 = vrot.slane %v6053_v59, 5  ;;  %v6060_v26 = vrot.slane %v6058_v1, 4  ;;  %v6063_v49 = vrot.slane %v6061_v34, 5  ;;  %11693 = vmatprep.mubr.bf16.mxu0 %v3067_v9  ;;  %11958 = vmatmul.mubr.bf16.gmra.mrb[20].mxu1 %v6014_v53  ;;  %v2798_v1 = vld [vmem:[#allocation2 + $0x148] sm:$0x1f] }
 0x342   :  { %v3072_v63 = vshll.u32 %v13012_v58, 16  ;;  %v3071_v17 = vrot.slane %v3069_v20, 4  ;;  %v3077_v25 = vshrl.u32 %v2795_v10, 16  ;;  %v3080_v38 = vshll.u32 %v2795_v10, 16  ;;  %11961 = vmatprep.mubr.bf16.mxu1 %v6031_v33 }
 0x343   :  { %v6048_v21 = vsel %vm2812_vm2, %v6039_v4, %v6047_v2  ;;  %v6056_v15 = vor.u32 %v6055_v28, %v6052_v29  ;;  %v6064_v57 = vor.u32 %v6063_v49, %v6060_v26  ;;  %v6067_v60 = vshrl.u32 %v13013_v62, 16  ;;  %v13016_v28 = vld [vmem:[#allocation2 + $0x140] sm:$0xf0]  ;;  %v6536_v49 = vld [vmem:[#allocation2 + $0x30] sm:$0xf8] }
 0x344   :  { %v3074_v47 = vrot.slane %v3072_v63, 5  ;;  %v3079_v22 = vrot.slane %v3077_v25, 4  ;;  %v3082_v46 = vrot.slane %v3080_v38, 5  ;;  %v6070_v40 = vshll.u32 %v13013_v62, 16  ;;  %v6537_v25 = vld [vmem:[#allocation2 + $0x38] sm:$0xf] }
 0x345   :  { %v6075_v31 = vshrl.u32 %v5538_v41, 16  ;;  %v6065_v18 = vsel %vm2812_vm2, %v6056_v15, %v6064_v57  ;;  %v6069_v19 = vrot.slane %v6067_v60, 4  ;;  %v6078_v6 = vshll.u32 %v5538_v41, 16  ;;  %v6538_v62 = vld [vmem:[#allocation2 + $0x40] sm:$0xf8] }
 0x346   :  { %v3075_v52 = vor.u32 %v3074_v47, %v3071_v17  ;;  %v3083_v61 = vor.u32 %v3082_v46, %v3079_v22  ;;  %v6072_v45 = vrot.slane %v6070_v40, 5  ;;  %v6599_v0 = vshrl.u32 %v6534_v23, 16 }
 0x347   :  { %v6077_v53 = vrot.slane %v6075_v31, 4  ;;  %v6080_v35 = vrot.slane %v6078_v6, 5  ;;  %v6602_v51 = vshll.u32 %v6534_v23, 16  ;;  %v6607_v50 = vshrl.u32 %v6535_v36, 16 }
 0x348   :  { %v6610_v37 = vshll.u32 %v6535_v36, 16  ;;  %v3084_v33 = vsel %vm2812_vm2, %v3075_v52, %v3083_v61  ;;  %v6073_v42 = vor.u32 %v6072_v45, %v6069_v19  ;;  %v6601_v14 = vrot.slane %v6599_v0, 3  ;;  %v6539_v52 = vld [vmem:[#allocation2 + $0x48] sm:$0xf] }
 0x349   :  { %v3086_v32 = vshrl.u32 %v13014_v56, 16  ;;  %11694 = vmatmul.mubr.bf16.gmra.mrb[92].mxu0 %v3084_v33  ;;  %v6081_v8 = vor.u32 %v6080_v35, %v6077_v53  ;;  %v6604_v12 = vrot.slane %v6602_v51, 4  ;;  %v6609_v7 = vrot.slane %v6607_v50, 3  ;;  %11962 = vmatmul.mubr.bf16.gmra.mrb[24].mxu1 %v6048_v21 }
 0x34a   :  { %v6612_v30 = vrot.slane %v6610_v37, 4  ;;  %v3089_v24 = vshll.u32 %v13014_v56, 16  ;;  %v3094_v13 = vshrl.u32 %v2796_v11, 16  ;;  %v3097_v54 = vshll.u32 %v2796_v11, 16  ;;  %11965 = vmatprep.mubr.bf16.mxu1 %v6065_v18 }
 0x34b   :  { %v3088_v16 = vrot.slane %v3086_v32, 4  ;;  %v6082_v3 = vsel %vm2812_vm2, %v6073_v42, %v6081_v8  ;;  %v6605_v55 = vor.u32 %v6604_v12, %v6601_v14  ;;  %v3103_v43 = vshrl.u32 %v13015_v39, 16  ;;  %v2799_v42 = vld [vmem:[#allocation2 + $0x158] sm:$0x1f]  ;;  %v13017_v8 = vld [vmem:[#allocation2 + $0x150] sm:$0xf0] }
 0x34c   :  { %v6613_v27 = vor.u32 %v6612_v30, %v6609_v7  ;;  %v3091_v44 = vrot.slane %v3089_v24, 5  ;;  %v3096_v48 = vrot.slane %v3094_v13, 4  ;;  %v3099_v29 = vrot.slane %v3097_v54, 5  ;;  %v2800_v13 = vld [vmem:[#allocation2 + $0x168] sm:$0x1f] }
 0x34d   :  { %v3106_v59 = vshll.u32 %v13015_v39, 16  ;;  %v3105_v10 = vrot.slane %v3103_v43, 4  ;;  %v3111_v9 = vshrl.u32 %v2797_v5, 16  ;;  %v3114_v4 = vshll.u32 %v2797_v5, 16 }
 0x34e   :  { %v6614_v34 = vsel %vm1271_vm1, %v6605_v55, %v6613_v27  ;;  %v3092_v2 = vor.u32 %v3091_v44, %v3088_v16  ;;  %v3100_v58 = vor.u32 %v3099_v29, %v3096_v48  ;;  %v3120_v26 = vshrl.u32 %v13016_v28, 16  ;;  %v13018_v44 = vld [vmem:[#allocation2 + $0x160] sm:$0xf0]  ;;  %v6540_v29 = vld [vmem:[#allocation2 + $0x50] sm:$0xf8] }
 0x34f   :  { %v3108_v20 = vrot.slane %v3106_v59, 5  ;;  %v3113_v63 = vrot.slane %v3111_v9, 4  ;;  %v3116_v41 = vrot.slane %v3114_v4, 5  ;;  %v3123_v21 = vshll.u32 %v13016_v28, 16  ;;  %v12883_v59 = vld [vmem:[%s17993_s4 + $0x1c8] sm:$0xff]  }
 0x350   :  { %v3128_v17 = vshrl.u32 %v2798_v1, 16  ;;  %v3101_v38 = vsel %vm2812_vm2, %v3092_v2, %v3100_v58  ;;  %v3122_v57 = vrot.slane %v3120_v26, 4  ;;  %v3131_v47 = vshll.u32 %v2798_v1, 16  ;;  %v6541_v4 = vld [vmem:[#allocation2 + $0x58] sm:$0xf] }
 0x351   :  { %v3109_v15 = vor.u32 %v3108_v20, %v3105_v10  ;;  %11697 = vmatprep.mubr.bf16.mxu0 %v3101_v38  ;;  %v3117_v60 = vor.u32 %v3116_v41, %v3113_v63  ;;  %v3125_v23 = vrot.slane %v3123_v21, 5  ;;  %v6616_v46 = vshrl.u32 %v6536_v49, 16  ;;  %11966 = vmatmul.mubr.bf16.gmra.mrb[28].mxu1 %v6082_v3  ;;  %v6542_v26 = vld [vmem:[#allocation2 + $0x60] sm:$0xf8] }
 0x352   :  { %v3130_v22 = vrot.slane %v3128_v17, 4  ;;  %v3133_v40 = vrot.slane %v3131_v47, 5  ;;  %v6619_v31 = vshll.u32 %v6536_v49, 16  ;;  %v6624_v36 = vshrl.u32 %v6537_v25, 16  ;;  %11985 = vmatprep.mubr.bf16.mxu1 %v6614_v34  ;;  %v13019_v49 = vld [vmem:[%s17993_s4 + $0x1c0] sm:$0xff]  }
 0x353   :  { %v6627_v18 = vshll.u32 %v6537_v25, 16  ;;  %v3118_v19 = vsel %vm2812_vm2, %v3109_v15, %v3117_v60  ;;  %v3126_v6 = vor.u32 %v3125_v23, %v3122_v57  ;;  %v6618_v61 = vrot.slane %v6616_v46, 3  ;;  %v6543_v25 = vld [vmem:[#allocation2 + $0x68] sm:$0xf] }
 0x354   :  { %v6633_v45 = vshrl.u32 %v6538_v62, 16  ;;  %11698 = vmatmul.mubr.bf16.gmra.mrb[96].mxu0 %v3118_v19  ;;  %v3134_v53 = vor.u32 %v3133_v40, %v3130_v22  ;;  %v6621_v0 = vrot.slane %v6619_v31, 4  ;;  %v6626_v35 = vrot.slane %v6624_v36, 3 }
 0x355   :  { %v6629_v51 = vrot.slane %v6627_v18, 4  ;;  %v6636_v37 = vshll.u32 %v6538_v62, 16  ;;  %v6641_v11 = vshrl.u32 %v6539_v52, 16  ;;  %v6644_v33 = vshll.u32 %v6539_v52, 16  ;;  %v12884_v62 = vld [vmem:[%s17993_s4 + $0x1d0] sm:$0xff]  }
 0x356   :  { %v6635_v50 = vrot.slane %v6633_v45, 3  ;;  %v3135_v14 = vsel %vm2812_vm2, %v3126_v6, %v3134_v53  ;;  %v6622_v56 = vor.u32 %v6621_v0, %v6618_v61  ;;  %v3137_v12 = vshrl.u32 %v13017_v8, 16  ;;  %v2801_v45 = vld [vmem:[#allocation2 + $0x178] sm:$0x1f] }
 0x357   :  { %v6630_v32 = vor.u32 %v6629_v51, %v6626_v35  ;;  %11701 = vmatprep.mubr.bf16.mxu0 %v3135_v14  ;;  %v6638_v7 = vrot.slane %v6636_v37, 4  ;;  %v6643_v30 = vrot.slane %v6641_v11, 3  ;;  %v6646_v16 = vrot.slane %v6644_v33, 4  ;;  %v13020_v51 = vld [vmem:[#allocation2 + $0x170] sm:$0xf0] }
 0x358   :  { %v3140_v24 = vshll.u32 %v13017_v8, 16  ;;  %v3139_v5 = vrot.slane %v3137_v12, 4  ;;  %v3145_v3 = vshrl.u32 %v2799_v42, 16  ;;  %v3148_v55 = vshll.u32 %v2799_v42, 16  ;;  %v2802_v37 = vld [vmem:[#allocation2 + $0x188] sm:$0x1f] }
 0x359   :  { %v6631_v54 = vsel %vm1271_vm1, %v6622_v56, %v6630_v32  ;;  %v6639_v27 = vor.u32 %v6638_v7, %v6635_v50  ;;  %v6647_v39 = vor.u32 %v6646_v16, %v6643_v30  ;;  %v3154_v48 = vshrl.u32 %v13018_v44, 16  ;;  %v12885_v56 = vld [vmem:[%s17993_s4 + $0x1d8] sm:$0xff]  }
 0x35a   :  { %v3142_v43 = vrot.slane %v3140_v24, 5  ;;  %v3147_v1 = vrot.slane %v3145_v3, 4  ;;  %v3150_v34 = vrot.slane %v3148_v55, 5  ;;  %v3157_v10 = vshll.u32 %v13018_v44, 16  ;;  %11986 = vmatmul.mubr.bf16.vlgmr.msra.gmra.mrb[32].mxu1 %v6631_v54 }
 0x35b   :  { %v3162_v9 = vshrl.u32 %v2800_v13, 16  ;;  %v6648_v2 = vsel %vm1271_vm1, %v6639_v27, %v6647_v39  ;;  %v3156_v20 = vrot.slane %v3154_v48, 4  ;;  %v3165_v28 = vshll.u32 %v2800_v13, 16  ;;  %12050 = vmatpush3.bf16.msra.mxu1 %v13019_v49  ;;  %v13021_v13 = vld [vmem:[#allocation2 + $0x180] sm:$0xf0] }
 0x35c   :  { %v3143_v58 = vor.u32 %v3142_v43, %v3139_v5  ;;  %11989 = vmatprep.mubr.bf16.mxu1 %v6648_v2  ;;  %v3151_v63 = vor.u32 %v3150_v34, %v3147_v1  ;;  %v3159_v41 = vrot.slane %v3157_v10, 5  ;;  %v6650_v17 = vshrl.u32 %v6540_v29, 16  ;;  %12051 = vmatprep.subr.bf16.mxu1 %v12883_v59  ;;  %v6544_v5 = vld [vmem:[#allocation2 + $0x70] sm:$0xf8]  ;;  %v6545_v43 = vld [vmem:[#allocation2 + $0x78] sm:$0xf] }
 0x35d   :  { %v3164_v21 = vrot.slane %v3162_v9, 4  ;;  %v3167_v38 = vrot.slane %v3165_v28, 5  ;;  %v6653_v15 = vshll.u32 %v6540_v29, 16  ;;  %v6658_v57 = vshrl.u32 %v6541_v4, 16  ;;  %v6546_v1 = vld [vmem:[#allocation2 + $0x80] sm:$0xf8] }
 0x35e   :  { %v6661_v47 = vshll.u32 %v6541_v4, 16  ;;  %v3152_v60 = vsel %vm2812_vm2, %v3143_v58, %v3151_v63  ;;  %v3160_v23 = vor.u32 %v3159_v41, %v3156_v20  ;;  %v6652_v22 = vrot.slane %v6650_v17, 3  ;;  %v12886_v34 = vld [vmem:[%s17993_s4 + $0x1e0] sm:$0xff]   ;;  %v6547_v49 = vld [vmem:[#allocation2 + $0x88] sm:$0xf] }
 0x35f   :  { %v6667_v46 = vshrl.u32 %v6542_v26, 16  ;;  %11702 = vmatmul.mubr.bf16.gmra.mrb[100].mxu0 %v3152_v60  ;;  %v3168_v40 = vor.u32 %v3167_v38, %v3164_v21  ;;  %v6655_v31 = vrot.slane %v6653_v15, 4  ;;  %v6660_v36 = vrot.slane %v6658_v57, 3  ;;  %12052 = vmatpush3.bf16.msra.mxu1 %v12883_v59 }
 0x360   :  { %v6663_v18 = vrot.slane %v6661_v47, 4  ;;  %v6670_v19 = vshll.u32 %v6542_v26, 16  ;;  %v6675_v6 = vshrl.u32 %v6543_v25, 16  ;;  %v6678_v61 = vshll.u32 %v6543_v25, 16  ;;  %12053 = vmatprep.subr.bf16.mxu1 %v12884_v62  ;;  %v12887_v47 = vld [vmem:[%s17993_s4 + $0x1e8] sm:$0xff]  }
 0x361   :  { %v6669_v52 = vrot.slane %v6667_v46, 3  ;;  %v3169_v53 = vsel %vm2812_vm2, %v3160_v23, %v3168_v40  ;;  %v6656_v0 = vor.u32 %v6655_v31, %v6652_v22  ;;  %v3171_v50 = vshrl.u32 %v13020_v51, 16  ;;  %v2803_v46 = vld [vmem:[#allocation2 + $0x198] sm:$0x1f] }
 0x362   :  { %v6664_v35 = vor.u32 %v6663_v18, %v6660_v36  ;;  %11705 = vmatprep.mubr.bf16.mxu0 %v3169_v53  ;;  %v6672_v11 = vrot.slane %v6670_v19, 4  ;;  %v6677_v33 = vrot.slane %v6675_v6, 3  ;;  %v6680_v42 = vrot.slane %v6678_v61, 4  ;;  %v13022_v18 = vld [vmem:[#allocation2 + $0x190] sm:$0xf0] }
 0x363   :  { %v3174_v14 = vshll.u32 %v13020_v51, 16  ;;  %v3173_v8 = vrot.slane %v3171_v50, 4  ;;  %v3179_v12 = vshrl.u32 %v2801_v45, 16  ;;  %v3182_v7 = vshll.u32 %v2801_v45, 16  ;;  %12054 = vmatpush3.bf16.msra.mxu1 %v12884_v62  ;;  %v2804_v53 = vld [vmem:[#allocation2 + $0x1a8] sm:$0x1f] }
 0x364   :  { %v6665_v32 = vsel %vm1271_vm1, %v6656_v0, %v6664_v35  ;;  %v6673_v30 = vor.u32 %v6672_v11, %v6669_v52  ;;  %v6681_v16 = vor.u32 %v6680_v42, %v6677_v33  ;;  %v3188_v54 = vshrl.u32 %v13021_v13, 16  ;;  %12055 = vmatprep.subr.bf16.mxu1 %v12885_v56 }
 0x365   :  { %11990 = vmatmul.mubr.bf16.gmra.mrb[36].mxu1 %v6665_v32  ;;  %v3176_v24 = vrot.slane %v3174_v14, 5  ;;  %v3181_v3 = vrot.slane %v3179_v12, 4  ;;  %v3184_v55 = vrot.slane %v3182_v7, 5  ;;  %v3191_v27 = vshll.u32 %v13021_v13, 16  ;;  %v13023_v14 = vld [vmem:[#allocation2 + $0x1a0] sm:$0xf0] }
 0x366   :  { %v3196_v39 = vshrl.u32 %v2802_v37, 16  ;;  %v6682_v44 = vsel %vm1271_vm1, %v6673_v30, %v6681_v16  ;;  %v3190_v29 = vrot.slane %v3188_v54, 4  ;;  %v3199_v59 = vshll.u32 %v2802_v37, 16  ;;  %v12888_v37 = vld [vmem:[%s17993_s4 + $0x1f0] sm:$0xff]   ;;  %v6549_v16 = vld [vmem:[#allocation2 + $0x98] sm:$0xf] }
 0x367   :  { %v3177_v48 = vor.u32 %v3176_v24, %v3173_v8  ;;  %11993 = vmatprep.mubr.bf16.mxu1 %v6682_v44  ;;  %v3185_v10 = vor.u32 %v3184_v55, %v3181_v3  ;;  %v3193_v9 = vrot.slane %v3191_v27, 5  ;;  %v6684_v2 = vshrl.u32 %v6544_v5, 16  ;;  %12056 = vmatpush3.bf16.msra.mxu1 %v12885_v56  ;;  %v6548_v32 = vld [vmem:[#allocation2 + $0x90] sm:$0xf8]  ;;  %v6550_v3 = vld [vmem:[#allocation2 + $0xa0] sm:$0xf8] }
 0x368   :  { %v3198_v4 = vrot.slane %v3196_v39, 4  ;;  %v3201_v58 = vrot.slane %v3199_v59, 5  ;;  %v6687_v20 = vshll.u32 %v6544_v5, 16  ;;  %v6692_v28 = vshrl.u32 %v6545_v43, 16  ;;  %12057 = vmatprep.subr.bf16.mxu1 %v12886_v34  ;;  %v12889_v44 = vld [vmem:[%s17993_s4 + $0x1f8] sm:$0xff]  }
 0x369   :  { %v6695_v26 = vshll.u32 %v6545_v43, 16  ;;  %v3186_v63 = vsel %vm2812_vm2, %v3177_v48, %v3185_v10  ;;  %v3194_v41 = vor.u32 %v3193_v9, %v3190_v29  ;;  %v6686_v21 = vrot.slane %v6684_v2, 3 }
 0x36a   :  { %v6701_v17 = vshrl.u32 %v6546_v1, 16  ;;  %11706 = vmatmul.mubr.bf16.gmra.mrb[104].mxu0 %v3186_v63  ;;  %v3202_v25 = vor.u32 %v3201_v58, %v3198_v4  ;;  %v6689_v38 = vrot.slane %v6687_v20, 4  ;;  %v6694_v15 = vrot.slane %v6692_v28, 3 }
 0x36b   :  { %v6697_v57 = vrot.slane %v6695_v26, 4  ;;  %v6704_v60 = vshll.u32 %v6546_v1, 16  ;;  %v6709_v23 = vshrl.u32 %v6547_v49, 16  ;;  %v6712_v22 = vshll.u32 %v6547_v49, 16  ;;  %12058 = vmatpush3.bf16.msra.mxu1 %v12886_v34  ;;  %v6551_v34 = vld [vmem:[#allocation2 + $0xa8] sm:$0xf] }
 0x36c   :  { %v6703_v62 = vrot.slane %v6701_v17, 3  ;;  %v3203_v40 = vsel %vm2812_vm2, %v3194_v41, %v3202_v25  ;;  %v6690_v31 = vor.u32 %v6689_v38, %v6686_v21  ;;  %v3205_v52 = vshrl.u32 %v13022_v18, 16  ;;  %12059 = vmatprep.subr.bf16.mxu1 %v12887_v47  ;;  %v2805_v17 = vld [vmem:[#allocation2 + $0x1b8] sm:$0x1f] }
 0x36d   :  { %v6698_v36 = vor.u32 %v6697_v57, %v6694_v15  ;;  %11709 = vmatprep.mubr.bf16.mxu0 %v3203_v40  ;;  %v6706_v19 = vrot.slane %v6704_v60, 4  ;;  %v6711_v6 = vrot.slane %v6709_v23, 3  ;;  %v6714_v61 = vrot.slane %v6712_v22, 4  ;;  %v13024_v57 = vld [vmem:[#allocation2 + $0x1b0] sm:$0xf0] }
 0x36e   :  { %v3208_v45 = vshll.u32 %v13022_v18, 16  ;;  %v3207_v35 = vrot.slane %v3205_v52, 4  ;;  %v3213_v51 = vshrl.u32 %v2803_v46, 16  ;;  %v3216_v50 = vshll.u32 %v2803_v46, 16  ;;  %v2806_v46 = vld [vmem:[#allocation2 + $0x1c8] sm:$0x1f] }
 0x36f   :  { %v6699_v0 = vsel %vm1271_vm1, %v6690_v31, %v6698_v36  ;;  %v6707_v11 = vor.u32 %v6706_v19, %v6703_v62  ;;  %v6715_v33 = vor.u32 %v6714_v61, %v6711_v6  ;;  %v3222_v56 = vshrl.u32 %v13023_v14, 16  ;;  %12060 = vmatpush3.bf16.msra.mxu1 %v12887_v47  ;;  %v13025_v61 = vld [vmem:[#allocation2 + $0x1c0] sm:$0xf0] }
 0x370   :  { %11994 = vmatmul.mubr.bf16.gmra.mrb[40].mxu1 %v6699_v0  ;;  %v3210_v42 = vrot.slane %v3208_v45, 5  ;;  %v3215_v8 = vrot.slane %v3213_v51, 4  ;;  %v3218_v12 = vrot.slane %v3216_v50, 5  ;;  %v3225_v7 = vshll.u32 %v13023_v14, 16  ;;  %12061 = vmatprep.subr.bf16.mxu1 %v12888_v37 }
 0x371   :  { %v3230_v30 = vshrl.u32 %v2804_v53, 16  ;;  %v6716_v24 = vsel %vm1271_vm1, %v6707_v11, %v6715_v33  ;;  %v3224_v54 = vrot.slane %v3222_v56, 4  ;;  %v3233_v5 = vshll.u32 %v2804_v53, 16  ;;  %v6552_v53 = vld [vmem:[#allocation2 + $0xb0] sm:$0xf8] }
 0x372   :  { %v3211_v13 = vor.u32 %v3210_v42, %v3207_v35  ;;  %11997 = vmatprep.mubr.bf16.mxu1 %v6716_v24  ;;  %v3219_v55 = vor.u32 %v3218_v12, %v3215_v8  ;;  %v3227_v27 = vrot.slane %v3225_v7, 5  ;;  %v6718_v43 = vshrl.u32 %v6548_v32, 16  ;;  %v6554_v56 = vld [vmem:[#allocation2 + $0xc0] sm:$0xf8] }
 0x373   :  { %v3232_v39 = vrot.slane %v3230_v30, 4  ;;  %v3235_v48 = vrot.slane %v3233_v5, 5  ;;  %v6721_v29 = vshll.u32 %v6548_v32, 16  ;;  %v6726_v59 = vshrl.u32 %v6549_v16, 16  ;;  %12062 = vmatpush3.bf16.msra.mxu1 %v12888_v37  ;;  %v6553_v37 = vld [vmem:[#allocation2 + $0xb8] sm:$0xf] }
 0x374   :  { %v6729_v1 = vshll.u32 %v6549_v16, 16  ;;  %v3220_v10 = vsel %vm2812_vm2, %v3211_v13, %v3219_v55  ;;  %v3228_v9 = vor.u32 %v3227_v27, %v3224_v54  ;;  %v6720_v4 = vrot.slane %v6718_v43, 3  ;;  %12063 = vmatprep.subr.bf16.mxu1 %v12889_v44  ;;  %v12890_v30 = vld [vmem:[%s17993_s4 + $0x200] sm:$0xff]   ;;  %v6555_v5 = vld [vmem:[#allocation2 + $0xc8] sm:$0xf] }
 0x375   :  { %v6735_v2 = vshrl.u32 %v6550_v3, 16  ;;  %11710 = vmatmul.mubr.bf16.gmra.mrb[108].mxu0 %v3220_v10  ;;  %v3236_v58 = vor.u32 %v3235_v48, %v3232_v39  ;;  %v6723_v20 = vrot.slane %v6721_v29, 4  ;;  %v6728_v28 = vrot.slane %v6726_v59, 3 }
 0x376   :  { %v6731_v26 = vrot.slane %v6729_v1, 4  ;;  %v6738_v63 = vshll.u32 %v6550_v3, 16  ;;  %v6743_v41 = vshrl.u32 %v6551_v34, 16  ;;  %v6746_v21 = vshll.u32 %v6551_v34, 16 }
 0x377   :  { %v6737_v49 = vrot.slane %v6735_v2, 3  ;;  %v3237_v25 = vsel %vm2812_vm2, %v3228_v9, %v3236_v58  ;;  %v6724_v38 = vor.u32 %v6723_v20, %v6720_v4  ;;  %v3239_v47 = vshrl.u32 %v13024_v57, 16  ;;  %12064 = vmatpush3.bf16.msra.mxu1 %v12889_v44  ;;  %v2807_v9 = vld [vmem:[#allocation2 + $0x1d8] sm:$0x1f]  ;;  %v13026_v20 = vld [vmem:[#allocation2 + $0x1d0] sm:$0xf0] }
 0x378   :  { %v6732_v15 = vor.u32 %v6731_v26, %v6728_v28  ;;  %11713 = vmatprep.mubr.bf16.mxu0 %v3237_v25  ;;  %v6740_v62 = vrot.slane %v6738_v63, 4  ;;  %v6745_v60 = vrot.slane %v6743_v41, 3  ;;  %v6748_v23 = vrot.slane %v6746_v21, 4  ;;  %12129 = vmatprep.subr.bf16.mxu1 %v12890_v30  ;;  %v2808_v21 = vld [vmem:[#allocation2 + $0x1e8] sm:$0x1f] }
 0x379   :  { %v3242_v22 = vshll.u32 %v13024_v57, 16  ;;  %v3241_v31 = vrot.slane %v3239_v47, 4  ;;  %v3247_v36 = vshrl.u32 %v2805_v17, 16  ;;  %v3250_v18 = vshll.u32 %v2805_v17, 16 }
 0x37a   :  { %v6733_v40 = vsel %vm1271_vm1, %v6724_v38, %v6732_v15  ;;  %v6741_v52 = vor.u32 %v6740_v62, %v6737_v49  ;;  %v6749_v19 = vor.u32 %v6748_v23, %v6745_v60  ;;  %v3256_v45 = vshrl.u32 %v13025_v61, 16  ;;  %v13027_v60 = vld [vmem:[#allocation2 + $0x1e0] sm:$0xf0] }
 0x37b   :  { %11998 = vmatmul.mubr.bf16.gmra.mrb[44].mxu1 %v6733_v40  ;;  %v3244_v6 = vrot.slane %v3242_v22, 5  ;;  %v3249_v0 = vrot.slane %v3247_v36, 4  ;;  %v3252_v35 = vrot.slane %v3250_v18, 5  ;;  %v3259_v51 = vshll.u32 %v13025_v61, 16  ;;  %v6556_v22 = vld [vmem:[#allocation2 + $0xd0] sm:$0xf8] }
 0x37c   :  { %v3264_v50 = vshrl.u32 %v2806_v46, 16  ;;  %v6750_v11 = vsel %vm1271_vm1, %v6741_v52, %v6749_v19  ;;  %v3258_v42 = vrot.slane %v3256_v45, 4  ;;  %v3267_v14 = vshll.u32 %v2806_v46, 16  ;;  %v6557_v18 = vld [vmem:[#allocation2 + $0xd8] sm:$0xf] }
 0x37d   :  { %v3245_v33 = vor.u32 %v3244_v6, %v3241_v31  ;;  %12001 = vmatprep.mubr.bf16.mxu1 %v6750_v11  ;;  %v3253_v32 = vor.u32 %v3252_v35, %v3249_v0  ;;  %v3261_v8 = vrot.slane %v3259_v51, 5  ;;  %v6752_v7 = vshrl.u32 %v6552_v53, 16  ;;  %v6558_v45 = vld [vmem:[#allocation2 + $0xe0] sm:$0xf8] }
 0x37e   :  { %v3266_v12 = vrot.slane %v3264_v50, 4  ;;  %v3269_v16 = vrot.slane %v3267_v14, 5  ;;  %v6755_v24 = vshll.u32 %v6552_v53, 16  ;;  %v6760_v13 = vshrl.u32 %v6553_v37, 16 }
 0x37f   :  { %v6763_v54 = vshll.u32 %v6553_v37, 16  ;;  %v3254_v3 = vsel %vm2812_vm2, %v3245_v33, %v3253_v32  ;;  %v3262_v55 = vor.u32 %v3261_v8, %v3258_v42  ;;  %v6754_v27 = vrot.slane %v6752_v7, 3  ;;  %v6559_v42 = vld [vmem:[#allocation2 + $0xe8] sm:$0xf] }
 0x380   :  { %v6769_v39 = vshrl.u32 %v6554_v56, 16  ;;  %11714 = vmatmul.mubr.bf16.gmra.mrb[112].mxu0 %v3254_v3  ;;  %v3270_v43 = vor.u32 %v3269_v16, %v3266_v12  ;;  %v6757_v44 = vrot.slane %v6755_v24, 4  ;;  %v6762_v48 = vrot.slane %v6760_v13, 3  ;;  %v2809_v3 = vld [vmem:[#allocation2 + $0x1f8] sm:$0x1f] }
 0x381   :  { %v6765_v29 = vrot.slane %v6763_v54, 4  ;;  %v6772_v1 = vshll.u32 %v6554_v56, 16  ;;  %v6777_v34 = vshrl.u32 %v6555_v5, 16  ;;  %v6780_v10 = vshll.u32 %v6555_v5, 16 }
 0x382   :  { %v6771_v59 = vrot.slane %v6769_v39, 3  ;;  %v3271_v4 = vsel %vm2812_vm2, %v3262_v55, %v3270_v43  ;;  %v6758_v2 = vor.u32 %v6757_v44, %v6754_v27  ;;  %v3273_v28 = vshrl.u32 %v13026_v20, 16  ;;  %v13028_v43 = vld [vmem:[#allocation2 + $0x1f0] sm:$0xf0] }
 0x383   :  { %v6766_v58 = vor.u32 %v6765_v29, %v6762_v48  ;;  %11717 = vmatprep.mubr.bf16.mxu0 %v3271_v4  ;;  %v6774_v26 = vrot.slane %v6772_v1, 4  ;;  %v6779_v49 = vrot.slane %v6777_v34, 3  ;;  %v6782_v63 = vrot.slane %v6780_v10, 4  ;;  %v2810_v34 = vld [vmem:[#allocation2 + $0x208] sm:$0x1f] }
 0x384   :  { %v3276_v41 = vshll.u32 %v13026_v20, 16  ;;  %v3275_v25 = vrot.slane %v3273_v28, 4  ;;  %v3281_v38 = vshrl.u32 %v2807_v9, 16  ;;  %v3284_v15 = vshll.u32 %v2807_v9, 16 }
 0x385   :  { %v6767_v17 = vsel %vm1271_vm1, %v6758_v2, %v6766_v58  ;;  %v6775_v57 = vor.u32 %v6774_v26, %v6771_v59  ;;  %v6783_v47 = vor.u32 %v6782_v63, %v6779_v49  ;;  %v3290_v23 = vshrl.u32 %v13027_v60, 16  ;;  %v13029_v26 = vld [vmem:[#allocation2 + $0x200] sm:$0xf0]  ;;  %v6560_v63 = vld [vmem:[#allocation2 + $0xf0] sm:$0xf8] }
 0x386   :  { %12002 = vmatmul.mubr.bf16.gmra.mrb[48].mxu1 %v6767_v17  ;;  %v3278_v62 = vrot.slane %v3276_v41, 5  ;;  %v3283_v46 = vrot.slane %v3281_v38, 4  ;;  %v3286_v40 = vrot.slane %v3284_v15, 5  ;;  %v3293_v31 = vshll.u32 %v13027_v60, 16  ;;  %v6561_v38 = vld [vmem:[#allocation2 + $0xf8] sm:$0xf] }
 0x387   :  { %v3298_v36 = vshrl.u32 %v2808_v21, 16  ;;  %v6784_v52 = vsel %vm1271_vm1, %v6775_v57, %v6783_v47  ;;  %v3292_v6 = vrot.slane %v3290_v23, 4  ;;  %v3301_v61 = vshll.u32 %v2808_v21, 16  ;;  %v6562_v60 = vld [vmem:[#allocation2 + $0x100] sm:$0xf8] }
 0x388   :  { %v3279_v19 = vor.u32 %v3278_v62, %v3275_v25  ;;  %12005 = vmatprep.mubr.bf16.mxu1 %v6784_v52  ;;  %v3287_v53 = vor.u32 %v3286_v40, %v3283_v46  ;;  %v3295_v0 = vrot.slane %v3293_v31, 5  ;;  %v6786_v51 = vshrl.u32 %v6556_v22, 16 }
 0x389   :  { %v3300_v35 = vrot.slane %v3298_v36, 4  ;;  %v3303_v50 = vrot.slane %v3301_v61, 5  ;;  %v6789_v37 = vshll.u32 %v6556_v22, 16  ;;  %v6794_v11 = vshrl.u32 %v6557_v18, 16 }
 0x38a   :  { %v6797_v33 = vshll.u32 %v6557_v18, 16  ;;  %v3288_v14 = vsel %vm2812_vm2, %v3279_v19, %v3287_v53  ;;  %v3296_v56 = vor.u32 %v3295_v0, %v3292_v6  ;;  %v6788_v32 = vrot.slane %v6786_v51, 3  ;;  %v6563_v19 = vld [vmem:[#allocation2 + $0x108] sm:$0xf] }
 0x38b   :  { %v6803_v8 = vshrl.u32 %v6558_v45, 16  ;;  %11718 = vmatmul.mubr.bf16.gmra.mrb[116].mxu0 %v3288_v14  ;;  %v3304_v12 = vor.u32 %v3303_v50, %v3300_v35  ;;  %v6791_v7 = vrot.slane %v6789_v37, 4  ;;  %v6796_v30 = vrot.slane %v6794_v11, 3  ;;  %v2811_v14 = vld [vmem:[#allocation2 + $0x218] sm:$0x1f] }
 0x38c   :  { %v6799_v16 = vrot.slane %v6797_v33, 4  ;;  %v6806_v13 = vshll.u32 %v6558_v45, 16  ;;  %v6811_v54 = vshrl.u32 %v6559_v42, 16  ;;  %v6814_v5 = vshll.u32 %v6559_v42, 16 }
 0x38d   :  { %v6805_v24 = vrot.slane %v6803_v8, 3  ;;  %v3305_v55 = vsel %vm2812_vm2, %v3296_v56, %v3304_v12  ;;  %v6792_v27 = vor.u32 %v6791_v7, %v6788_v32  ;;  %v3307_v44 = vshrl.u32 %v13028_v43, 16  ;;  %v13030_v12 = vld [vmem:[#allocation2 + $0x210] sm:$0xf0] }
 0x38e   :  { %v6800_v39 = vor.u32 %v6799_v16, %v6796_v30  ;;  %11721 = vmatprep.mubr.bf16.mxu0 %v3305_v55  ;;  %v6808_v48 = vrot.slane %v6806_v13, 4  ;;  %v6813_v29 = vrot.slane %v6811_v54, 3  ;;  %v6816_v59 = vrot.slane %v6814_v5, 4  ;;  %v3807_v30 = vld [vmem:[#allocation2 + $0x10] sm:$0xf8] }
 0x38f   :  { %v3310_v1 = vshll.u32 %v13028_v43, 16  ;;  %v3309_v9 = vrot.slane %v3307_v44, 4  ;;  %v3315_v4 = vshrl.u32 %v2809_v3, 16  ;;  %v3318_v2 = vshll.u32 %v2809_v3, 16 }
 0x390   :  { %v6801_v10 = vsel %vm1271_vm1, %v6792_v27, %v6800_v39  ;;  %v6809_v58 = vor.u32 %v6808_v48, %v6805_v24  ;;  %v6817_v20 = vor.u32 %v6816_v59, %v6813_v29  ;;  %v3324_v49 = vshrl.u32 %v13029_v26, 16  ;;  %v6564_v29 = vld [vmem:[#allocation2 + $0x110] sm:$0xf8] }
 0x391   :  { %12006 = vmatmul.mubr.bf16.gmra.mrb[52].mxu1 %v6801_v10  ;;  %v3312_v28 = vrot.slane %v3310_v1, 5  ;;  %v3317_v41 = vrot.slane %v3315_v4, 4  ;;  %v3320_v21 = vrot.slane %v3318_v2, 5  ;;  %v3327_v17 = vshll.u32 %v13029_v26, 16  ;;  %v13031_v10 = vld [vmem:[#allocation2 + $0x18] sm:$0xf] }
 0x392   :  { %v3332_v25 = vshrl.u32 %v2810_v34, 16  ;;  %v6818_v15 = vsel %vm1271_vm1, %v6809_v58, %v6817_v20  ;;  %v3326_v47 = vrot.slane %v3324_v49, 4  ;;  %v3335_v62 = vshll.u32 %v2810_v34, 16  ;;  %v6565_v4 = vld [vmem:[#allocation2 + $0x118] sm:$0xf] }
 0x393   :  { %v3313_v57 = vor.u32 %v3312_v28, %v3309_v9  ;;  %12009 = vmatprep.mubr.bf16.mxu1 %v6818_v15  ;;  %v3321_v23 = vor.u32 %v3320_v21, %v3317_v41  ;;  %v3329_v22 = vrot.slane %v3327_v17, 5  ;;  %v6820_v40 = vshrl.u32 %v6560_v63, 16  ;;  %v6566_v26 = vld [vmem:[#allocation2 + $0x140] sm:$0xf8] }
 0x394   :  { %v3334_v46 = vrot.slane %v3332_v25, 4  ;;  %v3337_v31 = vrot.slane %v3335_v62, 5  ;;  %v6823_v36 = vshll.u32 %v6560_v63, 16  ;;  %v6828_v18 = vshrl.u32 %v6561_v38, 16 }
 0x395   :  { %v6831_v52 = vshll.u32 %v6561_v38, 16  ;;  %v3322_v6 = vsel %vm2812_vm2, %v3313_v57, %v3321_v23  ;;  %v3330_v61 = vor.u32 %v3329_v22, %v3326_v47  ;;  %v6822_v45 = vrot.slane %v6820_v40, 3  ;;  %v6567_v57 = vld [vmem:[#allocation2 + $0x148] sm:$0xf]  ;;  %v3809_v22 = vld [vmem:[#allocation2 + $0x20] sm:$0xf8] }
 0x396   :  { %v6837_v53 = vshrl.u32 %v6562_v60, 16  ;;  %11722 = vmatmul.mubr.bf16.gmra.mrb[120].mxu0 %v3322_v6  ;;  %v3338_v0 = vor.u32 %v3337_v31, %v3334_v46  ;;  %v6825_v35 = vrot.slane %v6823_v36, 4  ;;  %v6830_v51 = vrot.slane %v6828_v18, 3 }
 0x397   :  { %v6833_v50 = vrot.slane %v6831_v52, 4  ;;  %v6840_v11 = vshll.u32 %v6562_v60, 16  ;;  %v6845_v33 = vshrl.u32 %v6563_v19, 16  ;;  %v6848_v42 = vshll.u32 %v6563_v19, 16 }
 0x398   :  { %v6839_v37 = vrot.slane %v6837_v53, 3  ;;  %v3339_v56 = vsel %vm2812_vm2, %v3330_v61, %v3338_v0  ;;  %v6826_v32 = vor.u32 %v6825_v35, %v6822_v45  ;;  %v3341_v7 = vshrl.u32 %v13030_v12, 16  ;;  %v3811_v35 = vld [vmem:[#allocation2 + $0x30] sm:$0xf8] }
 0x399   :  { %v6834_v8 = vor.u32 %v6833_v50, %v6830_v51  ;;  %11725 = vmatprep.mubr.bf16.mxu0 %v3339_v56  ;;  %v6842_v16 = vrot.slane %v6840_v11, 4  ;;  %v6847_v24 = vrot.slane %v6845_v33, 3  ;;  %v6850_v13 = vrot.slane %v6848_v42, 4 }
 0x39a   :  { %v3344_v54 = vshll.u32 %v13030_v12, 16  ;;  %v3343_v3 = vrot.slane %v3341_v7, 4  ;;  %v3349_v55 = vshrl.u32 %v2811_v14, 16  ;;  %v3352_v27 = vshll.u32 %v2811_v14, 16  ;;  %v13032_v14 = vld [vmem:[#allocation2 + $0x28] sm:$0xf] }
 0x39b   :  { %v6835_v5 = vsel %vm1271_vm1, %v6826_v32, %v6834_v8  ;;  %v6843_v39 = vor.u32 %v6842_v16, %v6839_v37  ;;  %v6851_v43 = vor.u32 %v6850_v13, %v6847_v24  ;;  %v3872_v48 = vshrl.u32 %v3807_v30, 16  ;;  %v6568_v16 = vld [vmem:[#allocation2 + $0x150] sm:$0xf8] }
 0x39c   :  { %12010 = vmatmul.mubr.bf16.gmra.mrb[56].mxu1 %v6835_v5  ;;  %v3346_v44 = vrot.slane %v3344_v54, 5  ;;  %v3351_v59 = vrot.slane %v3349_v55, 4  ;;  %v3354_v1 = vrot.slane %v3352_v27, 5  ;;  %v3875_v34 = vshll.u32 %v3807_v30, 16  ;;  %v13033_v5 = vld [vmem:[#allocation2 + $0x38] sm:$0xf] }
 0x39d   :  { %v3880_v9 = vshrl.u32 %v13031_v10, 16  ;;  %v6852_v2 = vsel %vm1271_vm1, %v6843_v39, %v6851_v43  ;;  %v3874_v20 = vrot.slane %v3872_v48, 3  ;;  %v3883_v28 = vshll.u32 %v13031_v10, 16  ;;  %v6569_v55 = vld [vmem:[#allocation2 + $0x158] sm:$0xf] }
 0x39e   :  { %v3347_v58 = vor.u32 %v3346_v44, %v3343_v3  ;;  %12013 = vmatprep.mubr.bf16.mxu1 %v6852_v2  ;;  %v3355_v49 = vor.u32 %v3354_v1, %v3351_v59  ;;  %v3877_v63 = vrot.slane %v3875_v34, 4  ;;  %v6854_v21 = vshrl.u32 %v6564_v29, 16  ;;  %v6570_v48 = vld [vmem:[#allocation2 + $0x160] sm:$0xf8] }
 0x39f   :  { %v3882_v41 = vrot.slane %v3880_v9, 3  ;;  %v3885_v17 = vrot.slane %v3883_v28, 4  ;;  %v6857_v25 = vshll.u32 %v6564_v29, 16  ;;  %v6862_v38 = vshrl.u32 %v6565_v4, 16 }
 0x3a0   :  { %v6865_v15 = vshll.u32 %v6565_v4, 16  ;;  %v3356_v47 = vsel %vm2812_vm2, %v3347_v58, %v3355_v49  ;;  %v3878_v62 = vor.u32 %v3877_v63, %v3874_v20  ;;  %v6856_v60 = vrot.slane %v6854_v21, 3  ;;  %v15179_v58 = vld [vmem:[#allocation2 + $0x168] sm:$0xf]  ;;  %v3813_v63 = vld [vmem:[#allocation2 + $0x40] sm:$0xf8] }
 0x3a1   :  { %v6871_v23 = vshrl.u32 %v6566_v26, 16  ;;  %11726 = vmatmul.mubr.bf16.gmra.mrb[124].mxu0 %v3356_v47  ;;  %v3886_v46 = vor.u32 %v3885_v17, %v3882_v41  ;;  %v6859_v40 = vrot.slane %v6857_v25, 4  ;;  %v6864_v31 = vrot.slane %v6862_v38, 3 }
 0x3a2   :  { %v6867_v36 = vrot.slane %v6865_v15, 4  ;;  %v6874_v52 = vshll.u32 %v6566_v26, 16  ;;  %v6879_v19 = vshrl.u32 %v6567_v57, 16  ;;  %v6882_v6 = vshll.u32 %v6567_v57, 16 }
 0x3a3   :  { %v6873_v18 = vrot.slane %v6871_v23, 3  ;;  %v3887_v61 = vsel %vm1271_vm1, %v3878_v62, %v3886_v46  ;;  %v6860_v45 = vor.u32 %v6859_v40, %v6856_v60  ;;  %v3889_v0 = vshrl.u32 %v3809_v22, 16  ;;  %v3815_v46 = vld [vmem:[#allocation2 + $0x50] sm:$0xf8] }
 0x3a4   :  { %v6868_v53 = vor.u32 %v6867_v36, %v6864_v31  ;;  %11745 = vmatprep.mubr.bf16.mxu0 %v3887_v61  ;;  %v6876_v51 = vrot.slane %v6874_v52, 4  ;;  %v6881_v50 = vrot.slane %v6879_v19, 3  ;;  %v6884_v37 = vrot.slane %v6882_v6, 4  ;;  %v13034_v6 = vld [vmem:[#allocation2 + $0x48] sm:$0xf] }
 0x3a5   :  { %v3892_v11 = vshll.u32 %v3809_v22, 16  ;;  %v3891_v42 = vrot.slane %v3889_v0, 3  ;;  %v3897_v56 = vshrl.u32 %v13032_v14, 16  ;;  %v3900_v32 = vshll.u32 %v13032_v14, 16 }
 0x3a6   :  { %v6869_v33 = vsel %vm1271_vm1, %v6860_v45, %v6868_v53  ;;  %v6877_v8 = vor.u32 %v6876_v51, %v6873_v18  ;;  %v6885_v12 = vor.u32 %v6884_v37, %v6881_v50  ;;  %v3906_v30 = vshrl.u32 %v3811_v35, 16  ;;  %v6572_v50 = vld [vmem:[#allocation2 + $0x170] sm:$0xf8] }
 0x3a7   :  { %12014 = vmatmul.mubr.bf16.gmra.mrb[60].mxu1 %v6869_v33  ;;  %v3894_v7 = vrot.slane %v3892_v11, 4  ;;  %v3899_v24 = vrot.slane %v3897_v56, 3  ;;  %v3902_v13 = vrot.slane %v3900_v32, 4  ;;  %v3909_v54 = vshll.u32 %v3811_v35, 16  ;;  %v15186_v56 = vld [vmem:[#allocation2 + $0x178] sm:$0xf] }
 0x3a8   :  { %v3914_v3 = vshrl.u32 %v13033_v5, 16  ;;  %v6886_v27 = vsel %vm1271_vm1, %v6877_v8, %v6885_v12  ;;  %v3908_v43 = vrot.slane %v3906_v30, 3  ;;  %v3917_v44 = vshll.u32 %v13033_v5, 16  ;;  %v6574_v30 = vld [vmem:[#allocation2 + $0x180] sm:$0xf8] }
 0x3a9   :  { %v3895_v39 = vor.u32 %v3894_v7, %v3891_v42  ;;  %12017 = vmatprep.mubr.bf16.mxu1 %v6886_v27  ;;  %v3903_v29 = vor.u32 %v3902_v13, %v3899_v24  ;;  %v3911_v59 = vrot.slane %v3909_v54, 4  ;;  %v6888_v34 = vshrl.u32 %v6568_v16, 16  ;;  %v13035_v42 = vld [vmem:[#allocation2 + $0x58] sm:$0xf] }
 0x3aa   :  { %v3916_v1 = vrot.slane %v3914_v3, 3  ;;  %v3919_v10 = vrot.slane %v3917_v44, 4  ;;  %v6891_v9 = vshll.u32 %v6568_v16, 16  ;;  %v6896_v4 = vshrl.u32 %v6569_v55, 16 }
 0x3ab   :  { %v6899_v2 = vshll.u32 %v6569_v55, 16  ;;  %v3904_v20 = vsel %vm1271_vm1, %v3895_v39, %v3903_v29  ;;  %v3912_v28 = vor.u32 %v3911_v59, %v3908_v43  ;;  %v6890_v26 = vrot.slane %v6888_v34, 3  ;;  %v15191_v39 = vld [vmem:[#allocation2 + $0x188] sm:$0xf]  ;;  %v3817_v59 = vld [vmem:[#allocation2 + $0x60] sm:$0xf8] }
 0x3ac   :  { %v6905_v49 = vshrl.u32 %v6570_v48, 16  ;;  %11746 = vmatmul.mubr.bf16.vlgmr.msra.gmra.mrb[64].mxu0 %v3904_v20  ;;  %v3920_v41 = vor.u32 %v3919_v10, %v3916_v1  ;;  %v6893_v21 = vrot.slane %v6891_v9, 4  ;;  %v6898_v17 = vrot.slane %v6896_v4, 3 }
 0x3ad   :  { %v6901_v25 = vrot.slane %v6899_v2, 4  ;;  %v6908_v15 = vshll.u32 %v6570_v48, 16  ;;  %v6913_v57 = vshrl.u32 %v15179_v58, 16  ;;  %v6916_v47 = vshll.u32 %v15179_v58, 16 }
 0x3ae   :  { %v6907_v38 = vrot.slane %v6905_v49, 3  ;;  %v3921_v62 = vsel %vm1271_vm1, %v3912_v28, %v3920_v41  ;;  %v6894_v60 = vor.u32 %v6893_v21, %v6890_v26  ;;  %v3923_v22 = vshrl.u32 %v3813_v63, 16  ;;  %v3819_v21 = vld [vmem:[#allocation2 + $0x70] sm:$0xf8] }
 0x3af   :  { %v6902_v23 = vor.u32 %v6901_v25, %v6898_v17  ;;  %11749 = vmatprep.mubr.bf16.mxu0 %v3921_v62  ;;  %v6910_v40 = vrot.slane %v6908_v15, 4  ;;  %v6915_v31 = vrot.slane %v6913_v57, 3  ;;  %v6918_v36 = vrot.slane %v6916_v47, 4  ;;  %v13036_v62 = vld [vmem:[#allocation2 + $0x68] sm:$0xf] }
 0x3b0   :  { %v3926_v18 = vshll.u32 %v3813_v63, 16  ;;  %v3925_v19 = vrot.slane %v3923_v22, 3  ;;  %v3931_v61 = vshrl.u32 %v13034_v6, 16  ;;  %v3934_v45 = vshll.u32 %v13034_v6, 16  ;;  %v13037_v6 = vld [vmem:[#allocation2 + $0x78] sm:$0xf] }
 0x3b1   :  { %v6903_v52 = vsel %vm1271_vm1, %v6894_v60, %v6902_v23  ;;  %v6911_v53 = vor.u32 %v6910_v40, %v6907_v38  ;;  %v6919_v0 = vor.u32 %v6918_v36, %v6915_v31  ;;  %v3940_v51 = vshrl.u32 %v3815_v46, 16  ;;  %v6576_v36 = vld [vmem:[#allocation2 + $0x190] sm:$0xf8] }
 0x3b2   :  { %12018 = vmatmul.mubr.bf16.gmra.mrb[0].mxu1 %v6903_v52  ;;  %v3928_v35 = vrot.slane %v3926_v18, 4  ;;  %v3933_v37 = vrot.slane %v3931_v61, 3  ;;  %v3936_v11 = vrot.slane %v3934_v45, 4  ;;  %v3943_v33 = vshll.u32 %v3815_v46, 16  ;;  %v15198_v45 = vld [vmem:[#allocation2 + $0x198] sm:$0xf] }
 0x3b3   :  { %v3948_v14 = vshrl.u32 %v13035_v42, 16  ;;  %v6920_v32 = vsel %vm1271_vm1, %v6911_v53, %v6919_v0  ;;  %v3942_v12 = vrot.slane %v3940_v51, 3  ;;  %v3951_v7 = vshll.u32 %v13035_v42, 16 }
 0x3b4   :  { %v3929_v8 = vor.u32 %v3928_v35, %v3925_v19  ;;  %12021 = vmatprep.mubr.bf16.mxu1 %v6920_v32  ;;  %v3937_v16 = vor.u32 %v3936_v11, %v3933_v37  ;;  %v3945_v24 = vrot.slane %v3943_v33, 4  ;;  %v6922_v54 = vshrl.u32 %v6572_v50, 16 }
 0x3b5   :  { %v3950_v13 = vrot.slane %v3948_v14, 3  ;;  %v3953_v5 = vrot.slane %v3951_v7, 4  ;;  %v6925_v3 = vshll.u32 %v6572_v50, 16  ;;  %v6930_v55 = vshrl.u32 %v15186_v56, 16  ;;  %v6578_v50 = vld [vmem:[#allocation2 + $0x1a0] sm:$0xf8] }
 0x3b6   :  { %v6933_v27 = vshll.u32 %v15186_v56, 16  ;;  %v3938_v43 = vsel %vm1271_vm1, %v3929_v8, %v3937_v16  ;;  %v3946_v44 = vor.u32 %v3945_v24, %v3942_v12  ;;  %v6924_v48 = vrot.slane %v6922_v54, 3  ;;  %v15203_v7 = vld [vmem:[#allocation2 + $0x1a8] sm:$0xf]  ;;  %v3821_v54 = vld [vmem:[#allocation2 + $0x80] sm:$0xf8] }
 0x3b7   :  { %v6939_v29 = vshrl.u32 %v6574_v30, 16  ;;  %11750 = vmatmul.mubr.bf16.gmra.mrb[68].mxu0 %v3938_v43  ;;  %v3954_v1 = vor.u32 %v3953_v5, %v3950_v13  ;;  %v6927_v34 = vrot.slane %v6925_v3, 4  ;;  %v6932_v10 = vrot.slane %v6930_v55, 3 }
 0x3b8   :  { %v6935_v9 = vrot.slane %v6933_v27, 4  ;;  %v6942_v2 = vshll.u32 %v6574_v30, 16  ;;  %v6947_v20 = vshrl.u32 %v15191_v39, 16  ;;  %v6950_v28 = vshll.u32 %v15191_v39, 16 }
 0x3b9   :  { %v6941_v4 = vrot.slane %v6939_v29, 3  ;;  %v3955_v26 = vsel %vm1271_vm1, %v3946_v44, %v3954_v1  ;;  %v6928_v49 = vor.u32 %v6927_v34, %v6924_v48  ;;  %v3957_v41 = vshrl.u32 %v3817_v59, 16 }
 0x3ba   :  { %v6936_v63 = vor.u32 %v6935_v9, %v6932_v10  ;;  %11753 = vmatprep.mubr.bf16.mxu0 %v3955_v26  ;;  %v6944_v17 = vrot.slane %v6942_v2, 4  ;;  %v6949_v25 = vrot.slane %v6947_v20, 3  ;;  %v6952_v38 = vrot.slane %v6950_v28, 4  ;;  %v3823_v9 = vld [vmem:[#allocation2 + $0x90] sm:$0xf8] }
 0x3bb   :  { %v3960_v15 = vshll.u32 %v3817_v59, 16  ;;  %v3959_v47 = vrot.slane %v3957_v41, 3  ;;  %v3965_v60 = vshrl.u32 %v13036_v62, 16  ;;  %v3968_v23 = vshll.u32 %v13036_v62, 16 }
 0x3bc   :  { %v6937_v57 = vsel %vm1271_vm1, %v6928_v49, %v6936_v63  ;;  %v6945_v22 = vor.u32 %v6944_v17, %v6941_v4  ;;  %v6953_v46 = vor.u32 %v6952_v38, %v6949_v25  ;;  %v3974_v31 = vshrl.u32 %v3819_v21, 16  ;;  %v13038_v63 = vld [vmem:[#allocation2 + $0x88] sm:$0xf] }
 0x3bd   :  { %12022 = vmatmul.mubr.bf16.gmra.mrb[4].mxu1 %v6937_v57  ;;  %v3962_v40 = vrot.slane %v3960_v15, 4  ;;  %v3967_v18 = vrot.slane %v3965_v60, 3  ;;  %v3970_v52 = vrot.slane %v3968_v23, 4  ;;  %v3977_v19 = vshll.u32 %v3819_v21, 16  ;;  %v6580_v57 = vld [vmem:[#allocation2 + $0x1b0] sm:$0xf8] }
 0x3be   :  { %v3982_v61 = vshrl.u32 %v13037_v6, 16  ;;  %v6954_v53 = vsel %vm1271_vm1, %v6945_v22, %v6953_v46  ;;  %v3976_v35 = vrot.slane %v3974_v31, 3  ;;  %v3985_v51 = vshll.u32 %v13037_v6, 16  ;;  %v13039_v23 = vld [vmem:[#allocation2 + $0x98] sm:$0xf] }
 0x3bf   :  { %v3963_v0 = vor.u32 %v3962_v40, %v3959_v47  ;;  %12025 = vmatprep.mubr.bf16.mxu1 %v6954_v53  ;;  %v3971_v37 = vor.u32 %v3970_v52, %v3967_v18  ;;  %v3979_v11 = vrot.slane %v3977_v19, 4  ;;  %v6956_v42 = vshrl.u32 %v6576_v36, 16  ;;  %v15210_v46 = vld [vmem:[#allocation2 + $0x1b8] sm:$0xf]  ;;  %v6582_v52 = vld [vmem:[#allocation2 + $0x1c0] sm:$0xf8] }
 0x3c0   :  { %v3984_v33 = vrot.slane %v3982_v61, 3  ;;  %v3987_v14 = vrot.slane %v3985_v51, 4  ;;  %v6959_v32 = vshll.u32 %v6576_v36, 16  ;;  %v6964_v8 = vshrl.u32 %v15198_v45, 16 }
 0x3c1   :  { %v6967_v12 = vshll.u32 %v15198_v45, 16  ;;  %v3972_v30 = vsel %vm1271_vm1, %v3963_v0, %v3971_v37  ;;  %v3980_v16 = vor.u32 %v3979_v11, %v3976_v35  ;;  %v6958_v24 = vrot.slane %v6956_v42, 3  ;;  %v15215_v37 = vld [vmem:[#allocation2 + $0x1c8] sm:$0xf] }
 0x3c2   :  { %v6973_v13 = vshrl.u32 %v6578_v50, 16  ;;  %11754 = vmatmul.mubr.bf16.gmra.mrb[72].mxu0 %v3972_v30  ;;  %v3988_v5 = vor.u32 %v3987_v14, %v3984_v33  ;;  %v6961_v3 = vrot.slane %v6959_v32, 4  ;;  %v6966_v55 = vrot.slane %v6964_v8, 3  ;;  %v3825_v32 = vld [vmem:[#allocation2 + $0xa0] sm:$0xf8] }
 0x3c3   :  { %v6969_v27 = vrot.slane %v6967_v12, 4  ;;  %v6976_v44 = vshll.u32 %v6578_v50, 16  ;;  %v6981_v48 = vshrl.u32 %v15203_v7, 16  ;;  %v6984_v29 = vshll.u32 %v15203_v7, 16 }
 0x3c4   :  { %v6975_v43 = vrot.slane %v6973_v13, 3  ;;  %v3989_v59 = vsel %vm1271_vm1, %v3980_v16, %v3988_v5  ;;  %v6962_v1 = vor.u32 %v6961_v3, %v6958_v24  ;;  %v3991_v10 = vshrl.u32 %v3821_v54, 16 }
 0x3c5   :  { %v6970_v34 = vor.u32 %v6969_v27, %v6966_v55  ;;  %11757 = vmatprep.mubr.bf16.mxu0 %v3989_v59  ;;  %v6978_v4 = vrot.slane %v6976_v44, 4  ;;  %v6983_v2 = vrot.slane %v6981_v48, 3  ;;  %v6986_v20 = vrot.slane %v6984_v29, 4  ;;  %v3827_v44 = vld [vmem:[#allocation2 + $0xb0] sm:$0xf8] }
 0x3c6   :  { %v3994_v28 = vshll.u32 %v3821_v54, 16  ;;  %v3993_v49 = vrot.slane %v3991_v10, 3  ;;  %v3999_v41 = vshrl.u32 %v13038_v63, 16  ;;  %v4002_v21 = vshll.u32 %v13038_v63, 16  ;;  %v6584_v63 = vld [vmem:[#allocation2 + $0x1d0] sm:$0xf8] }
 0x3c7   :  { %v6971_v26 = vsel %vm1271_vm1, %v6962_v1, %v6970_v34  ;;  %v6979_v17 = vor.u32 %v6978_v4, %v6975_v43  ;;  %v6987_v25 = vor.u32 %v6986_v20, %v6983_v2  ;;  %v4008_v15 = vshrl.u32 %v3823_v9, 16 }
 0x3c8   :  { %12026 = vmatmul.mubr.bf16.gmra.mrb[8].mxu1 %v6971_v26  ;;  %v3996_v38 = vrot.slane %v3994_v28, 4  ;;  %v4001_v47 = vrot.slane %v3999_v41, 3  ;;  %v4004_v62 = vrot.slane %v4002_v21, 4  ;;  %v4011_v60 = vshll.u32 %v3823_v9, 16  ;;  %v13040_v9 = vld [vmem:[#allocation2 + $0xa8] sm:$0xf] }
 0x3c9   :  { %v4016_v22 = vshrl.u32 %v13039_v23, 16  ;;  %v6988_v40 = vsel %vm1271_vm1, %v6979_v17, %v6987_v25  ;;  %v4010_v36 = vrot.slane %v4008_v15, 3  ;;  %v4019_v18 = vshll.u32 %v13039_v23, 16  ;;  %v13041_v25 = vld [vmem:[#allocation2 + $0xb8] sm:$0xf] }
 0x3ca   :  { %v3997_v31 = vor.u32 %v3996_v38, %v3993_v49  ;;  %12029 = vmatprep.mubr.bf16.mxu1 %v6988_v40  ;;  %v4005_v19 = vor.u32 %v4004_v62, %v4001_v47  ;;  %v4013_v6 = vrot.slane %v4011_v60, 4  ;;  %v6990_v53 = vshrl.u32 %v6580_v57, 16  ;;  %v15222_v15 = vld [vmem:[#allocation2 + $0x1d8] sm:$0xf]  ;;  %v6586_v23 = vld [vmem:[#allocation2 + $0x1e0] sm:$0xf8] }
 0x3cb   :  { %v4018_v61 = vrot.slane %v4016_v22, 3  ;;  %v4021_v0 = vrot.slane %v4019_v18, 4  ;;  %v6993_v35 = vshll.u32 %v6580_v57, 16  ;;  %v6998_v51 = vshrl.u32 %v15210_v46, 16 }
 0x3cc   :  { %v7001_v50 = vshll.u32 %v15210_v46, 16  ;;  %v4006_v11 = vsel %vm1271_vm1, %v3997_v31, %v4005_v19  ;;  %v4014_v33 = vor.u32 %v4013_v6, %v4010_v36  ;;  %v6992_v42 = vrot.slane %v6990_v53, 3 }
 0x3cd   :  { %v7007_v14 = vshrl.u32 %v6582_v52, 16  ;;  %11758 = vmatmul.mubr.bf16.gmra.mrb[76].mxu0 %v4006_v11  ;;  %v4022_v8 = vor.u32 %v4021_v0, %v4018_v61  ;;  %v6995_v12 = vrot.slane %v6993_v35, 4  ;;  %v7000_v30 = vrot.slane %v6998_v51, 3  ;;  %v15227_v61 = vld [vmem:[#allocation2 + $0x1e8] sm:$0xf] }
 0x3ce   :  { %v7003_v16 = vrot.slane %v7001_v50, 4  ;;  %v7010_v13 = vshll.u32 %v6582_v52, 16  ;;  %v7015_v54 = vshrl.u32 %v15215_v37, 16  ;;  %v7018_v5 = vshll.u32 %v15215_v37, 16  ;;  %v3829_v50 = vld [vmem:[#allocation2 + $0xc0] sm:$0xf8] }
 0x3cf   :  { %v7009_v24 = vrot.slane %v7007_v14, 3  ;;  %v4023_v3 = vsel %vm1271_vm1, %v4014_v33, %v4022_v8  ;;  %v6996_v55 = vor.u32 %v6995_v12, %v6992_v42  ;;  %v4025_v43 = vshrl.u32 %v3825_v32, 16 }
 0x3d0   :  { %v7004_v27 = vor.u32 %v7003_v16, %v7000_v30  ;;  %11761 = vmatprep.mubr.bf16.mxu0 %v4023_v3  ;;  %v7012_v48 = vrot.slane %v7010_v13, 4  ;;  %v7017_v29 = vrot.slane %v7015_v54, 3  ;;  %v7020_v59 = vrot.slane %v7018_v5, 4  ;;  %v3831_v5 = vld [vmem:[#allocation2 + $0xd0] sm:$0xf8] }
 0x3d1   :  { %v4028_v1 = vshll.u32 %v3825_v32, 16  ;;  %v4027_v10 = vrot.slane %v4025_v43, 3  ;;  %v4033_v4 = vshrl.u32 %v13040_v9, 16  ;;  %v4036_v2 = vshll.u32 %v13040_v9, 16 }
 0x3d2   :  { %v7005_v34 = vsel %vm1271_vm1, %v6996_v55, %v7004_v27  ;;  %v7013_v20 = vor.u32 %v7012_v48, %v7009_v24  ;;  %v7021_v28 = vor.u32 %v7020_v59, %v7017_v29  ;;  %v4042_v49 = vshrl.u32 %v3827_v44, 16  ;;  %v13042_v29 = vld [vmem:[#allocation2 + $0xc8] sm:$0xf] }
 0x3d3   :  { %12030 = vmatmul.mubr.bf16.gmra.mrb[12].mxu1 %v7005_v34  ;;  %v4030_v26 = vrot.slane %v4028_v1, 4  ;;  %v4035_v41 = vrot.slane %v4033_v4, 3  ;;  %v4038_v21 = vrot.slane %v4036_v2, 4  ;;  %v4045_v17 = vshll.u32 %v3827_v44, 16  ;;  %v6588_v2 = vld [vmem:[#allocation2 + $0x1f0] sm:$0xf8] }
 0x3d4   :  { %v4050_v38 = vshrl.u32 %v13041_v25, 16  ;;  %v7022_v57 = vsel %vm1271_vm1, %v7013_v20, %v7021_v28  ;;  %v4044_v62 = vrot.slane %v4042_v49, 3  ;;  %v4053_v60 = vshll.u32 %v13041_v25, 16  ;;  %v13043_v49 = vld [vmem:[#allocation2 + $0xd8] sm:$0xf] }
 0x3d5   :  { %v4031_v47 = vor.u32 %v4030_v26, %v4027_v10  ;;  %12033 = vmatprep.mubr.bf16.mxu1 %v7022_v57  ;;  %v4039_v22 = vor.u32 %v4038_v21, %v4035_v41  ;;  %v4047_v40 = vrot.slane %v4045_v17, 4  ;;  %v7024_v36 = vshrl.u32 %v6584_v63, 16  ;;  %v15234_v41 = vld [vmem:[#allocation2 + $0x1f8] sm:$0xf]  ;;  %v6590_v57 = vld [vmem:[#allocation2 + $0x200] sm:$0xf8] }
 0x3d6   :  { %v4052_v31 = vrot.slane %v4050_v38, 3  ;;  %v4055_v18 = vrot.slane %v4053_v60, 4  ;;  %v7027_v52 = vshll.u32 %v6584_v63, 16  ;;  %v7032_v19 = vshrl.u32 %v15222_v15, 16 }
 0x3d7   :  { %v7035_v6 = vshll.u32 %v15222_v15, 16  ;;  %v4040_v53 = vsel %vm1271_vm1, %v4031_v47, %v4039_v22  ;;  %v4048_v0 = vor.u32 %v4047_v40, %v4044_v62  ;;  %v7026_v35 = vrot.slane %v7024_v36, 3 }
 0x3d8   :  { %v7041_v51 = vshrl.u32 %v6586_v23, 16  ;;  %11762 = vmatmul.mubr.bf16.gmra.mrb[80].mxu0 %v4040_v53  ;;  %v4056_v11 = vor.u32 %v4055_v18, %v4052_v31  ;;  %v7029_v33 = vrot.slane %v7027_v52, 4  ;;  %v7034_v42 = vrot.slane %v7032_v19, 3  ;;  %v15239_v18 = vld [vmem:[#allocation2 + $0x208] sm:$0xf] }
 0x3d9   :  { %v7037_v14 = vrot.slane %v7035_v6, 4  ;;  %v7044_v8 = vshll.u32 %v6586_v23, 16  ;;  %v7049_v12 = vshrl.u32 %v15227_v61, 16  ;;  %v7052_v30 = vshll.u32 %v15227_v61, 16 }
 0x3da   :  { %v7043_v32 = vrot.slane %v7041_v51, 3  ;;  %v4057_v16 = vsel %vm1271_vm1, %v4048_v0, %v4056_v11  ;;  %v7030_v24 = vor.u32 %v7029_v33, %v7026_v35  ;;  %v4059_v54 = vshrl.u32 %v3829_v50, 16  ;;  %v3833_v0 = vld [vmem:[#allocation2 + $0xe0] sm:$0xf8] }
 0x3db   :  { %v7038_v13 = vor.u32 %v7037_v14, %v7034_v42  ;;  %11765 = vmatprep.mubr.bf16.mxu0 %v4057_v16  ;;  %v7046_v3 = vrot.slane %v7044_v8, 4  ;;  %v7051_v55 = vrot.slane %v7049_v12, 3  ;;  %v7054_v27 = vrot.slane %v7052_v30, 4 }
 0x3dc   :  { %v4062_v43 = vshll.u32 %v3829_v50, 16  ;;  %v4061_v48 = vrot.slane %v4059_v54, 3  ;;  %v4067_v59 = vshrl.u32 %v13042_v29, 16  ;;  %v4070_v1 = vshll.u32 %v13042_v29, 16 }
 0x3dd   :  { %v7039_v44 = vsel %vm1271_vm1, %v7030_v24, %v7038_v13  ;;  %v7047_v34 = vor.u32 %v7046_v3, %v7043_v32  ;;  %v7055_v10 = vor.u32 %v7054_v27, %v7051_v55  ;;  %v4076_v4 = vshrl.u32 %v3831_v5, 16  ;;  %v3835_v24 = vld [vmem:[#allocation2 + $0xf0] sm:$0xf8] }
 0x3de   :  { %12034 = vmatmul.mubr.bf16.gmra.mrb[16].mxu1 %v7039_v44  ;;  %v4064_v9 = vrot.slane %v4062_v43, 4  ;;  %v4069_v20 = vrot.slane %v4067_v59, 3  ;;  %v4072_v28 = vrot.slane %v4070_v1, 4  ;;  %v4079_v26 = vshll.u32 %v3831_v5, 16  ;;  %v13044_v43 = vld [vmem:[#allocation2 + $0xe8] sm:$0xf] }
 0x3df   :  { %v4084_v63 = vshrl.u32 %v13043_v49, 16  ;;  %v7056_v21 = vsel %vm1271_vm1, %v7047_v34, %v7055_v10  ;;  %v4078_v25 = vrot.slane %v4076_v4, 3  ;;  %v4087_v38 = vshll.u32 %v13043_v49, 16  ;;  %v6592_v10 = vld [vmem:[#allocation2 + $0x210] sm:$0xf8] }
 0x3e0   :  { %v4065_v17 = vor.u32 %v4064_v9, %v4061_v48  ;;  %12037 = vmatprep.mubr.bf16.mxu1 %v7056_v21  ;;  %v4073_v47 = vor.u32 %v4072_v28, %v4069_v20  ;;  %v4081_v62 = vrot.slane %v4079_v26, 4  ;;  %v7058_v23 = vshrl.u32 %v6588_v2, 16  ;;  %v13045_v20 = vld [vmem:[#allocation2 + $0xf8] sm:$0xf] }
 0x3e1   :  { %v4086_v60 = vrot.slane %v4084_v63, 3  ;;  %v4089_v22 = vrot.slane %v4087_v38, 4  ;;  %v7061_v40 = vshll.u32 %v6588_v2, 16  ;;  %v7066_v31 = vshrl.u32 %v15234_v41, 16  ;;  %v15246_v26 = vld [vmem:[#allocation2 + $0x218] sm:$0xf] }
 0x3e2   :  { %v7069_v36 = vshll.u32 %v15234_v41, 16  ;;  %v4074_v52 = vsel %vm1271_vm1, %v4065_v17, %v4073_v47  ;;  %v4082_v19 = vor.u32 %v4081_v62, %v4078_v25  ;;  %v7060_v6 = vrot.slane %v7058_v23, 3  ;;  %v6594_v25 = vld [vmem:[#allocation2 + $0x220] sm:$0xf8] }
 0x3e3   :  { %v7075_v53 = vshrl.u32 %v6590_v57, 16  ;;  %11766 = vmatmul.mubr.bf16.gmra.mrb[84].mxu0 %v4074_v52  ;;  %v4090_v35 = vor.u32 %v4089_v22, %v4086_v60  ;;  %v7063_v51 = vrot.slane %v7061_v40, 4  ;;  %v7068_v50 = vrot.slane %v7066_v31, 3  ;;  %v15251_v31 = vld [vmem:[#allocation2 + $0x228] sm:$0xf] }
 0x3e4   :  { %v7071_v11 = vrot.slane %v7069_v36, 4  ;;  %v7078_v42 = vshll.u32 %v6590_v57, 16  ;;  %v7083_v14 = vshrl.u32 %v15239_v18, 16  ;;  %v7086_v32 = vshll.u32 %v15239_v18, 16 }
 0x3e5   :  { %v7077_v33 = vrot.slane %v7075_v53, 3  ;;  %v4091_v8 = vsel %vm1271_vm1, %v4082_v19, %v4090_v35  ;;  %v7064_v12 = vor.u32 %v7063_v51, %v7060_v6  ;;  %v4093_v16 = vshrl.u32 %v3833_v0, 16  ;;  %v3837_v53 = vld [vmem:[#allocation2 + $0x100] sm:$0xf8] }
 0x3e6   :  { %v7072_v30 = vor.u32 %v7071_v11, %v7068_v50  ;;  %11769 = vmatprep.mubr.bf16.mxu0 %v4091_v8  ;;  %v7080_v13 = vrot.slane %v7078_v42, 4  ;;  %v7085_v54 = vrot.slane %v7083_v14, 3  ;;  %v7088_v5 = vrot.slane %v7086_v32, 4 }
 0x3e7   :  { %v4096_v3 = vshll.u32 %v3833_v0, 16  ;;  %v4095_v27 = vrot.slane %v4093_v16, 3  ;;  %v4101_v44 = vshrl.u32 %v13044_v43, 16  ;;  %v4104_v48 = vshll.u32 %v13044_v43, 16  ;;  %v6596_v16 = vld [vmem:[#allocation2 + $0x230] sm:$0xf8] }
 0x3e8   :  { %v7073_v55 = vsel %vm1271_vm1, %v7064_v12, %v7072_v30  ;;  %v7081_v29 = vor.u32 %v7080_v13, %v7077_v33  ;;  %v7089_v59 = vor.u32 %v7088_v5, %v7085_v54  ;;  %v4110_v34 = vshrl.u32 %v3835_v24, 16  ;;  %v13046_v43 = vld [vmem:[#allocation2 + $0x108] sm:$0xf] }
 0x3e9   :  { %12038 = vmatmul.mubr.bf16.gmra.mrb[20].mxu1 %v7073_v55  ;;  %v4098_v1 = vrot.slane %v4096_v3, 4  ;;  %v4103_v9 = vrot.slane %v4101_v44, 3  ;;  %v4106_v4 = vrot.slane %v4104_v48, 4  ;;  %v4113_v2 = vshll.u32 %v3835_v24, 16  ;;  %v15257_v3 = vld [vmem:[#allocation2 + $0x238] sm:$0xf] }
 0x3ea   :  { %v4118_v28 = vshrl.u32 %v13045_v20, 16  ;;  %v7090_v49 = vsel %vm1271_vm1, %v7081_v29, %v7089_v59  ;;  %v4112_v21 = vrot.slane %v4110_v34, 3  ;;  %v4121_v17 = vshll.u32 %v13045_v20, 16 }
 0x3eb   :  { %v4099_v63 = vor.u32 %v4098_v1, %v4095_v27  ;;  %12041 = vmatprep.mubr.bf16.mxu1 %v7090_v49  ;;  %v4107_v38 = vor.u32 %v4106_v4, %v4103_v9  ;;  %v4115_v57 = vrot.slane %v4113_v2, 4  ;;  %v7092_v62 = vshrl.u32 %v6592_v10, 16 }
 0x3ec   :  { %v4120_v47 = vrot.slane %v4118_v28, 3  ;;  %v4123_v60 = vrot.slane %v4121_v17, 4  ;;  %v7095_v23 = vshll.u32 %v6592_v10, 16  ;;  %v7100_v22 = vshrl.u32 %v15246_v26, 16 }
 0x3ed   :  { %v7103_v40 = vshll.u32 %v15246_v26, 16  ;;  %v4108_v36 = vsel %vm1271_vm1, %v4099_v63, %v4107_v38  ;;  %v4116_v52 = vor.u32 %v4115_v57, %v4112_v21  ;;  %v7094_v19 = vrot.slane %v7092_v62, 3  ;;  %v15263_v21 = vld [vmem:[#allocation2 + $0x20] sm:$0xf0] }
 0x3ee   :  { %v7109_v6 = vshrl.u32 %v6594_v25, 16  ;;  %11770 = vmatmul.mubr.bf16.gmra.mrb[88].mxu0 %v4108_v36  ;;  %v4124_v0 = vor.u32 %v4123_v60, %v4120_v47  ;;  %v7097_v35 = vrot.slane %v7095_v23, 4  ;;  %v7102_v51 = vrot.slane %v7100_v22, 3  ;;  %v13047_v23 = vld [vmem:[#allocation2 + $0x28] sm:$0xf] }
 0x3ef   :  { %v7105_v50 = vrot.slane %v7103_v40, 4  ;;  %v7112_v33 = vshll.u32 %v6594_v25, 16  ;;  %v7117_v42 = vshrl.u32 %v15251_v31, 16  ;;  %v7120_v14 = vshll.u32 %v15251_v31, 16 }
 0x3f0   :  { %v7111_v11 = vrot.slane %v7109_v6, 3  ;;  %v4125_v32 = vsel %vm1271_vm1, %v4116_v52, %v4124_v0  ;;  %v7098_v8 = vor.u32 %v7097_v35, %v7094_v19  ;;  %v4127_v30 = vshrl.u32 %v3837_v53, 16  ;;  %v15269_v19 = vld [vmem:[#allocation2 + $0x30] sm:$0xf0]  ;;  %v15271_v6 = vld [vmem:[#allocation2 + $0x40] sm:$0xf0] }
 0x3f1   :  { %v7106_v12 = vor.u32 %v7105_v50, %v7102_v51  ;;  %11773 = vmatprep.mubr.bf16.mxu0 %v4125_v32  ;;  %v7114_v24 = vrot.slane %v7112_v33, 4  ;;  %v7119_v13 = vrot.slane %v7117_v42, 3  ;;  %v7122_v54 = vrot.slane %v7120_v14, 4  ;;  %v13048_v0 = vld [vmem:[#allocation2 + $0x38] sm:$0xf]  ;;  %v12891_v33 = vld [vmem:[%s17993_s4 + $0x208] sm:$0xff]  }
 0x3f2   :  { %v4130_v5 = vshll.u32 %v3837_v53, 16  ;;  %v4129_v27 = vrot.slane %v4127_v30, 3  ;;  %v4135_v44 = vshrl.u32 %v13046_v43, 16  ;;  %v4138_v48 = vshll.u32 %v13046_v43, 16  ;;  %v13049_v50 = vld [vmem:[#allocation2 + $0x48] sm:$0xf] }
 0x3f3   :  { %v7107_v55 = vsel %vm1271_vm1, %v7098_v8, %v7106_v12  ;;  %v7115_v29 = vor.u32 %v7114_v24, %v7111_v11  ;;  %v7123_v59 = vor.u32 %v7122_v54, %v7119_v13  ;;  %v7126_v34 = vshrl.u32 %v6596_v16, 16  ;;  %v15280_v32 = vld [vmem:[#allocation2 + $0x50] sm:$0xf0]  ;;  %v13050_v8 = vld [vmem:[%s17993_s4 + $0x200] sm:$0xff]   ;;  %v13051_v24 = vld [vmem:[#allocation2 + $0x58] sm:$0xf] }
 0x3f4   :  { %12042 = vmatmul.mubr.bf16.gmra.mrb[24].mxu1 %v7107_v55  ;;  %v4132_v1 = vrot.slane %v4130_v5, 4  ;;  %v4137_v10 = vrot.slane %v4135_v44, 3  ;;  %v4140_v9 = vrot.slane %v4138_v48, 4  ;;  %v7129_v4 = vshll.u32 %v6596_v16, 16  ;;  %v15285_v12 = vld [vmem:[#allocation2 + $0x60] sm:$0xf0] }
 0x3f5   :  { %v7134_v2 = vshrl.u32 %v15257_v3, 16  ;;  %v7124_v20 = vsel %vm1271_vm1, %v7115_v29, %v7123_v59  ;;  %v7128_v49 = vrot.slane %v7126_v34, 3  ;;  %v7137_v63 = vshll.u32 %v15257_v3, 16  ;;  %v12892_v30 = vld [vmem:[%s17993_s4 + $0x210] sm:$0xff]   ;;  %v13052_v5 = vld [vmem:[#allocation2 + $0x68] sm:$0xf] }
 0x3f6   :  { %v4133_v28 = vor.u32 %v4132_v1, %v4129_v27  ;;  %12045 = vmatprep.mubr.bf16.mxu1 %v7124_v20  ;;  %v4141_v17 = vor.u32 %v4140_v9, %v4137_v10  ;;  %v7131_v25 = vrot.slane %v7129_v4, 4  ;;  %v7688_v60 = vrot.slane %v15263_v21, 4  ;;  %v12893_v27 = vld [vmem:[%s17993_s4 + $0x218] sm:$0xff]   ;;  %v15297_v48 = vld [vmem:[#allocation2 + $0x70] sm:$0xf0]  ;;  %v12894_v59 = vld [vmem:[%s17993_s4 + $0x220] sm:$0xff]  }
 0x3f7   :  { %v7136_v38 = vrot.slane %v7134_v2, 3  ;;  %v7139_v57 = vrot.slane %v7137_v63, 4  ;;  %v7689_v22 = vrot.slane %v13047_v23, 4  ;;  %v7691_v53 = vrot.slane %v15269_v19, 4  ;;  %v15299_v29 = vld [vmem:[#allocation2 + $0x80] sm:$0xf0] }
 0x3f8   :  { %v4142_v47 = vsel %vm1271_vm1, %v4133_v28, %v4141_v17  ;;  %v7132_v62 = vor.u32 %v7131_v25, %v7128_v49  ;;  %v7692_v35 = vrot.slane %v13048_v0, 4  ;;  %v7694_v51 = vrot.slane %v15271_v6, 4  ;;  %v13053_v34 = vld [vmem:[#allocation2 + $0x78] sm:$0xf]  ;;  %v13054_v4 = vld [vmem:[#allocation2 + $0x88] sm:$0xf] }
 0x3f9   :  { %11774 = vmatmul.mubr.bf16.gmra.mrb[92].mxu0 %v4142_v47  ;;  %v7140_v40 = vor.u32 %v7139_v57, %v7136_v38  ;;  %v7690_v52 = vsel %vm1960_vm0, %v7688_v60, %v7689_v22  ;;  %v7695_v11 = vrot.slane %v13049_v50, 4  ;;  %v7697_v16 = vrot.slane %v15280_v32, 4  ;;  %v12895_v20 = vld [vmem:[%s17993_s4 + $0x228] sm:$0xff]   ;;  %v15311_v63 = vld [vmem:[#allocation2 + $0x90] sm:$0xf0]  ;;  %v12897_v22 = vld [vmem:[%s17993_s4 + $0x238] sm:$0xff]  }
 0x3fa   :  { %v7693_v42 = vsel %vm1960_vm0, %v7691_v53, %v7692_v35  ;;  %v7698_v13 = vrot.slane %v13051_v24, 4  ;;  %v7700_v54 = vrot.slane %v15285_v12, 4  ;;  %v7701_v55 = vrot.slane %v13052_v5, 4  ;;  %v15313_v17 = vld [vmem:[#allocation2 + $0xa0] sm:$0xf0]  ;;  %v12896_v25 = vld [vmem:[%s17993_s4 + $0x230] sm:$0xff]  }
 0x3fb   :  { %v7141_v36 = vsel %vm1271_vm1, %v7132_v62, %v7140_v40  ;;  %v7696_v14 = vsel %vm1960_vm0, %v7694_v51, %v7695_v11  ;;  %v7703_v1 = vrot.slane %v15297_v48, 4  ;;  %v7704_v10 = vrot.slane %v13053_v34, 4  ;;  %v13055_v57 = vld [vmem:[#allocation2 + $0x98] sm:$0xf]  ;;  %v13056_v60 = vld [vmem:[#allocation2 + $0xa8] sm:$0xf] }
 0x3fc   :  { %12046 = vmatmul.mubr.bf16.gmra.mrb[28].mxu1 %v7141_v36  ;;  %v7699_v43 = vsel %vm1960_vm0, %v7697_v16, %v7698_v13  ;;  %v7702_v44 = vsel %vm1960_vm0, %v7700_v54, %v7701_v55  ;;  %v7706_v9 = vrot.slane %v15299_v29, 4  ;;  %v7707_v2 = vrot.slane %v13054_v4, 4  ;;  %v15327_v53 = vld [vmem:[#allocation2 + $0xc0] sm:$0xf0]  ;;  %v13057_v35 = vld [vmem:[#allocation2 + $0xb8] sm:$0xf] }
 0x3fd   :  { %12065 = vmatprep.mubr.bf16.mxu1 %v7690_v52  ;;  %v7705_v28 = vsel %vm1960_vm0, %v7703_v1, %v7704_v10  ;;  %v7709_v38 = vrot.slane %v15311_v63, 4  ;;  %v7710_v47 = vrot.slane %v13055_v57, 4  ;;  %v7712_v62 = vrot.slane %v15313_v17, 4  ;;  %v15325_v52 = vld [vmem:[#allocation2 + $0xb0] sm:$0xf0] }
 0x3fe   :  { %v7708_v49 = vsel %vm1960_vm0, %v7706_v9, %v7707_v2  ;;  %v7713_v23 = vrot.slane %v13056_v60, 4  ;;  %v7715_v0 = vrot.slane %v15325_v52, 4  ;;  %v7716_v51 = vrot.slane %v13057_v35, 4  ;;  %v13058_v11 = vld [vmem:[#allocation2 + $0xc8] sm:$0xf] }
 0x3ff   :  { %v7711_v40 = vsel %vm1960_vm0, %v7709_v38, %v7710_v47  ;;  %v7718_v50 = vrot.slane %v15327_v53, 4  ;;  %v13059_v24 = vld [vmem:[#allocation2 + $0xd8] sm:$0xf]  ;;  %v13060_v55 = vld [vmem:[#allocation2 + $0xe8] sm:$0xf] }
 0x400   :  { %v7714_v36 = vsel %vm1960_vm0, %v7712_v62, %v7713_v23  ;;  %v7722_v13 = vrot.slane %v13059_v24, 4  ;;  %v15349_v10 = vld [vmem:[#allocation2 + $0xf0] sm:$0xf0]  ;;  %v15351_v9 = vld [vmem:[#allocation2 + $0x100] sm:$0xf0] }
 0x401   :  { %v7727_v4 = vrot.slane %v15349_v10, 4  ;;  %v13061_v2 = vld [vmem:[#allocation2 + $0xf8] sm:$0xf]  ;;  %v15355_v38 = vld [vmem:[#allocation2 + $0x110] sm:$0xf0] }
 0x404   :  { %12066 = vmatmul.mubr.bf16.vlgmr.msra.gmra.mrb[32].mxu1 %v7693_v42  ;;  %v7717_v42 = vsel %vm1960_vm0, %v7715_v0, %v7716_v51  ;;  %v15366_v0 = vld [vmem:[#allocation2 + $0x140] sm:$0xf0] }
 0x405   :  { %12130 = vmatpush3.bf16.msra.mxu1 %v13050_v8  ;;  %12069 = vmatprep.mubr.bf16.mxu1 %v7696_v14  ;;  %v15333_v8 = vld [vmem:[#allocation2 + $0xd0] sm:$0xf0]  ;;  %v7736_v51 = vrot.slane %v15366_v0, 4 }
 0x406   :  { %12131 = vmatprep.subr.bf16.mxu1 %v12891_v33  ;;  %v7721_v16 = vrot.slane %v15333_v8, 4 }
 0x408   :  { %v7723_v1 = vsel %vm1960_vm0, %v7721_v16, %v7722_v13  ;;  %v15375_v16 = vld [vmem:[#allocation2 + $0x160] sm:$0xf0] }
 0x409   :  { %12132 = vmatpush3.bf16.msra.mxu1 %v12891_v33  ;;  %v7719_v33 = vrot.slane %v13058_v11, 4 }
 0x40a   :  { %12133 = vmatprep.subr.bf16.mxu1 %v12892_v30 }
 0x40b   :  { %v7720_v14 = vsel %vm1960_vm0, %v7718_v50, %v7719_v33  ;;  %v13064_v50 = vld [vmem:[#allocation2 + $0x148] sm:$0xf] }
 0x40c   :  { %12070 = vmatmul.mubr.bf16.gmra.mrb[36].mxu1 %v7699_v43  ;;  %v7737_v11 = vrot.slane %v13064_v50, 4 }
 0x40d   :  { %12073 = vmatprep.mubr.bf16.mxu1 %v7702_v44  ;;  %12134 = vmatpush3.bf16.msra.mxu1 %v12892_v30  ;;  %v15335_v30 = vld [vmem:[#allocation2 + $0xe0] sm:$0xf0] }
 0x40e   :  { %12135 = vmatprep.subr.bf16.mxu1 %v12893_v27  ;;  %v7724_v5 = vrot.slane %v15335_v30, 4 }
 0x411   :  { %12136 = vmatpush3.bf16.msra.mxu1 %v12893_v27  ;;  %v7725_v27 = vrot.slane %v13060_v55, 4  ;;  %v13065_v55 = vld [vmem:[#allocation2 + $0x158] sm:$0xf] }
 0x412   :  { %12137 = vmatprep.subr.bf16.mxu1 %v12894_v59 }
 0x413   :  { %v7726_v34 = vsel %vm1960_vm0, %v7724_v5, %v7725_v27  ;;  %v7740_v27 = vrot.slane %v13065_v55, 4 }
 0x414   :  { %12074 = vmatmul.mubr.bf16.gmra.mrb[40].mxu1 %v7705_v28  ;;  %v7730_v28 = vrot.slane %v15351_v9, 4 }
 0x415   :  { %12077 = vmatprep.mubr.bf16.mxu1 %v7708_v49  ;;  %12138 = vmatpush3.bf16.msra.mxu1 %v12894_v59  ;;  %v13062_v49 = vld [vmem:[#allocation2 + $0x108] sm:$0xf] }
 0x416   :  { %12139 = vmatprep.subr.bf16.mxu1 %v12895_v20 }
 0x419   :  { %12140 = vmatpush3.bf16.msra.mxu1 %v12895_v20  ;;  %v7728_v20 = vrot.slane %v13061_v2, 4 }
 0x41a   :  { %12141 = vmatprep.subr.bf16.mxu1 %v12896_v25 }
 0x41b   :  { %v7729_v47 = vsel %vm1960_vm0, %v7727_v4, %v7728_v20  ;;  %v7743_v4 = vrot.slane %v15179_v58, 4  ;;  %v7749_v58 = vrot.slane %v15191_v39, 4 }
 0x41c   :  { %12078 = vmatmul.mubr.bf16.gmra.mrb[44].mxu1 %v7711_v40  ;;  %v13063_v40 = vld [vmem:[#allocation2 + $0x118] sm:$0xf] }
 0x41d   :  { %12081 = vmatprep.mubr.bf16.mxu1 %v7714_v36  ;;  %12142 = vmatpush3.bf16.msra.mxu1 %v12896_v25  ;;  %v7731_v25 = vrot.slane %v13062_v49, 4  ;;  %v7734_v36 = vrot.slane %v13063_v40, 4  ;;  %v15390_v49 = vld [vmem:[#allocation2 + $0x170] sm:$0xf0] }
 0x41e   :  { %12143 = vmatprep.subr.bf16.mxu1 %v12897_v22 }
 0x41f   :  { %v7732_v60 = vsel %vm1960_vm0, %v7730_v28, %v7731_v25  ;;  %v15392_v25 = vld [vmem:[#allocation2 + $0x180] sm:$0xf0] }
 0x421   :  { %12144 = vmatpush3.bf16.msra.mxu1 %v12897_v22  ;;  %v7733_v22 = vrot.slane %v15355_v38, 4 }
 0x423   :  { %v7735_v33 = vsel %vm1960_vm0, %v7733_v22, %v7734_v36  ;;  %v7748_v22 = vrot.slane %v15392_v25, 4 }
 0x424   :  { %12082 = vmatmul.mubr.bf16.gmra.mrb[48].mxu1 %v7717_v42  ;;  %v7738_v42 = vsel %vm1960_vm0, %v7736_v51, %v7737_v11 }
 0x425   :  { %12085 = vmatprep.mubr.bf16.mxu1 %v7720_v14  ;;  %v15373_v14 = vld [vmem:[#allocation2 + $0x150] sm:$0xf0] }
 0x426   :  { %v7739_v5 = vrot.slane %v15373_v14, 4 }
 0x427   :  { %v15338_v54 = vpop.f32.mrb[96].mxu0 }
 0x428   :  { %18196 = vst [vmem:[#allocation17_spill] sm:$0xff] %v15338_v54  ;;  %v15341_v43 = vpop.f32.mrb[97].mxu0  ;;  %v7741_v20 = vsel %vm1960_vm0, %v7739_v5, %v7740_v27  ;;  %v7752_v5 = vrot.slane %v15198_v45, 4  ;;  %v7755_v27 = vrot.slane %v15203_v7, 4 }
 0x429   :  { %18197 = vst [vmem:[#allocation19_spill] sm:$0xff] %v15341_v43  ;;  %v15343_v44 = vpop.f32.mrb[98].mxu0 }
 0x42a   :  { %18198 = vst [vmem:[#allocation22_spill] sm:$0xff] %v15343_v44  ;;  %v15345_v59 = vpop.f32.mrb[99].mxu0 }
 0x42b   :  { %18199 = vst [vmem:[#allocation24_spill] sm:$0xff] %v15345_v59  ;;  %v8243_v59 = vld [vmem:[#allocation2 + $0xb8] sm:$0x1f] }
 0x42c   :  { %12086 = vmatmul.mubr.bf16.gmra.mrb[52].mxu1 %v7723_v1 }
 0x42d   :  { %12089 = vmatprep.mubr.bf16.mxu1 %v7726_v34  ;;  %v7742_v34 = vrot.slane %v15375_v16, 4 }
 0x42f   :  { %v7744_v28 = vsel %vm1960_vm0, %v7742_v34, %v7743_v4 }
 0x432   :  { %v15357_v57 = vpop.f32.mrb[100].mxu0 }
 0x433   :  { %18200 = vst [vmem:[#allocation21_spill] sm:$0xff] %v15357_v57  ;;  %v15360_v62 = vpop.f32.mrb[101].mxu0 }
 0x434   :  { %18201 = vst [vmem:[#allocation23_spill] sm:$0xff] %v15360_v62  ;;  %12090 = vmatmul.mubr.bf16.gmra.mrb[56].mxu1 %v7729_v47  ;;  %v15363_v23 = vpop.f32.mrb[102].mxu0  ;;  %v7745_v47 = vrot.slane %v15390_v49, 4 }
 0x435   :  { %18202 = vst [vmem:[#allocation26_spill] sm:$0xff] %v15363_v23  ;;  %12093 = vmatprep.mubr.bf16.mxu1 %v7732_v60  ;;  %v15368_v35 = vpop.f32.mrb[103].mxu0  ;;  %v7746_v60 = vrot.slane %v15186_v56, 4  ;;  %v15410_v56 = vld [vmem:[#allocation2 + $0x1a0] sm:$0xf0] }
 0x436   :  { %18203 = vst [vmem:[#allocation27_spill] sm:$0xff] %v15368_v35  ;;  %v7754_v55 = vrot.slane %v15410_v56, 4  ;;  %v8237_v35 = vld [vmem:[#allocation2 + $0x58] sm:$0x1f] }
 0x437   :  { %v7747_v50 = vsel %vm1960_vm0, %v7745_v47, %v7746_v60  ;;  %v15424_v60 = vld [vmem:[#allocation2 + $0x1c0] sm:$0xf0] }
 0x43c   :  { %12094 = vmatmul.mubr.bf16.gmra.mrb[60].mxu1 %v7735_v33  ;;  %v7750_v33 = vsel %vm1960_vm0, %v7748_v22, %v7749_v58  ;;  %v7758_v58 = vrot.slane %v15210_v46, 4  ;;  %v7764_v46 = vrot.slane %v15222_v15, 4 }
 0x43d   :  { %12097 = vmatprep.mubr.bf16.mxu1 %v7738_v42  ;;  %v15377_v24 = vpop.f32.mrb[104].mxu0  ;;  %v15408_v42 = vld [vmem:[#allocation2 + $0x190] sm:$0xf0] }
 0x43e   :  { %18204 = vst [vmem:[#allocation29_spill] sm:$0xff] %v15377_v24  ;;  %v15379_v13 = vpop.f32.mrb[105].mxu0  ;;  %v7751_v39 = vrot.slane %v15408_v42, 4 }
 0x43f   :  { %18205 = vst [vmem:[#allocation30_spill] sm:$0xff] %v15379_v13  ;;  %v15382_v1 = vpop.f32.mrb[106].mxu0 }
 0x440   :  { %18206 = vst [vmem:[#allocation31_spill] sm:$0xff] %v15382_v1  ;;  %v15386_v2 = vpop.f32.mrb[107].mxu0  ;;  %v7753_v34 = vsel %vm1960_vm0, %v7751_v39, %v7752_v5 }
 0x441   :  { %18207 = vst [vmem:[#allocation32_spill] sm:$0xff] %v15386_v2 }
 0x444   :  { %12098 = vmatmul.mubr.bf16.gmra.mrb[0].mxu1 %v7741_v20  ;;  %v7756_v20 = vsel %vm1960_vm0, %v7754_v55, %v7755_v27  ;;  %v15436_v55 = vld [vmem:[#allocation2 + $0x1d0] sm:$0xf0]  ;;  %v15438_v27 = vld [vmem:[#allocation2 + $0x1e0] sm:$0xf0] }
 0x445   :  { %12101 = vmatprep.mubr.bf16.mxu1 %v7744_v28  ;;  %v15420_v28 = vld [vmem:[#allocation2 + $0x1b0] sm:$0xf0] }
 0x446   :  { %v7757_v7 = vrot.slane %v15420_v28, 4 }
 0x448   :  { %v15398_v40 = vpop.f32.mrb[108].mxu0  ;;  %v7759_v39 = vsel %vm1960_vm0, %v7757_v7, %v7758_v58  ;;  %v7767_v7 = vrot.slane %v15227_v61, 4 }
 0x449   :  { %18208 = vst [vmem:[#allocation33_spill] sm:$0xff] %v15398_v40  ;;  %v15400_v36 = vpop.f32.mrb[109].mxu0 }
 0x44a   :  { %18209 = vst [vmem:[#allocation34_spill] sm:$0xff] %v15400_v36  ;;  %v15402_v51 = vpop.f32.mrb[110].mxu0 }
 0x44b   :  { %18210 = vst [vmem:[#allocation35_spill] sm:$0xff] %v15402_v51  ;;  %v15405_v11 = vpop.f32.mrb[111].mxu0 }
 0x44c   :  { %18211 = vst [vmem:[#allocation8_spill] sm:$0xff] %v15405_v11  ;;  %12102 = vmatmul.mubr.bf16.gmra.mrb[4].mxu1 %v7747_v50  ;;  %v7760_v50 = vrot.slane %v15424_v60, 4 }
 0x44d   :  { %12105 = vmatprep.mubr.bf16.mxu1 %v7750_v33  ;;  %v7761_v33 = vrot.slane %v15215_v37, 4  ;;  %v7766_v37 = vrot.slane %v15438_v27, 4 }
 0x44f   :  { %v7762_v5 = vsel %vm1960_vm0, %v7760_v50, %v7761_v33 }
 0x453   :  { %v15417_v4 = vpop.f32.mrb[112].mxu0 }
 0x454   :  { %18212 = vst [vmem:[#allocation5_spill] sm:$0xff] %v15417_v4  ;;  %12106 = vmatmul.mubr.bf16.gmra.mrb[8].mxu1 %v7753_v34  ;;  %v15422_v47 = vpop.f32.mrb[113].mxu0 }
 0x455   :  { %18213 = vst [vmem:[#allocation7_spill] sm:$0xff] %v15422_v47  ;;  %12109 = vmatprep.mubr.bf16.mxu1 %v7756_v20  ;;  %v15426_v22 = vpop.f32.mrb[114].mxu0  ;;  %v7763_v20 = vrot.slane %v15436_v55, 4  ;;  %v8235_v47 = vld [vmem:[#allocation2 + $0x38] sm:$0x1f] }
 0x456   :  { %18214 = vst [vmem:[#allocation10_spill] sm:$0xff] %v15426_v22  ;;  %v15428_v45 = vpop.f32.mrb[115].mxu0 }
 0x457   :  { %18215 = vst [vmem:[#allocation12_spill] sm:$0xff] %v15428_v45  ;;  %v7765_v33 = vsel %vm1960_vm0, %v7763_v20, %v7764_v46 }
 0x45c   :  { %12110 = vmatmul.mubr.bf16.gmra.mrb[12].mxu1 %v7759_v39  ;;  %v7768_v39 = vsel %vm1960_vm0, %v7766_v37, %v7767_v7  ;;  %v15470_v7 = vld [vmem:[#allocation2 + $0x210] sm:$0xf0] }
 0x45d   :  { %12113 = vmatprep.mubr.bf16.mxu1 %v7762_v5  ;;  %v15454_v5 = vld [vmem:[#allocation2 + $0x1f0] sm:$0xf0] }
 0x45e   :  { %v15440_v34 = vpop.f32.mrb[116].mxu0  ;;  %v7769_v15 = vrot.slane %v15454_v5, 4 }
 0x45f   :  { %18216 = vst [vmem:[#allocation9_spill] sm:$0xff] %v15440_v34  ;;  %v15444_v45 = vpop.f32.mrb[117].mxu0  ;;  %v15456_v34 = vld [vmem:[#allocation2 + $0x200] sm:$0xf0] }
 0x460   :  { %18217 = vst [vmem:[#allocation11_spill] sm:$0xff] %v15444_v45  ;;  %v15448_v58 = vpop.f32.mrb[118].mxu0  ;;  %v7770_v45 = vrot.slane %v15234_v41, 4  ;;  %v7772_v61 = vrot.slane %v15456_v34, 4 }
 0x461   :  { %18218 = vst [vmem:[#allocation14_spill] sm:$0xff] %v15448_v58  ;;  %v15450_v50 = vpop.f32.mrb[119].mxu0  ;;  %v7773_v58 = vrot.slane %v15239_v18, 4  ;;  %v7775_v18 = vrot.slane %v15470_v7, 4 }
 0x462   :  { %18219 = vst [vmem:[#allocation16_spill] sm:$0xff] %v15450_v50  ;;  %v7771_v20 = vsel %vm1960_vm0, %v7769_v15, %v7770_v45  ;;  %v7779_v45 = vrot.slane %v15251_v31, 4  ;;  %v8267_v15 = vshrl.u32 %v15263_v21, 16 }
 0x463   :  { %v7774_v37 = vsel %vm1960_vm0, %v7772_v61, %v7773_v58  ;;  %v8270_v58 = vshll.u32 %v15263_v21, 16  ;;  %v7782_v21 = vrot.slane %v15257_v3, 4 }
 0x464   :  { %12114 = vmatmul.mubr.bf16.gmra.mrb[16].mxu1 %v7765_v33  ;;  %v15472_v33 = vld [vmem:[#allocation2 + $0x220] sm:$0xf0]  ;;  %v8269_v4 = vrot.slane %v8267_v15, 4  ;;  %v8301_v15 = vshrl.u32 %v15271_v6, 16 }
 0x465   :  { %12117 = vmatprep.mubr.bf16.mxu1 %v7768_v39  ;;  %v8234_v39 = vld [vmem:[#allocation2 + $0x28] sm:$0x1f] }
 0x466   :  { %v8275_v61 = vshrl.u32 %v8234_v39, 16  ;;  %v8303_v24 = vrot.slane %v8301_v15, 4 }
 0x468   :  { %v8277_v11 = vrot.slane %v8275_v61, 4 }
 0x469   :  { %v15462_v22 = vpop.f32.mrb[120].mxu0 }
 0x46a   :  { %18220 = vst [vmem:[#allocation13_spill] sm:$0xff] %v15462_v22  ;;  %v15464_v50 = vpop.f32.mrb[121].mxu0  ;;  %v7776_v22 = vrot.slane %v15246_v26, 4  ;;  %v8272_v26 = vrot.slane %v8270_v58, 5  ;;  %v8304_v58 = vshll.u32 %v15271_v6, 16 }
 0x46b   :  { %18221 = vst [vmem:[#allocation15_spill] sm:$0xff] %v15464_v50  ;;  %v15467_v46 = vpop.f32.mrb[122].mxu0  ;;  %v7778_v50 = vrot.slane %v15472_v33, 4 }
 0x46c   :  { %18222 = vst [vmem:[#allocation18_spill] sm:$0xff] %v15467_v46  ;;  %12118 = vmatmul.mubr.bf16.gmra.mrb[20].mxu1 %v7771_v20  ;;  %v15474_v41 = vpop.f32.mrb[123].mxu0  ;;  %v8278_v20 = vshll.u32 %v8234_v39, 16  ;;  %v15482_v46 = vld [vmem:[#allocation2 + $0x230] sm:$0xf0] }
 0x46d   :  { %18223 = vst [vmem:[#allocation3_spill] sm:$0xff] %v15474_v41  ;;  %12121 = vmatprep.mubr.bf16.mxu1 %v7774_v37  ;;  %v7777_v41 = vsel %vm1960_vm0, %v7775_v18, %v7776_v22  ;;  %v7780_v37 = vsel %vm1960_vm0, %v7778_v50, %v7779_v45  ;;  %v7781_v31 = vrot.slane %v15482_v46, 4  ;;  %v8236_v39 = vld [vmem:[#allocation2 + $0x48] sm:$0x1f]  ;;  %v8284_v22 = vshrl.u32 %v15269_v19, 16 }
 0x46e   :  { %v8280_v51 = vrot.slane %v8278_v20, 5  ;;  %v8287_v50 = vshll.u32 %v15269_v19, 16  ;;  %v8295_v45 = vshll.u32 %v8235_v47, 16  ;;  %v8273_v20 = vor.u32 %v8272_v26, %v8269_v4 }
 0x46f   :  { %v8309_v3 = vshrl.u32 %v8236_v39, 16  ;;  %v8286_v2 = vrot.slane %v8284_v22, 4  ;;  %v8318_v4 = vshrl.u32 %v15280_v32, 16  ;;  %v8326_v26 = vshrl.u32 %v8237_v35, 16 }
 0x470   :  { %v8289_v1 = vrot.slane %v8287_v50, 5  ;;  %v8297_v19 = vrot.slane %v8295_v45, 5  ;;  %v8335_v50 = vshrl.u32 %v15285_v12, 16  ;;  %v8338_v45 = vshll.u32 %v15285_v12, 16 }
 0x471   :  { %v8311_v23 = vrot.slane %v8309_v3, 4  ;;  %v8328_v3 = vrot.slane %v8326_v26, 4 }
 0x472   :  { %v8340_v12 = vrot.slane %v8338_v45, 5 }
 0x474   :  { %12122 = vmatmul.mubr.bf16.gmra.mrb[24].mxu1 %v7777_v41  ;;  %v15486_v36 = vpop.f32.mrb[124].mxu0  ;;  %v8292_v41 = vshrl.u32 %v8235_v47, 16 }
 0x475   :  { %18224 = vst [vmem:[#allocation4_spill] sm:$0xff] %v15486_v36  ;;  %12125 = vmatprep.mubr.bf16.mxu1 %v7780_v37  ;;  %v15490_v40 = vpop.f32.mrb[125].mxu0  ;;  %v8281_v37 = vor.u32 %v8280_v51, %v8277_v11  ;;  %v8312_v36 = vshll.u32 %v8236_v39, 16  ;;  %v8321_v51 = vshll.u32 %v15280_v32, 16  ;;  %v8238_v11 = vld [vmem:[#allocation2 + $0x68] sm:$0x1f] }
 0x476   :  { %18225 = vst [vmem:[#allocation6_spill] sm:$0xff] %v15490_v40  ;;  %v15494_v18 = vpop.f32.mrb[126].mxu0  ;;  %v7783_v40 = vsel %vm1960_vm0, %v7781_v31, %v7782_v21  ;;  %v8294_v13 = vrot.slane %v8292_v41, 4  ;;  %v8329_v31 = vshll.u32 %v8237_v35, 16  ;;  %v8290_v21 = vor.u32 %v8289_v1, %v8286_v2  ;;  %v8239_v2 = vld [vmem:[#allocation2 + $0x78] sm:$0x1f] }
 0x477   :  { %18226 = vst [vmem:[#allocation20_spill] sm:$0xff] %v15494_v18  ;;  %v15498_v61 = vpop.f32.mrb[127].mxu0  ;;  %v8306_v18 = vrot.slane %v8304_v58, 5  ;;  %v8282_v47 = vsel %vm2812_vm2, %v8273_v20, %v8281_v37  ;;  %v8314_v6 = vrot.slane %v8312_v36, 5  ;;  %v8343_v15 = vshrl.u32 %v8238_v11, 16 }
 0x478   :  { %18227 = vst [vmem:[#allocation25_spill] sm:$0xff] %v15498_v61  ;;  %v8298_v39 = vor.u32 %v8297_v19, %v8294_v13  ;;  %v8346_v36 = vshll.u32 %v8238_v11, 16  ;;  %v8320_v20 = vrot.slane %v8318_v4, 4  ;;  %v8323_v37 = vrot.slane %v8321_v51, 5 }
 0x479   :  { %v8307_v22 = vor.u32 %v8306_v18, %v8303_v24  ;;  %v8331_v35 = vrot.slane %v8329_v31, 5  ;;  %v8337_v13 = vrot.slane %v8335_v50, 4  ;;  %v8345_v18 = vrot.slane %v8343_v15, 4 }
 0x47a   :  { %v8299_v24 = vsel %vm2812_vm2, %v8290_v21, %v8298_v39  ;;  %v8348_v19 = vrot.slane %v8346_v36, 5  ;;  %v8352_v4 = vshrl.u32 %v15297_v48, 16  ;;  %v8355_v11 = vshll.u32 %v15297_v48, 16 }
 0x47b   :  { %v8332_v51 = vor.u32 %v8331_v35, %v8328_v3  ;;  %v8360_v26 = vshrl.u32 %v8239_v2, 16  ;;  %v8363_v31 = vshll.u32 %v8239_v2, 16  ;;  %v8369_v21 = vshrl.u32 %v15299_v29, 16  ;;  %v8241_v3 = vld [vmem:[#allocation2 + $0x98] sm:$0x1f] }
 0x47c   :  { %12126 = vmatmul.mubr.bf16.gmra.mrb[28].mxu1 %v7783_v40  ;;  %v8315_v40 = vor.u32 %v8314_v6, %v8311_v23  ;;  %v8324_v6 = vor.u32 %v8323_v37, %v8320_v20  ;;  %v8372_v39 = vshll.u32 %v15299_v29, 16  ;;  %v8354_v45 = vrot.slane %v8352_v4, 4 }
 0x47d   :  { %12145 = vmatprep.mubr.bf16.mxu1 %v8282_v47  ;;  %v8240_v47 = vld [vmem:[#allocation2 + $0x88] sm:$0x1f]  ;;  %v8357_v36 = vrot.slane %v8355_v11, 5  ;;  %v8362_v20 = vrot.slane %v8360_v26, 4  ;;  %v8365_v37 = vrot.slane %v8363_v31, 5  ;;  %v8371_v48 = vrot.slane %v8369_v21, 4 }
 0x47e   :  { %v8316_v23 = vsel %vm2812_vm2, %v8307_v22, %v8315_v40  ;;  %v8377_v50 = vshrl.u32 %v8240_v47, 16  ;;  %v8341_v22 = vor.u32 %v8340_v12, %v8337_v13  ;;  %v8349_v40 = vor.u32 %v8348_v19, %v8345_v18 }
 0x47f   :  { %v15505_v41 = vpop.f32.mrb[64].mxu0  ;;  %v8333_v15 = vsel %vm2812_vm2, %v8324_v6, %v8332_v51  ;;  %v8374_v35 = vrot.slane %v8372_v39, 5  ;;  %v8386_v12 = vshrl.u32 %v15311_v63, 16  ;;  %v8389_v18 = vshll.u32 %v15311_v63, 16 }
 0x480   :  { %v15508_v58 = vpop.f32.mrb[65].mxu0  ;;  %v8379_v2 = vrot.slane %v8377_v50, 4  ;;  %v8350_v29 = vsel %vm2812_vm2, %v8341_v22, %v8349_v40  ;;  %v8394_v6 = vshrl.u32 %v8241_v3, 16  ;;  %v8397_v4 = vshll.u32 %v8241_v3, 16 }
 0x481   :  { %v15510_v32 = vpop.f32.mrb[66].mxu0  ;;  %v8358_v51 = vor.u32 %v8357_v36, %v8354_v45  ;;  %v8366_v11 = vor.u32 %v8365_v37, %v8362_v20  ;;  %v8375_v26 = vor.u32 %v8374_v35, %v8371_v48  ;;  %v8403_v21 = vshrl.u32 %v15313_v17, 16  ;;  %v8244_v37 = vld [vmem:[#allocation2 + $0xc8] sm:$0x1f] }
 0x482   :  { %v15512_v1 = vpop.f32.mrb[67].mxu0  ;;  %v8406_v39 = vshll.u32 %v15313_v17, 16  ;;  %v8388_v22 = vrot.slane %v8386_v12, 4  ;;  %v8391_v40 = vrot.slane %v8389_v18, 5  ;;  %v8420_v48 = vshrl.u32 %v15325_v52, 16 }
 0x483   :  { %v8367_v63 = vsel %vm2812_vm2, %v8358_v51, %v8366_v11  ;;  %v8405_v45 = vrot.slane %v8403_v21, 4  ;;  %v8423_v12 = vshll.u32 %v15325_v52, 16  ;;  %v8428_v18 = vshrl.u32 %v8243_v59, 16 }
 0x484   :  { %12146 = vmatmul.mubr.bf16.vlgmr.msra.gmra.mrb[32].mxu1 %v8299_v24  ;;  %v8380_v24 = vshll.u32 %v8240_v47, 16  ;;  %v8242_v47 = vld [vmem:[#allocation2 + $0xa8] sm:$0x1f]  ;;  %v8408_v36 = vrot.slane %v8406_v39, 5  ;;  %v8392_v3 = vor.u32 %v8391_v40, %v8388_v22  ;;  %v8440_v51 = vshll.u32 %v15327_v53, 16 }
 0x485   :  { %12149 = vmatprep.mubr.bf16.mxu1 %v8316_v23  ;;  %v8411_v50 = vshrl.u32 %v8242_v47, 16  ;;  %v8445_v11 = vshrl.u32 %v8244_v37, 16  ;;  %v8422_v39 = vrot.slane %v8420_v48, 4  ;;  %v8430_v22 = vrot.slane %v8428_v18, 4 }
 0x486   :  { %v8382_v61 = vrot.slane %v8380_v24, 5  ;;  %v8414_v24 = vshll.u32 %v8242_v47, 16  ;;  %v8431_v47 = vshll.u32 %v8243_v59, 16  ;;  %v8442_v59 = vrot.slane %v8440_v51, 5 }
 0x487   :  { %v8413_v20 = vrot.slane %v8411_v50, 4 }
 0x488   :  { %v8383_v31 = vor.u32 %v8382_v61, %v8379_v2  ;;  %v8416_v61 = vrot.slane %v8414_v24, 5  ;;  %v8425_v24 = vrot.slane %v8423_v12, 5  ;;  %v8433_v52 = vrot.slane %v8431_v47, 5 }
 0x489   :  { %v8471_v47 = vshrl.u32 %v15335_v30, 16 }
 0x48a   :  { %v15521_v23 = vpop.f32.mrb[68].mxu0  ;;  %v8384_v57 = vsel %vm2812_vm2, %v8375_v26, %v8383_v31  ;;  %v8409_v26 = vor.u32 %v8408_v36, %v8405_v45  ;;  %v8417_v31 = vor.u32 %v8416_v61, %v8413_v20  ;;  %v8454_v45 = vshrl.u32 %v15333_v8, 16  ;;  %v8246_v20 = vld [vmem:[#allocation2 + $0xe8] sm:$0x1f] }
 0x48b   :  { %v15523_v62 = vpop.f32.mrb[69].mxu0  ;;  %v8457_v36 = vshll.u32 %v15333_v8, 16  ;;  %v8434_v48 = vor.u32 %v8433_v52, %v8430_v22  ;;  %v8479_v51 = vshrl.u32 %v8246_v20, 16  ;;  %v8247_v52 = vld [vmem:[#allocation2 + $0xf8] sm:$0x1f] }
 0x48c   :  { %12150 = vmatmul.mubr.bf16.gmra.mrb[36].mxu1 %v8333_v15  ;;  %v15526_v13 = vpop.f32.mrb[70].mxu0  ;;  %v8396_v15 = vrot.slane %v8394_v6, 4 }
 0x48d   :  { %12153 = vmatprep.mubr.bf16.mxu1 %v8350_v29  ;;  %v15530_v19 = vpop.f32.mrb[71].mxu0  ;;  %v8399_v29 = vrot.slane %v8397_v4, 5  ;;  %v8437_v4 = vshrl.u32 %v15327_v53, 16  ;;  %v8418_v53 = vsel %vm2812_vm2, %v8409_v26, %v8417_v31  ;;  %v8456_v26 = vrot.slane %v8454_v45, 4 }
 0x48e   :  { %v8459_v31 = vrot.slane %v8457_v36, 5  ;;  %v8488_v45 = vshrl.u32 %v15349_v10, 16 }
 0x48f   :  { %v8400_v35 = vor.u32 %v8399_v29, %v8396_v15  ;;  %v8439_v40 = vrot.slane %v8437_v4, 4  ;;  %v8447_v15 = vrot.slane %v8445_v11, 4  ;;  %v8474_v4 = vshll.u32 %v15335_v30, 16 }
 0x490   :  { %v8482_v11 = vshll.u32 %v8246_v20, 16  ;;  %v8491_v20 = vshll.u32 %v15349_v10, 16 }
 0x491   :  { %v8401_v50 = vsel %vm2812_vm2, %v8392_v3, %v8400_v35  ;;  %v8426_v3 = vor.u32 %v8425_v24, %v8422_v39  ;;  %v8443_v35 = vor.u32 %v8442_v59, %v8439_v40  ;;  %v8473_v40 = vrot.slane %v8471_v47, 4 }
 0x492   :  { %v8476_v30 = vrot.slane %v8474_v4, 5  ;;  %v8481_v59 = vrot.slane %v8479_v51, 4  ;;  %v8490_v51 = vrot.slane %v8488_v45, 4 }
 0x493   :  { %v8435_v39 = vsel %vm2812_vm2, %v8426_v3, %v8434_v48  ;;  %v8505_v3 = vshrl.u32 %v15351_v9, 16  ;;  %v8508_v48 = vshll.u32 %v15351_v9, 16 }
 0x494   :  { %12154 = vmatmul.mubr.bf16.gmra.mrb[40].mxu1 %v8367_v63  ;;  %v8245_v63 = vld [vmem:[#allocation2 + $0xd8] sm:$0x1f]  ;;  %v8477_v47 = vor.u32 %v8476_v30, %v8473_v40  ;;  %v8522_v40 = vshrl.u32 %v15355_v38, 16  ;;  %v8525_v30 = vshll.u32 %v15355_v38, 16 }
 0x495   :  { %12157 = vmatprep.mubr.bf16.mxu1 %v8384_v57  ;;  %v15536_v17 = vpop.f32.mrb[72].mxu0  ;;  %v8448_v57 = vshll.u32 %v8244_v37, 16  ;;  %v8462_v61 = vshrl.u32 %v8245_v63, 16  ;;  %v8465_v37 = vshll.u32 %v8245_v63, 16  ;;  %v8507_v10 = vrot.slane %v8505_v3, 4 }
 0x496   :  { %v15539_v2 = vpop.f32.mrb[73].mxu0  ;;  %v8539_v3 = vshrl.u32 %v15366_v0, 16 }
 0x497   :  { %v15542_v6 = vpop.f32.mrb[74].mxu0  ;;  %v8450_v29 = vrot.slane %v8448_v57, 5  ;;  %v8467_v63 = vrot.slane %v8465_v37, 5  ;;  %v8499_v37 = vshll.u32 %v8247_v52, 16 }
 0x498   :  { %v15546_v21 = vpop.f32.mrb[75].mxu0  ;;  %v8541_v54 = vrot.slane %v8539_v3, 4 }
 0x499   :  { %v8451_v12 = vor.u32 %v8450_v29, %v8447_v15  ;;  %v8484_v15 = vrot.slane %v8482_v11, 5  ;;  %v8248_v29 = vld [vmem:[#allocation2 + $0x108] sm:$0x1f] }
 0x49b   :  { %v8452_v24 = vsel %vm2812_vm2, %v8443_v35, %v8451_v12  ;;  %v8513_v35 = vshrl.u32 %v8248_v29, 16  ;;  %v8516_v12 = vshll.u32 %v8248_v29, 16  ;;  %v8485_v4 = vor.u32 %v8484_v15, %v8481_v59 }
 0x49c   :  { %12158 = vmatmul.mubr.bf16.gmra.mrb[44].mxu1 %v8401_v50  ;;  %v8464_v50 = vrot.slane %v8462_v61, 4  ;;  %v8496_v61 = vshrl.u32 %v8247_v52, 16 }
 0x49d   :  { %12161 = vmatprep.mubr.bf16.mxu1 %v8418_v53  ;;  %v8460_v53 = vor.u32 %v8459_v31, %v8456_v26  ;;  %v8501_v31 = vrot.slane %v8499_v37, 5  ;;  %v8515_v52 = vrot.slane %v8513_v35, 4  ;;  %v8518_v44 = vrot.slane %v8516_v12, 5 }
 0x49e   :  { %v8468_v36 = vor.u32 %v8467_v63, %v8464_v50  ;;  %v8498_v26 = vrot.slane %v8496_v61, 4  ;;  %v8510_v63 = vrot.slane %v8508_v48, 5  ;;  %v8486_v9 = vsel %vm2812_vm2, %v8477_v47, %v8485_v4 }
 0x49f   :  { %v8519_v37 = vor.u32 %v8518_v44, %v8515_v52  ;;  %v8542_v48 = vshll.u32 %v15366_v0, 16  ;;  %v8524_v35 = vrot.slane %v8522_v40, 4  ;;  %v8527_v12 = vrot.slane %v8525_v30, 5  ;;  %v8252_v30 = vld [vmem:[#allocation2 + $0x168] sm:$0x1f] }
 0x4a0   :  { %v15552_v18 = vpop.f32.mrb[76].mxu0  ;;  %v8469_v11 = vsel %vm2812_vm2, %v8460_v53, %v8468_v36  ;;  %v8250_v53 = vld [vmem:[#allocation2 + $0x148] sm:$0x1f]  ;;  %v8502_v36 = vor.u32 %v8501_v31, %v8498_v26  ;;  %v8511_v61 = vor.u32 %v8510_v63, %v8507_v10  ;;  %v8559_v63 = vshll.u32 %v15373_v14, 16 }
 0x4a1   :  { %v15556_v57 = vpop.f32.mrb[77].mxu0  ;;  %v8547_v47 = vshrl.u32 %v8250_v53, 16  ;;  %v8550_v38 = vshll.u32 %v8250_v53, 16  ;;  %v8528_v26 = vor.u32 %v8527_v12, %v8524_v35  ;;  %v8584_v35 = vshll.u32 %v8252_v30, 16 }
 0x4a2   :  { %v15558_v8 = vpop.f32.mrb[78].mxu0  ;;  %v8520_v44 = vsel %vm2812_vm2, %v8511_v61, %v8519_v37  ;;  %v8576_v37 = vshll.u32 %v15375_v16, 16 }
 0x4a3   :  { %v15562_v22 = vpop.f32.mrb[79].mxu0  ;;  %v8549_v31 = vrot.slane %v8547_v47, 4  ;;  %v8552_v10 = vrot.slane %v8550_v38, 5  ;;  %v8561_v47 = vrot.slane %v8559_v63, 5 }
 0x4a4   :  { %12162 = vmatmul.mubr.bf16.gmra.mrb[48].mxu1 %v8435_v39  ;;  %v8493_v39 = vrot.slane %v8491_v20, 5 }
 0x4a5   :  { %12165 = vmatprep.mubr.bf16.mxu1 %v8452_v24  ;;  %v8249_v24 = vld [vmem:[#allocation2 + $0x118] sm:$0x1f]  ;;  %v8553_v61 = vor.u32 %v8552_v10, %v8549_v31  ;;  %v8590_v10 = vshrl.u32 %v15390_v49, 16 }
 0x4a6   :  { %v8530_v15 = vshrl.u32 %v8249_v24, 16  ;;  %v8533_v29 = vshll.u32 %v8249_v24, 16  ;;  %v8494_v45 = vor.u32 %v8493_v39, %v8490_v51  ;;  %v8544_v51 = vrot.slane %v8542_v48, 5 }
 0x4a7   :  { %v8556_v39 = vshrl.u32 %v15373_v14, 16  ;;  %v8581_v48 = vshrl.u32 %v8252_v30, 16 }
 0x4a8   :  { %v8532_v4 = vrot.slane %v8530_v15, 4  ;;  %v8503_v24 = vsel %vm2812_vm2, %v8494_v45, %v8502_v36  ;;  %v8545_v53 = vor.u32 %v8544_v51, %v8541_v54  ;;  %v8573_v36 = vshrl.u32 %v15375_v16, 16 }
 0x4a9   :  { %v8558_v45 = vrot.slane %v8556_v39, 4  ;;  %v8583_v51 = vrot.slane %v8581_v48, 4  ;;  %v8586_v39 = vrot.slane %v8584_v35, 5 }
 0x4aa   :  { %v8554_v54 = vsel %vm2812_vm2, %v8545_v53, %v8553_v61 }
 0x4ab   :  { %v15569_v50 = vpop.f32.mrb[80].mxu0  ;;  %v8562_v16 = vor.u32 %v8561_v47, %v8558_v45  ;;  %v8587_v61 = vor.u32 %v8586_v39, %v8583_v51  ;;  %v8255_v45 = vld [vmem:[#allocation2 + $0x198] sm:$0x1f]  ;;  %v8624_v51 = vshrl.u32 %v15408_v42, 16  ;;  %v8627_v39 = vshll.u32 %v15408_v42, 16 }
 0x4ac   :  { %12166 = vmatmul.mubr.bf16.gmra.mrb[52].mxu1 %v8469_v11  ;;  %v15572_v43 = vpop.f32.mrb[81].mxu0  ;;  %v8535_v11 = vrot.slane %v8533_v29, 5 }
 0x4ad   :  { %12169 = vmatprep.mubr.bf16.mxu1 %v8486_v9  ;;  %v15576_v59 = vpop.f32.mrb[82].mxu0  ;;  %v8251_v9 = vld [vmem:[#allocation2 + $0x158] sm:$0x1f] }
 0x4ae   :  { %v15578_v20 = vpop.f32.mrb[83].mxu0  ;;  %v8536_v0 = vor.u32 %v8535_v11, %v8532_v4  ;;  %v8564_v52 = vshrl.u32 %v8251_v9, 16  ;;  %v8567_v40 = vshll.u32 %v8251_v9, 16  ;;  %v8575_v11 = vrot.slane %v8573_v36, 4  ;;  %v8253_v9 = vld [vmem:[#allocation2 + $0x178] sm:$0x1f] }
 0x4af   :  { %v8601_v63 = vshll.u32 %v8253_v9, 16 }
 0x4b0   :  { %v8537_v14 = vsel %vm2812_vm2, %v8528_v26, %v8536_v0  ;;  %v8566_v38 = vrot.slane %v8564_v52, 4  ;;  %v8569_v4 = vrot.slane %v8567_v40, 5  ;;  %v8593_v26 = vshll.u32 %v15390_v49, 16 }
 0x4b1   :  { %v8598_v0 = vshrl.u32 %v8253_v9, 16  ;;  %v8607_v52 = vshrl.u32 %v15392_v25, 16  ;;  %v8610_v40 = vshll.u32 %v15392_v25, 16 }
 0x4b2   :  { %v8570_v31 = vor.u32 %v8569_v4, %v8566_v38  ;;  %v8595_v47 = vrot.slane %v8593_v26, 5  ;;  %v8603_v38 = vrot.slane %v8601_v63, 5 }
 0x4b3   :  { %v8600_v49 = vrot.slane %v8598_v0, 4  ;;  %v8609_v9 = vrot.slane %v8607_v52, 4  ;;  %v8641_v52 = vshrl.u32 %v15410_v56, 16 }
 0x4b4   :  { %12170 = vmatmul.mubr.bf16.gmra.mrb[56].mxu1 %v8503_v24  ;;  %v8578_v24 = vrot.slane %v8576_v37, 5  ;;  %v8571_v48 = vsel %vm2812_vm2, %v8562_v16, %v8570_v31  ;;  %v8635_v16 = vshll.u32 %v8255_v45, 16  ;;  %v8256_v31 = vld [vmem:[#allocation2 + $0x1a8] sm:$0x1f] }
 0x4b5   :  { %12173 = vmatprep.mubr.bf16.mxu1 %v8520_v44  ;;  %v8254_v44 = vld [vmem:[#allocation2 + $0x188] sm:$0x1f]  ;;  %v8604_v26 = vor.u32 %v8603_v38, %v8600_v49 }
 0x4b6   :  { %v15586_v15 = vpop.f32.mrb[84].mxu0  ;;  %v8615_v30 = vshrl.u32 %v8254_v44, 16  ;;  %v8618_v36 = vshll.u32 %v8254_v44, 16  ;;  %v8579_v53 = vor.u32 %v8578_v24, %v8575_v11  ;;  %v8632_v44 = vshrl.u32 %v8255_v45, 16  ;;  %v8257_v45 = vld [vmem:[#allocation2 + $0x1b8] sm:$0x1f] }
 0x4b7   :  { %v15588_v29 = vpop.f32.mrb[85].mxu0 }
 0x4b8   :  { %v15591_v3 = vpop.f32.mrb[86].mxu0  ;;  %v8617_v25 = vrot.slane %v8615_v30, 4  ;;  %v8588_v24 = vsel %vm2812_vm2, %v8579_v53, %v8587_v61  ;;  %v8649_v30 = vshrl.u32 %v8256_v31, 16  ;;  %v8629_v53 = vrot.slane %v8627_v39, 5 }
 0x4b9   :  { %v15595_v12 = vpop.f32.mrb[87].mxu0  ;;  %v8634_v61 = vrot.slane %v8632_v44, 4  ;;  %v8661_v39 = vshll.u32 %v15420_v28, 16  ;;  %v8666_v44 = vshrl.u32 %v8257_v45, 16 }
 0x4ba   :  { %18228 = vst [vmem:[#allocation36_spill] sm:$0xff] %v15595_v12  ;;  %v8620_v12 = vrot.slane %v8618_v36, 5  ;;  %v8652_v36 = vshll.u32 %v8256_v31, 16  ;;  %v8651_v49 = vrot.slane %v8649_v30, 4 }
 0x4bc   :  { %12174 = vmatmul.mubr.bf16.gmra.mrb[60].mxu1 %v8537_v14  ;;  %v8592_v14 = vrot.slane %v8590_v10, 4  ;;  %v8621_v63 = vor.u32 %v8620_v12, %v8617_v25  ;;  %v8643_v12 = vrot.slane %v8641_v52, 4  ;;  %v8654_v38 = vrot.slane %v8652_v36, 5 }
 0x4bd   :  { %12177 = vmatprep.mubr.bf16.mxu1 %v8554_v54  ;;  %v8612_v54 = vrot.slane %v8610_v40, 5  ;;  %v8644_v40 = vshll.u32 %v15410_v56, 16  ;;  %v8663_v36 = vrot.slane %v8661_v39, 5  ;;  %v8709_v39 = vshrl.u32 %v15438_v27, 16 }
 0x4be   :  { %v8596_v10 = vor.u32 %v8595_v47, %v8592_v14  ;;  %v8655_v52 = vor.u32 %v8654_v38, %v8651_v49  ;;  %v8260_v49 = vld [vmem:[#allocation2 + $0x1e8] sm:$0x1f] }
 0x4bf   :  { %v8613_v0 = vor.u32 %v8612_v54, %v8609_v9  ;;  %v8646_v47 = vrot.slane %v8644_v40, 5 }
 0x4c1   :  { %v15602_v37 = vpop.f32.mrb[88].mxu0  ;;  %v8622_v42 = vsel %vm2812_vm2, %v8613_v0, %v8621_v63  ;;  %v8647_v63 = vor.u32 %v8646_v47, %v8643_v12 }
 0x4c2   :  { %v15605_v35 = vpop.f32.mrb[89].mxu0 }
 0x4c3   :  { %v15607_v4 = vpop.f32.mrb[90].mxu0 }
 0x4c4   :  { %18229 = vst [vmem:[#allocation37_spill] sm:$0xff] %v15607_v4  ;;  %12178 = vmatmul.mubr.bf16.gmra.mrb[0].mxu1 %v8571_v48  ;;  %v15609_v11 = vpop.f32.mrb[91].mxu0  ;;  %v8626_v48 = vrot.slane %v8624_v51, 4  ;;  %v8258_v4 = vld [vmem:[#allocation2 + $0x1c8] sm:$0x1f]  ;;  %v8658_v51 = vshrl.u32 %v15420_v28, 16 }
 0x4c5   :  { %18230 = vst [vmem:[#allocation38_spill] sm:$0xff] %v15609_v11  ;;  %12181 = vmatprep.mubr.bf16.mxu1 %v8588_v24  ;;  %v8637_v24 = vrot.slane %v8635_v16, 5  ;;  %v8605_v11 = vsel %vm2812_vm2, %v8596_v10, %v8604_v26  ;;  %v8669_v16 = vshll.u32 %v8257_v45, 16  ;;  %v8678_v10 = vshll.u32 %v15424_v60, 16 }
 0x4c6   :  { %v8630_v9 = vor.u32 %v8629_v53, %v8626_v48  ;;  %v8683_v26 = vshrl.u32 %v8258_v4, 16  ;;  %v8686_v0 = vshll.u32 %v8258_v4, 16  ;;  %v8660_v30 = vrot.slane %v8658_v51, 4 }
 0x4c7   :  { %v8638_v54 = vor.u32 %v8637_v24, %v8634_v61  ;;  %v8668_v48 = vrot.slane %v8666_v44, 4  ;;  %v8671_v53 = vrot.slane %v8669_v16, 5  ;;  %v8259_v61 = vld [vmem:[#allocation2 + $0x1d8] sm:$0x1f]  ;;  %v8680_v24 = vrot.slane %v8678_v10, 5 }
 0x4c8   :  { %v8688_v45 = vrot.slane %v8686_v0, 5  ;;  %v8695_v4 = vshll.u32 %v15436_v55, 16  ;;  %v8700_v12 = vshrl.u32 %v8259_v61, 16  ;;  %v8703_v47 = vshll.u32 %v8259_v61, 16 }
 0x4c9   :  { %v8639_v40 = vsel %vm2812_vm2, %v8630_v9, %v8638_v54  ;;  %v8664_v38 = vor.u32 %v8663_v36, %v8660_v30  ;;  %v8672_v9 = vor.u32 %v8671_v53, %v8668_v48  ;;  %v8712_v44 = vshll.u32 %v15438_v27, 16  ;;  %v8262_v53 = vld [vmem:[#allocation2 + $0x208] sm:$0x1f] }
 0x4ca   :  { %v8717_v16 = vshrl.u32 %v8260_v49, 16  ;;  %v8705_v0 = vrot.slane %v8703_v47, 5  ;;  %v8754_v47 = vshll.u32 %v8262_v53, 16 }
 0x4cb   :  { %v8714_v30 = vrot.slane %v8712_v44, 5 }
 0x4cc   :  { %v15618_v14 = vpop.f32.mrb[92].mxu0  ;;  %12182 = vmatmul.mubr.bf16.gmra.mrb[4].mxu1 %v8605_v11  ;;  %v8675_v11 = vshrl.u32 %v15424_v60, 16  ;;  %v8692_v60 = vshrl.u32 %v15436_v55, 16  ;;  %v8719_v36 = vrot.slane %v8717_v16, 4 }
 0x4cd   :  { %v15620_v56 = vpop.f32.mrb[93].mxu0  ;;  %12185 = vmatprep.mubr.bf16.mxu1 %v8622_v42  ;;  %v8685_v42 = vrot.slane %v8683_v26, 4  ;;  %v8697_v26 = vrot.slane %v8695_v4, 5  ;;  %v8746_v4 = vshll.u32 %v15456_v34, 16 }
 0x4ce   :  { %v15622_v25 = vpop.f32.mrb[94].mxu0  ;;  %v8677_v28 = vrot.slane %v8675_v11, 4  ;;  %v8720_v11 = vshll.u32 %v8260_v49, 16  ;;  %v8694_v10 = vrot.slane %v8692_v60, 4  ;;  %v8743_v60 = vshrl.u32 %v15456_v34, 16 }
 0x4cf   :  { %v15626_v31 = vpop.f32.mrb[95].mxu0  ;;  %v8689_v51 = vor.u32 %v8688_v45, %v8685_v42  ;;  %v8264_v34 = vld [vmem:[#allocation2 + $0x228] sm:$0x1f] }
 0x4d0   :  { %18231 = vst [vmem:[#allocation39_spill] sm:$0xff] %v15626_v31  ;;  %v8656_v31 = vsel %vm2812_vm2, %v8647_v63, %v8655_v52  ;;  %v8681_v54 = vor.u32 %v8680_v24, %v8677_v28  ;;  %v8673_v63 = vsel %vm2812_vm2, %v8664_v38, %v8672_v9  ;;  %v8261_v52 = vld [vmem:[#allocation2 + $0x1f8] sm:$0x1f]  ;;  %v8722_v48 = vrot.slane %v8720_v11, 5 }
 0x4d1   :  { %v8698_v61 = vor.u32 %v8697_v26, %v8694_v10  ;;  %v8726_v28 = vshrl.u32 %v15454_v5, 16  ;;  %v8729_v24 = vshll.u32 %v15454_v5, 16  ;;  %v8734_v42 = vshrl.u32 %v8261_v52, 16 }
 0x4d2   :  { %v8690_v55 = vsel %vm2812_vm2, %v8681_v54, %v8689_v51  ;;  %v8737_v45 = vshll.u32 %v8261_v52, 16  ;;  %v8723_v38 = vor.u32 %v8722_v48, %v8719_v36  ;;  %v8745_v16 = vrot.slane %v8743_v60, 4 }
 0x4d3   :  { %v8728_v54 = vrot.slane %v8726_v28, 4  ;;  %v8731_v51 = vrot.slane %v8729_v24, 5  ;;  %v8748_v11 = vrot.slane %v8746_v4, 5  ;;  %v8756_v5 = vrot.slane %v8754_v47, 5 }
 0x4d4   :  { %12186 = vmatmul.mubr.bf16.gmra.mrb[8].mxu1 %v8639_v40  ;;  %v8711_v40 = vrot.slane %v8709_v39, 4  ;;  %v8736_v39 = vrot.slane %v8734_v42, 4  ;;  %v8739_v44 = vrot.slane %v8737_v45, 5  ;;  %v8763_v52 = vshll.u32 %v15470_v7, 16  ;;  %v8265_v45 = vld [vmem:[#allocation2 + $0x238] sm:$0x1f] }
 0x4d5   :  { %12189 = vmatprep.mubr.bf16.mxu1 %v8656_v31  ;;  %v8702_v31 = vrot.slane %v8700_v12, 4  ;;  %v8751_v12 = vshrl.u32 %v8262_v53, 16  ;;  %v8777_v53 = vshrl.u32 %v15472_v33, 16  ;;  %v8788_v28 = vshll.u32 %v8264_v34, 16 }
 0x4d6   :  { %v8715_v49 = vor.u32 %v8714_v30, %v8711_v40  ;;  %v8749_v40 = vor.u32 %v8748_v11, %v8745_v16  ;;  %v8765_v4 = vrot.slane %v8763_v52, 5 }
 0x4d7   :  { %v8706_v27 = vor.u32 %v8705_v0, %v8702_v31  ;;  %v8753_v10 = vrot.slane %v8751_v12, 4  ;;  %v8263_v31 = vld [vmem:[#allocation2 + $0x218] sm:$0x1f]  ;;  %v8732_v0 = vor.u32 %v8731_v51, %v8728_v54  ;;  %v8794_v54 = vshrl.u32 %v15482_v46, 16 }
 0x4d8   :  { %v8724_v26 = vsel %vm2812_vm2, %v8715_v49, %v8723_v38  ;;  %v8768_v36 = vshrl.u32 %v8263_v31, 16  ;;  %v8771_v48 = vshll.u32 %v8263_v31, 16  ;;  %v8802_v51 = vshrl.u32 %v8265_v45, 16 }
 0x4d9   :  { %v8707_v9 = vsel %vm2812_vm2, %v8698_v61, %v8706_v27  ;;  %v8757_v30 = vor.u32 %v8756_v5, %v8753_v10  ;;  %v8780_v61 = vshll.u32 %v15472_v33, 16  ;;  %v8785_v27 = vshrl.u32 %v8264_v34, 16 }
 0x4da   :  { %v8770_v12 = vrot.slane %v8768_v36, 4  ;;  %v8773_v47 = vrot.slane %v8771_v48, 5  ;;  %v8797_v33 = vshll.u32 %v15482_v46, 16  ;;  %v8796_v5 = vrot.slane %v8794_v54, 4 }
 0x4db   :  { %v8758_v60 = vsel %vm2812_vm2, %v8749_v40, %v8757_v30  ;;  %v8782_v49 = vrot.slane %v8780_v61, 5  ;;  %v8787_v38 = vrot.slane %v8785_v27, 4  ;;  %v8804_v31 = vrot.slane %v8802_v51, 4  ;;  %v12898_v40 = vld [vmem:[%s17996_s7] sm:$0xff]  }
 0x4dc   :  { %12190 = vmatmul.mubr.bf16.gmra.mrb[12].mxu1 %v8673_v63  ;;  %v8740_v63 = vor.u32 %v8739_v44, %v8736_v39  ;;  %v8805_v39 = vshll.u32 %v8265_v45, 16  ;;  %v8774_v16 = vor.u32 %v8773_v47, %v8770_v12  ;;  %12209 = vmatprep.subr.bf16.mxu0 %v12898_v40 }
 0x4dd   :  { %12193 = vmatprep.mubr.bf16.mxu1 %v8690_v55  ;;  %v8760_v55 = vshrl.u32 %v15470_v7, 16  ;;  %v8779_v7 = vrot.slane %v8777_v53, 4  ;;  %12210 = vmatpush3.bf16.msra.mxu0 %v12898_v40  ;;  %v18233_v40 = vld [vmem:[#allocation37_spill] sm:$0xff] }
 0x4de   :  { %v8741_v24 = vsel %vm2812_vm2, %v8732_v0, %v8740_v63  ;;  %v8807_v34 = vrot.slane %v8805_v39, 5 }
 0x4df   :  { %v8762_v42 = vrot.slane %v8760_v55, 4  ;;  %v8783_v11 = vor.u32 %v8782_v49, %v8779_v7 }
 0x4e0   :  { %v8808_v52 = vor.u32 %v8807_v34, %v8804_v31  ;;  %v18232_v34 = vld [vmem:[#allocation36_spill] sm:$0xff] }
 0x4e1   :  { %v8766_v44 = vor.u32 %v8765_v4, %v8762_v42 }
 0x4e3   :  { %v8775_v0 = vsel %vm2812_vm2, %v8766_v44, %v8774_v16 }
 0x4e4   :  { %12194 = vmatmul.mubr.bf16.gmra.mrb[16].mxu1 %v8707_v9  ;;  %v8790_v9 = vrot.slane %v8788_v28, 5 }
 0x4e5   :  { %12197 = vmatprep.mubr.bf16.mxu1 %v8724_v26  ;;  %v8799_v26 = vrot.slane %v8797_v33, 5 }
 0x4e6   :  { %v8791_v10 = vor.u32 %v8790_v9, %v8787_v38 }
 0x4e7   :  { %v8800_v55 = vor.u32 %v8799_v26, %v8796_v5 }
 0x4e8   :  { %v8792_v63 = vsel %vm2812_vm2, %v8783_v11, %v8791_v10 }
 0x4e9   :  { %v8809_v46 = vsel %vm2812_vm2, %v8800_v55, %v8808_v52 }
 0x4ec   :  { %12198 = vmatmul.mubr.bf16.gmra.mrb[20].mxu1 %v8741_v24 }
 0x4ed   :  { %12201 = vmatprep.mubr.bf16.mxu1 %v8758_v60 }
 0x4f4   :  { %12202 = vmatmul.mubr.bf16.gmra.mrb[24].mxu1 %v8775_v0 }
 0x4f5   :  { %12205 = vmatprep.mubr.bf16.mxu1 %v8792_v63 }
 0x4fc   :  { %12206 = vmatmul.mubr.bf16.gmra.mrb[28].mxu1 %v8809_v46 }
 0x557   :  { %v12147_v30 = vpop.f32.mrb[32].mxu1 }
 0x558   :  { %v15659_v36 = vadd.f32 %v12147_v30, %v15505_v41  ;;  %v8941_v48 = vpop.f32.mrb[33].mxu1 }
 0x559   :  { %v15662_v53 = vadd.f32 %v8941_v48, %v15508_v58  ;;  %v12148_v61 = vpop.f32.mrb[34].mxu1 }
 0x55a   :  { %v15665_v27 = vadd.f32 %v12148_v61, %v15510_v32  ;;  %v8944_v28 = vpop.f32.mrb[35].mxu1  ;;  %v18234_v61 = vld [vmem:[#allocation38_spill] sm:$0xff] }
 0x55b   :  { %v15668_v24 = vadd.f32 %v8944_v28, %v15512_v1 }
 0x55d   :  { %v9260_v63 = vadd.f32 %v15668_v24, %v15662_v53 }
 0x55f   :  { %v12151_v42 = vpop.f32.mrb[36].mxu1 }
 0x560   :  { %v15671_v45 = vadd.f32 %v12151_v42, %v15521_v23  ;;  %v8957_v60 = vpop.f32.mrb[37].mxu1  ;;  %v9284_v42 = vmul.f32 %v15659_v36, %v15659_v36 }
 0x561   :  { %v15674_v41 = vadd.f32 %v8957_v60, %v15523_v62  ;;  %v12152_v4 = vpop.f32.mrb[38].mxu1  ;;  %v9261_v60 = vadd.f32 %v15659_v36, %v9260_v63 }
 0x562   :  { %v15677_v58 = vadd.f32 %v12152_v4, %v15526_v13  ;;  %v8960_v12 = vpop.f32.mrb[39].mxu1 }
 0x563   :  { %v15680_v32 = vadd.f32 %v8960_v12, %v15530_v19 }
 0x567   :  { %v12155_v47 = vpop.f32.mrb[40].mxu1 }
 0x568   :  { %v15683_v1 = vadd.f32 %v12155_v47, %v15536_v17  ;;  %v8973_v7 = vpop.f32.mrb[41].mxu1 }
 0x569   :  { %v15686_v23 = vadd.f32 %v8973_v7, %v15539_v2  ;;  %v12156_v49 = vpop.f32.mrb[42].mxu1  ;;  %v9285_v7 = vmul.f32 %v15665_v27, %v15665_v27 }
 0x56a   :  { %v15689_v62 = vadd.f32 %v12156_v49, %v15542_v6  ;;  %v8976_v38 = vpop.f32.mrb[43].mxu1  ;;  %v9262_v49 = vadd.f32 %v15665_v27, %v9261_v60  ;;  %v18242_v60 = vld [vmem:[#allocation19_spill] sm:$0xff] }
 0x56b   :  { %v15692_v13 = vadd.f32 %v8976_v38, %v15546_v21 }
 0x56f   :  { %v12159_v9 = vpop.f32.mrb[44].mxu1 }
 0x570   :  { %v15695_v19 = vadd.f32 %v12159_v9, %v15552_v18  ;;  %v8989_v54 = vpop.f32.mrb[45].mxu1 }
 0x571   :  { %v15698_v17 = vadd.f32 %v8989_v54, %v15556_v57  ;;  %v12160_v33 = vpop.f32.mrb[46].mxu1 }
 0x572   :  { %v15701_v2 = vadd.f32 %v12160_v33, %v15558_v8  ;;  %v8992_v51 = vpop.f32.mrb[47].mxu1  ;;  %v9286_v33 = vmul.f32 %v15674_v41, %v15674_v41 }
 0x573   :  { %v15704_v6 = vadd.f32 %v8992_v51, %v15562_v22 }
 0x577   :  { %v12163_v39 = vpop.f32.mrb[48].mxu1 }
 0x578   :  { %v15707_v21 = vadd.f32 %v12163_v39, %v15569_v50  ;;  %v9005_v44 = vpop.f32.mrb[49].mxu1 }
 0x579   :  { %v15710_v18 = vadd.f32 %v9005_v44, %v15572_v43  ;;  %v12164_v16 = vpop.f32.mrb[50].mxu1 }
 0x57a   :  { %v15713_v57 = vadd.f32 %v12164_v16, %v15576_v59  ;;  %v9008_v11 = vpop.f32.mrb[51].mxu1  ;;  %v9344_v16 = vmul.f32 %v15707_v21, %v15707_v21 }
 0x57b   :  { %v15716_v8 = vadd.f32 %v9008_v11, %v15578_v20  ;;  %v9283_v20 = vmul.f32 %v15668_v24, %v15668_v24 }
 0x57d   :  { %v9320_v12 = vadd.f32 %v15716_v8, %v15710_v18 }
 0x57f   :  { %v12167_v10 = vpop.f32.mrb[52].mxu1  ;;  %v9321_v11 = vadd.f32 %v15707_v21, %v9320_v12 }
 0x580   :  { %v15719_v22 = vadd.f32 %v12167_v10, %v15586_v15  ;;  %v9021_v5 = vpop.f32.mrb[53].mxu1  ;;  %v9282_v15 = vmul.f32 %v15662_v53, %v15662_v53 }
 0x581   :  { %v15722_v50 = vadd.f32 %v9021_v5, %v15588_v29  ;;  %v12168_v26 = vpop.f32.mrb[54].mxu1 }
 0x582   :  { %v15725_v43 = vadd.f32 %v12168_v26, %v15591_v3  ;;  %v9024_v31 = vpop.f32.mrb[55].mxu1  ;;  %v9298_v46 = vadd.f32 %v9283_v20, %v9282_v15  ;;  %v9322_v15 = vadd.f32 %v15713_v57, %v9321_v11 }
 0x583   :  { %v15728_v59 = vadd.f32 %v9024_v31, %v18232_v34  ;;  %v9263_v31 = vadd.f32 %v15674_v41, %v9262_v49 }
 0x584   :  { %v9299_v4 = vadd.f32 %v9298_v46, %v9284_v42  ;;  %v9346_v46 = vmul.f32 %v15722_v50, %v15722_v50  ;;  %v9323_v12 = vadd.f32 %v15722_v50, %v9322_v15 }
 0x585   :  { %v9347_v11 = vmul.f32 %v15728_v59, %v15728_v59 }
 0x586   :  { %v9300_v44 = vadd.f32 %v9299_v4, %v9285_v7 }
 0x587   :  { %v12171_v0 = vpop.f32.mrb[56].mxu1 }
 0x588   :  { %v15737_v29 = vadd.f32 %v12171_v0, %v15602_v37  ;;  %v9037_v55 = vpop.f32.mrb[57].mxu1  ;;  %v9343_v37 = vmul.f32 %v15716_v8, %v15716_v8  ;;  %v9301_v20 = vadd.f32 %v9300_v44, %v9286_v33  ;;  %v9345_v0 = vmul.f32 %v15713_v57, %v15713_v57  ;;  %v12901_v33 = vld [vmem:[%s17996_s7 + $0x18] sm:$0xff]  }
 0x589   :  { %v15740_v3 = vadd.f32 %v9037_v55, %v15605_v35  ;;  %v12172_v52 = vpop.f32.mrb[58].mxu1  ;;  %v9342_v35 = vmul.f32 %v15710_v18, %v15710_v18  ;;  %v12900_v55 = vld [vmem:[%s17996_s7 + $0x10] sm:$0xff]  }
 0x58a   :  { %v15743_v30 = vadd.f32 %v12172_v52, %v18233_v40  ;;  %v9040_v48 = vpop.f32.mrb[59].mxu1  ;;  %v9264_v52 = vadd.f32 %v15680_v32, %v9263_v31 }
 0x58b   :  { %v15746_v28 = vadd.f32 %v9040_v48, %v18234_v61  ;;  %v9358_v38 = vadd.f32 %v9343_v37, %v9342_v35  ;;  %v18240_v48 = vld [vmem:[#allocation17_spill] sm:$0xff] }
 0x58c   :  { %v9265_v44 = vadd.f32 %v15671_v45, %v9264_v52  ;;  %v12902_v52 = vld [vmem:[%s17996_s7 + $0x20] sm:$0xff]  }
 0x58d   :  { %v9359_v34 = vadd.f32 %v9358_v38, %v9344_v16  ;;  %v18246_v38 = vld [vmem:[#allocation24_spill] sm:$0xff] }
 0x58f   :  { %v12175_v47 = vpop.f32.mrb[60].mxu1  ;;  %v9360_v40 = vadd.f32 %v9359_v34, %v9345_v0 }
 0x590   :  { %v15761_v9 = vadd.f32 %v12175_v47, %v15618_v14  ;;  %v9053_v54 = vpop.f32.mrb[61].mxu1  ;;  %v18238_v14 = vld [vmem:[#allocation39_spill] sm:$0xff]  ;;  %v18244_v47 = vld [vmem:[#allocation22_spill] sm:$0xff] }
 0x591   :  { %v15766_v51 = vadd.f32 %v9053_v54, %v15620_v56  ;;  %v12176_v39 = vpop.f32.mrb[62].mxu1  ;;  %v9287_v56 = vmul.f32 %v15680_v32, %v15680_v32  ;;  %v9361_v16 = vadd.f32 %v9360_v40, %v9346_v46  ;;  %v9266_v46 = vadd.f32 %v15677_v58, %v9265_v44 }
 0x592   :  { %18235 = vst [vmem:[#allocation36_spill] sm:$0xff] %v15761_v9  ;;  %v15772_v10 = vadd.f32 %v12176_v39, %v15622_v25  ;;  %v9056_v5 = vpop.f32.mrb[63].mxu1  ;;  %v12899_v25 = vld [vmem:[%s17996_s7 + $0x8] sm:$0xff]   ;;  %v9288_v39 = vmul.f32 %v15671_v45, %v15671_v45  ;;  %v9348_v44 = vmul.f32 %v15719_v22, %v15719_v22 }
 0x593   :  { %18236 = vst [vmem:[#allocation37_spill] sm:$0xff] %v15766_v51  ;;  %v15775_v26 = vadd.f32 %v9056_v5, %v18238_v14  ;;  %12211 = vmatprep.subr.bf16.mxu0 %v12899_v25  ;;  %v9302_v35 = vadd.f32 %v9301_v20, %v9287_v56  ;;  %v9324_v20 = vadd.f32 %v15728_v59, %v9323_v12  ;;  %v18250_v12 = vld [vmem:[#allocation23_spill] sm:$0xff] }
 0x594   :  { %18237 = vst [vmem:[#allocation38_spill] sm:$0xff] %v15772_v10  ;;  %12212 = vmatpush3.bf16.msra.mxu0 %v12899_v25  ;;  %v9289_v56 = vmul.f32 %v15677_v58, %v15677_v58  ;;  %v9362_v40 = vadd.f32 %v9361_v16, %v9347_v11  ;;  %v18252_v11 = vld [vmem:[#allocation26_spill] sm:$0xff] }
 0x595   :  { %18239 = vst [vmem:[#allocation39_spill] sm:$0xff] %v15775_v26  ;;  %12213 = vmatprep.subr.bf16.mxu0 %v12900_v55  ;;  %v9303_v34 = vadd.f32 %v9302_v35, %v9288_v39  ;;  %v9325_v16 = vadd.f32 %v15719_v22, %v9324_v20 }
 0x596   :  { %v9363_v20 = vadd.f32 %v9362_v40, %v9348_v44 }
 0x597   :  { %v12179_v63 = vpop.f32.mrb[0].mxu1  ;;  %v9304_v39 = vadd.f32 %v9303_v34, %v9289_v56  ;;  %v12903_v34 = vld [vmem:[%s17996_s7 + $0x28] sm:$0xff]  }
 0x598   :  { %v15793_v61 = vadd.f32 %v12179_v63, %v18240_v48  ;;  %v9069_v42 = vpop.f32.mrb[1].mxu1  ;;  %12214 = vmatpush3.bf16.msra.mxu0 %v12900_v55  ;;  %v9290_v55 = vmul.f32 %v15686_v23, %v15686_v23  ;;  %v18248_v48 = vld [vmem:[#allocation21_spill] sm:$0xff] }
 0x599   :  { %v15796_v37 = vadd.f32 %v9069_v42, %v18242_v60  ;;  %v12180_v4 = vpop.f32.mrb[2].mxu1  ;;  %12215 = vmatprep.subr.bf16.mxu0 %v12901_v33 }
 0x59a   :  { %18241 = vst [vmem:[#allocation17_spill] sm:$0xff] %v15793_v61  ;;  %v15800_v7 = vadd.f32 %v12180_v4, %v18244_v47  ;;  %v9072_v49 = vpop.f32.mrb[3].mxu1  ;;  %v9404_v0 = vmul.f32 %v15793_v61, %v15793_v61 }
 0x59b   :  { %18243 = vst [vmem:[#allocation19_spill] sm:$0xff] %v15796_v37  ;;  %v15803_v54 = vadd.f32 %v9072_v49, %v18246_v38  ;;  %v9402_v5 = vmul.f32 %v15796_v37, %v15796_v37 }
 0x59c   :  { %18245 = vst [vmem:[#allocation22_spill] sm:$0xff] %v15800_v7  ;;  %v9405_v4 = vmul.f32 %v15800_v7, %v15800_v7  ;;  %12216 = vmatpush3.bf16.msra.mxu0 %v12901_v33 }
 0x59d   :  { %18247 = vst [vmem:[#allocation24_spill] sm:$0xff] %v15803_v54  ;;  %v9380_v14 = vadd.f32 %v15803_v54, %v15796_v37  ;;  %v9403_v31 = vmul.f32 %v15803_v54, %v15803_v54  ;;  %12217 = vmatprep.subr.bf16.mxu0 %v12902_v52 }
 0x59f   :  { %v9381_v15 = vadd.f32 %v15793_v61, %v9380_v14  ;;  %v9418_v63 = vadd.f32 %v9403_v31, %v9402_v5  ;;  %v12183_v25 = vpop.f32.mrb[4].mxu1  ;;  %v18282_v61 = vld [vmem:[#allocation11_spill] sm:$0xff] }
 0x5a0   :  { %v15832_v42 = vadd.f32 %v12183_v25, %v18248_v48  ;;  %v9085_v60 = vpop.f32.mrb[5].mxu1  ;;  %v18254_v25 = vld [vmem:[#allocation27_spill] sm:$0xff]  ;;  %12218 = vmatpush3.bf16.msra.mxu0 %v12902_v52 }
 0x5a1   :  { %v9419_v35 = vadd.f32 %v9418_v63, %v9404_v0  ;;  %v15837_v47 = vadd.f32 %v9085_v60, %v18250_v12  ;;  %v9382_v49 = vadd.f32 %v15800_v7, %v9381_v15  ;;  %v12184_v38 = vpop.f32.mrb[6].mxu1  ;;  %v9267_v60 = vadd.f32 %v15686_v23, %v9266_v46  ;;  %12219 = vmatprep.subr.bf16.mxu0 %v12903_v34 }
 0x5a2   :  { %18249 = vst [vmem:[#allocation21_spill] sm:$0xff] %v15832_v42  ;;  %v15844_v5 = vadd.f32 %v12184_v38, %v18252_v11  ;;  %v9088_v14 = vpop.f32.mrb[7].mxu1  ;;  %v9305_v12 = vadd.f32 %v9304_v39, %v9290_v55  ;;  %v12904_v11 = vld [vmem:[%s17996_s7 + $0x30] sm:$0xff]   ;;  %v9291_v46 = vmul.f32 %v15692_v13, %v15692_v13 }
 0x5a3   :  { %18251 = vst [vmem:[#allocation23_spill] sm:$0xff] %v15837_v47  ;;  %v9383_v31 = vadd.f32 %v15837_v47, %v9382_v49  ;;  %v9406_v0 = vmul.f32 %v15837_v47, %v15837_v47  ;;  %v9420_v63 = vadd.f32 %v9419_v35, %v9405_v4  ;;  %v15850_v15 = vadd.f32 %v9088_v14, %v18254_v25  ;;  %v18256_v55 = vld [vmem:[#allocation29_spill] sm:$0xff] }
 0x5a4   :  { %18253 = vst [vmem:[#allocation26_spill] sm:$0xff] %v15844_v5  ;;  %v9349_v4 = vmul.f32 %v15725_v43, %v15725_v43  ;;  %v9326_v35 = vadd.f32 %v15725_v43, %v9325_v16  ;;  %v9408_v49 = vmul.f32 %v15832_v42, %v15832_v42  ;;  %v9350_v16 = vmul.f32 %v15740_v3, %v15740_v3 }
 0x5a5   :  { %18255 = vst [vmem:[#allocation27_spill] sm:$0xff] %v15850_v15  ;;  %v9421_v56 = vadd.f32 %v9420_v63, %v9406_v0  ;;  %v9384_v48 = vadd.f32 %v15850_v15, %v9383_v31  ;;  %v9407_v33 = vmul.f32 %v15850_v15, %v15850_v15  ;;  %v9409_v31 = vmul.f32 %v15844_v5, %v15844_v5  ;;  %v18258_v63 = vld [vmem:[#allocation30_spill] sm:$0xff] }
 0x5a6   :  { %v9364_v52 = vadd.f32 %v9363_v20, %v9349_v4  ;;  %12220 = vmatpush3.bf16.msra.mxu0 %v12903_v34  ;;  %v9268_v4 = vadd.f32 %v15692_v13, %v9267_v60 }
 0x5a7   :  { %v9385_v40 = vadd.f32 %v15832_v42, %v9384_v48  ;;  %v9422_v38 = vadd.f32 %v9421_v56, %v9407_v33  ;;  %v12187_v44 = vpop.f32.mrb[8].mxu1  ;;  %v9327_v33 = vadd.f32 %v15740_v3, %v9326_v35  ;;  %v18260_v42 = vld [vmem:[#allocation31_spill] sm:$0xff]  ;;  %12221 = vmatprep.subr.bf16.mxu0 %v12904_v11 }
 0x5a8   :  { %v15873_v39 = vadd.f32 %v12187_v44, %v18256_v55  ;;  %v9101_v14 = vpop.f32.mrb[9].mxu1  ;;  %v9365_v35 = vadd.f32 %v9364_v52, %v9350_v16  ;;  %v18264_v52 = vld [vmem:[#allocation33_spill] sm:$0xff] }
 0x5a9   :  { %v9423_v0 = vadd.f32 %v9422_v38, %v9408_v49  ;;  %v15878_v25 = vadd.f32 %v9101_v14, %v18258_v63  ;;  %v9386_v56 = vadd.f32 %v15844_v5, %v9385_v40  ;;  %v12188_v48 = vpop.f32.mrb[10].mxu1  ;;  %v18262_v49 = vld [vmem:[#allocation32_spill] sm:$0xff]  ;;  %v12905_v40 = vld [vmem:[%s17996_s7 + $0x38] sm:$0xff]   ;;  %v9306_v14 = vadd.f32 %v9305_v12, %v9291_v46  ;;  %v18268_v5 = vld [vmem:[#allocation35_spill] sm:$0xff] }
 0x5aa   :  { %18257 = vst [vmem:[#allocation29_spill] sm:$0xff] %v15873_v39  ;;  %v15883_v15 = vadd.f32 %v12188_v48, %v18260_v42  ;;  %v9104_v20 = vpop.f32.mrb[11].mxu1  ;;  %v9351_v42 = vmul.f32 %v15746_v28, %v15746_v28  ;;  %v9328_v60 = vadd.f32 %v15746_v28, %v9327_v33  ;;  %12222 = vmatpush3.bf16.msra.mxu0 %v12904_v11  ;;  %v18266_v33 = vld [vmem:[#allocation34_spill] sm:$0xff] }
 0x5ab   :  { %18259 = vst [vmem:[#allocation30_spill] sm:$0xff] %v15878_v25  ;;  %v9410_v44 = vmul.f32 %v15878_v25, %v15878_v25  ;;  %v9424_v55 = vadd.f32 %v9423_v0, %v9409_v31  ;;  %v15889_v38 = vadd.f32 %v9104_v20, %v18262_v49  ;;  %v9387_v34 = vadd.f32 %v15878_v25, %v9386_v56 }
 0x5ac   :  { %18261 = vst [vmem:[#allocation31_spill] sm:$0xff] %v15883_v15  ;;  %v9292_v0 = vmul.f32 %v15683_v1, %v15683_v1  ;;  %v9269_v48 = vadd.f32 %v15683_v1, %v9268_v4  ;;  %12223 = vmatprep.subr.bf16.mxu0 %v12905_v40  ;;  %v9366_v16 = vadd.f32 %v9365_v35, %v9351_v42 }
 0x5ad   :  { %18263 = vst [vmem:[#allocation32_spill] sm:$0xff] %v15889_v38  ;;  %v9425_v63 = vadd.f32 %v9424_v55, %v9410_v44  ;;  %v9411_v31 = vmul.f32 %v15889_v38, %v15889_v38  ;;  %v9388_v56 = vadd.f32 %v15889_v38, %v9387_v34  ;;  %v9352_v11 = vmul.f32 %v15737_v29, %v15737_v29  ;;  %v18270_v34 = vld [vmem:[#allocation8_spill] sm:$0xff]  ;;  %v18276_v38 = vld [vmem:[#allocation10_spill] sm:$0xff] }
 0x5ae   :  { %v9307_v46 = vadd.f32 %v9306_v14, %v9292_v0  ;;  %v9329_v25 = vadd.f32 %v15737_v29, %v9328_v60  ;;  %12224 = vmatpush3.bf16.msra.mxu0 %v12905_v40  ;;  %v9293_v42 = vmul.f32 %v15689_v62, %v15689_v62  ;;  %v9270_v14 = vadd.f32 %v15689_v62, %v9269_v48 }
 0x5af   :  { %v12191_v20 = vpop.f32.mrb[12].mxu1  ;;  %v9426_v4 = vadd.f32 %v9425_v63, %v9411_v31  ;;  %v9294_v60 = vmul.f32 %v15698_v17, %v15698_v17  ;;  %v9353_v40 = vmul.f32 %v15743_v30, %v15743_v30 }
 0x5b0   :  { %v15904_v49 = vadd.f32 %v12191_v20, %v18264_v52  ;;  %v9117_v12 = vpop.f32.mrb[13].mxu1  ;;  %v9367_v20 = vadd.f32 %v9366_v16, %v9352_v11  ;;  %v9412_v52 = vmul.f32 %v15873_v39, %v15873_v39  ;;  %v9308_v63 = vadd.f32 %v9307_v46, %v9293_v42 }
 0x5b1   :  { %v15908_v44 = vadd.f32 %v9117_v12, %v18266_v33  ;;  %v12192_v55 = vpop.f32.mrb[14].mxu1  ;;  %v9330_v31 = vadd.f32 %v15743_v30, %v9329_v25  ;;  %v9271_v48 = vadd.f32 %v15698_v17, %v9270_v14  ;;  %v9354_v16 = vmul.f32 %v15766_v51, %v15766_v51 }
 0x5b2   :  { %18265 = vst [vmem:[#allocation33_spill] sm:$0xff] %v15904_v49  ;;  %v15914_v47 = vadd.f32 %v12192_v55, %v18268_v5  ;;  %v9120_v35 = vpop.f32.mrb[15].mxu1  ;;  %v9389_v5 = vadd.f32 %v15873_v39, %v9388_v56  ;;  %v9427_v12 = vadd.f32 %v9426_v4, %v9412_v52  ;;  %v9368_v55 = vadd.f32 %v9367_v20, %v9353_v40  ;;  %v18274_v4 = vld [vmem:[#allocation7_spill] sm:$0xff] }
 0x5b3   :  { %18267 = vst [vmem:[#allocation34_spill] sm:$0xff] %v15908_v44  ;;  %v15920_v0 = vadd.f32 %v9120_v35, %v18270_v34  ;;  %v9413_v11 = vmul.f32 %v15883_v15, %v15883_v15  ;;  %v18272_v35 = vld [vmem:[#allocation5_spill] sm:$0xff]  ;;  %v9309_v42 = vadd.f32 %v9308_v63, %v9294_v60  ;;  %v9295_v34 = vmul.f32 %v15704_v6, %v15704_v6  ;;  %v18278_v60 = vld [vmem:[#allocation12_spill] sm:$0xff] }
 0x5b4   :  { %18269 = vst [vmem:[#allocation35_spill] sm:$0xff] %v15914_v47  ;;  %v9390_v25 = vadd.f32 %v15883_v15, %v9389_v5  ;;  %v9331_v39 = vadd.f32 %v15766_v51, %v9330_v31  ;;  %v9414_v20 = vmul.f32 %v15908_v44, %v15908_v44  ;;  %v9272_v7 = vadd.f32 %v15704_v6, %v9271_v48 }
 0x5b5   :  { %18271 = vst [vmem:[#allocation8_spill] sm:$0xff] %v15920_v0  ;;  %v9428_v40 = vadd.f32 %v9427_v12, %v9413_v11  ;;  %v9369_v5 = vadd.f32 %v9368_v55, %v9354_v16  ;;  %v9310_v11 = vadd.f32 %v9309_v42, %v9295_v34  ;;  %v9415_v48 = vmul.f32 %v15920_v0, %v15920_v0  ;;  %v18280_v42 = vld [vmem:[#allocation9_spill] sm:$0xff] }
 0x5b7   :  { %v12195_v33 = vpop.f32.mrb[16].mxu1 }
 0x5b8   :  { %v15936_v46 = vadd.f32 %v12195_v33, %v18272_v35  ;;  %v9133_v56 = vpop.f32.mrb[17].mxu1 }
 0x5b9   :  { %v15942_v14 = vadd.f32 %v9133_v56, %v18274_v4  ;;  %v12196_v52 = vpop.f32.mrb[18].mxu1  ;;  %v9355_v56 = vmul.f32 %v15775_v26, %v15775_v26  ;;  %v9391_v4 = vadd.f32 %v15908_v44, %v9390_v25  ;;  %v9273_v44 = vadd.f32 %v15695_v19, %v9272_v7 }
 0x5ba   :  { %18273 = vst [vmem:[#allocation5_spill] sm:$0xff] %v15936_v46  ;;  %v15948_v33 = vadd.f32 %v12196_v52, %v18276_v38  ;;  %v9136_v35 = vpop.f32.mrb[19].mxu1  ;;  %v9332_v52 = vadd.f32 %v15775_v26, %v9331_v39  ;;  %v9464_v16 = vmul.f32 %v15936_v46, %v15936_v46 }
 0x5bb   :  { %18275 = vst [vmem:[#allocation7_spill] sm:$0xff] %v15942_v14  ;;  %v15951_v63 = vadd.f32 %v9136_v35, %v18278_v60  ;;  %v9462_v31 = vmul.f32 %v15942_v14, %v15942_v14  ;;  %v9429_v35 = vadd.f32 %v9428_v40, %v9414_v20  ;;  %v9392_v20 = vadd.f32 %v15920_v0, %v9391_v4 }
 0x5bc   :  { %18277 = vst [vmem:[#allocation10_spill] sm:$0xff] %v15948_v33  ;;  %v9465_v40 = vmul.f32 %v15948_v33, %v15948_v33  ;;  %v9333_v4 = vadd.f32 %v15761_v9, %v9332_v52 }
 0x5bd   :  { %18279 = vst [vmem:[#allocation12_spill] sm:$0xff] %v15951_v63  ;;  %v9440_v12 = vadd.f32 %v15951_v63, %v15942_v14  ;;  %v9463_v38 = vmul.f32 %v15951_v63, %v15951_v63  ;;  %v9296_v14 = vmul.f32 %v15695_v19, %v15695_v19  ;;  %v9370_v63 = vadd.f32 %v9369_v5, %v9355_v56  ;;  %v18284_v5 = vld [vmem:[#allocation14_spill] sm:$0xff] }
 0x5bf   :  { %v9441_v55 = vadd.f32 %v15936_v46, %v9440_v12  ;;  %v9478_v25 = vadd.f32 %v9463_v38, %v9462_v31  ;;  %v12199_v60 = vpop.f32.mrb[20].mxu1  ;;  %v9311_v38 = vadd.f32 %v9310_v11, %v9296_v14  ;;  %v9356_v46 = vmul.f32 %v15761_v9, %v15761_v9  ;;  %v18286_v11 = vld [vmem:[#allocation16_spill] sm:$0xff] }
 0x5c0   :  { %v15973_v34 = vadd.f32 %v12199_v60, %v18280_v42  ;;  %v9149_v39 = vpop.f32.mrb[21].mxu1  ;;  %v9430_v42 = vadd.f32 %v9429_v35, %v9415_v48  ;;  %v9274_v35 = vadd.f32 %v15701_v2, %v9273_v44  ;;  %v18288_v44 = vld [vmem:[#allocation13_spill] sm:$0xff] }
 0x5c1   :  { %v9479_v15 = vadd.f32 %v9478_v25, %v9464_v16  ;;  %v15979_v12 = vadd.f32 %v9149_v39, %v18282_v61  ;;  %v12200_v31 = vpop.f32.mrb[22].mxu1  ;;  %v9442_v7 = vadd.f32 %v15948_v33, %v9441_v55  ;;  %v9297_v61 = vmul.f32 %v15701_v2, %v15701_v2 }
 0x5c2   :  { %18281 = vst [vmem:[#allocation9_spill] sm:$0xff] %v15973_v34  ;;  %v15985_v56 = vadd.f32 %v12200_v31, %v18284_v5  ;;  %v9152_v60 = vpop.f32.mrb[23].mxu1  ;;  %v9371_v55 = vadd.f32 %v9370_v63, %v9356_v46  ;;  %v9416_v31 = vmul.f32 %v15904_v49, %v15904_v49  ;;  %v9393_v5 = vadd.f32 %v15904_v49, %v9392_v20 }
 0x5c3   :  { %18283 = vst [vmem:[#allocation11_spill] sm:$0xff] %v15979_v12  ;;  %v9466_v16 = vmul.f32 %v15979_v12, %v15979_v12  ;;  %v9480_v25 = vadd.f32 %v9479_v15, %v9465_v40  ;;  %v9443_v14 = vadd.f32 %v15979_v12, %v9442_v7  ;;  %v15994_v39 = vadd.f32 %v9152_v60, %v18286_v11 }
 0x5c4   :  { %18285 = vst [vmem:[#allocation14_spill] sm:$0xff] %v15985_v56  ;;  %v9312_v40 = vadd.f32 %v9311_v38, %v9297_v61  ;;  %v9357_v7 = vmul.f32 %v15772_v10, %v15772_v10  ;;  %v9334_v60 = vadd.f32 %v15772_v10, %v9333_v4  ;;  %v9431_v46 = vadd.f32 %v9430_v42, %v9416_v31  ;;  %v18300_v10 = vld [vmem:[#allocation20_spill] sm:$0xff] }
 0x5c5   :  { %18287 = vst [vmem:[#allocation16_spill] sm:$0xff] %v15994_v39  ;;  %v9481_v52 = vadd.f32 %v9480_v25, %v9466_v16  ;;  %v9444_v48 = vadd.f32 %v15994_v39, %v9443_v14  ;;  %v9467_v15 = vmul.f32 %v15994_v39, %v15994_v39  ;;  %v9468_v11 = vmul.f32 %v15973_v34, %v15973_v34  ;;  %v18290_v39 = vld [vmem:[#allocation15_spill] sm:$0xff] }
 0x5c6   :  { %v9372_v12 = vadd.f32 %v9371_v55, %v9357_v7  ;;  %v9417_v38 = vmul.f32 %v15914_v47, %v15914_v47  ;;  %v9394_v61 = vadd.f32 %v15914_v47, %v9393_v5  ;;  %v9469_v31 = vmul.f32 %v15985_v56, %v15985_v56  ;;  %v18294_v5 = vld [vmem:[#allocation3_spill] sm:$0xff] }
 0x5c7   :  { %v12203_v63 = vpop.f32.mrb[24].mxu1  ;;  %v9445_v20 = vadd.f32 %v15973_v34, %v9444_v48  ;;  %v9482_v16 = vadd.f32 %v9481_v52, %v9467_v15  ;;  %v18292_v48 = vld [vmem:[#allocation18_spill] sm:$0xff]  ;;  %v9335_v55 = vrot.slane %v9334_v60, 4  ;;  %v9275_v47 = vrot.slane %v9274_v35, 4 }
 0x5c8   :  { %v16010_v25 = vadd.f32 %v12203_v63, %v18288_v44  ;;  %v9165_v14 = vpop.f32.mrb[25].mxu1  ;;  %v9432_v7 = vadd.f32 %v9431_v46, %v9417_v38  ;;  %v9373_v49 = vrot.slane %v9372_v12, 4 }
 0x5c9   :  { %v16016_v4 = vadd.f32 %v9165_v14, %v18290_v39  ;;  %v12204_v42 = vpop.f32.mrb[26].mxu1  ;;  %v9483_v33 = vadd.f32 %v9482_v16, %v9468_v11  ;;  %v9446_v52 = vadd.f32 %v15985_v56, %v9445_v20  ;;  %v9395_v11 = vrot.slane %v9394_v61, 4 }
 0x5ca   :  { %18289 = vst [vmem:[#allocation13_spill] sm:$0xff] %v16010_v25  ;;  %v16022_v15 = vadd.f32 %v12204_v42, %v18292_v48  ;;  %v9168_v63 = vpop.f32.mrb[27].mxu1  ;;  %v9313_v48 = vrot.slane %v9312_v40, 4  ;;  %v9336_v46 = vadd.f32 %v9335_v55, %v9334_v60  ;;  %v9433_v38 = vrot.slane %v9432_v7, 4 }
 0x5cb   :  { %18291 = vst [vmem:[#allocation15_spill] sm:$0xff] %v16016_v4  ;;  %v9470_v44 = vmul.f32 %v16016_v4, %v16016_v4  ;;  %v16027_v34 = vadd.f32 %v9168_v63, %v18294_v5  ;;  %v9447_v39 = vadd.f32 %v16016_v4, %v9446_v52  ;;  %v9484_v14 = vadd.f32 %v9483_v33, %v9469_v31  ;;  %v18296_v33 = vld [vmem:[#allocation4_spill] sm:$0xff] }
 0x5cc   :  { %18293 = vst [vmem:[#allocation18_spill] sm:$0xff] %v16022_v15  ;;  %v9472_v63 = vmul.f32 %v16010_v25, %v16010_v25  ;;  %v9276_v0 = vadd.f32 %v9275_v47, %v9274_v35  ;;  %v9374_v54 = vadd.f32 %v9373_v49, %v9372_v12  ;;  %v9396_v37 = vadd.f32 %v9395_v11, %v9394_v61  ;;  %v18302_v49 = vld [vmem:[#allocation25_spill] sm:$0xff] }
 0x5cd   :  { %18295 = vst [vmem:[#allocation3_spill] sm:$0xff] %v16027_v34  ;;  %v9471_v20 = vmul.f32 %v16027_v34, %v16027_v34  ;;  %v9485_v16 = vadd.f32 %v9484_v14, %v9470_v44  ;;  %v9448_v42 = vadd.f32 %v16027_v34, %v9447_v39  ;;  %v18298_v44 = vld [vmem:[#allocation6_spill] sm:$0xff]  ;;  %v9473_v60 = vmul.f32 %v16022_v15, %v16022_v15 }
 0x5ce   :  { %v9434_v35 = vadd.f32 %v9433_v38, %v9432_v7  ;;  %v9277_v11 = vrot.slane %v9276_v0, 2 }
 0x5cf   :  { %v12207_v56 = vpop.f32.mrb[28].mxu1  ;;  %v9449_v5 = vadd.f32 %v16010_v25, %v9448_v42  ;;  %v9486_v52 = vadd.f32 %v9485_v16, %v9471_v20  ;;  %v9337_v16 = vrot.slane %v9336_v46, 2 }
 0x5d0   :  { %v16037_v31 = vadd.f32 %v12207_v56, %v18296_v33  ;;  %v9181_v4 = vpop.f32.mrb[29].mxu1  ;;  %v9314_v56 = vadd.f32 %v9313_v48, %v9312_v40 }
 0x5d1   :  { %v16040_v14 = vadd.f32 %v9181_v4, %v18298_v44  ;;  %v12208_v39 = vpop.f32.mrb[30].mxu1  ;;  %v9487_v55 = vadd.f32 %v9486_v52, %v9472_v63  ;;  %v9450_v34 = vadd.f32 %v16022_v15, %v9449_v5  ;;  %v9375_v63 = vrot.slane %v9374_v54, 2 }
 0x5d2   :  { %18297 = vst [vmem:[#allocation4_spill] sm:$0xff] %v16037_v31  ;;  %v16046_v42 = vadd.f32 %v12208_v39, %v18300_v10  ;;  %v9184_v20 = vpop.f32.mrb[31].mxu1  ;;  %v9397_v10 = vrot.slane %v9396_v37, 2  ;;  %v9315_v48 = vrot.slane %v9314_v56, 2  ;;  %v9338_v33 = vadd.f32 %v9337_v16, %v9336_v46 }
 0x5d3   :  { %18299 = vst [vmem:[#allocation6_spill] sm:$0xff] %v16040_v14  ;;  %v9474_v47 = vmul.f32 %v16040_v14, %v16040_v14  ;;  %v16051_v12 = vadd.f32 %v9184_v20, %v18302_v49  ;;  %v9451_v61 = vadd.f32 %v16040_v14, %v9450_v34  ;;  %v9488_v4 = vadd.f32 %v9487_v55, %v9473_v60 }
 0x5d4   :  { %18301 = vst [vmem:[#allocation20_spill] sm:$0xff] %v16046_v42  ;;  %v9435_v44 = vrot.slane %v9434_v35, 2  ;;  %v9476_v39 = vmul.f32 %v16037_v31, %v16037_v31  ;;  %v9278_v34 = vadd.f32 %v9277_v11, %v9276_v0  ;;  %v9376_v60 = vadd.f32 %v9375_v63, %v9374_v54 }
 0x5d5   :  { %v9475_v5 = vmul.f32 %v16051_v12, %v16051_v12  ;;  %v9489_v52 = vadd.f32 %v9488_v4, %v9474_v47  ;;  %v9452_v40 = vadd.f32 %v16051_v12, %v9451_v61  ;;  %v9398_v55 = vadd.f32 %v9397_v10, %v9396_v37 }
 0x5d6   :  { %v9477_v20 = vmul.f32 %v16046_v42, %v16046_v42  ;;  %v9316_v4 = vadd.f32 %v9315_v48, %v9314_v56  ;;  %v9339_v61 = vrot.slane %v9338_v33, 1  ;;  %v9436_v14 = vadd.f32 %v9435_v44, %v9434_v35 }
 0x5d7   :  { %v9453_v7 = vadd.f32 %v16037_v31, %v9452_v40  ;;  %v9490_v38 = vadd.f32 %v9489_v52, %v9475_v5  ;;  %v9279_v15 = vrot.slane %v9278_v34, 1  ;;  %v9377_v25 = vrot.slane %v9376_v60, 1 }
 0x5d8   :  { %v9399_v9 = vrot.slane %v9398_v55, 1  ;;  %v9317_v5 = vrot.slane %v9316_v4, 1  ;;  %v9340_v0 = vadd.f32 %v9339_v61, %v9338_v33  ;;  %v9437_v54 = vrot.slane %v9436_v14, 1 }
 0x5d9   :  { %v9454_v49 = vadd.f32 %v16046_v42, %v9453_v7  ;;  %v9491_v47 = vadd.f32 %v9490_v38, %v9476_v39  ;;  %v9280_v63 = vadd.f32 %v9279_v15, %v9278_v34  ;;  %v9378_v10 = vadd.f32 %v9377_v25, %v9376_v60 }
 0x5da   :  { %v9400_v52 = vadd.f32 %v9399_v9, %v9398_v55  ;;  %v9318_v56 = vadd.f32 %v9317_v5, %v9316_v4  ;;  %v9438_v35 = vadd.f32 %v9437_v54, %v9436_v14  ;;  %v9505_v14 = vld [vmem:[%s17997_s5] sm:$0x1]  ;;  %v18303_v4 = vld [vmem:[#allocation28_spill] sm:$0xff] }
 0x5db   :  { %v9455_v46 = vrot.slane %v9454_v49, 4  ;;  %v9492_v16 = vadd.f32 %v9491_v47, %v9477_v20  ;;  %v9341_v48 = vadd.f32 %v9340_v0, %v9280_v63  ;;  %v9509_v55 = vld [vmem:[%s17998_s6] sm:$0x1]  ;;  %v18305_v63 = vld [vmem:[#allocation37_spill] sm:$0xff] }
 0x5dc   :  { %v9379_v20 = vadd.f32 %v9378_v10, %v9318_v56  ;;  %v18306_v10 = vld [vmem:[#allocation39_spill] sm:$0xff]  ;;  %v18310_v56 = vld [vmem:[#allocation24_spill] sm:$0xff] }
 0x5dd   :  { %v9456_v26 = vadd.f32 %v9455_v46, %v9454_v49  ;;  %v9493_v40 = vrot.slane %v9492_v16, 4  ;;  %v9401_v47 = vadd.f32 %v9400_v52, %v9341_v48  ;;  %v18307_v52 = vld [vmem:[#allocation36_spill] sm:$0xff] }
 0x5de   :  { %v9439_v46 = vadd.f32 %v9438_v35, %v9379_v20  ;;  %v18311_v35 = vld [vmem:[#allocation17_spill] sm:$0xff] }
 0x5df   :  { %v9457_v37 = vrot.slane %v9456_v26, 2  ;;  %v9494_v11 = vadd.f32 %v9493_v40, %v9492_v16 }
 0x5e1   :  { %v9458_v7 = vadd.f32 %v9457_v37, %v9456_v26  ;;  %v9495_v39 = vrot.slane %v9494_v11, 2 }
 0x5e3   :  { %v9459_v44 = vrot.slane %v9458_v7, 1  ;;  %v9496_v38 = vadd.f32 %v9495_v39, %v9494_v11  ;;  %v18309_v39 = vld [vmem:[#allocation19_spill] sm:$0xff] }
 0x5e5   :  { %v9460_v42 = vadd.f32 %v9459_v44, %v9458_v7  ;;  %v9497_v49 = vrot.slane %v9496_v38, 1  ;;  %v18308_v7 = vld [vmem:[#allocation38_spill] sm:$0xff] }
 0x5e7   :  { %v9461_v31 = vadd.f32 %v9460_v42, %v9401_v47  ;;  %v9498_v33 = vadd.f32 %v9497_v49, %v9496_v38  ;;  %v18312_v38 = vld [vmem:[#allocation22_spill] sm:$0xff]  ;;  %v18313_v47 = vld [vmem:[#allocation23_spill] sm:$0xff] }
 0x5e9   :  { %v9499_v61 = vadd.f32 %v9498_v33, %v9439_v46  ;;  %v9500_v51 = vmul.f32 0.001953125, %v9461_v31  ;;  %v18314_v46 = vld [vmem:[#allocation27_spill] sm:$0xff] }
 0x5eb   :  { %v9501_v16 = vmul.f32 0.001953125, %v9499_v61  ;;  %v9502_v15 = vmul.f32 %v9500_v51, %v9500_v51  ;;  %v18315_v61 = vld [vmem:[#allocation21_spill] sm:$0xff] }
 0x5ed   :  { %v9503_v25 = vsub.f32 %v9501_v16, %v9502_v15  ;;  %v18316_v15 = vld [vmem:[#allocation26_spill] sm:$0xff] }
 0x5ef   :  { %v9504_v9 = vmax.f32 %v9503_v25, 0.0 }
 0x5f1   :  { %v9506_v26 = vadd.f32 1e-05, %v9504_v9  ;;  %v18317_v9 = vld [vmem:[#allocation30_spill] sm:$0xff] }
 0x5f3   :  { %12908 = vrsqrt.f32 %v9506_v26 }
 0x5fd   :  { %v12909_v34 = vpop.eup %12908 }
 0x5fe   :  { %v9508_v60 = vmul.f32 %v12909_v34, %v9505_v14  ;;  %v18318_v14 = vld [vmem:[#allocation32_spill] sm:$0xff] }
 0x600   :  { %v9510_v42 = vmul.f32 %v9508_v60, %v9500_v51  ;;  %v16070_v40 = vrot.slane %v9508_v60, %v18303_v4  ;;  %v18319_v60 = vld [vmem:[#allocation29_spill] sm:$0xff] }
 0x602   :  { %v9511_v31 = vsub.f32 %v9509_v55, %v9510_v42  ;;  %v16074_v5 = vmul.f32 %v16051_v12, %v16070_v40  ;;  %v16078_v0 = vmul.f32 %v15662_v53, %v16070_v40  ;;  %v16082_v54 = vmul.f32 %v15668_v24, %v16070_v40  ;;  %v18320_v42 = vld [vmem:[#allocation31_spill] sm:$0xff] }
 0x603   :  { %v9520_v37 = vmul.f32 %v15659_v36, %v16070_v40  ;;  %v9521_v51 = vmul.f32 %v15665_v27, %v16070_v40  ;;  %v16090_v11 = vmul.f32 %v15674_v41, %v16070_v40  ;;  %v16094_v12 = vmul.f32 %v15680_v32, %v16070_v40 }
 0x604   :  { %18304 = vst [vmem:[#allocation25_spill] sm:$0xff] %v16074_v5  ;;  %v16097_v53 = vrot.slane %v9511_v31, %v18303_v4  ;;  %v16101_v24 = vmul.f32 %v15671_v45, %v16070_v40  ;;  %v16105_v36 = vmul.f32 %v15677_v58, %v16070_v40  ;;  %v16109_v27 = vmul.f32 %v15686_v23, %v16070_v40  ;;  %v18338_v4 = vld [vmem:[#allocation14_spill] sm:$0xff]  ;;  %v18340_v5 = vld [vmem:[#allocation15_spill] sm:$0xff] }
 0x605   :  { %v16113_v41 = vmul.f32 %v15692_v13, %v16070_v40  ;;  %v16117_v32 = vmul.f32 %v15683_v1, %v16070_v40  ;;  %v16121_v45 = vmul.f32 %v15689_v62, %v16070_v40  ;;  %v16125_v58 = vmul.f32 %v15698_v17, %v16070_v40 }
 0x606   :  { %v16129_v23 = vmul.f32 %v15704_v6, %v16070_v40  ;;  %v16133_v13 = vmul.f32 %v15695_v19, %v16070_v40  ;;  %v16137_v1 = vmul.f32 %v15701_v2, %v16070_v40  ;;  %v16141_v62 = vmul.f32 %v15710_v18, %v16070_v40 }
 0x607   :  { %v16145_v17 = vmul.f32 %v15716_v8, %v16070_v40  ;;  %v16149_v6 = vmul.f32 %v15707_v21, %v16070_v40  ;;  %v16153_v19 = vmul.f32 %v15713_v57, %v16070_v40  ;;  %v16157_v2 = vmul.f32 %v15722_v50, %v16070_v40 }
 0x608   :  { %v16161_v18 = vmul.f32 %v15728_v59, %v16070_v40  ;;  %v16165_v8 = vmul.f32 %v15719_v22, %v16070_v40  ;;  %v16169_v21 = vmul.f32 %v15725_v43, %v16070_v40  ;;  %v16173_v57 = vmul.f32 %v15740_v3, %v16070_v40 }
 0x609   :  { %v16177_v50 = vmul.f32 %v15746_v28, %v16070_v40  ;;  %v16181_v59 = vmul.f32 %v15737_v29, %v16070_v40  ;;  %v16185_v22 = vmul.f32 %v15743_v30, %v16070_v40  ;;  %v16189_v43 = vmul.f32 %v18305_v63, %v16070_v40  ;;  %v18321_v63 = vld [vmem:[#allocation34_spill] sm:$0xff] }
 0x60a   :  { %v16193_v3 = vmul.f32 %v18306_v10, %v16070_v40  ;;  %v16197_v28 = vmul.f32 %v18307_v52, %v16070_v40  ;;  %v16201_v29 = vmul.f32 %v18308_v7, %v16070_v40  ;;  %v16205_v30 = vmul.f32 %v18309_v39, %v16070_v40  ;;  %v18322_v52 = vld [vmem:[#allocation8_spill] sm:$0xff]  ;;  %v18323_v39 = vld [vmem:[#allocation33_spill] sm:$0xff] }
 0x60b   :  { %v16209_v48 = vmul.f32 %v18310_v56, %v16070_v40  ;;  %v16213_v44 = vmul.f32 %v18311_v35, %v16070_v40  ;;  %v16217_v20 = vmul.f32 %v18312_v38, %v16070_v40  ;;  %v16221_v49 = vmul.f32 %v18313_v47, %v16070_v40  ;;  %v18324_v35 = vld [vmem:[#allocation35_spill] sm:$0xff] }
 0x60c   :  { %v16225_v33 = vmul.f32 %v18314_v46, %v16070_v40  ;;  %v16229_v16 = vmul.f32 %v18315_v61, %v16070_v40  ;;  %v16233_v25 = vmul.f32 %v18316_v15, %v16070_v40  ;;  %v16237_v26 = vmul.f32 %v18317_v9, %v16070_v40  ;;  %v18325_v47 = vld [vmem:[#allocation7_spill] sm:$0xff]  ;;  %v18326_v61 = vld [vmem:[#allocation12_spill] sm:$0xff]  ;;  %v18328_v9 = vld [vmem:[#allocation5_spill] sm:$0xff] }
 0x60d   :  { %v16241_v34 = vmul.f32 %v18318_v14, %v16070_v40  ;;  %v16245_v55 = vmul.f32 %v18319_v60, %v16070_v40  ;;  %v16249_v31 = vmul.f32 %v18320_v42, %v16070_v40  ;;  %v16253_v10 = vmul.f32 %v18321_v63, %v16070_v40  ;;  %v18330_v60 = vld [vmem:[#allocation10_spill] sm:$0xff]  ;;  %v18332_v63 = vld [vmem:[#allocation11_spill] sm:$0xff] }
 0x60e   :  { %v16257_v7 = vmul.f32 %v18322_v52, %v16070_v40  ;;  %v16261_v56 = vmul.f32 %v18323_v39, %v16070_v40  ;;  %v16265_v38 = vmul.f32 %v18324_v35, %v16070_v40  ;;  %v16269_v46 = vmul.f32 %v18325_v47, %v16070_v40  ;;  %v18334_v39 = vld [vmem:[#allocation16_spill] sm:$0xff]  ;;  %v18336_v47 = vld [vmem:[#allocation9_spill] sm:$0xff] }
 0x60f   :  { %v16273_v15 = vmul.f32 %v18326_v61, %v16070_v40  ;;  %v16277_v14 = vmul.f32 %v18328_v9, %v16070_v40  ;;  %v16281_v42 = vmul.f32 %v18330_v60, %v16070_v40  ;;  %v16285_v52 = vmul.f32 %v18332_v63, %v16070_v40 }
 0x610   :  { %v16289_v35 = vmul.f32 %v18334_v39, %v16070_v40  ;;  %v16293_v61 = vmul.f32 %v18336_v47, %v16070_v40  ;;  %v16297_v9 = vmul.f32 %v18338_v4, %v16070_v40  ;;  %v16301_v60 = vmul.f32 %v18340_v5, %v16070_v40 }
 0x611   :  { %18327 = vst [vmem:[#allocation37_spill] sm:$0xff] %v16273_v15  ;;  %18329 = vst [vmem:[#allocation39_spill] sm:$0xff] %v16277_v14 }
 0x612   :  { %18331 = vst [vmem:[#allocation36_spill] sm:$0xff] %v16281_v42  ;;  %18333 = vst [vmem:[#allocation38_spill] sm:$0xff] %v16285_v52  ;;  %v18342_v42 = vld [vmem:[#allocation3_spill] sm:$0xff]  ;;  %v18344_v52 = vld [vmem:[#allocation13_spill] sm:$0xff] }
 0x613   :  { %18335 = vst [vmem:[#allocation19_spill] sm:$0xff] %v16289_v35  ;;  %18337 = vst [vmem:[#allocation24_spill] sm:$0xff] %v16293_v61  ;;  %v16305_v63 = vmul.f32 %v18342_v42, %v16070_v40  ;;  %v16309_v39 = vmul.f32 %v18344_v52, %v16070_v40  ;;  %v18346_v35 = vld [vmem:[#allocation18_spill] sm:$0xff]  ;;  %v9591_v52 = vadd.f32 %v16097_v53, %v9521_v51 }
 0x614   :  { %18339 = vst [vmem:[#allocation17_spill] sm:$0xff] %v16297_v9  ;;  %18341 = vst [vmem:[#allocation22_spill] sm:$0xff] %v16301_v60  ;;  %v16313_v47 = vmul.f32 %v18346_v35, %v16070_v40  ;;  %v18348_v61 = vld [vmem:[#allocation6_spill] sm:$0xff]  ;;  %v18350_v9 = vld [vmem:[#allocation4_spill] sm:$0xff]  ;;  %v9588_v35 = vadd.f32 %v16097_v53, %v16078_v0 }
 0x615   :  { %18343 = vst [vmem:[#allocation23_spill] sm:$0xff] %v16305_v63  ;;  %18345 = vst [vmem:[#allocation27_spill] sm:$0xff] %v16309_v39  ;;  %v16317_v4 = vmul.f32 %v18348_v61, %v16070_v40  ;;  %v16321_v5 = vmul.f32 %v18350_v9, %v16070_v40  ;;  %v18352_v60 = vld [vmem:[#allocation20_spill] sm:$0xff]  ;;  %v9590_v63 = vadd.f32 %v16097_v53, %v9520_v37 }
 0x616   :  { %18347 = vst [vmem:[#allocation21_spill] sm:$0xff] %v16313_v47  ;;  %v16325_v42 = vmul.f32 %v18352_v60, %v16070_v40  ;;  %v9589_v47 = vadd.f32 %v16097_v53, %v16082_v54  ;;  %v9592_v61 = vadd.f32 %v16097_v53, %v16090_v11  ;;  %v9593_v9 = vadd.f32 %v16097_v53, %v16094_v12 }
 0x617   :  { %18349 = vst [vmem:[#allocation26_spill] sm:$0xff] %v16317_v4  ;;  %18351 = vst [vmem:[#allocation30_spill] sm:$0xff] %v16321_v5  ;;  %v9654_v5 = vmax.f32 %v9590_v63, 0.0  ;;  %v9655_v4 = vmax.f32 %v9591_v52, 0.0  ;;  %v9594_v40 = vadd.f32 %v16097_v53, %v16101_v24  ;;  %v9595_v37 = vadd.f32 %v16097_v53, %v16105_v36 }
 0x618   :  { %18353 = vst [vmem:[#allocation32_spill] sm:$0xff] %v16325_v42  ;;  %v9652_v51 = vmax.f32 %v9588_v35, 0.0  ;;  %v9653_v60 = vmax.f32 %v9589_v47, 0.0  ;;  %v9656_v0 = vmax.f32 %v9592_v61, 0.0  ;;  %v9657_v42 = vmax.f32 %v9593_v9, 0.0 }
 0x619   :  { %v9717_v39 = vpack.c.bf16 %v9655_v4, %v9654_v5  ;;  %v9658_v54 = vmax.f32 %v9594_v40, 0.0  ;;  %v9659_v14 = vmax.f32 %v9595_v37, 0.0  ;;  %v9596_v11 = vadd.f32 %v16097_v53, %v16109_v27 }
 0x61a   :  { %v9716_v15 = vpack.c.bf16 %v9653_v60, %v9652_v51  ;;  %v9718_v12 = vpack.c.bf16 %v9657_v42, %v9656_v0  ;;  %v9597_v63 = vadd.f32 %v16097_v53, %v16113_v41  ;;  %v9598_v24 = vadd.f32 %v16097_v53, %v16117_v32 }
 0x61b   :  { %v9719_v52 = vpack.c.bf16 %v9659_v14, %v9658_v54  ;;  %v9660_v36 = vmax.f32 %v9596_v11, 0.0  ;;  %v9599_v47 = vadd.f32 %v16097_v53, %v16121_v45  ;;  %v9600_v4 = vadd.f32 %v16097_v53, %v16125_v58 }
 0x61c   :  { %12225 = vmatprep.mubr.bf16.mxu0 %v9716_v15  ;;  %v9661_v5 = vmax.f32 %v9597_v63, 0.0  ;;  %v9662_v35 = vmax.f32 %v9598_v24, 0.0  ;;  %v9601_v27 = vadd.f32 %v16097_v53, %v16129_v23  ;;  %v9602_v41 = vadd.f32 %v16097_v53, %v16133_v13 }
 0x61d   :  { %12226 = vmatmul.mubr.bf16.vlgmr.msra.gmra.mrb[128].mxu0 %v9717_v39  ;;  %v9663_v42 = vmax.f32 %v9599_v47, 0.0  ;;  %v9664_v32 = vmax.f32 %v9600_v4, 0.0  ;;  %v9603_v14 = vadd.f32 %v16097_v53, %v16137_v1  ;;  %v9604_v45 = vadd.f32 %v16097_v53, %v16141_v62 }
 0x61e   :  { %12229 = vmatprep.mubr.bf16.mxu0 %v9718_v12  ;;  %v9720_v58 = vpack.c.bf16 %v9661_v5, %v9660_v36  ;;  %v9665_v15 = vmax.f32 %v9601_v27, 0.0  ;;  %v9666_v61 = vmax.f32 %v9602_v41, 0.0  ;;  %v9605_v9 = vadd.f32 %v16097_v53, %v16145_v17 }
 0x61f   :  { %v9721_v23 = vpack.c.bf16 %v9663_v42, %v9662_v35  ;;  %v9667_v40 = vmax.f32 %v9603_v14, 0.0  ;;  %v9668_v37 = vmax.f32 %v9604_v45, 0.0  ;;  %v9606_v13 = vadd.f32 %v16097_v53, %v16149_v6 }
 0x620   :  { %v9722_v39 = vpack.c.bf16 %v9665_v15, %v9664_v32  ;;  %v9669_v51 = vmax.f32 %v9605_v9, 0.0  ;;  %v9607_v1 = vadd.f32 %v16097_v53, %v16153_v19  ;;  %v9608_v62 = vadd.f32 %v16097_v53, %v16157_v2 }
 0x621   :  { %v16367_v60 = vpack.c.bf16 %v9667_v40, %v9666_v61  ;;  %v9670_v0 = vmax.f32 %v9606_v13, 0.0  ;;  %v9609_v17 = vadd.f32 %v16097_v53, %v16161_v18  ;;  %v9610_v54 = vadd.f32 %v16097_v53, %v16165_v8 }
 0x622   :  { %v16373_v11 = vpack.c.bf16 %v9669_v51, %v9668_v37  ;;  %v9671_v6 = vmax.f32 %v9607_v1, 0.0  ;;  %v9672_v12 = vmax.f32 %v9608_v62, 0.0  ;;  %v9611_v63 = vadd.f32 %v16097_v53, %v16169_v21 }
 0x623   :  { %v9673_v19 = vmax.f32 %v9609_v17, 0.0  ;;  %v9674_v24 = vmax.f32 %v9610_v54, 0.0  ;;  %v9612_v2 = vadd.f32 %v16097_v53, %v16173_v57  ;;  %v9613_v36 = vadd.f32 %v16097_v53, %v16177_v50 }
 0x624   :  { %v16381_v47 = vpack.c.bf16 %v9671_v6, %v9670_v0  ;;  %v9675_v18 = vmax.f32 %v9611_v63, 0.0  ;;  %v9614_v8 = vadd.f32 %v16097_v53, %v16181_v59  ;;  %v9615_v4 = vadd.f32 %v16097_v53, %v16185_v22 }
 0x625   :  { %12230 = vmatmul.mubr.bf16.gmra.mrb[132].mxu0 %v9719_v52  ;;  %v16387_v5 = vpack.c.bf16 %v9673_v19, %v9672_v12  ;;  %v9676_v21 = vmax.f32 %v9612_v2, 0.0  ;;  %v9677_v35 = vmax.f32 %v9613_v36, 0.0  ;;  %v9616_v57 = vadd.f32 %v16097_v53, %v16189_v43 }
 0x626   :  { %12233 = vmatprep.mubr.bf16.mxu0 %v9720_v58  ;;  %v16391_v27 = vpack.c.bf16 %v9675_v18, %v9674_v24  ;;  %v9678_v50 = vmax.f32 %v9614_v8, 0.0  ;;  %v9679_v41 = vmax.f32 %v9615_v4, 0.0  ;;  %v9617_v42 = vadd.f32 %v16097_v53, %v16193_v3  ;;  %v18354_v4 = vld [vmem:[#allocation37_spill] sm:$0xff] }
 0x627   :  { %v16395_v59 = vpack.c.bf16 %v9677_v35, %v9676_v21  ;;  %v9680_v32 = vmax.f32 %v9616_v57, 0.0  ;;  %v9618_v22 = vadd.f32 %v16097_v53, %v16197_v28  ;;  %v9619_v52 = vadd.f32 %v16097_v53, %v16201_v29 }
 0x628   :  { %v16401_v14 = vpack.c.bf16 %v9679_v41, %v9678_v50  ;;  %v9681_v43 = vmax.f32 %v9617_v42, 0.0  ;;  %v9620_v45 = vadd.f32 %v16097_v53, %v16205_v30  ;;  %v9621_v58 = vadd.f32 %v16097_v53, %v16209_v48  ;;  %v18355_v50 = vld [vmem:[#allocation39_spill] sm:$0xff]  ;;  %v18356_v41 = vld [vmem:[#allocation36_spill] sm:$0xff] }
 0x629   :  { %v9682_v15 = vmax.f32 %v9618_v22, 0.0  ;;  %v9683_v3 = vmax.f32 %v9619_v52, 0.0  ;;  %v9622_v61 = vadd.f32 %v16097_v53, %v16213_v44  ;;  %v9623_v28 = vadd.f32 %v16097_v53, %v16217_v20 }
 0x62a   :  { %v16411_v9 = vpack.c.bf16 %v9681_v43, %v9680_v32  ;;  %v9684_v29 = vmax.f32 %v9620_v45, 0.0  ;;  %v9685_v40 = vmax.f32 %v9621_v58, 0.0  ;;  %v9624_v37 = vadd.f32 %v16097_v53, %v16221_v49  ;;  %v18358_v58 = vld [vmem:[#allocation19_spill] sm:$0xff] }
 0x62b   :  { %v16415_v13 = vpack.c.bf16 %v9683_v3, %v9682_v15  ;;  %v9686_v30 = vmax.f32 %v9622_v61, 0.0  ;;  %v9687_v51 = vmax.f32 %v9623_v28, 0.0  ;;  %v9625_v48 = vadd.f32 %v16097_v53, %v16225_v33  ;;  %v18359_v28 = vld [vmem:[#allocation24_spill] sm:$0xff] }
 0x62c   :  { %v16419_v1 = vpack.c.bf16 %v9685_v40, %v9684_v29  ;;  %v9688_v44 = vmax.f32 %v9624_v37, 0.0  ;;  %v9626_v20 = vadd.f32 %v16097_v53, %v16229_v16  ;;  %v9627_v62 = vadd.f32 %v16097_v53, %v16233_v25  ;;  %v18360_v40 = vld [vmem:[#allocation17_spill] sm:$0xff] }
 0x62d   :  { %12234 = vmatmul.mubr.bf16.gmra.mrb[136].mxu0 %v9721_v23  ;;  %v16425_v0 = vpack.c.bf16 %v9687_v51, %v9686_v30  ;;  %v9689_v49 = vmax.f32 %v9625_v48, 0.0  ;;  %v9628_v17 = vadd.f32 %v16097_v53, %v16237_v26  ;;  %v9629_v54 = vadd.f32 %v16097_v53, %v16241_v34  ;;  %v18361_v48 = vld [vmem:[#allocation22_spill] sm:$0xff] }
 0x62e   :  { %12237 = vmatprep.mubr.bf16.mxu0 %v9722_v39  ;;  %v9690_v33 = vmax.f32 %v9626_v20, 0.0  ;;  %v9691_v6 = vmax.f32 %v9627_v62, 0.0  ;;  %v9630_v12 = vadd.f32 %v16097_v53, %v16245_v55  ;;  %v9631_v16 = vadd.f32 %v16097_v53, %v16249_v31 }
 0x62f   :  { %v16435_v25 = vpack.c.bf16 %v9689_v49, %v9688_v44  ;;  %v9692_v23 = vmax.f32 %v9628_v17, 0.0  ;;  %v9693_v63 = vmax.f32 %v9629_v54, 0.0  ;;  %v9632_v19 = vadd.f32 %v16097_v53, %v16253_v10  ;;  %v18362_v44 = vld [vmem:[#allocation23_spill] sm:$0xff]  ;;  %v18364_v54 = vld [vmem:[#allocation21_spill] sm:$0xff] }
 0x630   :  { %v16439_v26 = vpack.c.bf16 %v9691_v6, %v9690_v33  ;;  %v9694_v24 = vmax.f32 %v9630_v12, 0.0  ;;  %v9695_v34 = vmax.f32 %v9631_v16, 0.0  ;;  %v9633_v39 = vadd.f32 %v16097_v53, %v16257_v7  ;;  %v18363_v17 = vld [vmem:[#allocation27_spill] sm:$0xff] }
 0x631   :  { %v9736_v2 = vpack.c.bf16 %v9693_v63, %v9692_v23  ;;  %v9696_v36 = vmax.f32 %v9632_v19, 0.0  ;;  %v9634_v55 = vadd.f32 %v16097_v53, %v16261_v56  ;;  %v9635_v31 = vadd.f32 %v16097_v53, %v16265_v38  ;;  %v18357_v38 = vld [vmem:[#allocation38_spill] sm:$0xff] }
 0x632   :  { %v9737_v18 = vpack.c.bf16 %v9695_v34, %v9694_v24  ;;  %v9697_v8 = vmax.f32 %v9633_v39, 0.0  ;;  %v9636_v10 = vadd.f32 %v16097_v53, %v16269_v46  ;;  %v9637_v21 = vadd.f32 %v16097_v53, %v18354_v4  ;;  %v18365_v23 = vld [vmem:[#allocation26_spill] sm:$0xff]  ;;  %v18366_v39 = vld [vmem:[#allocation25_spill] sm:$0xff]  ;;  %v18368_v4 = vld [vmem:[#allocation32_spill] sm:$0xff] }
 0x633   :  { %v9698_v35 = vmax.f32 %v9634_v55, 0.0  ;;  %v9699_v57 = vmax.f32 %v9635_v31, 0.0  ;;  %v9638_v7 = vadd.f32 %v16097_v53, %v18355_v50  ;;  %v9639_v42 = vadd.f32 %v16097_v53, %v18356_v41 }
 0x634   :  { %v9738_v56 = vpack.c.bf16 %v9697_v8, %v9696_v36  ;;  %v9700_v32 = vmax.f32 %v9636_v10, 0.0  ;;  %v9701_v22 = vmax.f32 %v9637_v21, 0.0  ;;  %v9640_v52 = vadd.f32 %v16097_v53, %v18357_v38  ;;  %v18367_v8 = vld [vmem:[#allocation30_spill] sm:$0xff] }
 0x635   :  { %12238 = vmatmul.mubr.bf16.gmra.mrb[140].mxu0 %v16367_v60  ;;  %v9739_v46 = vpack.c.bf16 %v9699_v57, %v9698_v35  ;;  %v9702_v43 = vmax.f32 %v9638_v7, 0.0  ;;  %v9703_v45 = vmax.f32 %v9639_v42, 0.0  ;;  %v9641_v15 = vadd.f32 %v16097_v53, %v18358_v58 }
 0x636   :  { %12241 = vmatprep.mubr.bf16.mxu0 %v16373_v11  ;;  %v9740_v3 = vpack.c.bf16 %v9701_v22, %v9700_v32  ;;  %v9704_v61 = vmax.f32 %v9640_v52, 0.0  ;;  %v9642_v29 = vadd.f32 %v16097_v53, %v18359_v28  ;;  %v9643_v37 = vadd.f32 %v16097_v53, %v18360_v40 }
 0x637   :  { %v9741_v30 = vpack.c.bf16 %v9703_v45, %v9702_v43  ;;  %v9705_v51 = vmax.f32 %v9641_v15, 0.0  ;;  %v9644_v60 = vadd.f32 %v16097_v53, %v18361_v48  ;;  %v9645_v20 = vadd.f32 %v16097_v53, %v18362_v44 }
 0x638   :  { %v9706_v62 = vmax.f32 %v9642_v29, 0.0  ;;  %v9707_v49 = vmax.f32 %v9643_v37, 0.0  ;;  %v9646_v11 = vadd.f32 %v16097_v53, %v18363_v17  ;;  %v9647_v33 = vadd.f32 %v16097_v53, %v18364_v54 }
 0x639   :  { %v9742_v6 = vpack.c.bf16 %v9705_v51, %v9704_v61  ;;  %v9708_v12 = vmax.f32 %v9644_v60, 0.0  ;;  %v9709_v16 = vmax.f32 %v9645_v20, 0.0  ;;  %v9648_v63 = vadd.f32 %v16097_v53, %v18365_v23 }
 0x63a   :  { %v9743_v19 = vpack.c.bf16 %v9707_v49, %v9706_v62  ;;  %v9710_v24 = vmax.f32 %v9646_v11, 0.0  ;;  %v9711_v34 = vmax.f32 %v9647_v33, 0.0  ;;  %v9649_v36 = vadd.f32 %v16097_v53, %v18366_v39 }
 0x63b   :  { %v9744_v55 = vpack.c.bf16 %v9709_v16, %v9708_v12  ;;  %v9712_v31 = vmax.f32 %v9648_v63, 0.0  ;;  %v9650_v10 = vadd.f32 %v16097_v53, %v18367_v8  ;;  %v9651_v21 = vadd.f32 %v16097_v53, %v18368_v4 }
 0x63c   :  { %v9745_v35 = vpack.c.bf16 %v9711_v34, %v9710_v24  ;;  %v9713_v57 = vmax.f32 %v9649_v36, 0.0 }
 0x63d   :  { %12242 = vmatmul.mubr.bf16.gmra.mrb[144].mxu0 %v16381_v47  ;;  %v9714_v50 = vmax.f32 %v9650_v10, 0.0  ;;  %v9715_v7 = vmax.f32 %v9651_v21, 0.0 }
 0x63e   :  { %12245 = vmatprep.mubr.bf16.mxu0 %v16387_v5  ;;  %v9746_v41 = vpack.c.bf16 %v9713_v57, %v9712_v31 }
 0x63f   :  { %v9747_v42 = vpack.c.bf16 %v9715_v7, %v9714_v50 }
 0x645   :  { %12246 = vmatmul.mubr.bf16.gmra.mrb[148].mxu0 %v16391_v27 }
 0x646   :  { %12249 = vmatprep.mubr.bf16.mxu0 %v16395_v59 }
 0x64d   :  { %12250 = vmatmul.mubr.bf16.gmra.mrb[152].mxu0 %v16401_v14 }
 0x64e   :  { %12253 = vmatprep.mubr.bf16.mxu0 %v16411_v9 }
 0x655   :  { %12254 = vmatmul.mubr.bf16.gmra.mrb[156].mxu0 %v16415_v13 }
 0x656   :  { %12257 = vmatprep.mubr.bf16.mxu0 %v16419_v1 }
 0x65d   :  { %12258 = vmatmul.mubr.bf16.gmra.mrb[160].mxu0 %v16425_v0 }
 0x65e   :  { %12261 = vmatprep.mubr.bf16.mxu0 %v16435_v25 }
 0x665   :  { %12262 = vmatmul.mubr.bf16.gmra.mrb[164].mxu0 %v16439_v26 }
 0x666   :  { %12265 = vmatprep.mubr.bf16.mxu0 %v9736_v2 }
 0x66d   :  { %12266 = vmatmul.mubr.bf16.gmra.mrb[168].mxu0 %v9737_v18 }
 0x66e   :  { %12269 = vmatprep.mubr.bf16.mxu0 %v9738_v56 }
 0x675   :  { %12270 = vmatmul.mubr.bf16.gmra.mrb[172].mxu0 %v9739_v46 }
 0x676   :  { %12273 = vmatprep.mubr.bf16.mxu0 %v9740_v3 }
 0x67d   :  { %12274 = vmatmul.mubr.bf16.gmra.mrb[176].mxu0 %v9741_v30 }
 0x67e   :  { %12277 = vmatprep.mubr.bf16.mxu0 %v9742_v6 }
 0x685   :  { %12278 = vmatmul.mubr.bf16.gmra.mrb[180].mxu0 %v9743_v19 }
 0x686   :  { %12281 = vmatprep.mubr.bf16.mxu0 %v9744_v55 }
 0x68d   :  { %12282 = vmatmul.mubr.bf16.gmra.mrb[184].mxu0 %v9745_v35 }
 0x68e   :  { %12285 = vmatprep.mubr.bf16.mxu0 %v9746_v41 }
 0x695   :  { %12286 = vmatmul.mubr.bf16.gmra.mrb[188].mxu0 %v9747_v42 }
 0x6f0   :  { %v16492_v53 = vpop.f32.mrb[128].mxu0 }
 0x6f1   :  { %v16494_v47 = vpop.f32.mrb[129].mxu0  ;;  %v10125_v13 = vmul.f32 %v16492_v53, %v16492_v53 }
 0x6f2   :  { %v16496_v5 = vpop.f32.mrb[130].mxu0  ;;  %v10123_v59 = vmul.f32 %v16494_v47, %v16494_v47 }
 0x6f3   :  { %v16498_v27 = vpop.f32.mrb[131].mxu0  ;;  %v10126_v25 = vmul.f32 %v16496_v5, %v16496_v5 }
 0x6f4   :  { %v10101_v14 = vadd.f32 %v16498_v27, %v16494_v47  ;;  %v10124_v9 = vmul.f32 %v16498_v27, %v16498_v27 }
 0x6f6   :  { %v10102_v1 = vadd.f32 %v16492_v53, %v10101_v14  ;;  %v10139_v0 = vadd.f32 %v10124_v9, %v10123_v59 }
 0x6f8   :  { %v10140_v26 = vadd.f32 %v10139_v0, %v10125_v13  ;;  %v16511_v2 = vpop.f32.mrb[132].mxu0  ;;  %v10103_v18 = vadd.f32 %v16496_v5, %v10102_v1 }
 0x6f9   :  { %v16514_v56 = vpop.f32.mrb[133].mxu0  ;;  %v10129_v15 = vmul.f32 %v16511_v2, %v16511_v2 }
 0x6fa   :  { %v10104_v32 = vadd.f32 %v10103_v18, %v16514_v56  ;;  %v10127_v22 = vmul.f32 %v16514_v56, %v16514_v56  ;;  %v10141_v38 = vadd.f32 %v10140_v26, %v10126_v25  ;;  %v16519_v52 = vpop.f32.mrb[134].mxu0 }
 0x6fb   :  { %v16521_v46 = vpop.f32.mrb[135].mxu0  ;;  %v10130_v28 = vmul.f32 %v16519_v52, %v16519_v52 }
 0x6fc   :  { %v10142_v43 = vadd.f32 %v10141_v38, %v10127_v22  ;;  %v10105_v45 = vadd.f32 %v10104_v32, %v16521_v46  ;;  %v10128_v58 = vmul.f32 %v16521_v46, %v16521_v46 }
 0x6fe   :  { %v10106_v3 = vadd.f32 %v16511_v2, %v10105_v45  ;;  %v10143_v61 = vadd.f32 %v10142_v43, %v10128_v58 }
 0x700   :  { %v10144_v29 = vadd.f32 %v10143_v61, %v10129_v15  ;;  %v16531_v40 = vpop.f32.mrb[136].mxu0  ;;  %v10107_v37 = vadd.f32 %v16519_v52, %v10106_v3 }
 0x701   :  { %v16534_v30 = vpop.f32.mrb[137].mxu0  ;;  %v10133_v11 = vmul.f32 %v16531_v40, %v16531_v40 }
 0x702   :  { %v10108_v51 = vadd.f32 %v10107_v37, %v16534_v30  ;;  %v10131_v48 = vmul.f32 %v16534_v30, %v16534_v30  ;;  %v10145_v60 = vadd.f32 %v10144_v29, %v10130_v28  ;;  %v16539_v44 = vpop.f32.mrb[138].mxu0 }
 0x703   :  { %v16541_v20 = vpop.f32.mrb[139].mxu0  ;;  %v10134_v6 = vmul.f32 %v16539_v44, %v16539_v44 }
 0x704   :  { %v10146_v62 = vadd.f32 %v10145_v60, %v10131_v48  ;;  %v10109_v49 = vadd.f32 %v10108_v51, %v16541_v20  ;;  %v10132_v17 = vmul.f32 %v16541_v20, %v16541_v20 }
 0x706   :  { %v10110_v54 = vadd.f32 %v16531_v40, %v10109_v49  ;;  %v10147_v33 = vadd.f32 %v10146_v62, %v10132_v17 }
 0x708   :  { %v10148_v12 = vadd.f32 %v10147_v33, %v10133_v11  ;;  %v16551_v16 = vpop.f32.mrb[140].mxu0  ;;  %v10111_v23 = vadd.f32 %v16539_v44, %v10110_v54 }
 0x709   :  { %v16554_v63 = vpop.f32.mrb[141].mxu0  ;;  %v10137_v10 = vmul.f32 %v16551_v16, %v16551_v16 }
 0x70a   :  { %v10112_v19 = vadd.f32 %v10111_v23, %v16554_v63  ;;  %v10135_v24 = vmul.f32 %v16554_v63, %v16554_v63  ;;  %v10149_v34 = vadd.f32 %v10148_v12, %v10134_v6  ;;  %v16559_v39 = vpop.f32.mrb[142].mxu0 }
 0x70b   :  { %v16561_v36 = vpop.f32.mrb[143].mxu0  ;;  %v10138_v35 = vmul.f32 %v16559_v39, %v16559_v39 }
 0x70c   :  { %v10150_v55 = vadd.f32 %v10149_v34, %v10135_v24  ;;  %v10113_v31 = vadd.f32 %v10112_v19, %v16561_v36  ;;  %v10136_v8 = vmul.f32 %v16561_v36, %v16561_v36 }
 0x70e   :  { %v10114_v4 = vadd.f32 %v16551_v16, %v10113_v31  ;;  %v10151_v21 = vadd.f32 %v10150_v55, %v10136_v8 }
 0x710   :  { %v10115_v57 = vadd.f32 %v16559_v39, %v10114_v4  ;;  %v10152_v50 = vadd.f32 %v10151_v21, %v10137_v10  ;;  %v16572_v7 = vpop.f32.mrb[144].mxu0 }
 0x711   :  { %v16574_v41 = vpop.f32.mrb[145].mxu0  ;;  %v10185_v0 = vmul.f32 %v16572_v7, %v16572_v7 }
 0x712   :  { %v10153_v42 = vadd.f32 %v10152_v50, %v10138_v35  ;;  %v16576_v59 = vpop.f32.mrb[146].mxu0  ;;  %v10183_v9 = vmul.f32 %v16574_v41, %v16574_v41  ;;  %v10116_v8 = vrot.slane %v10115_v57, 4 }
 0x713   :  { %v16578_v14 = vpop.f32.mrb[147].mxu0  ;;  %v10186_v38 = vmul.f32 %v16576_v59, %v16576_v59 }
 0x714   :  { %v10161_v13 = vadd.f32 %v16578_v14, %v16574_v41  ;;  %v10184_v1 = vmul.f32 %v16578_v14, %v16578_v14 }
 0x716   :  { %v10162_v25 = vadd.f32 %v16572_v7, %v10161_v13  ;;  %v10199_v26 = vadd.f32 %v10184_v1, %v10183_v9 }
 0x718   :  { %v10200_v18 = vadd.f32 %v10199_v26, %v10185_v0  ;;  %v16589_v32 = vpop.f32.mrb[148].mxu0  ;;  %v10163_v22 = vadd.f32 %v16576_v59, %v10162_v25  ;;  %v10117_v26 = vadd.f32 %v10116_v8, %v10115_v57 }
 0x719   :  { %v16594_v43 = vpop.f32.mrb[149].mxu0  ;;  %v10189_v48 = vmul.f32 %v16589_v32, %v16589_v32 }
 0x71a   :  { %v10164_v45 = vadd.f32 %v10163_v22, %v16594_v43  ;;  %v10187_v58 = vmul.f32 %v16594_v43, %v16594_v43  ;;  %v16599_v15 = vpop.f32.mrb[150].mxu0  ;;  %v10201_v3 = vadd.f32 %v10200_v18, %v10186_v38  ;;  %v10154_v18 = vrot.slane %v10153_v42, 4 }
 0x71b   :  { %v16601_v61 = vpop.f32.mrb[151].mxu0  ;;  %v10190_v17 = vmul.f32 %v16599_v15, %v16599_v15 }
 0x71c   :  { %v10165_v28 = vadd.f32 %v10164_v45, %v16601_v61  ;;  %v10188_v29 = vmul.f32 %v16601_v61, %v16601_v61  ;;  %v10202_v37 = vadd.f32 %v10201_v3, %v10187_v58 }
 0x71e   :  { %v10166_v51 = vadd.f32 %v16589_v32, %v10165_v28  ;;  %v10203_v60 = vadd.f32 %v10202_v37, %v10188_v29  ;;  %v10118_v29 = vrot.slane %v10117_v26, 2  ;;  %v10155_v37 = vadd.f32 %v10154_v18, %v10153_v42 }
 0x720   :  { %v16609_v62 = vpop.f32.mrb[152].mxu0  ;;  %v10167_v49 = vadd.f32 %v16599_v15, %v10166_v51  ;;  %v10204_v11 = vadd.f32 %v10203_v60, %v10189_v48 }
 0x721   :  { %v16614_v54 = vpop.f32.mrb[153].mxu0  ;;  %v10193_v10 = vmul.f32 %v16609_v62, %v16609_v62 }
 0x722   :  { %v10168_v33 = vadd.f32 %v10167_v49, %v16614_v54  ;;  %v10191_v6 = vmul.f32 %v16614_v54, %v16614_v54  ;;  %v16619_v12 = vpop.f32.mrb[154].mxu0  ;;  %v10205_v23 = vadd.f32 %v10204_v11, %v10190_v17 }
 0x723   :  { %v16621_v19 = vpop.f32.mrb[155].mxu0  ;;  %v10194_v50 = vmul.f32 %v16619_v12, %v16619_v12 }
 0x724   :  { %v10169_v24 = vadd.f32 %v10168_v33, %v16621_v19  ;;  %v10192_v34 = vmul.f32 %v16621_v19, %v16621_v19  ;;  %v10206_v55 = vadd.f32 %v10205_v23, %v10191_v6  ;;  %v10119_v23 = vadd.f32 %v10118_v29, %v10117_v26 }
 0x726   :  { %v10170_v31 = vadd.f32 %v16609_v62, %v10169_v24  ;;  %v10207_v4 = vadd.f32 %v10206_v55, %v10192_v34  ;;  %v10156_v24 = vrot.slane %v10155_v37, 2 }
 0x728   :  { %v16629_v21 = vpop.f32.mrb[156].mxu0  ;;  %v10171_v35 = vadd.f32 %v16619_v12, %v10170_v31  ;;  %v10208_v9 = vadd.f32 %v10207_v4, %v10193_v10  ;;  %v10157_v26 = vadd.f32 %v10156_v24, %v10155_v37 }
 0x729   :  { %v16634_v13 = vpop.f32.mrb[157].mxu0  ;;  %v10197_v51 = vmul.f32 %v16629_v21, %v16629_v21 }
 0x72a   :  { %v10172_v1 = vadd.f32 %v10171_v35, %v16634_v13  ;;  %v10195_v0 = vmul.f32 %v16634_v13, %v16634_v13  ;;  %v16639_v25 = vpop.f32.mrb[158].mxu0  ;;  %v10209_v22 = vadd.f32 %v10208_v9, %v10194_v50  ;;  %v10158_v24 = vrot.slane %v10157_v26, 1 }
 0x72b   :  { %v16641_v38 = vpop.f32.mrb[159].mxu0  ;;  %v10198_v49 = vmul.f32 %v16639_v25, %v16639_v25 }
 0x72c   :  { %v10173_v45 = vadd.f32 %v10172_v1, %v16641_v38  ;;  %v10196_v58 = vmul.f32 %v16641_v38, %v16641_v38  ;;  %v10210_v3 = vadd.f32 %v10209_v22, %v10195_v0  ;;  %v10120_v0 = vrot.slane %v10119_v23, 1 }
 0x72e   :  { %v10174_v28 = vadd.f32 %v16629_v21, %v10173_v45  ;;  %v10211_v48 = vadd.f32 %v10210_v3, %v10196_v58 }
 0x730   :  { %v10175_v57 = vadd.f32 %v16639_v25, %v10174_v28  ;;  %v16650_v60 = vpop.f32.mrb[160].mxu0  ;;  %v10212_v17 = vadd.f32 %v10211_v48, %v10197_v51 }
 0x731   :  { %v16654_v11 = vpop.f32.mrb[161].mxu0  ;;  %v10245_v50 = vmul.f32 %v16650_v60, %v16650_v60 }
 0x732   :  { %v10176_v33 = vrot.slane %v10175_v57, 4  ;;  %v16656_v6 = vpop.f32.mrb[162].mxu0  ;;  %v10213_v42 = vadd.f32 %v10212_v17, %v10198_v49  ;;  %v10243_v31 = vmul.f32 %v16654_v11, %v16654_v11 }
 0x733   :  { %v16658_v34 = vpop.f32.mrb[163].mxu0  ;;  %v10246_v45 = vmul.f32 %v16656_v6, %v16656_v6 }
 0x734   :  { %v10177_v55 = vadd.f32 %v10176_v33, %v10175_v57  ;;  %v10221_v8 = vadd.f32 %v16658_v34, %v16654_v11  ;;  %v10244_v10 = vmul.f32 %v16658_v34, %v16658_v34  ;;  %v10214_v4 = vrot.slane %v10213_v42, 4 }
 0x735   :  { %v10121_v33 = vadd.f32 %v10120_v0, %v10119_v23  ;;  %v10159_v0 = vadd.f32 %v10158_v24, %v10157_v26 }
 0x736   :  { %v10178_v35 = vrot.slane %v10177_v55, 2  ;;  %v10222_v9 = vadd.f32 %v16650_v60, %v10221_v8  ;;  %v10259_v1 = vadd.f32 %v10244_v10, %v10243_v31  ;;  %v10215_v18 = vadd.f32 %v10214_v4, %v10213_v42 }
 0x738   :  { %v10179_v22 = vadd.f32 %v10178_v35, %v10177_v55  ;;  %v10260_v58 = vadd.f32 %v10259_v1, %v10245_v50  ;;  %v16671_v3 = vpop.f32.mrb[164].mxu0  ;;  %v10223_v28 = vadd.f32 %v16656_v6, %v10222_v9  ;;  %v10216_v29 = vrot.slane %v10215_v18, 2 }
 0x739   :  { %18369 = vst [vmem:[#allocation29_spill] sm:$0xff] %v16671_v3  ;;  %v16674_v51 = vpop.f32.mrb[165].mxu0  ;;  %v10249_v9 = vmul.f32 %v16671_v3, %v16671_v3 }
 0x73a   :  { %v10180_v48 = vrot.slane %v10179_v22, 1  ;;  %v10224_v57 = vadd.f32 %v10223_v28, %v16674_v51  ;;  %v10247_v49 = vmul.f32 %v16674_v51, %v16674_v51  ;;  %v10261_v37 = vadd.f32 %v10260_v58, %v10246_v45  ;;  %v16679_v17 = vpop.f32.mrb[166].mxu0 }
 0x73b   :  { %18370 = vst [vmem:[#allocation31_spill] sm:$0xff] %v16679_v17  ;;  %v10217_v42 = vadd.f32 %v10216_v29, %v10215_v18  ;;  %v16681_v55 = vpop.f32.mrb[167].mxu0 }
 0x73c   :  { %v10181_v31 = vadd.f32 %v10180_v48, %v10179_v22  ;;  %v10262_v8 = vadd.f32 %v10261_v37, %v10247_v49  ;;  %v10225_v10 = vadd.f32 %v10224_v57, %v16681_v55  ;;  %v10248_v4 = vmul.f32 %v16681_v55, %v16681_v55 }
 0x73d   :  { %v10218_v35 = vrot.slane %v10217_v42, 1  ;;  %v10250_v22 = vmul.f32 %v16679_v17, %v16679_v17 }
 0x73e   :  { %v16686_v50 = vadd.f32 %v10181_v31, %v10121_v33  ;;  %v10226_v1 = vadd.f32 %v16671_v3, %v10225_v10  ;;  %v10263_v23 = vadd.f32 %v10262_v8, %v10248_v4 }
 0x73f   :  { %v10219_v18 = vadd.f32 %v10218_v35, %v10217_v42 }
 0x740   :  { %v10264_v45 = vadd.f32 %v10263_v23, %v10249_v9  ;;  %v16693_v58 = vpop.f32.mrb[168].mxu0  ;;  %v10227_v28 = vadd.f32 %v16679_v17, %v10226_v1 }
 0x741   :  { %18371 = vst [vmem:[#allocation34_spill] sm:$0xff] %v16693_v58  ;;  %v16696_v29 = vadd.f32 %v10219_v18, %v10159_v0  ;;  %v16698_v48 = vpop.f32.mrb[169].mxu0  ;;  %v10253_v8 = vmul.f32 %v16693_v58, %v16693_v58 }
 0x742   :  { %18372 = vst [vmem:[#allocation8_spill] sm:$0xff] %v16698_v48  ;;  %v10228_v57 = vadd.f32 %v10227_v28, %v16698_v48  ;;  %v10251_v49 = vmul.f32 %v16698_v48, %v16698_v48  ;;  %v10265_v37 = vadd.f32 %v10264_v45, %v10250_v22  ;;  %v16703_v26 = vpop.f32.mrb[170].mxu0 }
 0x743   :  { %18373 = vst [vmem:[#allocation33_spill] sm:$0xff] %v16703_v26  ;;  %v16705_v33 = vpop.f32.mrb[171].mxu0  ;;  %v10254_v35 = vmul.f32 %v16703_v26, %v16703_v26 }
 0x744   :  { %18374 = vst [vmem:[#allocation35_spill] sm:$0xff] %v16705_v33  ;;  %v10266_v24 = vadd.f32 %v10265_v37, %v10251_v49  ;;  %v10229_v42 = vadd.f32 %v10228_v57, %v16705_v33  ;;  %v10252_v31 = vmul.f32 %v16705_v33, %v16705_v33 }
 0x746   :  { %v10230_v10 = vadd.f32 %v16693_v58, %v10229_v42  ;;  %v10267_v4 = vadd.f32 %v10266_v24, %v10252_v31 }
 0x748   :  { %v10268_v9 = vadd.f32 %v10267_v4, %v10253_v8  ;;  %v16715_v1 = vpop.f32.mrb[172].mxu0  ;;  %v10231_v23 = vadd.f32 %v16703_v26, %v10230_v10 }
 0x749   :  { %18375 = vst [vmem:[#allocation7_spill] sm:$0xff] %v16715_v1  ;;  %v16718_v0 = vpop.f32.mrb[173].mxu0  ;;  %v10257_v42 = vmul.f32 %v16715_v1, %v16715_v1 }
 0x74a   :  { %18376 = vst [vmem:[#allocation12_spill] sm:$0xff] %v16718_v0  ;;  %v10232_v18 = vadd.f32 %v10231_v23, %v16718_v0  ;;  %v10255_v22 = vmul.f32 %v16718_v0, %v16718_v0  ;;  %v10269_v45 = vadd.f32 %v10268_v9, %v10254_v35  ;;  %v16723_v28 = vpop.f32.mrb[174].mxu0 }
 0x74b   :  { %18377 = vst [vmem:[#allocation5_spill] sm:$0xff] %v16723_v28  ;;  %v16725_v57 = vpop.f32.mrb[175].mxu0  ;;  %v10258_v10 = vmul.f32 %v16723_v28, %v16723_v28 }
 0x74c   :  { %18378 = vst [vmem:[#allocation10_spill] sm:$0xff] %v16725_v57  ;;  %v10270_v49 = vadd.f32 %v10269_v45, %v10255_v22  ;;  %v10233_v37 = vadd.f32 %v10232_v18, %v16725_v57  ;;  %v10256_v24 = vmul.f32 %v16725_v57, %v16725_v57 }
 0x74e   :  { %v10234_v31 = vadd.f32 %v16715_v1, %v10233_v37  ;;  %v10271_v8 = vadd.f32 %v10270_v49, %v10256_v24 }
 0x750   :  { %v10235_v4 = vadd.f32 %v16723_v28, %v10234_v31  ;;  %v10272_v35 = vadd.f32 %v10271_v8, %v10257_v42  ;;  %v16736_v9 = vpop.f32.mrb[176].mxu0 }
 0x751   :  { %18379 = vst [vmem:[#allocation11_spill] sm:$0xff] %v16736_v9  ;;  %v16738_v23 = vpop.f32.mrb[177].mxu0  ;;  %v10305_v31 = vmul.f32 %v16736_v9, %v16736_v9 }
 0x752   :  { %18380 = vst [vmem:[#allocation16_spill] sm:$0xff] %v16738_v23  ;;  %v10236_v18 = vrot.slane %v10235_v4, 4  ;;  %v10273_v22 = vadd.f32 %v10272_v35, %v10258_v10  ;;  %v16740_v45 = vpop.f32.mrb[178].mxu0  ;;  %v10303_v57 = vmul.f32 %v16738_v23, %v16738_v23 }
 0x753   :  { %18381 = vst [vmem:[#allocation9_spill] sm:$0xff] %v16740_v45  ;;  %v16744_v0 = vpop.f32.mrb[179].mxu0 }
 0x754   :  { %18382 = vst [vmem:[#allocation14_spill] sm:$0xff] %v16744_v0  ;;  %v10237_v49 = vadd.f32 %v10236_v18, %v10235_v4  ;;  %v10274_v37 = vrot.slane %v10273_v22, 4  ;;  %v10281_v24 = vadd.f32 %v16744_v0, %v16738_v23  ;;  %v10304_v42 = vmul.f32 %v16744_v0, %v16744_v0 }
 0x755   :  { %v10306_v18 = vmul.f32 %v16740_v45, %v16740_v45 }
 0x756   :  { %v10238_v8 = vrot.slane %v10237_v49, 2  ;;  %v10275_v10 = vadd.f32 %v10274_v37, %v10273_v22  ;;  %v10282_v35 = vadd.f32 %v16736_v9, %v10281_v24  ;;  %v10319_v28 = vadd.f32 %v10304_v42, %v10303_v57 }
 0x758   :  { %v10239_v1 = vadd.f32 %v10238_v8, %v10237_v49  ;;  %v10276_v26 = vrot.slane %v10275_v10, 2  ;;  %v10320_v58 = vadd.f32 %v10319_v28, %v10305_v31  ;;  %v16753_v33 = vpop.f32.mrb[180].mxu0  ;;  %v10283_v4 = vadd.f32 %v16740_v45, %v10282_v35 }
 0x759   :  { %18383 = vst [vmem:[#allocation15_spill] sm:$0xff] %v16753_v33  ;;  %v16758_v23 = vpop.f32.mrb[181].mxu0 }
 0x75a   :  { %18384 = vst [vmem:[#allocation3_spill] sm:$0xff] %v16758_v23  ;;  %v10240_v0 = vrot.slane %v10239_v1, 1  ;;  %v10277_v48 = vadd.f32 %v10276_v26, %v10275_v10  ;;  %v10284_v17 = vadd.f32 %v10283_v4, %v16758_v23  ;;  %v10307_v22 = vmul.f32 %v16758_v23, %v16758_v23  ;;  %v16763_v57 = vpop.f32.mrb[182].mxu0 }
 0x75b   :  { %18385 = vst [vmem:[#allocation13_spill] sm:$0xff] %v16763_v57  ;;  %v10321_v49 = vadd.f32 %v10320_v58, %v10306_v18  ;;  %v16765_v28 = vpop.f32.mrb[183].mxu0  ;;  %v10309_v4 = vmul.f32 %v16753_v33, %v16753_v33 }
 0x75c   :  { %18386 = vst [vmem:[#allocation18_spill] sm:$0xff] %v16765_v28  ;;  %v10241_v37 = vadd.f32 %v10240_v0, %v10239_v1  ;;  %v10278_v24 = vrot.slane %v10277_v48, 1  ;;  %v10285_v42 = vadd.f32 %v10284_v17, %v16765_v28  ;;  %v10308_v31 = vmul.f32 %v16765_v28, %v16765_v28 }
 0x75d   :  { %v10322_v8 = vadd.f32 %v10321_v49, %v10307_v22  ;;  %v10310_v17 = vmul.f32 %v16763_v57, %v16763_v57 }
 0x75e   :  { %v10242_v26 = vadd.f32 %v10241_v37, %v16686_v50  ;;  %v10279_v10 = vadd.f32 %v10278_v24, %v10277_v48  ;;  %v10286_v35 = vadd.f32 %v16753_v33, %v10285_v42 }
 0x75f   :  { %v10323_v23 = vadd.f32 %v10322_v8, %v10308_v31 }
 0x760   :  { %v10280_v58 = vadd.f32 %v10279_v10, %v16696_v29  ;;  %v16775_v18 = vpop.f32.mrb[184].mxu0  ;;  %v10287_v1 = vadd.f32 %v16763_v57, %v10286_v35 }
 0x761   :  { %18387 = vst [vmem:[#allocation6_spill] sm:$0xff] %v16775_v18  ;;  %v10324_v0 = vadd.f32 %v10323_v23, %v10309_v4  ;;  %v16780_v22 = vpop.f32.mrb[185].mxu0  ;;  %v10313_v8 = vmul.f32 %v16775_v18, %v16775_v18 }
 0x762   :  { %18388 = vst [vmem:[#allocation4_spill] sm:$0xff] %v16780_v22  ;;  %v10288_v50 = vadd.f32 %v10287_v1, %v16780_v22  ;;  %v10311_v48 = vmul.f32 %v16780_v22, %v16780_v22  ;;  %v16785_v49 = vpop.f32.mrb[186].mxu0 }
 0x763   :  { %18389 = vst [vmem:[#allocation20_spill] sm:$0xff] %v16785_v49  ;;  %v10325_v37 = vadd.f32 %v10324_v0, %v10310_v17  ;;  %v16787_v24 = vpop.f32.mrb[187].mxu0  ;;  %v10314_v1 = vmul.f32 %v16785_v49, %v16785_v49 }
 0x764   :  { %18390 = vst [vmem:[#allocation37_spill] sm:$0xff] %v16787_v24  ;;  %v10289_v29 = vadd.f32 %v10288_v50, %v16787_v24  ;;  %v10312_v42 = vmul.f32 %v16787_v24, %v16787_v24 }
 0x765   :  { %v10326_v31 = vadd.f32 %v10325_v37, %v10311_v48 }
 0x766   :  { %v10290_v23 = vadd.f32 %v16775_v18, %v10289_v29 }
 0x767   :  { %v10327_v10 = vadd.f32 %v10326_v31, %v10312_v42 }
 0x768   :  { %v16795_v35 = vpop.f32.mrb[188].mxu0  ;;  %v10291_v4 = vadd.f32 %v16785_v49, %v10290_v23 }
 0x769   :  { %18391 = vst [vmem:[#allocation39_spill] sm:$0xff] %v16795_v35  ;;  %v10328_v17 = vadd.f32 %v10327_v10, %v10313_v8  ;;  %v16800_v0 = vpop.f32.mrb[189].mxu0  ;;  %v10317_v10 = vmul.f32 %v16795_v35, %v16795_v35 }
 0x76a   :  { %18392 = vst [vmem:[#allocation36_spill] sm:$0xff] %v16800_v0  ;;  %v10292_v50 = vadd.f32 %v10291_v4, %v16800_v0  ;;  %v10315_v48 = vmul.f32 %v16800_v0, %v16800_v0  ;;  %v16805_v37 = vpop.f32.mrb[190].mxu0 }
 0x76b   :  { %18393 = vst [vmem:[#allocation38_spill] sm:$0xff] %v16805_v37  ;;  %v10329_v29 = vadd.f32 %v10328_v17, %v10314_v1  ;;  %v16807_v18 = vpop.f32.mrb[191].mxu0  ;;  %v10318_v0 = vmul.f32 %v16805_v37, %v16805_v37 }
 0x76c   :  { %18394 = vst [vmem:[#allocation19_spill] sm:$0xff] %v16807_v18  ;;  %v10293_v42 = vadd.f32 %v10292_v50, %v16807_v18  ;;  %v10316_v31 = vmul.f32 %v16807_v18, %v16807_v18 }
 0x76d   :  { %v10330_v23 = vadd.f32 %v10329_v29, %v10315_v48 }
 0x76e   :  { %v10294_v8 = vadd.f32 %v16795_v35, %v10293_v42 }
 0x76f   :  { %v10331_v4 = vadd.f32 %v10330_v23, %v10316_v31 }
 0x770   :  { %v10295_v49 = vadd.f32 %v16805_v37, %v10294_v8 }
 0x771   :  { %v10332_v1 = vadd.f32 %v10331_v4, %v10317_v10 }
 0x772   :  { %v10296_v17 = vrot.slane %v10295_v49, 4 }
 0x773   :  { %v10333_v24 = vadd.f32 %v10332_v1, %v10318_v0  ;;  %v18396_v0 = vld [vmem:[#allocation29_spill] sm:$0xff]  ;;  %v18398_v1 = vld [vmem:[#allocation8_spill] sm:$0xff] }
 0x774   :  { %v10297_v22 = vadd.f32 %v10296_v17, %v10295_v49  ;;  %v10346_v49 = vld [vmem:[%s17999_s8] sm:$0x1] }
 0x775   :  { %v10334_v50 = vrot.slane %v10333_v24, 4  ;;  %v18399_v17 = vld [vmem:[#allocation35_spill] sm:$0xff] }
 0x776   :  { %v10298_v57 = vrot.slane %v10297_v22, 2 }
 0x777   :  { %v10335_v33 = vadd.f32 %v10334_v50, %v10333_v24  ;;  %v18400_v50 = vld [vmem:[#allocation34_spill] sm:$0xff] }
 0x778   :  { %v10299_v18 = vadd.f32 %v10298_v57, %v10297_v22 }
 0x779   :  { %v10336_v48 = vrot.slane %v10335_v33, 2 }
 0x77a   :  { %v10300_v29 = vrot.slane %v10299_v18, 1 }
 0x77b   :  { %v10337_v42 = vadd.f32 %v10336_v48, %v10335_v33  ;;  %v16824_v33 = vld [vmem:[%s18000_s9] sm:$0x1]  ;;  %v18401_v48 = vld [vmem:[#allocation33_spill] sm:$0xff] }
 0x77c   :  { %v10301_v28 = vadd.f32 %v10300_v29, %v10299_v18 }
 0x77d   :  { %v10338_v45 = vrot.slane %v10337_v42, 1 }
 0x77e   :  { %v10302_v35 = vadd.f32 %v10301_v28, %v10242_v26  ;;  %v18395_v28 = vld [vmem:[#allocation28_spill] sm:$0xff] }
 0x77f   :  { %v10339_v31 = vadd.f32 %v10338_v45, %v10337_v42  ;;  %v18402_v42 = vld [vmem:[#allocation12_spill] sm:$0xff] }
 0x780   :  { %v10341_v23 = vmul.f32 0.001953125, %v10302_v35 }
 0x781   :  { %v10340_v8 = vadd.f32 %v10339_v31, %v10280_v58 }
 0x782   :  { %v10343_v9 = vmul.f32 %v10341_v23, %v10341_v23 }
 0x783   :  { %v10342_v3 = vmul.f32 0.001953125, %v10340_v8 }
 0x785   :  { %v10344_v37 = vsub.f32 %v10342_v3, %v10343_v9  ;;  %v18417_v3 = vld [vmem:[#allocation15_spill] sm:$0xff] }
 0x787   :  { %v10345_v10 = vmax.f32 %v10344_v37, 0.0  ;;  %v18397_v37 = vld [vmem:[#allocation31_spill] sm:$0xff] }
 0x789   :  { %v10347_v4 = vadd.f32 1e-05, %v10345_v10  ;;  %v18404_v10 = vld [vmem:[#allocation7_spill] sm:$0xff] }
 0x78b   :  { %12910 = vrsqrt.f32 %v10347_v4 }
 0x795   :  { %v12911_v57 = vpop.eup %12910 }
 0x796   :  { %v10349_v22 = vmul.f32 %v12911_v57, %v10346_v49  ;;  %v18405_v49 = vld [vmem:[#allocation5_spill] sm:$0xff] }
 0x798   :  { %v16826_v45 = vmul.f32 %v10349_v22, %v10341_v23  ;;  %v16829_v26 = vrot.slane %v10349_v22, %v18395_v28  ;;  %v18403_v23 = vld [vmem:[#allocation10_spill] sm:$0xff]  ;;  %v18406_v22 = vld [vmem:[#allocation16_spill] sm:$0xff] }
 0x79a   :  { %v16835_v9 = vmul.f32 %v16829_v26, %v16494_v47  ;;  %v16839_v58 = vmul.f32 %v16829_v26, %v16498_v27  ;;  %v16843_v18 = vmul.f32 %v16492_v53, %v16829_v26  ;;  %v16847_v24 = vmul.f32 %v16496_v5, %v16829_v26 }
 0x79b   :  { %v16851_v35 = vmul.f32 %v16829_v26, %v16514_v56  ;;  %v16855_v47 = vmul.f32 %v16829_v26, %v16521_v46  ;;  %v16859_v27 = vmul.f32 %v16511_v2, %v16829_v26  ;;  %v16863_v53 = vmul.f32 %v16519_v52, %v16829_v26 }
 0x79c   :  { %v16867_v5 = vmul.f32 %v16829_v26, %v16534_v30  ;;  %v16871_v56 = vmul.f32 %v16829_v26, %v16541_v20  ;;  %v16875_v46 = vmul.f32 %v16531_v40, %v16829_v26  ;;  %v16879_v2 = vmul.f32 %v16539_v44, %v16829_v26 }
 0x79d   :  { %v16883_v52 = vmul.f32 %v16829_v26, %v16554_v63  ;;  %v16887_v30 = vmul.f32 %v16829_v26, %v16561_v36  ;;  %v16891_v20 = vmul.f32 %v16551_v16, %v16829_v26  ;;  %v16895_v40 = vmul.f32 %v16559_v39, %v16829_v26 }
 0x79e   :  { %v16899_v44 = vmul.f32 %v16829_v26, %v16574_v41  ;;  %v16903_v63 = vmul.f32 %v16829_v26, %v16578_v14  ;;  %v16907_v36 = vmul.f32 %v16572_v7, %v16829_v26  ;;  %v16911_v16 = vmul.f32 %v16576_v59, %v16829_v26 }
 0x79f   :  { %v16915_v39 = vmul.f32 %v16829_v26, %v16594_v43  ;;  %v16919_v41 = vmul.f32 %v16829_v26, %v16601_v61  ;;  %v16923_v14 = vmul.f32 %v16589_v32, %v16829_v26  ;;  %v16927_v7 = vmul.f32 %v16599_v15, %v16829_v26 }
 0x7a0   :  { %v16931_v59 = vmul.f32 %v16829_v26, %v16614_v54  ;;  %v16935_v43 = vmul.f32 %v16829_v26, %v16621_v19  ;;  %v16939_v61 = vmul.f32 %v16609_v62, %v16829_v26  ;;  %v16943_v32 = vmul.f32 %v16619_v12, %v16829_v26 }
 0x7a1   :  { %v16947_v15 = vmul.f32 %v16829_v26, %v16634_v13  ;;  %v16951_v54 = vmul.f32 %v16829_v26, %v16641_v38  ;;  %v16955_v19 = vmul.f32 %v16629_v21, %v16829_v26  ;;  %v16959_v62 = vmul.f32 %v16639_v25, %v16829_v26 }
 0x7a2   :  { %v16963_v12 = vmul.f32 %v16829_v26, %v16654_v11  ;;  %v16967_v13 = vmul.f32 %v16829_v26, %v16658_v34  ;;  %v16971_v38 = vmul.f32 %v16650_v60, %v16829_v26  ;;  %v16975_v21 = vmul.f32 %v16656_v6, %v16829_v26 }
 0x7a3   :  { %v16979_v25 = vmul.f32 %v16829_v26, %v16674_v51  ;;  %v16983_v11 = vmul.f32 %v16829_v26, %v16681_v55  ;;  %v16987_v34 = vmul.f32 %v18396_v0, %v16829_v26  ;;  %v16991_v60 = vmul.f32 %v18397_v37, %v16829_v26  ;;  %v18407_v37 = vld [vmem:[#allocation14_spill] sm:$0xff] }
 0x7a4   :  { %v16995_v6 = vmul.f32 %v16829_v26, %v18398_v1  ;;  %v16999_v51 = vmul.f32 %v16829_v26, %v18399_v17  ;;  %v17003_v55 = vmul.f32 %v18400_v50, %v16829_v26  ;;  %v17007_v29 = vmul.f32 %v18401_v48, %v16829_v26  ;;  %v18409_v17 = vld [vmem:[#allocation11_spill] sm:$0xff]  ;;  %v18411_v48 = vld [vmem:[#allocation9_spill] sm:$0xff] }
 0x7a5   :  { %v17011_v31 = vmul.f32 %v16829_v26, %v18402_v42  ;;  %v17015_v8 = vmul.f32 %v16829_v26, %v18403_v23  ;;  %v17019_v4 = vmul.f32 %v18404_v10, %v16829_v26  ;;  %v17023_v57 = vmul.f32 %v18405_v49, %v16829_v26  ;;  %v18413_v23 = vld [vmem:[#allocation3_spill] sm:$0xff]  ;;  %v18415_v49 = vld [vmem:[#allocation18_spill] sm:$0xff] }
 0x7a6   :  { %v17027_v0 = vmul.f32 %v16829_v26, %v18406_v22  ;;  %v17031_v1 = vmul.f32 %v16829_v26, %v18407_v37  ;;  %v17035_v50 = vmul.f32 %v18409_v17, %v16829_v26  ;;  %v17039_v42 = vmul.f32 %v18411_v48, %v16829_v26 }
 0x7a7   :  { %v17043_v10 = vmul.f32 %v16829_v26, %v18413_v23  ;;  %v17047_v22 = vmul.f32 %v16829_v26, %v18415_v49  ;;  %v17051_v37 = vmul.f32 %v18417_v3, %v16829_v26 }
 0x7a8   :  { %18408 = vst [vmem:[#allocation24_spill] sm:$0xff] %v17031_v1  ;;  %18410 = vst [vmem:[#allocation17_spill] sm:$0xff] %v17035_v50  ;;  %v18419_v1 = vld [vmem:[#allocation13_spill] sm:$0xff]  ;;  %v18421_v50 = vld [vmem:[#allocation4_spill] sm:$0xff] }
 0x7a9   :  { %18412 = vst [vmem:[#allocation22_spill] sm:$0xff] %v17039_v42  ;;  %18414 = vst [vmem:[#allocation23_spill] sm:$0xff] %v17043_v10  ;;  %v17055_v17 = vmul.f32 %v18419_v1, %v16829_v26  ;;  %v17059_v48 = vmul.f32 %v16829_v26, %v18421_v50  ;;  %v18423_v42 = vld [vmem:[#allocation37_spill] sm:$0xff]  ;;  %v18425_v10 = vld [vmem:[#allocation6_spill] sm:$0xff] }
 0x7aa   :  { %18416 = vst [vmem:[#allocation27_spill] sm:$0xff] %v17047_v22  ;;  %18418 = vst [vmem:[#allocation21_spill] sm:$0xff] %v17051_v37  ;;  %v17063_v23 = vmul.f32 %v16829_v26, %v18423_v42  ;;  %v17067_v49 = vmul.f32 %v18425_v10, %v16829_v26  ;;  %v18426_v22 = vld [vmem:[#allocation20_spill] sm:$0xff] }
 0x7ab   :  { %18420 = vst [vmem:[#allocation26_spill] sm:$0xff] %v17055_v17  ;;  %18422 = vst [vmem:[#allocation25_spill] sm:$0xff] %v17059_v48  ;;  %v17071_v3 = vmul.f32 %v18426_v22, %v16829_v26  ;;  %v18428_v37 = vld [vmem:[#allocation36_spill] sm:$0xff]  ;;  %v18429_v17 = vld [vmem:[#allocation19_spill] sm:$0xff]  ;;  %v18432_v22 = vsub.f32 %v16824_v33, %v16826_v45 }
 0x7ac   :  { %18424 = vst [vmem:[#allocation30_spill] sm:$0xff] %v17063_v23  ;;  %v17075_v1 = vmul.f32 %v16829_v26, %v18428_v37  ;;  %v17079_v50 = vmul.f32 %v16829_v26, %v18429_v17  ;;  %v18430_v48 = vld [vmem:[#allocation39_spill] sm:$0xff]  ;;  %v18431_v23 = vld [vmem:[#allocation38_spill] sm:$0xff] }
 0x7ad   :  { %18427 = vst [vmem:[#allocation32_spill] sm:$0xff] %v17071_v3  ;;  %v17083_v42 = vmul.f32 %v18430_v48, %v16829_v26  ;;  %v17087_v10 = vmul.f32 %v18431_v23, %v16829_v26  ;;  %v17093_v3 = vrot.slane %v18432_v22, %v18395_v28 }
 0x7af   :  { %v17097_v37 = vadd.f32 %v17093_v3, %v16835_v9  ;;  %v17101_v17 = vadd.f32 %v17093_v3, %v16839_v58  ;;  %v17105_v48 = vadd.f32 %v17093_v3, %v16843_v18  ;;  %v17109_v26 = vadd.f32 %v17093_v3, %v16847_v24  ;;  %v18450_v23 = vld [vmem:[#allocation17_spill] sm:$0xff] }
 0x7b0   :  { %v17113_v33 = vadd.f32 %v17093_v3, %v16851_v35  ;;  %v17117_v45 = vadd.f32 %v17093_v3, %v16855_v47  ;;  %v17121_v28 = vadd.f32 %v17093_v3, %v16859_v27  ;;  %v17125_v9 = vadd.f32 %v17093_v3, %v16863_v53 }
 0x7b1   :  { %v17129_v58 = vadd.f32 %v17093_v3, %v16867_v5  ;;  %v17133_v18 = vadd.f32 %v17093_v3, %v16871_v56  ;;  %v17137_v24 = vadd.f32 %v17093_v3, %v16875_v46  ;;  %v17141_v35 = vadd.f32 %v17093_v3, %v16879_v2 }
 0x7b2   :  { %v17145_v47 = vadd.f32 %v17093_v3, %v16883_v52  ;;  %v17149_v27 = vadd.f32 %v17093_v3, %v16887_v30  ;;  %v17153_v53 = vadd.f32 %v17093_v3, %v16891_v20  ;;  %v17157_v5 = vadd.f32 %v17093_v3, %v16895_v40 }
 0x7b3   :  { %v17161_v56 = vadd.f32 %v17093_v3, %v16899_v44  ;;  %v17165_v46 = vadd.f32 %v17093_v3, %v16903_v63  ;;  %v17169_v2 = vadd.f32 %v17093_v3, %v16907_v36  ;;  %v17173_v52 = vadd.f32 %v17093_v3, %v16911_v16 }
 0x7b4   :  { %v17177_v30 = vadd.f32 %v17093_v3, %v16915_v39  ;;  %v17181_v20 = vadd.f32 %v17093_v3, %v16919_v41  ;;  %v17185_v40 = vadd.f32 %v17093_v3, %v16923_v14  ;;  %v17189_v44 = vadd.f32 %v17093_v3, %v16927_v7 }
 0x7b5   :  { %v17193_v63 = vadd.f32 %v17093_v3, %v16931_v59  ;;  %v17197_v36 = vadd.f32 %v17093_v3, %v16935_v43  ;;  %v17201_v16 = vadd.f32 %v17093_v3, %v16939_v61  ;;  %v17205_v39 = vadd.f32 %v17093_v3, %v16943_v32 }
 0x7b6   :  { %v17209_v41 = vadd.f32 %v17093_v3, %v16947_v15  ;;  %v17213_v14 = vadd.f32 %v17093_v3, %v16951_v54  ;;  %v17217_v7 = vadd.f32 %v17093_v3, %v16955_v19  ;;  %v17221_v59 = vadd.f32 %v17093_v3, %v16959_v62 }
 0x7b7   :  { %v17225_v43 = vadd.f32 %v17093_v3, %v16963_v12  ;;  %v17229_v61 = vadd.f32 %v17093_v3, %v16967_v13  ;;  %v17233_v32 = vadd.f32 %v17093_v3, %v16971_v38  ;;  %v17237_v15 = vadd.f32 %v17093_v3, %v16975_v21 }
 0x7b8   :  { %v17241_v54 = vadd.f32 %v17093_v3, %v16979_v25  ;;  %v17245_v19 = vadd.f32 %v17093_v3, %v16983_v11  ;;  %v17249_v62 = vadd.f32 %v17093_v3, %v16987_v34  ;;  %v17253_v12 = vadd.f32 %v17093_v3, %v16991_v60 }
 0x7b9   :  { %18433 = vst [vmem:[#allocation28_spill] sm:$0xff] %v17233_v32  ;;  %18434 = vst [vmem:[#allocation29_spill] sm:$0xff] %v17237_v15  ;;  %v17257_v13 = vadd.f32 %v17093_v3, %v16995_v6  ;;  %v17261_v38 = vadd.f32 %v17093_v3, %v16999_v51  ;;  %v17265_v21 = vadd.f32 %v17093_v3, %v17003_v55  ;;  %v10493_v51 = vld [vmem:[%s17992_s0] sm:$0xff]  ;;  %v10494_v55 = vld [vmem:[%s17992_s0 + $0x8] sm:$0xff] }
 0x7ba   :  { %18435 = vst [vmem:[#allocation31_spill] sm:$0xff] %v17241_v54  ;;  %18436 = vst [vmem:[#allocation8_spill] sm:$0xff] %v17245_v19  ;;  %v17269_v25 = vadd.f32 %v17093_v3, %v17007_v29  ;;  %v17273_v11 = vadd.f32 %v17093_v3, %v17011_v31  ;;  %v17277_v34 = vadd.f32 %v17093_v3, %v17015_v8  ;;  %v10495_v29 = vld [vmem:[%s17992_s0 + $0x10] sm:$0xff]  ;;  %v10496_v31 = vld [vmem:[%s17992_s0 + $0x18] sm:$0xff] }
 0x7bb   :  { %18437 = vst [vmem:[#allocation35_spill] sm:$0xff] %v17249_v62  ;;  %18438 = vst [vmem:[#allocation34_spill] sm:$0xff] %v17253_v12  ;;  %v17281_v60 = vadd.f32 %v17093_v3, %v17019_v4  ;;  %v17285_v6 = vadd.f32 %v17093_v3, %v17023_v57  ;;  %v17301_v8 = vadd.f32 %v17093_v3, %v17027_v0  ;;  %v18448_v4 = vld [vmem:[#allocation24_spill] sm:$0xff]  ;;  %v10505_v62 = vld [vmem:[%s17992_s0 + $0x60] sm:$0xff] }
 0x7bc   :  { %18439 = vst [vmem:[#allocation33_spill] sm:$0xff] %v17257_v13  ;;  %18440 = vst [vmem:[#allocation12_spill] sm:$0xff] %v17261_v38  ;;  %v17305_v57 = vadd.f32 %v17093_v3, %v18448_v4  ;;  %v17309_v22 = vadd.f32 %v17093_v3, %v18450_v23  ;;  %v10498_v0 = vld [vmem:[%s17992_s0 + $0x28] sm:$0xff]  ;;  %v10499_v4 = vld [vmem:[%s17992_s0 + $0x30] sm:$0xff]  ;;  %v17430_v19 = vadd.f32 %v10495_v29, %v17105_v48 }
 0x7bd   :  { %18441 = vst [vmem:[#allocation10_spill] sm:$0xff] %v17265_v21  ;;  %18442 = vst [vmem:[#allocation7_spill] sm:$0xff] %v17269_v25  ;;  %v10500_v23 = vld [vmem:[%s17992_s0 + $0x38] sm:$0xff]  ;;  %v10501_v38 = vld [vmem:[%s17992_s0 + $0x40] sm:$0xff]  ;;  %v17433_v54 = vadd.f32 %v10496_v31, %v17109_v26  ;;  %v17451_v26 = vadd.f32 %v10498_v0, %v17117_v45 }
 0x7be   :  { %18443 = vst [vmem:[#allocation5_spill] sm:$0xff] %v17273_v11  ;;  %18444 = vst [vmem:[#allocation16_spill] sm:$0xff] %v17277_v34  ;;  %v10497_v34 = vld [vmem:[%s17992_s0 + $0x20] sm:$0xff]  ;;  %v18460_v25 = vld [vmem:[#allocation26_spill] sm:$0xff] }
 0x7bf   :  { %18445 = vst [vmem:[#allocation14_spill] sm:$0xff] %v17281_v60  ;;  %18446 = vst [vmem:[#allocation11_spill] sm:$0xff] %v17285_v6  ;;  %v18452_v6 = vld [vmem:[#allocation22_spill] sm:$0xff]  ;;  %v17341_v21 = vadd.f32 %v17093_v3, %v18460_v25  ;;  %v18467_v13 = vld [vmem:[#allocation32_spill] sm:$0xff]  ;;  %v17448_v48 = vadd.f32 %v10497_v34, %v17113_v33 }
 0x7c0   :  { %18447 = vst [vmem:[#allocation9_spill] sm:$0xff] %v17301_v8  ;;  %18449 = vst [vmem:[#allocation3_spill] sm:$0xff] %v17305_v57  ;;  %v17313_v60 = vadd.f32 %v17093_v3, %v18452_v6  ;;  %v18458_v8 = vld [vmem:[#allocation21_spill] sm:$0xff]  ;;  %v17369_v12 = vadd.f32 %v17093_v3, %v18467_v13  ;;  %v17385_v13 = vadd.f32 %v17093_v3, %v17075_v1  ;;  %v10510_v1 = vld [vmem:[%s17992_s0 + $0x88] sm:$0xff] }
 0x7c1   :  { %18451 = vst [vmem:[#allocation18_spill] sm:$0xff] %v17309_v22  ;;  %v18454_v22 = vld [vmem:[#allocation23_spill] sm:$0xff]  ;;  %v17337_v11 = vadd.f32 %v17093_v3, %v18458_v8  ;;  %18461 = vst [vmem:[#allocation6_spill] sm:$0xff] %v17341_v21  ;;  %v10504_v8 = vld [vmem:[%s17992_s0 + $0x58] sm:$0xff] }
 0x7c2   :  { %18453 = vst [vmem:[#allocation15_spill] sm:$0xff] %v17313_v60  ;;  %v17329_v6 = vadd.f32 %v17093_v3, %v18454_v22  ;;  %v18456_v60 = vld [vmem:[#allocation27_spill] sm:$0xff]  ;;  %v10502_v22 = vld [vmem:[%s17992_s0 + $0x48] sm:$0xff]  ;;  %v18464_v21 = vld [vmem:[#allocation30_spill] sm:$0xff]  ;;  %v17481_v0 = vadd.f32 %v10504_v8, %v17141_v35 }
 0x7c3   :  { %v17333_v57 = vadd.f32 %v17093_v3, %v18456_v60  ;;  %18459 = vst [vmem:[#allocation37_spill] sm:$0xff] %v17337_v11  ;;  %v10503_v60 = vld [vmem:[%s17992_s0 + $0x50] sm:$0xff]  ;;  %18468 = vst [vmem:[#allocation39_spill] sm:$0xff] %v17369_v12  ;;  %v17389_v12 = vadd.f32 %v17093_v3, %v17079_v50  ;;  %v10517_v15 = vld [vmem:[%s17992_s0 + $0xc0] sm:$0xff] }
 0x7c4   :  { %18455 = vst [vmem:[#allocation13_spill] sm:$0xff] %v17329_v6  ;;  %v18462_v11 = vld [vmem:[#allocation25_spill] sm:$0xff]  ;;  %v17365_v6 = vadd.f32 %v17093_v3, %v17067_v49  ;;  %v10508_v49 = vld [vmem:[%s17992_s0 + $0x78] sm:$0xff]  ;;  %18469 = vst [vmem:[#allocation38_spill] sm:$0xff] %v17385_v13  ;;  %v17427_v13 = vadd.f32 %v10494_v55, %v17101_v17  ;;  %v17457_v55 = vadd.f32 %v10500_v23, %v17125_v9 }
 0x7c5   :  { %18457 = vst [vmem:[#allocation4_spill] sm:$0xff] %v17333_v57  ;;  %v17357_v25 = vadd.f32 %v17093_v3, %v18462_v11  ;;  %v17361_v57 = vadd.f32 %v17093_v3, %v18464_v21  ;;  %v10506_v11 = vld [vmem:[%s17992_s0 + $0x68] sm:$0xff]  ;;  %v10507_v21 = vld [vmem:[%s17992_s0 + $0x70] sm:$0xff]  ;;  %18470 = vst [vmem:[#allocation24_spill] sm:$0xff] %v17389_v12  ;;  %v17424_v12 = vadd.f32 %v10493_v51, %v17097_v37 }
 0x7c6   :  { %18466 = vst [vmem:[#allocation19_spill] sm:$0xff] %v17365_v6  ;;  %v17393_v6 = vadd.f32 %v17093_v3, %v17083_v42  ;;  %v10511_v50 = vld [vmem:[%s17992_s0 + $0x90] sm:$0xff]  ;;  %v10512_v42 = vld [vmem:[%s17992_s0 + $0x98] sm:$0xff]  ;;  %v10518_v32 = vld [vmem:[%s17992_s0 + $0xc8] sm:$0xff]  ;;  %v17454_v51 = vadd.f32 %v10499_v4, %v17121_v28  ;;  %v17472_v28 = vadd.f32 %v10501_v38, %v17129_v58  ;;  %v17475_v9 = vadd.f32 %v10502_v22, %v17133_v18 }
 0x7c7   :  { %18463 = vst [vmem:[#allocation20_spill] sm:$0xff] %v17357_v25  ;;  %18465 = vst [vmem:[#allocation36_spill] sm:$0xff] %v17361_v57  ;;  %v17397_v57 = vadd.f32 %v17093_v3, %v17087_v10  ;;  %v10509_v25 = vld [vmem:[%s17992_s0 + $0x80] sm:$0xff]  ;;  %v10514_v10 = vld [vmem:[%s17992_s0 + $0xa8] sm:$0xff]  ;;  %v17478_v34 = vadd.f32 %v10503_v60, %v17137_v24  ;;  %v17496_v24 = vadd.f32 %v10505_v62, %v17145_v47 }
 0x7c8   :  { %18471 = vst [vmem:[#allocation17_spill] sm:$0xff] %v17393_v6  ;;  %v10513_v3 = vld [vmem:[%s17992_s0 + $0xa0] sm:$0xff]  ;;  %v10516_v6 = vld [vmem:[%s17992_s0 + $0xb8] sm:$0xff]  ;;  %v10519_v37 = vld [vmem:[%s17992_s0 + $0xd0] sm:$0xff]  ;;  %v17499_v35 = vadd.f32 %v10506_v11, %v17149_v27  ;;  %v17502_v38 = vadd.f32 %v10507_v21, %v17153_v53  ;;  %v17505_v22 = vadd.f32 %v10508_v49, %v17157_v5  ;;  %v17520_v53 = vadd.f32 %v10509_v25, %v17161_v56 }
 0x7c9   :  { %18472 = vst [vmem:[#allocation22_spill] sm:$0xff] %v17397_v57  ;;  %v10515_v57 = vld [vmem:[%s17992_s0 + $0xb0] sm:$0xff]  ;;  %v10520_v17 = vld [vmem:[%s17992_s0 + $0xd8] sm:$0xff]  ;;  %v10521_v29 = vld [vmem:[%s17992_s0 + $0xe0] sm:$0xff]  ;;  %v17523_v5 = vadd.f32 %v10510_v1, %v17165_v46  ;;  %v17526_v62 = vadd.f32 %v10511_v50, %v17169_v2  ;;  %v17529_v11 = vadd.f32 %v10512_v42, %v17173_v52  ;;  %v17541_v46 = vadd.f32 %v10513_v3, %v17177_v30 }
 0x7ca   :  { %v10522_v31 = vld [vmem:[%s17992_s0 + $0xe8] sm:$0xff]  ;;  %v10523_v33 = vld [vmem:[%s17992_s0 + $0xf0] sm:$0xff]  ;;  %v10524_v45 = vld [vmem:[%s17992_s0 + $0xf8] sm:$0xff]  ;;  %v17544_v2 = vadd.f32 %v10514_v10, %v17181_v20  ;;  %v17547_v52 = vadd.f32 %v10515_v57, %v17185_v40  ;;  %v17550_v25 = vadd.f32 %v10516_v6, %v17189_v44  ;;  %v17562_v20 = vadd.f32 %v10517_v15, %v17193_v63 }
 0x7cb   :  { %v10525_v4 = vld [vmem:[%s17992_s0 + $0x100] sm:$0xff]  ;;  %v10526_v23 = vld [vmem:[%s17992_s0 + $0x108] sm:$0xff]  ;;  %v10527_v58 = vld [vmem:[%s17992_s0 + $0x110] sm:$0xff]  ;;  %v17565_v40 = vadd.f32 %v10518_v32, %v17197_v36  ;;  %v17568_v44 = vadd.f32 %v10519_v37, %v17201_v16  ;;  %v17571_v57 = vadd.f32 %v10520_v17, %v17205_v39  ;;  %v17583_v36 = vadd.f32 %v10521_v29, %v17209_v41 }
 0x7cc   :  { %v10528_v18 = vld [vmem:[%s17992_s0 + $0x118] sm:$0xff]  ;;  %v10529_v60 = vld [vmem:[%s17992_s0 + $0x120] sm:$0xff]  ;;  %v10530_v8 = vld [vmem:[%s17992_s0 + $0x128] sm:$0xff]  ;;  %v17586_v16 = vadd.f32 %v10522_v31, %v17213_v14  ;;  %v17589_v39 = vadd.f32 %v10523_v33, %v17217_v7  ;;  %v17592_v32 = vadd.f32 %v10524_v45, %v17221_v59  ;;  %v17604_v14 = vadd.f32 %v10525_v4, %v17225_v43 }
 0x7cd   :  { %v10531_v47 = vld [vmem:[%s17992_s0 + $0x130] sm:$0xff]  ;;  %v10532_v27 = vld [vmem:[%s17992_s0 + $0x138] sm:$0xff]  ;;  %v10533_v21 = vld [vmem:[%s17992_s0 + $0x140] sm:$0xff]  ;;  %v17607_v7 = vadd.f32 %v10526_v23, %v17229_v61 }
 0x7ce   :  { %v10534_v49 = vld [vmem:[%s17992_s0 + $0x148] sm:$0xff]  ;;  %v10535_v56 = vld [vmem:[%s17992_s0 + $0x150] sm:$0xff]  ;;  %v10536_v1 = vld [vmem:[%s17992_s0 + $0x158] sm:$0xff] }
 0x7cf   :  { %v10537_v50 = vld [vmem:[%s17992_s0 + $0x160] sm:$0xff]  ;;  %v10538_v30 = vld [vmem:[%s17992_s0 + $0x168] sm:$0xff]  ;;  %v10539_v6 = vld [vmem:[%s17992_s0 + $0x170] sm:$0xff] }
 0x7d0   :  { %v10540_v42 = vld [vmem:[%s17992_s0 + $0x178] sm:$0xff]  ;;  %v10541_v63 = vld [vmem:[%s17992_s0 + $0x180] sm:$0xff]  ;;  %v10542_v15 = vld [vmem:[%s17992_s0 + $0x188] sm:$0xff] }
 0x7d1   :  { %v10543_v3 = vld [vmem:[%s17992_s0 + $0x190] sm:$0xff]  ;;  %v10544_v41 = vld [vmem:[%s17992_s0 + $0x198] sm:$0xff]  ;;  %v18473_v59 = vld [vmem:[#allocation28_spill] sm:$0xff] }
 0x7d2   :  { %v17610_v10 = vadd.f32 %v10527_v58, %v18473_v59  ;;  %v18475_v37 = vld [vmem:[#allocation29_spill] sm:$0xff]  ;;  %v10545_v29 = vld [vmem:[%s17992_s0 + $0x1a0] sm:$0xff]  ;;  %v10546_v31 = vld [vmem:[%s17992_s0 + $0x1a8] sm:$0xff] }
 0x7d3   :  { %v17613_v17 = vadd.f32 %v10528_v18, %v18475_v37  ;;  %v10547_v43 = vld [vmem:[%s17992_s0 + $0x1b0] sm:$0xff]  ;;  %v18477_v61 = vld [vmem:[#allocation31_spill] sm:$0xff]  ;;  %v18479_v45 = vld [vmem:[#allocation8_spill] sm:$0xff] }
 0x7d4   :  { %18474 = vst [vmem:[#allocation23_spill] sm:$0xff] %v17610_v10  ;;  %v17625_v33 = vadd.f32 %v10529_v60, %v18477_v61  ;;  %v17628_v4 = vadd.f32 %v10530_v8, %v18479_v45  ;;  %v18481_v23 = vld [vmem:[#allocation35_spill] sm:$0xff]  ;;  %v18483_v18 = vld [vmem:[#allocation34_spill] sm:$0xff]  ;;  %v10550_v60 = vld [vmem:[%s17992_s0 + $0x1c8] sm:$0xff] }
 0x7d5   :  { %18476 = vst [vmem:[#allocation27_spill] sm:$0xff] %v17613_v17  ;;  %v17631_v58 = vadd.f32 %v10531_v47, %v18481_v23  ;;  %v17634_v59 = vadd.f32 %v10532_v27, %v18483_v18  ;;  %v10548_v37 = vld [vmem:[%s17992_s0 + $0x1b8] sm:$0xff]  ;;  %v10549_v17 = vld [vmem:[%s17992_s0 + $0x1c0] sm:$0xff]  ;;  %v18485_v8 = vld [vmem:[#allocation33_spill] sm:$0xff] }
 0x7d6   :  { %18478 = vst [vmem:[#allocation21_spill] sm:$0xff] %v17625_v33  ;;  %18480 = vst [vmem:[#allocation26_spill] sm:$0xff] %v17628_v4  ;;  %v17646_v61 = vadd.f32 %v10533_v21, %v18485_v8  ;;  %v18487_v47 = vld [vmem:[#allocation12_spill] sm:$0xff]  ;;  %v18489_v27 = vld [vmem:[#allocation10_spill] sm:$0xff] }
 0x7d7   :  { %18482 = vst [vmem:[#allocation25_spill] sm:$0xff] %v17631_v58  ;;  %18484 = vst [vmem:[#allocation30_spill] sm:$0xff] %v17634_v59  ;;  %v17649_v45 = vadd.f32 %v10534_v49, %v18487_v47  ;;  %v17652_v23 = vadd.f32 %v10535_v56, %v18489_v27  ;;  %v18491_v18 = vld [vmem:[#allocation7_spill] sm:$0xff]  ;;  %v10551_v58 = vld [vmem:[%s17992_s0 + $0x1d0] sm:$0xff] }
 0x7d8   :  { %18486 = vst [vmem:[#allocation32_spill] sm:$0xff] %v17646_v61  ;;  %v17655_v59 = vadd.f32 %v10536_v1, %v18491_v18  ;;  %v10552_v4 = vld [vmem:[%s17992_s0 + $0x1d8] sm:$0xff]  ;;  %v10553_v21 = vld [vmem:[%s17992_s0 + $0x1e0] sm:$0xff]  ;;  %v18493_v49 = vld [vmem:[#allocation5_spill] sm:$0xff] }
 0x7d9   :  { %18488 = vst [vmem:[#allocation28_spill] sm:$0xff] %v17649_v45  ;;  %18490 = vst [vmem:[#allocation29_spill] sm:$0xff] %v17652_v23  ;;  %v17667_v8 = vadd.f32 %v10537_v50, %v18493_v49  ;;  %v18495_v56 = vld [vmem:[#allocation16_spill] sm:$0xff]  ;;  %v18497_v1 = vld [vmem:[#allocation14_spill] sm:$0xff] }
 0x7da   :  { %18492 = vst [vmem:[#allocation31_spill] sm:$0xff] %v17655_v59  ;;  %v17670_v47 = vadd.f32 %v10538_v30, %v18495_v56  ;;  %v17673_v27 = vadd.f32 %v10539_v6, %v18497_v1  ;;  %v18499_v18 = vld [vmem:[#allocation11_spill] sm:$0xff]  ;;  %v10554_v23 = vld [vmem:[%s17992_s0 + $0x1e8] sm:$0xff]  ;;  %v10555_v45 = vld [vmem:[%s17992_s0 + $0x1f0] sm:$0xff] }
 0x7db   :  { %18494 = vst [vmem:[#allocation8_spill] sm:$0xff] %v17667_v8  ;;  %v17676_v59 = vadd.f32 %v10540_v42, %v18499_v18  ;;  %v10556_v50 = vld [vmem:[%s17992_s0 + $0x1f8] sm:$0xff]  ;;  %v18501_v30 = vld [vmem:[#allocation9_spill] sm:$0xff]  ;;  %v18502_v6 = vld [vmem:[#allocation3_spill] sm:$0xff] }
 0x7dc   :  { %18496 = vst [vmem:[#allocation35_spill] sm:$0xff] %v17670_v47  ;;  %18498 = vst [vmem:[#allocation34_spill] sm:$0xff] %v17673_v27  ;;  %v17688_v49 = vadd.f32 %v10541_v63, %v18501_v30  ;;  %v17691_v56 = vadd.f32 %v10542_v15, %v18502_v6  ;;  %v18503_v42 = vld [vmem:[#allocation18_spill] sm:$0xff]  ;;  %v18504_v18 = vld [vmem:[#allocation15_spill] sm:$0xff] }
 0x7dd   :  { %18500 = vst [vmem:[#allocation33_spill] sm:$0xff] %v17676_v59  ;;  %v17694_v1 = vadd.f32 %v10543_v3, %v18503_v42  ;;  %v17697_v59 = vadd.f32 %v10544_v41, %v18504_v18  ;;  %v18505_v27 = vld [vmem:[#allocation13_spill] sm:$0xff]  ;;  %v18506_v8 = vld [vmem:[#allocation4_spill] sm:$0xff]  ;;  %v18508_v63 = vld [vmem:[#allocation6_spill] sm:$0xff] }
 0x7de   :  { %v17700_v47 = vadd.f32 %v10545_v29, %v18505_v27  ;;  %v17703_v61 = vadd.f32 %v10546_v31, %v18506_v8  ;;  %v18507_v33 = vld [vmem:[#allocation37_spill] sm:$0xff]  ;;  %v17709_v30 = vadd.f32 %v10548_v37, %v18508_v63  ;;  %v18509_v15 = vld [vmem:[#allocation20_spill] sm:$0xff]  ;;  %v18511_v41 = vld [vmem:[#allocation19_spill] sm:$0xff] }
 0x7df   :  { %v17706_v10 = vadd.f32 %v10547_v43, %v18507_v33  ;;  %v17712_v6 = vadd.f32 %v10549_v17, %v18509_v15  ;;  %v18510_v3 = vld [vmem:[#allocation36_spill] sm:$0xff]  ;;  %v17718_v18 = vadd.f32 %v10551_v58, %v18511_v41  ;;  %v18512_v29 = vld [vmem:[#allocation39_spill] sm:$0xff]  ;;  %v18513_v31 = vld [vmem:[#allocation38_spill] sm:$0xff]  ;;  %v10622_v58 = vmax.f32 %v17427_v13, 0.0 }
 0x7e0   :  { %v17715_v42 = vadd.f32 %v10550_v60, %v18510_v3  ;;  %v17721_v27 = vadd.f32 %v10552_v4, %v18512_v29  ;;  %v17724_v8 = vadd.f32 %v10553_v21, %v18513_v31  ;;  %v18514_v43 = vld [vmem:[#allocation24_spill] sm:$0xff]  ;;  %v18515_v37 = vld [vmem:[#allocation17_spill] sm:$0xff]  ;;  %v18516_v17 = vld [vmem:[#allocation22_spill] sm:$0xff]  ;;  %v10621_v60 = vmax.f32 %v17424_v12, 0.0 }
 0x7e1   :  { %v17727_v33 = vadd.f32 %v10554_v23, %v18514_v43  ;;  %v17730_v63 = vadd.f32 %v10555_v45, %v18515_v37  ;;  %v17733_v15 = vadd.f32 %v10556_v50, %v18516_v17  ;;  %v10623_v3 = vmax.f32 %v17430_v19, 0.0  ;;  %10686 = vst [vmem:[%s18001_s10 + $0x8] sm:$0xff] %v10622_v58  ;;  %v18522_v31 = vld [vmem:[#allocation30_spill] sm:$0xff]  ;;  %v18523_v37 = vld [vmem:[#allocation32_spill] sm:$0xff] }
 0x7e2   :  { %v10624_v4 = vmax.f32 %v17433_v54, 0.0  ;;  %v10625_v21 = vmax.f32 %v17448_v48, 0.0  ;;  %v10626_v41 = vmax.f32 %v17451_v26, 0.0  ;;  %v10627_v23 = vmax.f32 %v17454_v51, 0.0  ;;  %10685 = vst [vmem:[%s18001_s10] sm:$0xff] %v10621_v60  ;;  %v18524_v60 = vld [vmem:[#allocation28_spill] sm:$0xff] }
 0x7e3   :  { %v10628_v45 = vmax.f32 %v17457_v55, 0.0  ;;  %v10629_v29 = vmax.f32 %v17472_v28, 0.0  ;;  %v10630_v50 = vmax.f32 %v17475_v9, 0.0  ;;  %v10631_v12 = vmax.f32 %v17478_v34, 0.0  ;;  %10687 = vst [vmem:[%s18001_s10 + $0x10] sm:$0xff] %v10623_v3  ;;  %v18525_v3 = vld [vmem:[#allocation29_spill] sm:$0xff] }
 0x7e4   :  { %v10632_v13 = vmax.f32 %v17481_v0, 0.0  ;;  %10688 = vst [vmem:[%s18001_s10 + $0x18] sm:$0xff] %v10624_v4  ;;  %v10633_v54 = vmax.f32 %v17496_v24, 0.0  ;;  %v10634_v19 = vmax.f32 %v17499_v35, 0.0  ;;  %v10635_v48 = vmax.f32 %v17502_v38, 0.0  ;;  %10689 = vst [vmem:[%s18001_s10 + $0x20] sm:$0xff] %v10625_v21 }
 0x7e5   :  { %v10636_v26 = vmax.f32 %v17505_v22, 0.0  ;;  %10690 = vst [vmem:[%s18001_s10 + $0x28] sm:$0xff] %v10626_v41  ;;  %10691 = vst [vmem:[%s18001_s10 + $0x30] sm:$0xff] %v10627_v23  ;;  %v10637_v51 = vmax.f32 %v17520_v53, 0.0  ;;  %v10638_v55 = vmax.f32 %v17523_v5, 0.0  ;;  %v10639_v28 = vmax.f32 %v17526_v62, 0.0 }
 0x7e6   :  { %10692 = vst [vmem:[%s18001_s10 + $0x38] sm:$0xff] %v10628_v45  ;;  %v10640_v9 = vmax.f32 %v17529_v11, 0.0  ;;  %10693 = vst [vmem:[%s18001_s10 + $0x40] sm:$0xff] %v10629_v29  ;;  %v10641_v34 = vmax.f32 %v17541_v46, 0.0  ;;  %v10642_v0 = vmax.f32 %v17544_v2, 0.0  ;;  %v10643_v24 = vmax.f32 %v17547_v52, 0.0 }
 0x7e7   :  { %10694 = vst [vmem:[%s18001_s10 + $0x48] sm:$0xff] %v10630_v50  ;;  %10695 = vst [vmem:[%s18001_s10 + $0x50] sm:$0xff] %v10631_v12  ;;  %v10644_v35 = vmax.f32 %v17550_v25, 0.0  ;;  %v10645_v38 = vmax.f32 %v17562_v20, 0.0  ;;  %v10646_v22 = vmax.f32 %v17565_v40, 0.0  ;;  %v10647_v53 = vmax.f32 %v17568_v44, 0.0 }
 0x7e8   :  { %10696 = vst [vmem:[%s18001_s10 + $0x58] sm:$0xff] %v10632_v13  ;;  %10697 = vst [vmem:[%s18001_s10 + $0x60] sm:$0xff] %v10633_v54  ;;  %v10648_v5 = vmax.f32 %v17571_v57, 0.0  ;;  %v10649_v62 = vmax.f32 %v17583_v36, 0.0  ;;  %v10650_v11 = vmax.f32 %v17586_v16, 0.0  ;;  %v10651_v46 = vmax.f32 %v17589_v39, 0.0 }
 0x7e9   :  { %10698 = vst [vmem:[%s18001_s10 + $0x68] sm:$0xff] %v10634_v19  ;;  %10699 = vst [vmem:[%s18001_s10 + $0x70] sm:$0xff] %v10635_v48  ;;  %v10652_v2 = vmax.f32 %v17592_v32, 0.0  ;;  %v10653_v52 = vmax.f32 %v17604_v14, 0.0  ;;  %v10654_v25 = vmax.f32 %v17607_v7, 0.0  ;;  %v18517_v20 = vld [vmem:[#allocation23_spill] sm:$0xff] }
 0x7ea   :  { %10700 = vst [vmem:[%s18001_s10 + $0x78] sm:$0xff] %v10636_v26  ;;  %10701 = vst [vmem:[%s18001_s10 + $0x80] sm:$0xff] %v10637_v51  ;;  %v10655_v40 = vmax.f32 %v18517_v20, 0.0  ;;  %v18518_v44 = vld [vmem:[#allocation27_spill] sm:$0xff]  ;;  %v18519_v36 = vld [vmem:[#allocation21_spill] sm:$0xff]  ;;  %v10660_v43 = vmax.f32 %v18522_v31, 0.0 }
 0x7eb   :  { %10702 = vst [vmem:[%s18001_s10 + $0x88] sm:$0xff] %v10638_v55  ;;  %10703 = vst [vmem:[%s18001_s10 + $0x90] sm:$0xff] %v10639_v28  ;;  %v10656_v57 = vmax.f32 %v18518_v44, 0.0  ;;  %v10657_v16 = vmax.f32 %v18519_v36, 0.0  ;;  %v18520_v39 = vld [vmem:[#allocation26_spill] sm:$0xff]  ;;  %v18521_v14 = vld [vmem:[#allocation25_spill] sm:$0xff] }
 0x7ec   :  { %10704 = vst [vmem:[%s18001_s10 + $0x98] sm:$0xff] %v10640_v9  ;;  %10705 = vst [vmem:[%s18001_s10 + $0xa0] sm:$0xff] %v10641_v34  ;;  %v10658_v32 = vmax.f32 %v18520_v39, 0.0  ;;  %v10659_v7 = vmax.f32 %v18521_v14, 0.0  ;;  %v10661_v17 = vmax.f32 %v18523_v37, 0.0  ;;  %v10662_v58 = vmax.f32 %v18524_v60, 0.0 }
 0x7ed   :  { %10706 = vst [vmem:[%s18001_s10 + $0xa8] sm:$0xff] %v10642_v0  ;;  %10707 = vst [vmem:[%s18001_s10 + $0xb0] sm:$0xff] %v10643_v24  ;;  %v10663_v4 = vmax.f32 %v18525_v3, 0.0  ;;  %v18526_v21 = vld [vmem:[#allocation31_spill] sm:$0xff]  ;;  %v18527_v23 = vld [vmem:[#allocation8_spill] sm:$0xff]  ;;  %v10669_v48 = vmax.f32 %v17688_v49, 0.0 }
 0x7ee   :  { %10708 = vst [vmem:[%s18001_s10 + $0xb8] sm:$0xff] %v10644_v35  ;;  %10709 = vst [vmem:[%s18001_s10 + $0xc0] sm:$0xff] %v10645_v38  ;;  %v10664_v41 = vmax.f32 %v18526_v21, 0.0  ;;  %v10665_v45 = vmax.f32 %v18527_v23, 0.0  ;;  %v18528_v29 = vld [vmem:[#allocation35_spill] sm:$0xff]  ;;  %v18529_v12 = vld [vmem:[#allocation34_spill] sm:$0xff] }
 0x7ef   :  { %10710 = vst [vmem:[%s18001_s10 + $0xc8] sm:$0xff] %v10646_v22  ;;  %10711 = vst [vmem:[%s18001_s10 + $0xd0] sm:$0xff] %v10647_v53  ;;  %v10666_v50 = vmax.f32 %v18528_v29, 0.0  ;;  %v10667_v13 = vmax.f32 %v18529_v12, 0.0  ;;  %v18530_v54 = vld [vmem:[#allocation33_spill] sm:$0xff]  ;;  %v10670_v26 = vmax.f32 %v17691_v56, 0.0 }
 0x7f0   :  { %10712 = vst [vmem:[%s18001_s10 + $0xd8] sm:$0xff] %v10648_v5  ;;  %10713 = vst [vmem:[%s18001_s10 + $0xe0] sm:$0xff] %v10649_v62  ;;  %v10668_v19 = vmax.f32 %v18530_v54, 0.0  ;;  %v10671_v51 = vmax.f32 %v17694_v1, 0.0  ;;  %v10672_v55 = vmax.f32 %v17697_v59, 0.0  ;;  %v10673_v49 = vmax.f32 %v17700_v47, 0.0 }
 0x7f1   :  { %10714 = vst [vmem:[%s18001_s10 + $0xe8] sm:$0xff] %v10650_v11  ;;  %10715 = vst [vmem:[%s18001_s10 + $0xf0] sm:$0xff] %v10651_v46  ;;  %v10674_v59 = vmax.f32 %v17703_v61, 0.0  ;;  %v10675_v56 = vmax.f32 %v17706_v10, 0.0  ;;  %v10676_v1 = vmax.f32 %v17709_v30, 0.0  ;;  %v10677_v10 = vmax.f32 %v17712_v6, 0.0 }
 0x7f2   :  { %10716 = vst [vmem:[%s18001_s10 + $0xf8] sm:$0xff] %v10652_v2  ;;  %10717 = vst [vmem:[%s18001_s10 + $0x100] sm:$0xff] %v10653_v52  ;;  %v10678_v61 = vmax.f32 %v17715_v42, 0.0  ;;  %v10679_v47 = vmax.f32 %v17718_v18, 0.0  ;;  %v10680_v30 = vmax.f32 %v17721_v27, 0.0  ;;  %v10681_v6 = vmax.f32 %v17724_v8, 0.0 }
 0x7f3   :  { %10718 = vst [vmem:[%s18001_s10 + $0x108] sm:$0xff] %v10654_v25  ;;  %10719 = vst [vmem:[%s18001_s10 + $0x110] sm:$0xff] %v10655_v40  ;;  %v10682_v42 = vmax.f32 %v17727_v33, 0.0  ;;  %v10683_v18 = vmax.f32 %v17730_v63, 0.0  ;;  %v10684_v27 = vmax.f32 %v17733_v15, 0.0 }
 0x7f4   :  { %10720 = vst [vmem:[%s18001_s10 + $0x118] sm:$0xff] %v10656_v57  ;;  %10721 = vst [vmem:[%s18001_s10 + $0x120] sm:$0xff] %v10657_v16 }
 0x7f5   :  { %10722 = vst [vmem:[%s18001_s10 + $0x128] sm:$0xff] %v10658_v32  ;;  %10723 = vst [vmem:[%s18001_s10 + $0x130] sm:$0xff] %v10659_v7 }
 0x7f6   :  { %10724 = vst [vmem:[%s18001_s10 + $0x138] sm:$0xff] %v10660_v43  ;;  %10725 = vst [vmem:[%s18001_s10 + $0x140] sm:$0xff] %v10661_v17 }
 0x7f7   :  { %10726 = vst [vmem:[%s18001_s10 + $0x148] sm:$0xff] %v10662_v58  ;;  %10727 = vst [vmem:[%s18001_s10 + $0x150] sm:$0xff] %v10663_v4 }
 0x7f8   :  { %10728 = vst [vmem:[%s18001_s10 + $0x158] sm:$0xff] %v10664_v41  ;;  %10729 = vst [vmem:[%s18001_s10 + $0x160] sm:$0xff] %v10665_v45 }
 0x7f9   :  { %10730 = vst [vmem:[%s18001_s10 + $0x168] sm:$0xff] %v10666_v50  ;;  %10731 = vst [vmem:[%s18001_s10 + $0x170] sm:$0xff] %v10667_v13 }
 0x7fa   :  { %10732 = vst [vmem:[%s18001_s10 + $0x178] sm:$0xff] %v10668_v19  ;;  %10733 = vst [vmem:[%s18001_s10 + $0x180] sm:$0xff] %v10669_v48 }
 0x7fb   :  { %10734 = vst [vmem:[%s18001_s10 + $0x188] sm:$0xff] %v10670_v26  ;;  %10735 = vst [vmem:[%s18001_s10 + $0x190] sm:$0xff] %v10671_v51 }
 0x7fc   :  { %10736 = vst [vmem:[%s18001_s10 + $0x198] sm:$0xff] %v10672_v55  ;;  %10737 = vst [vmem:[%s18001_s10 + $0x1a0] sm:$0xff] %v10673_v49 }
 0x7fd   :  { %10738 = vst [vmem:[%s18001_s10 + $0x1a8] sm:$0xff] %v10674_v59  ;;  %10739 = vst [vmem:[%s18001_s10 + $0x1b0] sm:$0xff] %v10675_v56 }
 0x7fe   :  { %10740 = vst [vmem:[%s18001_s10 + $0x1b8] sm:$0xff] %v10676_v1  ;;  %10741 = vst [vmem:[%s18001_s10 + $0x1c0] sm:$0xff] %v10677_v10 }
 0x7ff   :  { %10742 = vst [vmem:[%s18001_s10 + $0x1c8] sm:$0xff] %v10678_v61  ;;  %10743 = vst [vmem:[%s18001_s10 + $0x1d0] sm:$0xff] %v10679_v47 }
 0x800   :  { %10744 = vst [vmem:[%s18001_s10 + $0x1d8] sm:$0xff] %v10680_v30  ;;  %10745 = vst [vmem:[%s18001_s10 + $0x1e0] sm:$0xff] %v10681_v6 }
 0x801   :  { %10746 = vst [vmem:[%s18001_s10 + $0x1e8] sm:$0xff] %v10682_v42  ;;  %10747 = vst [vmem:[%s18001_s10 + $0x1f0] sm:$0xff] %v10683_v18 }
 0x802   :  { %10748 = vst [vmem:[%s18001_s10 + $0x1f8] sm:$0xff] %v10684_v27 }

</bundles_post_ra>
